<compile_context>
chip_gen: v6e
topology: v6e:2x2x1
jax: 0.10.0
libtpu: 0.0.40
codegen_flags: <defaults>
</compile_context>

<pallas_src>
import jax
import jax.numpy as jnp
from jax.experimental import pallas as pl
from jax.experimental.pallas import tpu as pltpu


def _fused_kernel(s_ref, w21_ref, b21_ref, x_ref, w22_ref, o_ref, xg_ref):
    # s_ref:   [1, C_mid]      f32   (x63 squeezed)
    # w21_ref: [C_out, C_mid]  bf16  (conv2d21 weight, natural layout)
    # b21_ref: [C_out, 1]      f32   (conv2d21 bias, column)
    # x_ref:   [C_out, HW]     f32   (x61 flattened; resident across steps)
    # w22_ref: [TM, C_out]     bf16  (row-tile of W22[co, ci])
    # o_ref:   [TM, HW]        out dtype (bf16 by default)
    # xg_ref:  [C_out, HW]     bf16  scratch: gate-scaled x, built at step 0
    @pl.when(pl.program_id(0) == 0)
    def _():
        s = jnp.maximum(s_ref[...], 0.0)                              # ReLU, [1, C_mid]
        # 1x1 conv (matvec) as multiply + lane reduction -> column [C_out, 1]
        z = jnp.sum(w21_ref[...].astype(jnp.float32) * s, axis=1, keepdims=True)
        z = z + b21_ref[...]
        gate = pl.reciprocal(1.0 + jnp.exp(-z), approx=True)          # sigmoid (EUP)
        # Fold the per-input-channel gate into the resident activation and
        # cast to bf16 exactly once (single rounding, single pass).
        xg_ref[...] = (x_ref[...] * gate).astype(jnp.bfloat16)

    # Dominant matmul: [TM, C_out] x [C_out, HW], f32 accumulation on the MXU.
    o_ref[...] = jnp.dot(w22_ref[...], xg_ref[...],
                         preferred_element_type=jnp.float32).astype(o_ref.dtype)


def _pick_tile_m(c_out, target=256):
    """Largest multiple-of-8 divisor of c_out that is <= target (fallback: c_out)."""
    candidates = [t for t in range(8, min(c_out, target) + 1, 8) if c_out % t == 0]
    return max(candidates) if candidates else c_out


def prepare_params(w21, b21, w22, *, tile_m=None):
    """One-time (amortized) parameter prep: 1x1-conv weights to matmul layout,
    bf16 casts, and W22 pre-split into contiguous, fully aligned row tiles."""
    c_out, c_mid = w21.shape[0], w21.shape[1]
    if tile_m is None:
        tile_m = _pick_tile_m(c_out)
    assert c_out % tile_m == 0 and tile_m % 8 == 0
    grid_m = c_out // tile_m
    w21_p = w21[:, :, 0, 0].astype(jnp.bfloat16)                      # [C_out, C_mid]
    b21_p = b21.reshape(c_out, 1).astype(jnp.float32)                 # [C_out, 1]
    w22_p = w22[:, :, 0, 0].astype(jnp.bfloat16).reshape(grid_m, tile_m, c_out)
    return w21_p, b21_p, w22_p


def fused_se_block(x61, x63, w21_p, b21_p, w22_p, *, out_dtype=jnp.bfloat16):
    """x61: [1, C_out, H, W] f32, x63: [1, C_mid, 1, 1] f32, prepared params."""
    n, c_out, h, w = x61.shape
    assert n == 1
    c_mid = x63.shape[1]
    hw = h * w
    grid_m, tile_m, _ = w22_p.shape

    # Glue: contiguous reshapes only — no casts, no transposes, no copies.
    x_chw = x61.reshape(c_out, hw)                                    # [C_out, HW] f32
    s = x63.reshape(1, c_mid)                                         # [1, C_mid]  f32

    out_tiles = pl.pallas_call(
        _fused_kernel,
        out_shape=jax.ShapeDtypeStruct((grid_m, tile_m, hw), out_dtype),
        grid=(grid_m,),
        in_specs=[
            pl.BlockSpec((1, c_mid), lambda i: (0, 0)),               # s
            pl.BlockSpec((c_out, c_mid), lambda i: (0, 0)),           # w21 (bf16)
            pl.BlockSpec((c_out, 1), lambda i: (0, 0)),               # b21 column
            pl.BlockSpec((c_out, hw), lambda i: (0, 0)),              # x (f32, resident)
            pl.BlockSpec((None, tile_m, c_out), lambda i: (i, 0, 0)), # W22 row tile
        ],
        out_specs=pl.BlockSpec((None, tile_m, hw), lambda i: (i, 0, 0)),
        scratch_shapes=[pltpu.VMEM((c_out, hw), jnp.bfloat16)],       # gate-scaled x
        compiler_params=pltpu.CompilerParams(
            # Step-0 scratch init -> sequential grid; also keeps the resident
            # x from being fetched per-core on v7x megacore.
            dimension_semantics=("arbitrary",),
            vmem_limit_bytes=32 * 1024 * 1024,
        ),
    )(s, w21_p, b21_p, x_chw, w22_p)

    # (grid_m, tile_m, HW) -> NCHW: contiguous reshape, no data movement.
    return out_tiles.reshape(1, c_out, h, w)


def _reference(x61, x63, w21, b21, w22):
    """Pure-JAX f32 reference of the PyTorch forward."""
    s = jnp.maximum(x63[0, :, 0, 0], 0.0)                             # [C_mid]
    z = w21[:, :, 0, 0] @ s + b21                                     # [C_out]
    gate = jax.nn.sigmoid(z)                                          # [C_out]
    xg = x61 * gate[None, :, None, None]                              # [1, C_out, H, W]
    return jnp.einsum("oc,nchw->nohw", w22[:, :, 0, 0], xg)


if __name__ == "__main__":
    C_MID, C_OUT, H, W = 174, 696, 28, 28

    key = jax.random.PRNGKey(0)
    k1, k2, k3, k4, k5 = jax.random.split(key, 5)

    # Inputs (match the module's shapes)
    x61 = jax.random.normal(k1, (1, C_OUT, H, W), dtype=jnp.float32)
    x63 = jax.random.normal(k2, (1, C_MID, 1, 1), dtype=jnp.float32)

    # Deterministic parameters (shapes from the module __init__)
    w21 = jax.random.normal(k3, (C_OUT, C_MID, 1, 1), dtype=jnp.float32) * (1.0 / C_MID ** 0.5)
    b21 = jax.random.normal(k4, (C_OUT,), dtype=jnp.float32) * (1.0 / C_MID ** 0.5)
    w22 = jax.random.normal(k5, (C_OUT, C_OUT, 1, 1), dtype=jnp.float32) * (1.0 / C_OUT ** 0.5)

    params = prepare_params(w21, b21, w22)          # one-time, amortized
    fwd = jax.jit(fused_se_block)

    out = jax.block_until_ready(fwd(x61, x63, *params))
    ref = jax.block_until_ready(_reference(x61, x63, w21, b21, w22))

    assert out.shape == (1, C_OUT, H, W)
    assert out.dtype == jnp.bfloat16
    out_f32 = out.astype(jnp.float32)
    # bf16 matmul operands + bf16 output (f32 accumulation) -> loosened tolerance.
    err = float(jnp.max(jnp.abs(out_f32 - ref)))
    assert jnp.allclose(out_f32, ref, atol=3e-2, rtol=3e-2), err

    print("KERNEL_OK")
</pallas_src>

<mosaic_0001>
module attributes {stable_mosaic.version = 11 : i64} {
  func.func @_fused_kernel(%arg0: i32, %arg1: memref<1x174xf32, #tpu.memory_space<vmem>>, %arg2: memref<696x174xbf16, #tpu.memory_space<vmem>>, %arg3: memref<696x1xf32, #tpu.memory_space<vmem>>, %arg4: memref<696x784xf32, #tpu.memory_space<vmem>>, %arg5: memref<1x232x696xbf16, #tpu.memory_space<vmem>>, %arg6: memref<1x232x784xbf16, #tpu.memory_space<vmem>>, %arg7: memref<696x784xbf16, #tpu.memory_space<vmem>>) attributes {dimension_semantics = [#tpu.dimension_semantics<arbitrary>], iteration_bounds = array<i64: 3>, scalar_prefetch = 0 : i64, scratch_operands = 1 : i64, tpu.core_type = #tpu.core_type<tc>, window_params = [{pipeline_mode = #tpu.pipeline_mode<synchronous>, transform_indices = @transform_0, window_bounds = array<i64: 1, 174>}, {pipeline_mode = #tpu.pipeline_mode<synchronous>, transform_indices = @transform_1, window_bounds = array<i64: 696, 174>}, {pipeline_mode = #tpu.pipeline_mode<synchronous>, transform_indices = @transform_2, window_bounds = array<i64: 696, 1>}, {pipeline_mode = #tpu.pipeline_mode<synchronous>, transform_indices = @transform_3, window_bounds = array<i64: 696, 784>}, {transform_indices = @transform_4, window_bounds = array<i64: 1, 232, 696>}, {transform_indices = @transform_5, window_bounds = array<i64: 1, 232, 784>}]} {
    %c0_i32 = arith.constant 0 : i32
    %0 = arith.cmpi eq, %arg0, %c0_i32 : i32
    %1 = arith.extui %0 : i1 to i32
    %c0_i32_0 = arith.constant 0 : i32
    %2 = arith.cmpi ne, %1, %c0_i32_0 : i32
    scf.if %2 {
      %c0_8 = arith.constant 0 : index
      %c0_9 = arith.constant 0 : index
      %11 = vector.load %arg1[%c0_8, %c0_9] : memref<1x174xf32, #tpu.memory_space<vmem>>, vector<1x174xf32>
      %cst_10 = arith.constant 0.000000e+00 : f32
      %12 = vector.broadcast %cst_10 : f32 to vector<1x174xf32>
      %13 = arith.maximumf %11, %12 : vector<1x174xf32>
      %c0_11 = arith.constant 0 : index
      %c0_12 = arith.constant 0 : index
      %14 = vector.load %arg2[%c0_11, %c0_12] : memref<696x174xbf16, #tpu.memory_space<vmem>>, vector<696x174xbf16>
      %15 = arith.extf %14 : vector<696x174xbf16> to vector<696x174xf32>
      %16 = vector.broadcast %13 : vector<1x174xf32> to vector<696x174xf32>
      %17 = arith.mulf %15, %16 : vector<696x174xf32>
      %cst_13 = arith.constant dense<0.000000e+00> : vector<696xf32>
      %18 = vector.multi_reduction <add>, %17, %cst_13 [1] : vector<696x174xf32> to vector<696xf32>
      %19 = vector.shape_cast %18 : vector<696xf32> to vector<696x1xf32>
      %c0_14 = arith.constant 0 : index
      %c0_15 = arith.constant 0 : index
      %20 = vector.load %arg3[%c0_14, %c0_15] : memref<696x1xf32, #tpu.memory_space<vmem>>, vector<696x1xf32>
      %21 = arith.addf %19, %20 : vector<696x1xf32>
      %cst_16 = arith.constant 0.000000e+00 : f32
      %22 = vector.broadcast %cst_16 : f32 to vector<696x1xf32>
      %23 = arith.subf %22, %21 : vector<696x1xf32>
      %24 = math.exp %23 : vector<696x1xf32>
      %cst_17 = arith.constant 1.000000e+00 : f32
      %25 = vector.broadcast %cst_17 : f32 to vector<696x1xf32>
      %26 = arith.addf %25, %24 : vector<696x1xf32>
      %27 = tpu.reciprocal %26 {approx = true} : vector<696x1xf32> -> vector<696x1xf32>
      %c0_18 = arith.constant 0 : index
      %c0_19 = arith.constant 0 : index
      %28 = vector.load %arg4[%c0_18, %c0_19] : memref<696x784xf32, #tpu.memory_space<vmem>>, vector<696x784xf32>
      %29 = vector.broadcast %27 : vector<696x1xf32> to vector<696x784xf32>
      %30 = arith.mulf %28, %29 : vector<696x784xf32>
      %31 = arith.truncf %30 : vector<696x784xf32> to vector<696x784xbf16>
      %c0_20 = arith.constant 0 : index
      %c0_21 = arith.constant 0 : index
      %32 = vector.load %arg7[%c0_20, %c0_21] : memref<696x784xbf16, #tpu.memory_space<vmem>>, vector<696x784xbf16>
      tpu.vector_store %arg7[%c0_20, %c0_21], %31 {strides = array<i32>} : memref<696x784xbf16, #tpu.memory_space<vmem>>, vector<696x784xbf16>,
    } else {
    }
    %c0 = arith.constant 0 : index
    %c0_1 = arith.constant 0 : index
    %c0_2 = arith.constant 0 : index
    %3 = vector.load %arg5[%c0, %c0_1, %c0_2] : memref<1x232x696xbf16, #tpu.memory_space<vmem>>, vector<1x232x696xbf16>
    %4 = vector.shape_cast %3 : vector<1x232x696xbf16> to vector<232x696xbf16>
    %c0_3 = arith.constant 0 : index
    %c0_4 = arith.constant 0 : index
    %5 = vector.load %arg7[%c0_3, %c0_4] : memref<696x784xbf16, #tpu.memory_space<vmem>>, vector<696x784xbf16>
    %cst = arith.constant dense<0.000000e+00> : vector<232x784xf32>
    %6 = tpu.matmul %4, %5, %cst {dimension_numbers = #tpu.dot_dimension_numbers<[1], [0], [0], [1], [0, 0, 1, 1], [], []>} : vector<232x696xbf16>, vector<696x784xbf16>, vector<232x784xf32> -> vector<232x784xf32>
    %7 = arith.truncf %6 : vector<232x784xf32> to vector<232x784xbf16>
    %c0_5 = arith.constant 0 : index
    %c0_6 = arith.constant 0 : index
    %c0_7 = arith.constant 0 : index
    %8 = vector.load %arg6[%c0_5, %c0_6, %c0_7] : memref<1x232x784xbf16, #tpu.memory_space<vmem>>, vector<1x232x784xbf16>
    %9 = vector.shape_cast %8 : vector<1x232x784xbf16> to vector<232x784xbf16>
    %10 = vector.shape_cast %7 : vector<232x784xbf16> to vector<1x232x784xbf16>
    tpu.vector_store %arg6[%c0_5, %c0_6, %c0_7], %10 {strides = array<i32>} : memref<1x232x784xbf16, #tpu.memory_space<vmem>>, vector<1x232x784xbf16>,
    return
  }
  func.func @transform_0(%arg0: i32) -> (i32, i32) {
    %c0_i32 = arith.constant 0 : i32
    %c0_i32_0 = arith.constant 0 : i32
    %c0_i32_1 = arith.constant 0 : i32
    return %c0_i32, %c0_i32_0 : i32, i32
  }
  func.func @transform_1(%arg0: i32) -> (i32, i32) {
    %c0_i32 = arith.constant 0 : i32
    %c0_i32_0 = arith.constant 0 : i32
    %c0_i32_1 = arith.constant 0 : i32
    return %c0_i32, %c0_i32_0 : i32, i32
  }
  func.func @transform_2(%arg0: i32) -> (i32, i32) {
    %c0_i32 = arith.constant 0 : i32
    %c0_i32_0 = arith.constant 0 : i32
    %c0_i32_1 = arith.constant 0 : i32
    return %c0_i32, %c0_i32_0 : i32, i32
  }
  func.func @transform_3(%arg0: i32) -> (i32, i32) {
    %c0_i32 = arith.constant 0 : i32
    %c0_i32_0 = arith.constant 0 : i32
    %c0_i32_1 = arith.constant 0 : i32
    return %c0_i32, %c0_i32_0 : i32, i32
  }
  func.func @transform_4(%arg0: i32) -> (i32, i32, i32) {
    %c0_i32 = arith.constant 0 : i32
    %c0_i32_0 = arith.constant 0 : i32
    %c0_i32_1 = arith.constant 0 : i32
    return %arg0, %c0_i32, %c0_i32_0 : i32, i32, i32
  }
  func.func @transform_5(%arg0: i32) -> (i32, i32, i32) {
    %c0_i32 = arith.constant 0 : i32
    %c0_i32_0 = arith.constant 0 : i32
    %c0_i32_1 = arith.constant 0 : i32
    return %arg0, %c0_i32, %c0_i32_0 : i32, i32, i32
  }
}

</mosaic_0001>

<bundles_post_ra>
// kernel: fused_se_block.1
= control target key start
LH: loop header
LB: loop body
LE: loop exit
PB: predicated region body
PF: predicated region fallthrough
CT: control target
= control target key end

     0   :  { %s13650_s18 = smov 0   ;;  %s18843_s0 = inlined_call_operand.vmem [shape: f32[1,174], index: 0, kind: input, shape index: {}]   ;;  %s18844_s1 = inlined_call_operand.vmem [shape: bf16[696,174], index: 1, kind: input, shape index: {}]   ;;  %s18845_s2 = inlined_call_operand.vmem [shape: f32[696,1], index: 2, kind: input, shape index: {}]   ;;  %s18846_s3 = inlined_call_operand.vmem [shape: f32[696,784], index: 3, kind: input, shape index: {}]   ;;  %s18847_s4 = inlined_call_operand.vmem [shape: bf16[3,232,696], index: 4, kind: input, shape index: {}]   ;;  %s18848_s5 = inlined_call_operand.vmem [shape: bf16[3,232,784], index: 5, kind: output, shape index: {}]  }
   0x1 LB: > { %s10956_s19 = sadd.s32 4294967295, %s13616_s18   ;;  %p10960_p0 = scmp.ge.s32.totalorder %s13616_s18, 1  ;;  %s13616_s18 = sphi %s13650_s18, %s15_s18  }
   0x2   : > { %p187_p1 = scmp.lt.s32.totalorder %s13616_s18, 4 }
   0x4   : > { %p188_p2 = pnand %p10960_p0, %p187_p1 }
   0x6   : > { %191 = sbr.rel (%p188_p2) target bundleno = 1597 (0x63d), region = 40 }
   0xb   : > { %p215_p3 = scmp.lt.s32.totalorder %s10956_s19, 2  ;;  %p10963_p4 = scmp.ne.s32.totalorder %s10956_s19, 0 }
   0xd   : > { %s216_s20 = scalar_select %p215_p3, %s10956_s19, 2 }
   0xe   : > { %229 = sbr.rel (%p10963_p4) target bundleno = 615 (0x267), region = 44 }
   0xf   : > { %s12567_s21 = smul.u32 696, %s216_s20 }
  0x10   : > { %s12568_s22 = smul.u32 812, %s216_s20 }
  0x11   : > { %s13661_s25 = scalar_lea.vmem %s18847_s4, %s12567_s21 }
  0x12   : > { %s13666_s28 = scalar_lea.vmem %s18848_s5, %s12568_s22 }
  0x13   : > { %v230_v0 = vld [vmem:[%s18843_s0] sm:$0x3]  ;;  %v234_v1 = vld [vmem:[%s18844_s1 + $0x10] sm:$0xff]  ;;  %v494_v2 = vlaneseq  ;;  %v235_v4 = vld [vmem:[%s18844_s1 + $0x18] sm:$0xff]  ;;  %vm678_vm0 = vcmask 375808   ;;  %vm5213_vm1 = vcmask 125952  }
  0x14   : > { %v232_v3 = vld [vmem:[%s18844_s1] sm:$0xff]  ;;  %v231_v5 = vmax.f32 %v230_v0, 0.0  ;;  %v233_v7 = vld [vmem:[%s18844_s1 + $0x8] sm:$0xff]  ;;  %v323_v9 = vunpack.c.l.bf16 %v234_v1  ;;  %v324_v10 = vunpack.c.h.bf16 %v234_v1  ;;  %v325_v16 = vunpack.c.l.bf16 %v235_v4  ;;  %v239_v17 = vld [vmem:[%s18844_s1 + $0x38] sm:$0xff] }
  0x15   : > { %v495_v6 = vshrl.u32 %v494_v2, 7  ;;  %v237_v8 = vld [vmem:[%s18844_s1 + $0x28] sm:$0xff]  ;;  %v319_v11 = vunpack.c.l.bf16 %v232_v3  ;;  %v236_v12 = vld [vmem:[%s18844_s1 + $0x20] sm:$0xff]  ;;  %v320_v15 = vunpack.c.h.bf16 %v232_v3  ;;  %v238_v18 = vld [vmem:[%s18844_s1 + $0x30] sm:$0xff]  ;;  %v326_v19 = vunpack.c.h.bf16 %v235_v4 }
  0x16   : > { %v321_v20 = vunpack.c.l.bf16 %v233_v7  ;;  %v322_v21 = vunpack.c.h.bf16 %v233_v7  ;;  %v329_v22 = vunpack.c.l.bf16 %v237_v8  ;;  %v330_v25 = vunpack.c.h.bf16 %v237_v8  ;;  %v241_v39 = vld [vmem:[%s18844_s1 + $0x48] sm:$0xff]  ;;  %v240_v40 = vld [vmem:[%s18844_s1 + $0x40] sm:$0xff]  ;;  %v243_v57 = vld [vmem:[%s18844_s1 + $0x58] sm:$0xff] }
  0x17   : > { %v496_v13 = vsub.s32 0, %v495_v6  ;;  %v500_v14 = vsub.s32 1, %v495_v6  ;;  %v327_v26 = vunpack.c.l.bf16 %v236_v12  ;;  %v328_v27 = vunpack.c.h.bf16 %v236_v12  ;;  %v242_v63 = vld [vmem:[%s18844_s1 + $0x50] sm:$0xff]  ;;  %v245_v8 = vld [vmem:[%s18844_s1 + $0x68] sm:$0xff] }
  0x18   : > { %v333_v28 = vunpack.c.l.bf16 %v239_v17  ;;  %v334_v29 = vunpack.c.h.bf16 %v239_v17  ;;  %v331_v30 = vunpack.c.l.bf16 %v238_v18  ;;  %v332_v44 = vunpack.c.h.bf16 %v238_v18  ;;  %v247_v18 = vld [vmem:[%s18844_s1 + $0x78] sm:$0xff] }
  0x19   : > { %v13695_v23 = vrot.slane %v231_v5, %v496_v13  ;;  %v13697_v24 = vrot.slane %v231_v5, %v500_v14  ;;  %v338_v51 = vunpack.c.h.bf16 %v241_v39  ;;  %v336_v52 = vunpack.c.h.bf16 %v240_v40  ;;  %v244_v13 = vld [vmem:[%s18844_s1 + $0x60] sm:$0xff] }
  0x1a   : > { %v337_v61 = vunpack.c.l.bf16 %v241_v39  ;;  %v335_v62 = vunpack.c.l.bf16 %v240_v40  ;;  %v342_v3 = vunpack.c.h.bf16 %v243_v57  ;;  %v339_v12 = vunpack.c.l.bf16 %v242_v63 }
  0x1b   : > { %v508_v31 = vmul.f32 %v13695_v23, %v323_v9  ;;  %v509_v32 = vmul.f32 %v13697_v24, %v324_v10  ;;  %v504_v33 = vmul.f32 %v13695_v23, %v319_v11  ;;  %v505_v34 = vmul.f32 %v13697_v24, %v320_v15 }
  0x1c   : > { %v510_v35 = vmul.f32 %v13695_v23, %v325_v16  ;;  %v511_v36 = vmul.f32 %v13697_v24, %v326_v19  ;;  %v506_v37 = vmul.f32 %v13695_v23, %v321_v20  ;;  %v507_v38 = vmul.f32 %v13697_v24, %v322_v21 }
  0x1d   : > { %v687_v41 = vsel %vm678_vm0, %v509_v32, 0.0  ;;  %v679_v42 = vsel %vm678_vm0, %v505_v34, 0.0  ;;  %v515_v43 = vmul.f32 %v13697_v24, %v330_v25  ;;  %v514_v50 = vmul.f32 %v13695_v23, %v329_v22 }
  0x1e   : > { %v688_v45 = vadd.f32 %v687_v41, %v508_v31  ;;  %v680_v46 = vadd.f32 %v679_v42, %v504_v33  ;;  %v691_v47 = vsel %vm678_vm0, %v511_v36, 0.0  ;;  %v683_v48 = vsel %vm678_vm0, %v507_v38, 0.0  ;;  %v249_v38 = vld [vmem:[%s18844_s1 + $0x88] sm:$0xff]  ;;  %v248_v41 = vld [vmem:[%s18844_s1 + $0x80] sm:$0xff] }
  0x1f   : > { %v692_v49 = vadd.f32 %v691_v47, %v510_v35  ;;  %v684_v53 = vadd.f32 %v683_v48, %v506_v37  ;;  %v699_v54 = vsel %vm678_vm0, %v515_v43, 0.0  ;;  %v512_v55 = vmul.f32 %v13695_v23, %v327_v26 }
  0x20   : > { %689 = vadd.xlane.f32.xlu1 %v688_v45  ;;  %681 = vadd.xlane.f32.xlu0 %v680_v46  ;;  %v513_v56 = vmul.f32 %v13697_v24, %v328_v27  ;;  %v519_v58 = vmul.f32 %v13697_v24, %v334_v29  ;;  %v517_v59 = vmul.f32 %v13697_v24, %v332_v44  ;;  %v340_v10 = vunpack.c.h.bf16 %v242_v63  ;;  %v246_v27 = vld [vmem:[%s18844_s1 + $0x70] sm:$0xff] }
  0x21   : > { %v700_v0 = vadd.f32 %v699_v54, %v514_v50  ;;  %v518_v1 = vmul.f32 %v13695_v23, %v333_v28  ;;  %v516_v2 = vmul.f32 %v13695_v23, %v331_v30  ;;  %v523_v6 = vmul.f32 %v13697_v24, %v338_v51 }
  0x22   : > { %v695_v60 = vsel %vm678_vm0, %v513_v56, 0.0  ;;  %v707_v5 = vsel %vm678_vm0, %v519_v58, 0.0  ;;  %v521_v7 = vmul.f32 %v13697_v24, %v336_v52  ;;  %v703_v9 = vsel %vm678_vm0, %v517_v59, 0.0 }
  0x23   : > { %v696_v4 = vadd.f32 %v695_v60, %v512_v55  ;;  %v341_v11 = vunpack.c.l.bf16 %v243_v57  ;;  %v708_v14 = vadd.f32 %v707_v5, %v518_v1  ;;  %v522_v15 = vmul.f32 %v13695_v23, %v337_v61  ;;  %v250_v55 = vld [vmem:[%s18844_s1 + $0x90] sm:$0xff]  ;;  %v252_v5 = vld [vmem:[%s18844_s1 + $0xa0] sm:$0xff] }
  0x24   : > { %693 = vadd.xlane.f32.xlu1 %v692_v49  ;;  %685 = vadd.xlane.f32.xlu0 %v684_v53  ;;  %v520_v16 = vmul.f32 %v13695_v23, %v335_v62  ;;  %v346_v17 = vunpack.c.h.bf16 %v245_v8  ;;  %v704_v19 = vadd.f32 %v703_v9, %v516_v2  ;;  %v715_v20 = vsel %vm678_vm0, %v523_v6, 0.0  ;;  %v251_v53 = vld [vmem:[%s18844_s1 + $0x98] sm:$0xff] }
  0x25   : > { %v711_v21 = vsel %vm678_vm0, %v521_v7, 0.0  ;;  %v527_v22 = vmul.f32 %v13697_v24, %v342_v3  ;;  %v525_v25 = vmul.f32 %v13697_v24, %v340_v10  ;;  %v344_v26 = vunpack.c.h.bf16 %v244_v13 }
  0x26   : > { %v345_v28 = vunpack.c.l.bf16 %v245_v8  ;;  %v350_v29 = vunpack.c.h.bf16 %v247_v18  ;;  %v716_v30 = vadd.f32 %v715_v20, %v522_v15  ;;  %v712_v31 = vadd.f32 %v711_v21, %v520_v16 }
  0x27   : > { %v526_v32 = vmul.f32 %v13695_v23, %v341_v11  ;;  %v531_v33 = vmul.f32 %v13697_v24, %v346_v17  ;;  %v723_v34 = vsel %vm678_vm0, %v527_v22, 0.0  ;;  %v524_v35 = vmul.f32 %v13695_v23, %v339_v12  ;;  %v254_v22 = vld [vmem:[%s18844_s1 + $0xb0] sm:$0xff] }
  0x28   : > { %701 = vadd.xlane.f32.xlu1 %v700_v0  ;;  %697 = vadd.xlane.f32.xlu0 %v696_v4  ;;  %v343_v36 = vunpack.c.l.bf16 %v244_v13  ;;  %v348_v37 = vunpack.c.h.bf16 %v246_v27  ;;  %v719_v39 = vsel %vm678_vm0, %v525_v25, 0.0  ;;  %v529_v40 = vmul.f32 %v13697_v24, %v344_v26  ;;  %v253_v4 = vld [vmem:[%s18844_s1 + $0xa8] sm:$0xff] }
  0x29   : > { %v530_v42 = vmul.f32 %v13695_v23, %v345_v28  ;;  %v349_v43 = vunpack.c.l.bf16 %v247_v18  ;;  %v535_v44 = vmul.f32 %v13697_v24, %v350_v29  ;;  %v724_v45 = vadd.f32 %v723_v34, %v526_v32  ;;  %v255_v18 = vld [vmem:[%s18844_s1 + $0xb8] sm:$0xff]  ;;  %v257_v34 = vld [vmem:[%s18844_s1 + $0xc8] sm:$0xff] }
  0x2a   : > { %v731_v46 = vsel %vm678_vm0, %v531_v33, 0.0  ;;  %v347_v47 = vunpack.c.l.bf16 %v246_v27  ;;  %v354_v48 = vunpack.c.h.bf16 %v249_v38  ;;  %v720_v49 = vadd.f32 %v719_v39, %v524_v35 }
  0x2b   : > { %v528_v50 = vmul.f32 %v13695_v23, %v343_v36  ;;  %v533_v51 = vmul.f32 %v13697_v24, %v348_v37  ;;  %v352_v52 = vunpack.c.h.bf16 %v248_v41  ;;  %v727_v54 = vsel %vm678_vm0, %v529_v40, 0.0  ;;  %v256_v37 = vld [vmem:[%s18844_s1 + $0xc0] sm:$0xff] }
  0x2c   : > { %709 = vadd.xlane.f32.xlu1 %v708_v14  ;;  %705 = vadd.xlane.f32.xlu0 %v704_v19  ;;  %v732_v56 = vadd.f32 %v731_v46, %v530_v42  ;;  %v534_v57 = vmul.f32 %v13695_v23, %v349_v43  ;;  %v739_v58 = vsel %vm678_vm0, %v535_v44, 0.0  ;;  %v353_v59 = vunpack.c.l.bf16 %v249_v38 }
  0x2d   : > { %v532_v60 = vmul.f32 %v13695_v23, %v347_v47  ;;  %v539_v61 = vmul.f32 %v13697_v24, %v354_v48  ;;  %v351_v62 = vunpack.c.l.bf16 %v248_v41  ;;  %v358_v63 = vunpack.c.h.bf16 %v251_v53  ;;  %v259_v48 = vld [vmem:[%s18844_s1 + $0xd8] sm:$0xff] }
  0x2e   : > { %v728_v0 = vadd.f32 %v727_v54, %v528_v50  ;;  %v735_v1 = vsel %vm678_vm0, %v533_v51, 0.0  ;;  %v537_v2 = vmul.f32 %v13697_v24, %v352_v52  ;;  %v356_v3 = vunpack.c.h.bf16 %v250_v55  ;;  %v258_v50 = vld [vmem:[%s18844_s1 + $0xd0] sm:$0xff] }
  0x2f   : > { %v740_v6 = vadd.f32 %v739_v58, %v534_v57  ;;  %v538_v7 = vmul.f32 %v13695_v23, %v353_v59  ;;  %v357_v8 = vunpack.c.l.bf16 %v251_v53  ;;  %v355_v9 = vunpack.c.l.bf16 %v250_v55 }
  0x30   : > { %717 = vadd.xlane.f32.xlu1 %v716_v30  ;;  %713 = vadd.xlane.f32.xlu0 %v712_v31  ;;  %v736_v10 = vadd.f32 %v735_v1, %v532_v60  ;;  %v747_v11 = vsel %vm678_vm0, %v539_v61, 0.0  ;;  %v536_v12 = vmul.f32 %v13695_v23, %v351_v62  ;;  %v543_v13 = vmul.f32 %v13697_v24, %v358_v63  ;;  %v261_v62 = vld [vmem:[%s18844_s1 + $0xe8] sm:$0xff]  ;;  %v260_v63 = vld [vmem:[%s18844_s1 + $0xe0] sm:$0xff] }
  0x31   : > { %v743_v14 = vsel %vm678_vm0, %v537_v2, 0.0  ;;  %v541_v15 = vmul.f32 %v13697_v24, %v356_v3  ;;  %v362_v16 = vunpack.c.h.bf16 %v253_v4  ;;  %v360_v17 = vunpack.c.h.bf16 %v252_v5 }
  0x32   : > { %v748_v19 = vadd.f32 %v747_v11, %v538_v7  ;;  %v542_v20 = vmul.f32 %v13695_v23, %v357_v8  ;;  %v540_v21 = vmul.f32 %v13695_v23, %v355_v9  ;;  %v744_v25 = vadd.f32 %v743_v14, %v536_v12  ;;  %v262_v9 = vld [vmem:[%s18844_s1 + $0xf0] sm:$0xff] }
  0x33   : > { %v755_v26 = vsel %vm678_vm0, %v543_v13, 0.0  ;;  %v361_v27 = vunpack.c.l.bf16 %v253_v4  ;;  %v359_v28 = vunpack.c.l.bf16 %v252_v5  ;;  %v751_v29 = vsel %vm678_vm0, %v541_v15, 0.0  ;;  %v263_v4 = vld [vmem:[%s18844_s1 + $0xf8] sm:$0xff] }
  0x34   : > { %725 = vadd.xlane.f32.xlu1 %v724_v45  ;;  %721 = vadd.xlane.f32.xlu0 %v720_v49  ;;  %v547_v30 = vmul.f32 %v13697_v24, %v362_v16  ;;  %v545_v31 = vmul.f32 %v13697_v24, %v360_v17  ;;  %v366_v32 = vunpack.c.h.bf16 %v255_v18  ;;  %v364_v33 = vunpack.c.h.bf16 %v254_v22 }
  0x35   : > { %v756_v35 = vadd.f32 %v755_v26, %v542_v20  ;;  %v365_v36 = vunpack.c.l.bf16 %v255_v18  ;;  %v752_v38 = vadd.f32 %v751_v29, %v540_v21  ;;  %v546_v39 = vmul.f32 %v13695_v23, %v361_v27  ;;  %v264_v29 = vld [vmem:[%s18844_s1 + $0x100] sm:$0xff] }
  0x36   : > { %v544_v40 = vmul.f32 %v13695_v23, %v359_v28  ;;  %v363_v41 = vunpack.c.l.bf16 %v254_v22  ;;  %v763_v42 = vsel %vm678_vm0, %v547_v30, 0.0  ;;  %v759_v43 = vsel %vm678_vm0, %v545_v31, 0.0  ;;  %v265_v22 = vld [vmem:[%s18844_s1 + $0x108] sm:$0xff] }
  0x37   : > { %v551_v44 = vmul.f32 %v13697_v24, %v366_v32  ;;  %v370_v45 = vunpack.c.h.bf16 %v257_v34  ;;  %v549_v46 = vmul.f32 %v13697_v24, %v364_v33  ;;  %v368_v47 = vunpack.c.h.bf16 %v256_v37 }
  0x38   : > { %733 = vadd.xlane.f32.xlu1 %v732_v56  ;;  %729 = vadd.xlane.f32.xlu0 %v728_v0  ;;  %v550_v49 = vmul.f32 %v13695_v23, %v365_v36  ;;  %v764_v51 = vadd.f32 %v763_v42, %v546_v39  ;;  %v760_v52 = vadd.f32 %v759_v43, %v544_v40  ;;  %v369_v53 = vunpack.c.l.bf16 %v257_v34  ;;  %v267_v40 = vld [vmem:[%s18844_s1 + $0x118] sm:$0xff]  ;;  %v266_v43 = vld [vmem:[%s18844_s1 + $0x110] sm:$0xff] }
  0x39   : > { %v367_v54 = vunpack.c.l.bf16 %v256_v37  ;;  %v771_v55 = vsel %vm678_vm0, %v551_v44, 0.0  ;;  %v548_v56 = vmul.f32 %v13695_v23, %v363_v41  ;;  %v555_v57 = vmul.f32 %v13697_v24, %v370_v45 }
  0x3a   : > { %v374_v58 = vunpack.c.h.bf16 %v259_v48  ;;  %v767_v59 = vsel %vm678_vm0, %v549_v46, 0.0  ;;  %v553_v60 = vmul.f32 %v13697_v24, %v368_v47  ;;  %v372_v61 = vunpack.c.h.bf16 %v258_v50 }
  0x3b   : > { %v772_v0 = vadd.f32 %v771_v55, %v550_v49  ;;  %v554_v1 = vmul.f32 %v13695_v23, %v369_v53  ;;  %v552_v2 = vmul.f32 %v13695_v23, %v367_v54  ;;  %v373_v3 = vunpack.c.l.bf16 %v259_v48 }
  0x3c   : > { %741 = vadd.xlane.f32.xlu1 %v740_v6  ;;  %737 = vadd.xlane.f32.xlu0 %v736_v10  ;;  %v768_v5 = vadd.f32 %v767_v59, %v548_v56  ;;  %v779_v6 = vsel %vm678_vm0, %v555_v57, 0.0  ;;  %v559_v7 = vmul.f32 %v13697_v24, %v374_v58  ;;  %v371_v8 = vunpack.c.l.bf16 %v258_v50  ;;  %v269_v56 = vld [vmem:[%s18844_s1 + $0x128] sm:$0xff]  ;;  %v268_v57 = vld [vmem:[%s18844_s1 + $0x120] sm:$0xff] }
  0x3d   : > { %v775_v10 = vsel %vm678_vm0, %v553_v60, 0.0  ;;  %v557_v11 = vmul.f32 %v13697_v24, %v372_v61  ;;  %v378_v12 = vunpack.c.h.bf16 %v261_v62  ;;  %v376_v13 = vunpack.c.h.bf16 %v260_v63 }
  0x3e   : > { %v382_v14 = vunpack.c.h.bf16 %v263_v4  ;;  %v780_v15 = vadd.f32 %v779_v6, %v554_v1  ;;  %v377_v16 = vunpack.c.l.bf16 %v261_v62  ;;  %v380_v17 = vunpack.c.h.bf16 %v262_v9 }
  0x3f   : > { %v776_v18 = vadd.f32 %v775_v10, %v552_v2  ;;  %v556_v20 = vmul.f32 %v13695_v23, %v371_v8  ;;  %v375_v21 = vunpack.c.l.bf16 %v260_v63  ;;  %v783_v26 = vsel %vm678_vm0, %v557_v11, 0.0  ;;  %v271_v8 = vld [vmem:[%s18844_s1 + $0x138] sm:$0xff] }
  0x40   : > { %749 = vadd.xlane.f32.xlu1 %v748_v19  ;;  %745 = vadd.xlane.f32.xlu0 %v744_v25  ;;  %v558_v19 = vmul.f32 %v13695_v23, %v373_v3  ;;  %v787_v25 = vsel %vm678_vm0, %v559_v7, 0.0  ;;  %v563_v27 = vmul.f32 %v13697_v24, %v378_v12  ;;  %v561_v28 = vmul.f32 %v13697_v24, %v376_v13 }
  0x41   : > { %v381_v30 = vunpack.c.l.bf16 %v263_v4  ;;  %v567_v31 = vmul.f32 %v13697_v24, %v382_v14  ;;  %v379_v32 = vunpack.c.l.bf16 %v262_v9  ;;  %v562_v33 = vmul.f32 %v13695_v23, %v377_v16  ;;  %v270_v9 = vld [vmem:[%s18844_s1 + $0x130] sm:$0xff] }
  0x42   : > { %v565_v34 = vmul.f32 %v13697_v24, %v380_v17  ;;  %v788_v36 = vadd.f32 %v787_v25, %v558_v19  ;;  %v784_v37 = vadd.f32 %v783_v26, %v556_v20  ;;  %v384_v39 = vunpack.c.h.bf16 %v264_v29  ;;  %v273_v20 = vld [vmem:[%s18844_s1 + $0x148] sm:$0xff] }
  0x43   : > { %v795_v41 = vsel %vm678_vm0, %v563_v27, 0.0  ;;  %v791_v42 = vsel %vm678_vm0, %v561_v28, 0.0  ;;  %v566_v44 = vmul.f32 %v13695_v23, %v381_v30  ;;  %v803_v45 = vsel %vm678_vm0, %v567_v31, 0.0  ;;  %v275_v28 = vld [vmem:[%s18844_s1 + $0x158] sm:$0xff] }
  0x44   : > { %757 = vadd.xlane.f32.xlu1 %v756_v35  ;;  %753 = vadd.xlane.f32.xlu0 %v752_v38  ;;  %v386_v35 = vunpack.c.h.bf16 %v265_v22  ;;  %v560_v38 = vmul.f32 %v13695_v23, %v375_v21  ;;  %v564_v46 = vmul.f32 %v13695_v23, %v379_v32  ;;  %v385_v47 = vunpack.c.l.bf16 %v265_v22  ;;  %v272_v21 = vld [vmem:[%s18844_s1 + $0x140] sm:$0xff] }
  0x45   : > { %v799_v48 = vsel %vm678_vm0, %v565_v34, 0.0  ;;  %v383_v50 = vunpack.c.l.bf16 %v264_v29  ;;  %v569_v54 = vmul.f32 %v13697_v24, %v384_v39  ;;  %v388_v55 = vunpack.c.h.bf16 %v266_v43 }
  0x46   : > { %v571_v49 = vmul.f32 %v13697_v24, %v386_v35  ;;  %v792_v53 = vadd.f32 %v791_v42, %v560_v38  ;;  %v804_v58 = vadd.f32 %v803_v45, %v566_v44  ;;  %v800_v59 = vadd.f32 %v799_v48, %v564_v46  ;;  %v277_v46 = vld [vmem:[%s18844_s1 + $0x168] sm:$0xff] }
  0x47   : > { %v570_v60 = vmul.f32 %v13695_v23, %v385_v47  ;;  %v389_v61 = vunpack.c.l.bf16 %v267_v40  ;;  %v568_v63 = vmul.f32 %v13695_v23, %v383_v50  ;;  %v387_v1 = vunpack.c.l.bf16 %v266_v43 }
  0x48   : > { %765 = vadd.xlane.f32.xlu1 %v764_v51  ;;  %761 = vadd.xlane.f32.xlu0 %v760_v52  ;;  %v390_v51 = vunpack.c.h.bf16 %v267_v40  ;;  %v796_v52 = vadd.f32 %v795_v41, %v562_v33  ;;  %v811_v62 = vsel %vm678_vm0, %v571_v49, 0.0  ;;  %v807_v2 = vsel %vm678_vm0, %v569_v54, 0.0  ;;  %v274_v33 = vld [vmem:[%s18844_s1 + $0x150] sm:$0xff] }
  0x49   : > { %v573_v3 = vmul.f32 %v13697_v24, %v388_v55  ;;  %v394_v4 = vunpack.c.h.bf16 %v269_v56  ;;  %v812_v6 = vadd.f32 %v811_v62, %v570_v60  ;;  %v574_v7 = vmul.f32 %v13695_v23, %v389_v61  ;;  %v279_v62 = vld [vmem:[%s18844_s1 + $0x178] sm:$0xff] }
  0x4a   : > { %v808_v10 = vadd.f32 %v807_v2, %v568_v63  ;;  %v572_v12 = vmul.f32 %v13695_v23, %v387_v1  ;;  %v393_v13 = vunpack.c.l.bf16 %v269_v56  ;;  %v391_v16 = vunpack.c.l.bf16 %v268_v57  ;;  %v278_v1 = vld [vmem:[%s18844_s1 + $0x170] sm:$0xff] }
  0x4b   : > { %v815_v14 = vsel %vm678_vm0, %v573_v3, 0.0  ;;  %v396_v19 = vunpack.c.h.bf16 %v270_v9  ;;  %v397_v27 = vunpack.c.l.bf16 %v271_v8  ;;  %v395_v32 = vunpack.c.l.bf16 %v270_v9 }
  0x4c   : > { %773 = vadd.xlane.f32.xlu1 %v772_v0  ;;  %769 = vadd.xlane.f32.xlu0 %v768_v5  ;;  %v575_v0 = vmul.f32 %v13697_v24, %v390_v51  ;;  %v392_v5 = vunpack.c.h.bf16 %v268_v57  ;;  %v816_v25 = vadd.f32 %v815_v14, %v572_v12  ;;  %v578_v26 = vmul.f32 %v13695_v23, %v393_v13  ;;  %v276_v51 = vld [vmem:[%s18844_s1 + $0x160] sm:$0xff]  ;;  %v281_v14 = vld [vmem:[%s18844_s1 + $0x188] sm:$0xff] }
  0x4d   : > { %v576_v30 = vmul.f32 %v13695_v23, %v391_v16  ;;  %v581_v35 = vmul.f32 %v13697_v24, %v396_v19  ;;  %v406_v38 = vunpack.c.h.bf16 %v275_v28  ;;  %v582_v39 = vmul.f32 %v13695_v23, %v397_v27 }
  0x4e   : > { %v819_v11 = vsel %vm678_vm0, %v575_v0, 0.0  ;;  %v577_v17 = vmul.f32 %v13697_v24, %v392_v5  ;;  %v401_v40 = vunpack.c.l.bf16 %v273_v20  ;;  %v404_v41 = vunpack.c.h.bf16 %v274_v33 }
  0x4f   : > { %v820_v22 = vadd.f32 %v819_v11, %v574_v7  ;;  %v580_v44 = vmul.f32 %v13695_v23, %v395_v32  ;;  %v399_v45 = vunpack.c.l.bf16 %v272_v21  ;;  %v831_v48 = vsel %vm678_vm0, %v581_v35, 0.0  ;;  %v283_v32 = vld [vmem:[%s18844_s1 + $0x198] sm:$0xff] }
  0x50   : > { %781 = vadd.xlane.f32.xlu1 %v780_v15  ;;  %777 = vadd.xlane.f32.xlu0 %v776_v18  ;;  %v579_v15 = vmul.f32 %v13697_v24, %v394_v4  ;;  %v398_v18 = vunpack.c.h.bf16 %v271_v8  ;;  %v823_v31 = vsel %vm678_vm0, %v577_v17, 0.0  ;;  %v403_v54 = vunpack.c.l.bf16 %v274_v33  ;;  %v282_v33 = vld [vmem:[%s18844_s1 + $0x190] sm:$0xff] }
  0x51   : > { %v824_v43 = vadd.f32 %v823_v31, %v576_v30  ;;  %v586_v55 = vmul.f32 %v13695_v23, %v401_v40  ;;  %v589_v56 = vmul.f32 %v13697_v24, %v404_v41  ;;  %v410_v57 = vunpack.c.h.bf16 %v277_v46 }
  0x52   : > { %v827_v29 = vsel %vm678_vm0, %v579_v15, 0.0  ;;  %v583_v34 = vmul.f32 %v13697_v24, %v398_v18  ;;  %v584_v60 = vmul.f32 %v13695_v23, %v399_v45  ;;  %v408_v61 = vunpack.c.h.bf16 %v276_v51  ;;  %v280_v15 = vld [vmem:[%s18844_s1 + $0x180] sm:$0xff] }
  0x53   : > { %v828_v42 = vadd.f32 %v827_v29, %v578_v26  ;;  %v588_v4 = vmul.f32 %v13695_v23, %v403_v54  ;;  %v409_v5 = vunpack.c.l.bf16 %v277_v46  ;;  %v595_v7 = vmul.f32 %v13697_v24, %v410_v57  ;;  %v284_v45 = vld [vmem:[%s18844_s1 + $0x1a0] sm:$0xff] }
  0x54   : > { %789 = vadd.xlane.f32.xlu1 %v788_v36  ;;  %785 = vadd.xlane.f32.xlu0 %v784_v37  ;;  %v402_v36 = vunpack.c.h.bf16 %v273_v20  ;;  %v400_v37 = vunpack.c.h.bf16 %v272_v21  ;;  %v835_v47 = vsel %vm678_vm0, %v583_v34, 0.0  ;;  %v407_v8 = vunpack.c.l.bf16 %v276_v51 }
  0x55   : > { %v414_v9 = vunpack.c.h.bf16 %v279_v62  ;;  %v593_v12 = vmul.f32 %v13697_v24, %v408_v61  ;;  %v412_v13 = vunpack.c.h.bf16 %v278_v1  ;;  %v594_v18 = vmul.f32 %v13695_v23, %v409_v5 }
  0x56   : > { %v587_v49 = vmul.f32 %v13697_v24, %v402_v36  ;;  %v585_v50 = vmul.f32 %v13697_v24, %v400_v37  ;;  %v413_v19 = vunpack.c.l.bf16 %v279_v62  ;;  %v859_v20 = vsel %vm678_vm0, %v595_v7, 0.0 }
  0x57   : > { %v592_v21 = vmul.f32 %v13695_v23, %v407_v8  ;;  %v855_v26 = vsel %vm678_vm0, %v593_v12, 0.0  ;;  %v597_v27 = vmul.f32 %v13697_v24, %v412_v13  ;;  %v416_v29 = vunpack.c.h.bf16 %v280_v15 }
  0x58   : > { %797 = vadd.xlane.f32.xlu1 %v796_v52  ;;  %793 = vadd.xlane.f32.xlu0 %v792_v53  ;;  %v405_v52 = vunpack.c.l.bf16 %v275_v28  ;;  %v591_v53 = vmul.f32 %v13697_v24, %v406_v38  ;;  %v843_v63 = vsel %vm678_vm0, %v587_v49, 0.0  ;;  %v839_v0 = vsel %vm678_vm0, %v585_v50, 0.0  ;;  %v287_v50 = vld [vmem:[%s18844_s1 + $0x1b8] sm:$0xff] }
  0x59   : > { %v840_v11 = vadd.f32 %v839_v0, %v584_v60  ;;  %v418_v28 = vunpack.c.h.bf16 %v281_v14  ;;  %v860_v30 = vadd.f32 %v859_v20, %v594_v18  ;;  %v598_v31 = vmul.f32 %v13695_v23, %v413_v19  ;;  %v291_v20 = vld [vmem:[%s18844_s1 + $0x1d8] sm:$0xff] }
  0x5a   : > { %v590_v2 = vmul.f32 %v13695_v23, %v405_v52  ;;  %v851_v3 = vsel %vm678_vm0, %v591_v53, 0.0  ;;  %v856_v34 = vadd.f32 %v855_v26, %v592_v21  ;;  %v417_v37 = vunpack.c.l.bf16 %v281_v14 }
  0x5b   : > { %v863_v38 = vsel %vm678_vm0, %v597_v27, 0.0  ;;  %v415_v40 = vunpack.c.l.bf16 %v280_v15  ;;  %v601_v41 = vmul.f32 %v13697_v24, %v416_v29  ;;  %v421_v49 = vunpack.c.l.bf16 %v283_v32 }
  0x5c   : > { %805 = vadd.xlane.f32.xlu1 %v804_v58  ;;  %801 = vadd.xlane.f32.xlu0 %v800_v59  ;;  %v836_v58 = vadd.f32 %v835_v47, %v582_v39  ;;  %v832_v59 = vadd.f32 %v831_v48, %v580_v44  ;;  %v852_v16 = vadd.f32 %v851_v3, %v590_v2  ;;  %v285_v44 = vld [vmem:[%s18844_s1 + $0x1a8] sm:$0xff]  ;;  %v419_v54 = vunpack.c.l.bf16 %v282_v33 }
  0x5d   : > { %v603_v39 = vmul.f32 %v13697_v24, %v418_v28  ;;  %v602_v48 = vmul.f32 %v13695_v23, %v417_v37  ;;  %v600_v52 = vmul.f32 %v13695_v23, %v415_v40  ;;  %v871_v53 = vsel %vm678_vm0, %v601_v41, 0.0 }
  0x5e   : > { %v430_v60 = vunpack.c.h.bf16 %v287_v50  ;;  %v606_v61 = vmul.f32 %v13695_v23, %v421_v49  ;;  %v425_v62 = vunpack.c.l.bf16 %v285_v44  ;;  %v604_v2 = vmul.f32 %v13695_v23, %v419_v54 }
  0x5f   : > { %v875_v51 = vsel %vm678_vm0, %v603_v39, 0.0  ;;  %v423_v3 = vunpack.c.l.bf16 %v284_v45  ;;  %v292_v39 = vld [vmem:[%s18844_s1 + $0x1e0] sm:$0xff] }
  0x60   : > { %813 = vadd.xlane.f32.xlu1 %v812_v6  ;;  %809 = vadd.xlane.f32.xlu0 %v808_v10  ;;  %v847_v6 = vsel %vm678_vm0, %v589_v56, 0.0  ;;  %v844_v10 = vadd.f32 %v843_v63, %v586_v55  ;;  %v286_v55 = vld [vmem:[%s18844_s1 + $0x1b0] sm:$0xff]  ;;  %v876_v0 = vadd.f32 %v875_v51, %v602_v48  ;;  %v610_v13 = vmul.f32 %v13695_v23, %v425_v62 }
  0x61   : > { %v848_v17 = vadd.f32 %v847_v6, %v588_v4  ;;  %v428_v63 = vunpack.c.h.bf16 %v286_v55  ;;  %v289_v4 = vld [vmem:[%s18844_s1 + $0x1c8] sm:$0xff]  ;;  %v427_v12 = vunpack.c.l.bf16 %v286_v55  ;;  %v608_v18 = vmul.f32 %v13695_v23, %v423_v3 }
  0x62   : > { %v434_v15 = vunpack.c.h.bf16 %v289_v4  ;;  %v433_v29 = vunpack.c.l.bf16 %v289_v4  ;;  %v440_v51 = vunpack.c.h.bf16 %v292_v39 }
  0x63   : > { %v613_v14 = vmul.f32 %v13697_v24, %v428_v63  ;;  %v612_v28 = vmul.f32 %v13695_v23, %v427_v12 }
  0x64   : > { %821 = vadd.xlane.f32.xlu1 %v820_v22  ;;  %817 = vadd.xlane.f32.xlu0 %v816_v25  ;;  %v599_v22 = vmul.f32 %v13697_v24, %v414_v9  ;;  %v411_v25 = vunpack.c.l.bf16 %v278_v1  ;;  %v872_v1 = vadd.f32 %v871_v53, %v600_v52  ;;  %v288_v9 = vld [vmem:[%s18844_s1 + $0x1c0] sm:$0xff]  ;;  %v295_v52 = vld [vmem:[%s18844_s1 + $0x1f8] sm:$0xff]  ;;  %v625_v63 = vmul.f32 %v13697_v24, %v440_v51 }
  0x65   : > { %v432_v19 = vunpack.c.h.bf16 %v288_v9  ;;  %v445_v4 = vunpack.c.l.bf16 %v295_v52 }
  0x66   : > { %v867_v35 = vsel %vm678_vm0, %v599_v22, 0.0  ;;  %v596_v36 = vmul.f32 %v13695_v23, %v411_v25  ;;  %v290_v25 = vld [vmem:[%s18844_s1 + $0x1d0] sm:$0xff]  ;;  %v919_v12 = vsel %vm678_vm0, %v625_v63, 0.0 }
  0x67   : > { %v868_v46 = vadd.f32 %v867_v35, %v598_v31  ;;  %v619_v31 = vmul.f32 %v13697_v24, %v434_v15  ;;  %v436_v37 = vunpack.c.h.bf16 %v290_v25 }
  0x68   : > { %829 = vadd.xlane.f32.xlu1 %v828_v42  ;;  %825 = vadd.xlane.f32.xlu0 %v824_v43  ;;  %v422_v42 = vunpack.c.h.bf16 %v283_v32  ;;  %v420_v43 = vunpack.c.h.bf16 %v282_v33  ;;  %v864_v47 = vadd.f32 %v863_v38, %v596_v36  ;;  %v431_v32 = vunpack.c.l.bf16 %v288_v9  ;;  %v293_v38 = vld [vmem:[%s18844_s1 + $0x1e8] sm:$0xff] }
  0x69   : > { %v438_v33 = vunpack.c.h.bf16 %v291_v20  ;;  %v617_v36 = vmul.f32 %v13697_v24, %v432_v19  ;;  %v621_v49 = vmul.f32 %v13697_v24, %v436_v37  ;;  %v441_v55 = vunpack.c.l.bf16 %v293_v38 }
  0x6a   : > { %v607_v56 = vmul.f32 %v13697_v24, %v422_v42  ;;  %v605_v57 = vmul.f32 %v13697_v24, %v420_v43  ;;  %v618_v42 = vmul.f32 %v13695_v23, %v433_v29  ;;  %v437_v43 = vunpack.c.l.bf16 %v291_v20 }
  0x6b   : > { %v903_v48 = vsel %vm678_vm0, %v617_v36, 0.0  ;;  %v626_v3 = vmul.f32 %v13695_v23, %v441_v55 }
  0x6c   : > { %837 = vadd.xlane.f32.xlu1 %v836_v58  ;;  %833 = vadd.xlane.f32.xlu0 %v832_v59  ;;  %v426_v58 = vunpack.c.h.bf16 %v285_v44  ;;  %v424_v59 = vunpack.c.h.bf16 %v284_v45  ;;  %v883_v5 = vsel %vm678_vm0, %v607_v56, 0.0  ;;  %v879_v6 = vsel %vm678_vm0, %v605_v57, 0.0  ;;  %v294_v56 = vld [vmem:[%s18844_s1 + $0x1f0] sm:$0xff] }
  0x6d   : > { %v907_v44 = vsel %vm678_vm0, %v619_v31, 0.0  ;;  %v616_v45 = vmul.f32 %v13695_v23, %v431_v32  ;;  %v622_v54 = vmul.f32 %v13695_v23, %v437_v43  ;;  %v443_v9 = vunpack.c.l.bf16 %v294_v56 }
  0x6e   : > { %v611_v7 = vmul.f32 %v13697_v24, %v426_v58  ;;  %v609_v8 = vmul.f32 %v13697_v24, %v424_v59  ;;  %v908_v53 = vadd.f32 %v907_v44, %v618_v42  ;;  %v13618_v42 = vmov 0  }
  0x6f   : > { %v904_v57 = vadd.f32 %v903_v48, %v616_v45  ;;  %12579 = vset.pattern.permute.xlu1 %v13618_v42  ;;  %12580 = vset.pattern.permute.xlu0 %v13618_v42 }
  0x70   : > { %845 = vadd.xlane.f32.xlu1 %v844_v10  ;;  %841 = vadd.xlane.f32.xlu0 %v840_v11  ;;  %v429_v10 = vunpack.c.l.bf16 %v287_v50  ;;  %v615_v11 = vmul.f32 %v13697_v24, %v430_v60  ;;  %v891_v21 = vsel %vm678_vm0, %v611_v7, 0.0  ;;  %v887_v22 = vsel %vm678_vm0, %v609_v8, 0.0 }
  0x71   : > { %v888_v35 = vadd.f32 %v887_v22, %v608_v18  ;;  %v442_v50 = vunpack.c.h.bf16 %v293_v38  ;;  %v439_v60 = vunpack.c.l.bf16 %v292_v39  ;;  %v630_v18 = vmul.f32 %v13695_v23, %v445_v4 }
  0x72   : > { %v614_v26 = vmul.f32 %v13695_v23, %v429_v10  ;;  %v899_v27 = vsel %vm678_vm0, %v615_v11, 0.0  ;;  %v299_v10 = vld [vmem:[%s18844_s1 + $0x218] sm:$0xff]  ;;  %v628_v22 = vmul.f32 %v13695_v23, %v443_v9 }
  0x73   : > { %v627_v62 = vmul.f32 %v13697_v24, %v442_v50  ;;  %v624_v8 = vmul.f32 %v13695_v23, %v439_v60  ;;  %v454_v19 = vunpack.c.h.bf16 %v299_v10 }
  0x74   : > { %853 = vadd.xlane.f32.xlu1 %v852_v16  ;;  %849 = vadd.xlane.f32.xlu0 %v848_v17  ;;  %v884_v16 = vadd.f32 %v883_v5, %v606_v61  ;;  %v880_v17 = vadd.f32 %v879_v6, %v604_v2  ;;  %v900_v40 = vadd.f32 %v899_v27, %v614_v26  ;;  %v911_v61 = vsel %vm678_vm0, %v621_v49, 0.0  ;;  %v297_v2 = vld [vmem:[%s18844_s1 + $0x208] sm:$0xff]  ;;  %v296_v5 = vld [vmem:[%s18844_s1 + $0x200] sm:$0xff] }
  0x75   : > { %v923_v11 = vsel %vm678_vm0, %v627_v62, 0.0  ;;  %v301_v26 = vld [vmem:[%s18844_s1 + $0x228] sm:$0xff]  ;;  %v300_v27 = vld [vmem:[%s18844_s1 + $0x220] sm:$0xff] }
  0x76   : > { %v924_v20 = vadd.f32 %v923_v11, %v626_v3  ;;  %v458_v36 = vunpack.c.h.bf16 %v301_v26  ;;  %v456_v37 = vunpack.c.h.bf16 %v300_v27  ;;  %v457_v50 = vunpack.c.l.bf16 %v301_v26  ;;  %v309_v11 = vld [vmem:[%s18844_s1 + $0x268] sm:$0xff] }
  0x77   : > { %v455_v51 = vunpack.c.l.bf16 %v300_v27  ;;  %v474_v26 = vunpack.c.h.bf16 %v309_v11 }
  0x78   : > { %861 = vadd.xlane.f32.xlu1 %v860_v30  ;;  %857 = vadd.xlane.f32.xlu0 %v856_v34  ;;  %v895_v30 = vsel %vm678_vm0, %v613_v14, 0.0  ;;  %v892_v34 = vadd.f32 %v891_v21, %v610_v13  ;;  %v450_v14 = vunpack.c.h.bf16 %v297_v2  ;;  %v920_v21 = vadd.f32 %v919_v12, %v624_v8 }
  0x79   : > { %v896_v41 = vadd.f32 %v895_v30, %v612_v28  ;;  %v447_v30 = vunpack.c.l.bf16 %v296_v5  ;;  %v641_v55 = vmul.f32 %v13697_v24, %v456_v37  ;;  %v642_v3 = vmul.f32 %v13695_v23, %v457_v50  ;;  %v1027_v50 = vld [vmem:[%s18845_s2] sm:$0xff] }
  0x7a   : > { %v635_v29 = vmul.f32 %v13697_v24, %v450_v14  ;;  %v640_v4 = vmul.f32 %v13695_v23, %v455_v51  ;;  %v659_v42 = vmul.f32 %v13697_v24, %v474_v26 }
  0x7b   : > { %v632_v45 = vmul.f32 %v13695_v23, %v447_v30  ;;  %v951_v8 = vsel %vm678_vm0, %v641_v55, 0.0 }
  0x7c   : > { %869 = vadd.xlane.f32.xlu1 %v868_v46  ;;  %865 = vadd.xlane.f32.xlu0 %v864_v47  ;;  %v623_v46 = vmul.f32 %v13697_v24, %v438_v33  ;;  %v435_v47 = vunpack.c.l.bf16 %v290_v25  ;;  %v449_v25 = vunpack.c.l.bf16 %v297_v2  ;;  %v939_v44 = vsel %vm678_vm0, %v635_v29, 0.0 }
  0x7e   : > { %v915_v58 = vsel %vm678_vm0, %v623_v46, 0.0  ;;  %v620_v59 = vmul.f32 %v13695_v23, %v435_v47  ;;  %v634_v39 = vmul.f32 %v13695_v23, %v449_v25  ;;  %v302_v47 = vld [vmem:[%s18844_s1 + $0x230] sm:$0xff] }
  0x7f   : > { %v916_v6 = vadd.f32 %v915_v58, %v622_v54  ;;  %v643_v54 = vmul.f32 %v13697_v24, %v458_v36  ;;  %v460_v60 = vunpack.c.h.bf16 %v302_v47 }
  0x80   : > { %877 = vadd.xlane.f32.xlu1 %v876_v0  ;;  %873 = vadd.xlane.f32.xlu0 %v872_v1  ;;  %v446_v0 = vunpack.c.h.bf16 %v295_v52  ;;  %v444_v1 = vunpack.c.h.bf16 %v294_v56  ;;  %v912_v7 = vadd.f32 %v911_v61, %v620_v59  ;;  %v305_v52 = vld [vmem:[%s18844_s1 + $0x248] sm:$0xff]  ;;  %v940_v58 = vadd.f32 %v939_v44, %v634_v39 }
  0x81   : > { %v465_v14 = vunpack.c.l.bf16 %v305_v52  ;;  %v473_v39 = vunpack.c.l.bf16 %v309_v11 }
  0x82   : > { %v631_v13 = vmul.f32 %v13697_v24, %v446_v0  ;;  %v629_v15 = vmul.f32 %v13697_v24, %v444_v1  ;;  %v466_v0 = vunpack.c.h.bf16 %v305_v52  ;;  %v307_v1 = vld [vmem:[%s18844_s1 + $0x258] sm:$0xff] }
  0x83   : > { %v469_v29 = vunpack.c.l.bf16 %v307_v1 }
  0x84   : > { %885 = vadd.xlane.f32.xlu1 %v884_v16  ;;  %881 = vadd.xlane.f32.xlu0 %v880_v17  ;;  %v448_v16 = vunpack.c.h.bf16 %v296_v5  ;;  %v298_v17 = vld [vmem:[%s18844_s1 + $0x210] sm:$0xff]  ;;  %v931_v28 = vsel %vm678_vm0, %v631_v13, 0.0  ;;  %v927_v32 = vsel %vm678_vm0, %v629_v15, 0.0  ;;  %v645_v13 = vmul.f32 %v13697_v24, %v460_v60 }
  0x85   : > { %v452_v31 = vunpack.c.h.bf16 %v298_v17  ;;  %v932_v38 = vadd.f32 %v931_v28, %v630_v18  ;;  %v928_v43 = vadd.f32 %v927_v32, %v628_v22  ;;  %v470_v15 = vunpack.c.h.bf16 %v307_v1 }
  0x86   : > { %v633_v33 = vmul.f32 %v13697_v24, %v448_v16  ;;  %v308_v16 = vld [vmem:[%s18844_s1 + $0x260] sm:$0xff]  ;;  %v651_v18 = vmul.f32 %v13697_v24, %v466_v0  ;;  %v952_v22 = vadd.f32 %v951_v8, %v640_v4  ;;  %v959_v32 = vsel %vm678_vm0, %v645_v13, 0.0  ;;  %v1028_v8 = vld [vmem:[%s18845_s2 + $0x8] sm:$0xff] }
  0x87   : > { %v637_v46 = vmul.f32 %v13697_v24, %v452_v31  ;;  %v472_v30 = vunpack.c.h.bf16 %v308_v16  ;;  %v311_v31 = vld [vmem:[%s18844_s1 + $0x278] sm:$0xff] }
  0x88   : > { %893 = vadd.xlane.f32.xlu1 %v892_v34  ;;  %889 = vadd.xlane.f32.xlu0 %v888_v35  ;;  %v453_v34 = vunpack.c.l.bf16 %v299_v10  ;;  %v639_v35 = vmul.f32 %v13697_v24, %v454_v19  ;;  %v935_v48 = vsel %vm678_vm0, %v633_v33, 0.0  ;;  %v459_v10 = vunpack.c.l.bf16 %v302_v47 }
  0x89   : > { %v936_v61 = vadd.f32 %v935_v48, %v632_v45  ;;  %v943_v62 = vsel %vm678_vm0, %v637_v46, 0.0  ;;  %v650_v33 = vmul.f32 %v13695_v23, %v465_v14  ;;  %v971_v36 = vsel %vm678_vm0, %v651_v18, 0.0 }
  0x8a   : > { %v638_v49 = vmul.f32 %v13695_v23, %v453_v34  ;;  %v644_v28 = vmul.f32 %v13695_v23, %v459_v10  ;;  %v655_v34 = vmul.f32 %v13697_v24, %v470_v15  ;;  %v478_v44 = vunpack.c.h.bf16 %v311_v31 }
  0x8b   : > { %v654_v47 = vmul.f32 %v13695_v23, %v469_v29  ;;  %v657_v48 = vmul.f32 %v13697_v24, %v472_v30  ;;  %v972_v51 = vadd.f32 %v971_v36, %v650_v33  ;;  %v1032_v30 = vld [vmem:[%s18845_s2 + $0x28] sm:$0xff] }
  0x8c   : > { %901 = vadd.xlane.f32.xlu1 %v900_v40  ;;  %897 = vadd.xlane.f32.xlu0 %v896_v41  ;;  %v451_v40 = vunpack.c.l.bf16 %v298_v17  ;;  %v303_v41 = vld [vmem:[%s18844_s1 + $0x238] sm:$0xff]  ;;  %v960_v46 = vadd.f32 %v959_v32, %v644_v28  ;;  %v979_v52 = vsel %vm678_vm0, %v655_v34, 0.0  ;;  %v663_v0 = vmul.f32 %v13697_v24, %v478_v44 }
  0x8d   : > { %v462_v56 = vunpack.c.h.bf16 %v303_v41  ;;  %v461_v63 = vunpack.c.l.bf16 %v303_v41  ;;  %v980_v4 = vadd.f32 %v979_v52, %v654_v47 }
  0x8e   : > { %v636_v59 = vmul.f32 %v13695_v23, %v451_v40  ;;  %v310_v40 = vld [vmem:[%s18844_s1 + $0x270] sm:$0xff] }
  0x8f   : > { %v647_v9 = vmul.f32 %v13697_v24, %v462_v56  ;;  %v646_v17 = vmul.f32 %v13695_v23, %v461_v63  ;;  %v475_v1 = vunpack.c.l.bf16 %v310_v40 }
  0x90   : > { %909 = vadd.xlane.f32.xlu1 %v908_v53  ;;  %905 = vadd.xlane.f32.xlu0 %v904_v57  ;;  %v947_v53 = vsel %vm678_vm0, %v639_v35, 0.0  ;;  %v304_v57 = vld [vmem:[%s18844_s1 + $0x240] sm:$0xff]  ;;  %v944_v12 = vadd.f32 %v943_v62, %v636_v59  ;;  %v313_v59 = vld [vmem:[%s18844_s1 + $0x288] sm:$0xff]  ;;  %v987_v62 = vsel %vm678_vm0, %v659_v42, 0.0 }
  0x91   : > { %v948_v2 = vadd.f32 %v947_v53, %v638_v49  ;;  %v464_v5 = vunpack.c.h.bf16 %v304_v57  ;;  %v463_v19 = vunpack.c.l.bf16 %v304_v57  ;;  %v963_v27 = vsel %vm678_vm0, %v647_v9, 0.0  ;;  %v1029_v49 = vld [vmem:[%s18845_s2 + $0x10] sm:$0xff] }
  0x92   : > { %v964_v45 = vadd.f32 %v963_v27, %v646_v17  ;;  %v658_v57 = vmul.f32 %v13695_v23, %v473_v39  ;;  %v481_v11 = vunpack.c.l.bf16 %v313_v59  ;;  %v314_v39 = vld [vmem:[%s18844_s1 + $0x290] sm:$0xff] }
  0x93   : > { %v649_v25 = vmul.f32 %v13697_v24, %v464_v5  ;;  %v648_v37 = vmul.f32 %v13695_v23, %v463_v19  ;;  %v983_v5 = vsel %vm678_vm0, %v657_v48, 0.0 }
  0x94   : > { %917 = vadd.xlane.f32.xlu1 %v916_v6  ;;  %913 = vadd.xlane.f32.xlu0 %v912_v7  ;;  %v306_v6 = vld [vmem:[%s18844_s1 + $0x250] sm:$0xff]  ;;  %v955_v7 = vsel %vm678_vm0, %v643_v54, 0.0  ;;  %v476_v54 = vunpack.c.h.bf16 %v310_v40  ;;  %v14169_v15 = vadd.f32 %v987_v62, %v658_v57  ;;  %v666_v33 = vmul.f32 %v13695_v23, %v481_v11 }
  0x95   : > { %v467_v35 = vunpack.c.l.bf16 %v306_v6  ;;  %v967_v41 = vsel %vm678_vm0, %v649_v25, 0.0  ;;  %v315_v25 = vld [vmem:[%s18844_s1 + $0x298] sm:$0xff] }
  0x96   : > { %v968_v55 = vadd.f32 %v967_v41, %v648_v37  ;;  %v661_v10 = vmul.f32 %v13697_v24, %v476_v54  ;;  %v486_v44 = vunpack.c.h.bf16 %v315_v25  ;;  %v484_v54 = vunpack.c.h.bf16 %v314_v39 }
  0x97   : > { %v652_v53 = vmul.f32 %v13695_v23, %v467_v35 }
  0x98   : > { %925 = vadd.xlane.f32.xlu1 %v924_v20  ;;  %921 = vadd.xlane.f32.xlu0 %v920_v21  ;;  %v468_v20 = vunpack.c.h.bf16 %v306_v6  ;;  %v956_v21 = vadd.f32 %v955_v7, %v642_v3  ;;  %v312_v6 = vld [vmem:[%s18844_s1 + $0x280] sm:$0xff]  ;;  %v1030_v7 = vld [vmem:[%s18845_s2 + $0x18] sm:$0xff]  ;;  %v991_v32 = vsel %vm678_vm0, %v661_v10, 0.0  ;;  %v671_v62 = vmul.f32 %v13697_v24, %v486_v44 }
  0x99   : > { %v479_v35 = vunpack.c.l.bf16 %v312_v6 }
  0x9c   : > { %933 = vadd.xlane.f32.xlu1 %v932_v38  ;;  %929 = vadd.xlane.f32.xlu0 %v928_v43  ;;  %v653_v38 = vmul.f32 %v13697_v24, %v468_v20  ;;  %v471_v43 = vunpack.c.l.bf16 %v308_v16  ;;  %v995_v20 = vsel %vm678_vm0, %v663_v0, 0.0 }
  0x9e   : > { %v975_v56 = vsel %vm678_vm0, %v653_v38, 0.0  ;;  %v656_v63 = vmul.f32 %v13695_v23, %v471_v43  ;;  %v485_v38 = vunpack.c.l.bf16 %v315_v25 }
  0x9f   : > { %v976_v9 = vadd.f32 %v975_v56, %v652_v53  ;;  %v664_v53 = vmul.f32 %v13695_v23, %v479_v35 }
  0xa0   : > { %941 = vadd.xlane.f32.xlu1 %v940_v58  ;;  %937 = vadd.xlane.f32.xlu0 %v936_v61  ;;  %v477_v58 = vunpack.c.l.bf16 %v311_v31  ;;  %v14172_v19 = vadd.f32 %v983_v5, %v656_v63  ;;  %v1031_v31 = vld [vmem:[%s18845_s2 + $0x20] sm:$0xff]  ;;  %v670_v57 = vmul.f32 %v13695_v23, %v485_v38  ;;  %v483_v63 = vunpack.c.l.bf16 %v314_v39  ;;  %v1036_v5 = vld [vmem:[%s18845_s2 + $0x48] sm:$0xff] }
  0xa2   : > { %v662_v16 = vmul.f32 %v13695_v23, %v477_v58  ;;  %v317_v58 = vld [vmem:[%s18844_s1 + $0x2a8] sm:$0xff] }
  0xa3   : > { %v490_v10 = vunpack.c.h.bf16 %v317_v58 }
  0xa4   : > { %949 = vadd.xlane.f32.xlu1 %v948_v2  ;;  %945 = vadd.xlane.f32.xlu0 %v944_v12  ;;  %v482_v12 = vunpack.c.h.bf16 %v313_v59  ;;  %v996_v42 = vadd.f32 %v995_v20, %v662_v16 }
  0xa6   : > { %v667_v34 = vmul.f32 %v13697_v24, %v482_v12 }
  0xa8   : > { %957 = vadd.xlane.f32.xlu1 %v956_v21  ;;  %953 = vadd.xlane.f32.xlu0 %v952_v22  ;;  %v660_v21 = vmul.f32 %v13695_v23, %v475_v1  ;;  %v480_v22 = vunpack.c.h.bf16 %v312_v6  ;;  %v1003_v52 = vsel %vm678_vm0, %v667_v34, 0.0  ;;  %v1035_v6 = vld [vmem:[%s18845_s2 + $0x40] sm:$0xff] }
  0xa9   : > { %v690_v60 = vpop.xlane.xlu1 %689  ;;  %v682_v61 = vpop.xlane.xlu0 %681 }
  0xaa   : > { %v1116_v2 = vadd.f32 %v1029_v49, %v690_v60  ;;  %v1114_v3 = vadd.f32 %v1027_v50, %v682_v61  ;;  %v665_v43 = vmul.f32 %v13697_v24, %v480_v22  ;;  %v1034_v49 = vld [vmem:[%s18845_s2 + $0x38] sm:$0xff]  ;;  %v1033_v50 = vld [vmem:[%s18845_s2 + $0x30] sm:$0xff] }
  0xac   : > { %v1203_v13 = vsub.f32 0.0, %v1116_v2  ;;  %965 = vadd.xlane.f32.xlu1 %v964_v45  ;;  %961 = vadd.xlane.f32.xlu0 %v960_v46  ;;  %v1201_v14 = vsub.f32 0.0, %v1114_v3  ;;  %v999_v61 = vsel %vm678_vm0, %v665_v43, 0.0 }
  0xad   : > { %v694_v17 = vpop.xlane.xlu1 %693  ;;  %v686_v18 = vpop.xlane.xlu0 %685 }
  0xae   : > { %v1292_v26 = vmul.f32 1.442695, %v1203_v13  ;;  %v1117_v27 = vadd.f32 %v1030_v7, %v694_v17  ;;  %v1288_v28 = vmul.f32 1.442695, %v1201_v14  ;;  %v1115_v29 = vadd.f32 %v1028_v8, %v686_v18 }
  0xaf   : > { %v1004_v7 = vadd.f32 %v1003_v52, %v666_v33  ;;  %v669_v8 = vmul.f32 %v13697_v24, %v484_v54  ;;  %v1000_v13 = vadd.f32 %v999_v61, %v664_v53  ;;  %v1011_v17 = vsel %vm678_vm0, %v671_v62, 0.0  ;;  %v1037_v33 = vld [vmem:[%s18845_s2 + $0x50] sm:$0xff]  ;;  %v1039_v52 = vld [vmem:[%s18845_s2 + $0x60] sm:$0xff] }
  0xb0   : > { %12581 = vpow2.f32 %v1292_v26  ;;  %v1204_v36 = vsub.f32 0.0, %v1117_v27  ;;  %973 = vadd.xlane.f32.xlu1 %v972_v51  ;;  %969 = vadd.xlane.f32.xlu0 %v968_v55  ;;  %v1202_v37 = vsub.f32 0.0, %v1115_v29  ;;  %v992_v51 = vadd.f32 %v991_v32, %v660_v21  ;;  %v318_v21 = vld [vmem:[%s18844_s1 + $0x2b0] sm:$0xff] }
  0xb1   : > { %12583 = vpow2.f32 %v1288_v28  ;;  %v702_v40 = vpop.xlane.xlu1 %701  ;;  %v698_v41 = vpop.xlane.xlu0 %697  ;;  %v668_v18 = vmul.f32 %v13695_v23, %v483_v63  ;;  %v1007_v27 = vsel %vm678_vm0, %v669_v8, 0.0  ;;  %v675_v29 = vmul.f32 %v13697_v24, %v490_v10 }
  0xb2   : > { %v1294_v45 = vmul.f32 1.442695, %v1204_v36  ;;  %v1119_v46 = vadd.f32 %v1032_v30, %v702_v40  ;;  %v1290_v47 = vmul.f32 1.442695, %v1202_v37  ;;  %v1118_v48 = vadd.f32 %v1031_v31, %v698_v41 }
  0xb3   : > { %v491_v34 = vunpack.c.l.bf16 %v318_v21  ;;  %v1012_v38 = vadd.f32 %v1011_v17, %v670_v57  ;;  %v492_v40 = vunpack.c.h.bf16 %v318_v21  ;;  %v1019_v53 = vsel %vm678_vm0, %v675_v29, 0.0 }
  0xb4   : > { %12585 = vpow2.f32 %v1294_v45  ;;  %v1206_v55 = vsub.f32 0.0, %v1119_v46  ;;  %981 = vadd.xlane.f32.xlu1 %v980_v4  ;;  %977 = vadd.xlane.f32.xlu0 %v976_v9  ;;  %v1205_v56 = vsub.f32 0.0, %v1118_v48  ;;  %v316_v4 = vld [vmem:[%s18844_s1 + $0x2a0] sm:$0xff]  ;;  %v489_v9 = vunpack.c.l.bf16 %v317_v58  ;;  %v1040_v48 = vld [vmem:[%s18845_s2 + $0x68] sm:$0xff] }
  0xb5   : > { %12587 = vpow2.f32 %v1290_v47  ;;  %v710_v59 = vpop.xlane.xlu1 %709  ;;  %v706_v60 = vpop.xlane.xlu0 %705  ;;  %v488_v20 = vunpack.c.h.bf16 %v316_v4  ;;  %v487_v30 = vunpack.c.l.bf16 %v316_v4  ;;  %v676_v54 = vmul.f32 %v13695_v23, %v491_v34 }
  0xb6   : > { %v1298_v0 = vmul.f32 1.442695, %v1206_v55  ;;  %v1121_v1 = vadd.f32 %v1034_v49, %v710_v59  ;;  %v1296_v2 = vmul.f32 1.442695, %v1205_v56  ;;  %v1120_v3 = vadd.f32 %v1033_v50, %v706_v60 }
  0xb7   : > { %v674_v28 = vmul.f32 %v13695_v23, %v489_v9  ;;  %v673_v39 = vmul.f32 %v13697_v24, %v488_v20  ;;  %v672_v50 = vmul.f32 %v13695_v23, %v487_v30  ;;  %v677_v60 = vmul.f32 %v13697_v24, %v492_v40  ;;  %v1042_v23 = vld [vmem:[%s18845_s2 + $0x78] sm:$0xff]  ;;  %v1041_v24 = vld [vmem:[%s18845_s2 + $0x70] sm:$0xff]  ;;  %v1044_v20 = vld [vmem:[%s18845_s2 + $0x88] sm:$0xff] }
  0xb8   : > { %12589 = vpow2.f32 %v1298_v0  ;;  %v1208_v11 = vsub.f32 0.0, %v1121_v1  ;;  %989 = vadd.xlane.f32.xlu1 %v14169_v15  ;;  %985 = vadd.xlane.f32.xlu0 %v14172_v19  ;;  %v1207_v12 = vsub.f32 0.0, %v1120_v3  ;;  %v1038_v19 = vld [vmem:[%s18845_s2 + $0x58] sm:$0xff] }
  0xb9   : > { %12591 = vpow2.f32 %v1296_v2  ;;  %v718_v14 = vpop.xlane.xlu1 %717  ;;  %v714_v16 = vpop.xlane.xlu0 %713  ;;  %v1015_v59 = vsel %vm678_vm0, %v673_v39, 0.0 }
  0xba   : > { %v1302_v22 = vmul.f32 1.442695, %v1208_v11  ;;  %v1123_v25 = vadd.f32 %v1036_v5, %v718_v14  ;;  %v1300_v26 = vmul.f32 1.442695, %v1207_v12  ;;  %v1122_v15 = vadd.f32 %v1035_v6, %v714_v16 }
  0xbb   : > { %v1020_v5 = vadd.f32 %v1019_v53, %v674_v28  ;;  %v1016_v6 = vadd.f32 %v1015_v59, %v672_v50  ;;  %v1023_v11 = vsel %vm678_vm0, %v677_v60, 0.0 }
  0xbc   : > { %12593 = vpow2.f32 %v1302_v22  ;;  %v1210_v31 = vsub.f32 0.0, %v1123_v25  ;;  %997 = vadd.xlane.f32.xlu1 %v996_v42  ;;  %993 = vadd.xlane.f32.xlu0 %v992_v51  ;;  %v1209_v32 = vsub.f32 0.0, %v1122_v15  ;;  %v1008_v42 = vadd.f32 %v1007_v27, %v668_v18 }
  0xbd   : > { %v12582_v35 = vpop.eup %12581  ;;  %12595 = vpow2.f32 %v1300_v26  ;;  %v726_v36 = vpop.xlane.xlu1 %725  ;;  %v1024_v25 = vadd.f32 %v1023_v11, %v676_v54  ;;  %v1043_v26 = vld [vmem:[%s18845_s2 + $0x80] sm:$0xff] }
  0xbe   : > { %v722_v37 = vpop.xlane.xlu0 %721  ;;  %v12584_v41 = vpop.eup %12583  ;;  %v1464_v43 = vadd.f32 1.0, %v12582_v35  ;;  %v1306_v44 = vmul.f32 1.442695, %v1210_v31  ;;  %v1125_v45 = vadd.f32 %v1038_v19, %v726_v36  ;;  %v1304_v47 = vmul.f32 1.442695, %v1209_v32  ;;  %v1046_v35 = vld [vmem:[%s18845_s2 + $0x98] sm:$0xff] }
  0xbf   : > { %v1462_v46 = vadd.f32 1.0, %v12584_v41  ;;  %v1124_v49 = vadd.f32 %v1037_v33, %v722_v37  ;;  %v1045_v37 = vld [vmem:[%s18845_s2 + $0x90] sm:$0xff]  ;;  %v1047_v54 = vld [vmem:[%s18845_s2 + $0xa0] sm:$0xff] }
  0xc0   : > { %12597 = vrcp.f32 %v1464_v43  ;;  %v1212_v51 = vsub.f32 0.0, %v1125_v45  ;;  %1005 = vadd.xlane.f32.xlu1 %v1004_v7  ;;  %1001 = vadd.xlane.f32.xlu0 %v1000_v13 }
  0xc1   : > { %v12586_v55 = vpop.eup %12585  ;;  %12599 = vrcp.f32 %v1462_v46  ;;  %v734_v56 = vpop.xlane.xlu1 %733  ;;  %v1211_v57 = vsub.f32 0.0, %v1124_v49  ;;  %v1048_v49 = vld [vmem:[%s18845_s2 + $0xa8] sm:$0xff] }
  0xc2   : > { %v730_v58 = vpop.xlane.xlu0 %729  ;;  %v12588_v61 = vpop.eup %12587  ;;  %v1465_v62 = vadd.f32 1.0, %v12586_v55  ;;  %12601 = vpow2.f32 %v1306_v44  ;;  %v1310_v63 = vmul.f32 1.442695, %v1212_v51  ;;  %v1127_v0 = vadd.f32 %v1040_v48, %v734_v56 }
  0xc3   : > { %v1463_v1 = vadd.f32 1.0, %v12588_v61  ;;  %12603 = vpow2.f32 %v1304_v47  ;;  %v1308_v2 = vmul.f32 1.442695, %v1211_v57  ;;  %v1126_v3 = vadd.f32 %v1039_v52, %v730_v58 }
  0xc4   : > { %12605 = vrcp.f32 %v1465_v62  ;;  %v1214_v4 = vsub.f32 0.0, %v1127_v0  ;;  %1013 = vadd.xlane.f32.xlu1 %v1012_v38  ;;  %1009 = vadd.xlane.f32.xlu0 %v1008_v42  ;;  %v1050_v0 = vld [vmem:[%s18845_s2 + $0xb8] sm:$0xff] }
  0xc5   : > { %v12590_v7 = vpop.eup %12589  ;;  %12607 = vrcp.f32 %v1463_v1  ;;  %v742_v8 = vpop.xlane.xlu1 %741  ;;  %v1213_v9 = vsub.f32 0.0, %v1126_v3 }
  0xc6   : > { %v738_v10 = vpop.xlane.xlu0 %737  ;;  %v12592_v12 = vpop.eup %12591  ;;  %v1467_v13 = vadd.f32 1.0, %v12590_v7  ;;  %12609 = vpow2.f32 %v1310_v63  ;;  %v1314_v14 = vmul.f32 1.442695, %v1214_v4  ;;  %v1129_v16 = vadd.f32 %v1042_v23, %v742_v8 }
  0xc7   : > { %v1466_v17 = vadd.f32 1.0, %v12592_v12  ;;  %12611 = vpow2.f32 %v1308_v2  ;;  %v1312_v18 = vmul.f32 1.442695, %v1213_v9  ;;  %v1128_v21 = vadd.f32 %v1041_v24, %v738_v10  ;;  %v1049_v2 = vld [vmem:[%s18845_s2 + $0xb0] sm:$0xff] }
  0xc8   : > { %12613 = vrcp.f32 %v1467_v13  ;;  %v1216_v22 = vsub.f32 0.0, %v1129_v16  ;;  %1021 = vadd.xlane.f32.xlu1 %v1020_v5  ;;  %1017 = vadd.xlane.f32.xlu0 %v1016_v6  ;;  %v1052_v16 = vld [vmem:[%s18845_s2 + $0xc8] sm:$0xff] }
  0xc9   : > { %v12594_v15 = vpop.eup %12593  ;;  %12615 = vrcp.f32 %v1466_v17  ;;  %v750_v19 = vpop.xlane.xlu1 %749  ;;  %v1215_v27 = vsub.f32 0.0, %v1128_v21 }
  0xca   : > { %v746_v28 = vpop.xlane.xlu0 %745  ;;  %v12596_v29 = vpop.eup %12595  ;;  %v1469_v30 = vadd.f32 1.0, %v12594_v15  ;;  %12617 = vpow2.f32 %v1314_v14  ;;  %v1318_v31 = vmul.f32 1.442695, %v1216_v22  ;;  %v1131_v32 = vadd.f32 %v1044_v20, %v750_v19  ;;  %v1051_v22 = vld [vmem:[%s18845_s2 + $0xc0] sm:$0xff] }
  0xcb   : > { %v1468_v33 = vadd.f32 1.0, %v12596_v29  ;;  %12619 = vpow2.f32 %v1312_v18  ;;  %v1316_v34 = vmul.f32 1.442695, %v1215_v27  ;;  %v1130_v36 = vadd.f32 %v1043_v26, %v746_v28 }
  0xcc   : > { %12621 = vrcp.f32 %v1469_v30  ;;  %v1218_v38 = vsub.f32 0.0, %v1131_v32  ;;  %1025 = vadd.xlane.f32.xlu0 %v1024_v25  ;;  %v1054_v32 = vld [vmem:[%s18845_s2 + $0xd8] sm:$0xff] }
  0xcd   : > { %v14263_v39 = vpop.eup %12597  ;;  %12623 = vrcp.f32 %v1468_v33  ;;  %v758_v40 = vpop.xlane.xlu1 %757  ;;  %v1217_v41 = vsub.f32 0.0, %v1130_v36 }
  0xce   : > { %v754_v43 = vpop.xlane.xlu0 %753  ;;  %v12600_v44 = vpop.eup %12599  ;;  %12625 = vpow2.f32 %v1318_v31  ;;  %v1322_v45 = vmul.f32 1.442695, %v1218_v38  ;;  %v1133_v42 = vadd.f32 %v1046_v35, %v758_v40 }
  0xcf   : > { %v1132_v46 = vadd.f32 %v1045_v37, %v754_v43  ;;  %v12602_v47 = vpop.eup %12601  ;;  %12627 = vpow2.f32 %v1316_v34  ;;  %v1320_v48 = vmul.f32 1.442695, %v1217_v41  ;;  %v1053_v37 = vld [vmem:[%s18845_s2 + $0xd0] sm:$0xff] }
  0xd0   : > { %v12604_v50 = vpop.eup %12603  ;;  %v1471_v51 = vadd.f32 1.0, %v12602_v47  ;;  %12629 = vpow2.f32 %v1322_v45  ;;  %v1220_v52 = vsub.f32 0.0, %v1133_v42 }
  0xd1   : > { %v1219_v53 = vsub.f32 0.0, %v1132_v46  ;;  %v14271_v55 = vpop.eup %12605  ;;  %v1470_v56 = vadd.f32 1.0, %v12604_v50  ;;  %12631 = vpow2.f32 %v1320_v48  ;;  %v766_v57 = vpop.xlane.xlu1 %765 }
  0xd2   : > { %v762_v58 = vpop.xlane.xlu0 %761  ;;  %v14273_v59 = vpop.eup %12607  ;;  %12633 = vrcp.f32 %v1471_v51  ;;  %v1326_v60 = vmul.f32 1.442695, %v1220_v52  ;;  %v1135_v61 = vadd.f32 %v1048_v49, %v766_v57  ;;  %v1056_v51 = vld [vmem:[%s18845_s2 + $0xe8] sm:$0xff] }
  0xd3   : > { %v1324_v62 = vmul.f32 1.442695, %v1219_v53  ;;  %v12610_v63 = vpop.eup %12609  ;;  %12635 = vrcp.f32 %v1470_v56  ;;  %v1134_v1 = vadd.f32 %v1047_v54, %v762_v58  ;;  %v1055_v54 = vld [vmem:[%s18845_s2 + $0xe0] sm:$0xff] }
  0xd4   : > { %v12612_v23 = vpop.eup %12611  ;;  %v1473_v3 = vadd.f32 1.0, %v12610_v63  ;;  %12637 = vpow2.f32 %v1326_v60  ;;  %v1222_v4 = vsub.f32 0.0, %v1135_v61 }
  0xd5   : > { %v14281_v5 = vpop.eup %12613  ;;  %v1472_v6 = vadd.f32 1.0, %v12612_v23  ;;  %12639 = vpow2.f32 %v1324_v62  ;;  %v774_v24 = vpop.xlane.xlu1 %773  ;;  %v1221_v7 = vsub.f32 0.0, %v1134_v1 }
  0xd6   : > { %v770_v8 = vpop.xlane.xlu0 %769  ;;  %v14283_v9 = vpop.eup %12615  ;;  %12641 = vrcp.f32 %v1473_v3  ;;  %v1330_v10 = vmul.f32 1.442695, %v1222_v4  ;;  %v1137_v11 = vadd.f32 %v1050_v0, %v774_v24  ;;  %v1058_v3 = vld [vmem:[%s18845_s2 + $0xf8] sm:$0xff]  ;;  %v1057_v24 = vld [vmem:[%s18845_s2 + $0xf0] sm:$0xff] }
  0xd7   : > { %v1136_v12 = vadd.f32 %v1049_v2, %v770_v8  ;;  %v12618_v13 = vpop.eup %12617  ;;  %12643 = vrcp.f32 %v1472_v6  ;;  %v1328_v14 = vmul.f32 1.442695, %v1221_v7 }
  0xd8   : > { %v12620_v17 = vpop.eup %12619  ;;  %v1475_v18 = vadd.f32 1.0, %v12618_v13  ;;  %12645 = vpow2.f32 %v1330_v10  ;;  %v1224_v20 = vsub.f32 0.0, %v1137_v11 }
  0xd9   : > { %v1223_v21 = vsub.f32 0.0, %v1136_v12  ;;  %v14291_v25 = vpop.eup %12621  ;;  %v1474_v26 = vadd.f32 1.0, %v12620_v17  ;;  %12647 = vpow2.f32 %v1328_v14  ;;  %v782_v15 = vpop.xlane.xlu1 %781  ;;  %2247 = vperm.xlu1 %12579, %v12600_v44  }
  0xda   : > { %v778_v19 = vpop.xlane.xlu0 %777  ;;  %v14293_v27 = vpop.eup %12623  ;;  %12649 = vrcp.f32 %v1475_v18  ;;  %v1334_v28 = vmul.f32 1.442695, %v1224_v20  ;;  %v1139_v29 = vadd.f32 %v1052_v16, %v782_v15  ;;  %v1060_v20 = vld [vmem:[%s18845_s2 + $0x108] sm:$0xff] }
  0xdb   : > { %v1332_v30 = vmul.f32 1.442695, %v1223_v21  ;;  %v12626_v31 = vpop.eup %12625  ;;  %12651 = vrcp.f32 %v1474_v26  ;;  %v1138_v33 = vadd.f32 %v1051_v22, %v778_v19  ;;  %v1059_v26 = vld [vmem:[%s18845_s2 + $0x100] sm:$0xff] }
  0xdc   : > { %v12628_v34 = vpop.eup %12627  ;;  %v1477_v35 = vadd.f32 1.0, %v12626_v31  ;;  %12653 = vpow2.f32 %v1334_v28  ;;  %v1226_v36 = vsub.f32 0.0, %v1139_v29 }
  0xdd   : > { %v12630_v38 = vpop.eup %12629  ;;  %v1476_v40 = vadd.f32 1.0, %v12628_v34  ;;  %12655 = vpow2.f32 %v1332_v30  ;;  %v790_v41 = vpop.xlane.xlu1 %789  ;;  %2257 = vperm.xlu1 %12579, %v14263_v39   ;;  %v1225_v43 = vsub.f32 0.0, %v1138_v33 }
  0xde   : > { %v786_v44 = vpop.xlane.xlu0 %785  ;;  %v12632_v45 = vpop.eup %12631  ;;  %12657 = vrcp.f32 %v1477_v35  ;;  %v1479_v42 = vadd.f32 1.0, %v12630_v38  ;;  %v1338_v46 = vmul.f32 1.442695, %v1226_v36  ;;  %v1141_v47 = vadd.f32 %v1054_v32, %v790_v41 }
  0xdf   : > { %v14302_v48 = vpop.eup %12633  ;;  %12659 = vrcp.f32 %v1476_v40  ;;  %v1478_v49 = vadd.f32 1.0, %v12632_v45  ;;  %v1336_v50 = vmul.f32 1.442695, %v1225_v43  ;;  %v1140_v52 = vadd.f32 %v1053_v37, %v786_v44  ;;  %v1062_v37 = vld [vmem:[%s18845_s2 + $0x118] sm:$0xff] }
  0xe0   : > { %v14307_v53 = vpop.eup %12635  ;;  %12661 = vrcp.f32 %v1479_v42  ;;  %v1228_v39 = vsub.f32 0.0, %v1141_v47 }
  0xe1   : > { %v12638_v56 = vpop.eup %12637  ;;  %12663 = vrcp.f32 %v1478_v49  ;;  %v798_v57 = vpop.xlane.xlu1 %797  ;;  %2262 = vperm.xlu1 %12579, %v14271_v55   ;;  %v1227_v58 = vsub.f32 0.0, %v1140_v52 }
  0xe2   : > { %v794_v60 = vpop.xlane.xlu0 %793  ;;  %v12640_v61 = vpop.eup %12639  ;;  %v1481_v62 = vadd.f32 1.0, %v12638_v56  ;;  %12665 = vpow2.f32 %v1338_v46  ;;  %v1342_v63 = vmul.f32 1.442695, %v1228_v39  ;;  %v1143_v0 = vadd.f32 %v1056_v51, %v798_v57  ;;  %2252 = vperm.xlu0 %12580, %v14273_v59   ;;  %v1064_v39 = vld [vmem:[%s18845_s2 + $0x128] sm:$0xff] }
  0xe3   : > { %v14314_v1 = vpop.eup %12641  ;;  %v1480_v2 = vadd.f32 1.0, %v12640_v61  ;;  %12667 = vpow2.f32 %v1336_v50  ;;  %v1340_v23 = vmul.f32 1.442695, %v1227_v58  ;;  %v1142_v4 = vadd.f32 %v1055_v54, %v794_v60  ;;  %v1063_v58 = vld [vmem:[%s18845_s2 + $0x120] sm:$0xff] }
  0xe4   : > { %v12644_v55 = vpop.eup %12643  ;;  %12669 = vrcp.f32 %v1481_v62  ;;  %v1230_v6 = vsub.f32 0.0, %v1143_v0 }
  0xe5   : > { %v12646_v7 = vpop.eup %12645  ;;  %12671 = vrcp.f32 %v1480_v2  ;;  %v806_v59 = vpop.xlane.xlu1 %805  ;;  %2267 = vperm.xlu1 %12579, %v14283_v9   ;;  %v1229_v8 = vsub.f32 0.0, %v1142_v4 }
  0xe6   : > { %v802_v10 = vpop.xlane.xlu0 %801  ;;  %v12648_v11 = vpop.eup %12647  ;;  %v1483_v12 = vadd.f32 1.0, %v12646_v7  ;;  %12673 = vpow2.f32 %v1342_v63  ;;  %v1346_v13 = vmul.f32 1.442695, %v1230_v6  ;;  %v1145_v14 = vadd.f32 %v1058_v3, %v806_v59  ;;  %2297 = vperm.xlu0 %12580, %v12644_v55   ;;  %v1066_v55 = vld [vmem:[%s18845_s2 + $0x138] sm:$0xff] }
  0xe7   : > { %v14323_v16 = vpop.eup %12649  ;;  %v1482_v17 = vadd.f32 1.0, %v12648_v11  ;;  %12675 = vpow2.f32 %v1340_v23  ;;  %v1344_v18 = vmul.f32 1.442695, %v1229_v8  ;;  %v1144_v21 = vadd.f32 %v1057_v24, %v802_v10  ;;  %v1065_v24 = vld [vmem:[%s18845_s2 + $0x130] sm:$0xff] }
  0xe8   : > { %v12652_v22 = vpop.eup %12651  ;;  %12677 = vrcp.f32 %v1483_v12  ;;  %v1232_v9 = vsub.f32 0.0, %v1145_v14 }
  0xe9   : > { %v12654_v15 = vpop.eup %12653  ;;  %12679 = vrcp.f32 %v1482_v17  ;;  %v814_v19 = vpop.xlane.xlu1 %813  ;;  %2272 = vperm.xlu1 %12579, %v14281_v5   ;;  %v1231_v28 = vsub.f32 0.0, %v1144_v21  ;;  %v1061_v5 = vld [vmem:[%s18845_s2 + $0x110] sm:$0xff] }
  0xea   : > { %v810_v29 = vpop.xlane.xlu0 %809  ;;  %v12656_v30 = vpop.eup %12655  ;;  %v1485_v31 = vadd.f32 1.0, %v12654_v15  ;;  %12681 = vpow2.f32 %v1346_v13  ;;  %v1350_v32 = vmul.f32 1.442695, %v1232_v9  ;;  %v1147_v33 = vadd.f32 %v1060_v20, %v814_v19  ;;  %2307 = vperm.xlu0 %12580, %v12652_v22   ;;  %v1068_v9 = vld [vmem:[%s18845_s2 + $0x148] sm:$0xff] }
  0xeb   : > { %v14332_v34 = vpop.eup %12657  ;;  %v1484_v35 = vadd.f32 1.0, %v12656_v30  ;;  %12683 = vpow2.f32 %v1344_v18  ;;  %v1348_v36 = vmul.f32 1.442695, %v1231_v28  ;;  %v1146_v38 = vadd.f32 %v1059_v26, %v810_v29  ;;  %v1067_v28 = vld [vmem:[%s18845_s2 + $0x140] sm:$0xff] }
  0xec   : > { %v12660_v40 = vpop.eup %12659  ;;  %12685 = vrcp.f32 %v1485_v31  ;;  %v1234_v41 = vsub.f32 0.0, %v1147_v33 }
  0xed   : > { %v14340_v43 = vpop.eup %12661  ;;  %12687 = vrcp.f32 %v1484_v35  ;;  %v822_v44 = vpop.xlane.xlu1 %821  ;;  %2277 = vperm.xlu1 %12579, %v14293_v27   ;;  %v1233_v45 = vsub.f32 0.0, %v1146_v38 }
  0xee   : > { %v818_v42 = vpop.xlane.xlu0 %817  ;;  %v12664_v46 = vpop.eup %12663  ;;  %12689 = vpow2.f32 %v1350_v32  ;;  %v1354_v47 = vmul.f32 1.442695, %v1234_v41  ;;  %v1149_v49 = vadd.f32 %v1062_v37, %v822_v44  ;;  %2317 = vperm.xlu0 %12580, %v12660_v40  }
  0xef   : > { %v1148_v50 = vadd.f32 %v1061_v5, %v818_v42  ;;  %v12666_v51 = vpop.eup %12665  ;;  %12691 = vpow2.f32 %v1348_v36  ;;  %v1352_v52 = vmul.f32 1.442695, %v1233_v45  ;;  %v1070_v5 = vld [vmem:[%s18845_s2 + $0x158] sm:$0xff] }
  0xf0   : > { %v12668_v54 = vpop.eup %12667  ;;  %v1487_v56 = vadd.f32 1.0, %v12666_v51  ;;  %12693 = vpow2.f32 %v1354_v47  ;;  %v1236_v57 = vsub.f32 0.0, %v1149_v49 }
  0xf1   : > { %v1235_v27 = vsub.f32 0.0, %v1148_v50  ;;  %v14349_v60 = vpop.eup %12669  ;;  %v1486_v61 = vadd.f32 1.0, %v12668_v54  ;;  %12695 = vpow2.f32 %v1352_v52  ;;  %v830_v62 = vpop.xlane.xlu1 %829  ;;  %2282 = vperm.xlu1 %12579, %v14291_v25  }
  0xf2   : > { %v826_v63 = vpop.xlane.xlu0 %825  ;;  %v12672_v0 = vpop.eup %12671  ;;  %12697 = vrcp.f32 %v1487_v56  ;;  %v1358_v2 = vmul.f32 1.442695, %v1236_v57  ;;  %v1151_v23 = vadd.f32 %v1064_v39, %v830_v62  ;;  %2327 = vperm.xlu0 %12580, %v12664_v46  }
  0xf3   : > { %v1356_v3 = vmul.f32 1.442695, %v1235_v27  ;;  %v12674_v4 = vpop.eup %12673  ;;  %12699 = vrcp.f32 %v1486_v61  ;;  %v1150_v6 = vadd.f32 %v1063_v58, %v826_v63  ;;  %v1072_v58 = vld [vmem:[%s18845_s2 + $0x168] sm:$0xff]  ;;  %v1071_v63 = vld [vmem:[%s18845_s2 + $0x160] sm:$0xff] }
  0xf4   : > { %v12676_v7 = vpop.eup %12675  ;;  %v1489_v25 = vadd.f32 1.0, %v12674_v4  ;;  %12701 = vpow2.f32 %v1358_v2  ;;  %v1238_v59 = vsub.f32 0.0, %v1151_v23 }
  0xf5   : > { %v14358_v8 = vpop.eup %12677  ;;  %v1488_v10 = vadd.f32 1.0, %v12676_v7  ;;  %12703 = vpow2.f32 %v1356_v3  ;;  %v838_v11 = vpop.xlane.xlu1 %837  ;;  %2287 = vperm.xlu1 %12579, %v14307_v53   ;;  %v1237_v12 = vsub.f32 0.0, %v1150_v6 }
  0xf6   : > { %v834_v13 = vpop.xlane.xlu0 %833  ;;  %v12680_v14 = vpop.eup %12679  ;;  %12705 = vrcp.f32 %v1489_v25  ;;  %v1362_v17 = vmul.f32 1.442695, %v1238_v59  ;;  %v1153_v18 = vadd.f32 %v1066_v55, %v838_v11  ;;  %2337 = vperm.xlu0 %12580, %v12672_v0  }
  0xf7   : > { %v1152_v20 = vadd.f32 %v1065_v24, %v834_v13  ;;  %v12682_v21 = vpop.eup %12681  ;;  %12707 = vrcp.f32 %v1488_v10  ;;  %v1360_v22 = vmul.f32 1.442695, %v1237_v12  ;;  %v1074_v10 = vld [vmem:[%s18845_s2 + $0x178] sm:$0xff]  ;;  %v1073_v13 = vld [vmem:[%s18845_s2 + $0x170] sm:$0xff] }
  0xf8   : > { %v12684_v26 = vpop.eup %12683  ;;  %v1491_v15 = vadd.f32 1.0, %v12682_v21  ;;  %12709 = vpow2.f32 %v1362_v17  ;;  %v1240_v19 = vsub.f32 0.0, %v1153_v18 }
  0xf9   : > { %v1239_v53 = vsub.f32 0.0, %v1152_v20  ;;  %v14367_v29 = vpop.eup %12685  ;;  %v1490_v30 = vadd.f32 1.0, %v12684_v26  ;;  %12711 = vpow2.f32 %v1360_v22  ;;  %v846_v31 = vpop.xlane.xlu1 %845  ;;  %2292 = vperm.xlu1 %12579, %v14302_v48   ;;  %v1069_v48 = vld [vmem:[%s18845_s2 + $0x150] sm:$0xff] }
  0xfa   : > { %v842_v32 = vpop.xlane.xlu0 %841  ;;  %v12688_v33 = vpop.eup %12687  ;;  %12713 = vrcp.f32 %v1491_v15  ;;  %v1366_v35 = vmul.f32 1.442695, %v1240_v19  ;;  %v1155_v36 = vadd.f32 %v1068_v9, %v846_v31  ;;  %2347 = vperm.xlu0 %12580, %v12680_v14  }
  0xfb   : > { %v1364_v37 = vmul.f32 1.442695, %v1239_v53  ;;  %v12690_v38 = vpop.eup %12689  ;;  %12715 = vrcp.f32 %v1490_v30  ;;  %v1154_v40 = vadd.f32 %v1067_v28, %v842_v32  ;;  %v1076_v28 = vld [vmem:[%s18845_s2 + $0x188] sm:$0xff]  ;;  %v1075_v32 = vld [vmem:[%s18845_s2 + $0x180] sm:$0xff] }
  0xfc   : > { %v12692_v41 = vpop.eup %12691  ;;  %v1493_v44 = vadd.f32 1.0, %v12690_v38  ;;  %12717 = vpow2.f32 %v1366_v35  ;;  %v1242_v45 = vsub.f32 0.0, %v1155_v36 }
  0xfd   : > { %v12694_v42 = vpop.eup %12693  ;;  %v1492_v46 = vadd.f32 1.0, %v12692_v41  ;;  %12719 = vpow2.f32 %v1364_v37  ;;  %v854_v47 = vpop.xlane.xlu1 %853  ;;  %2302 = vperm.xlu1 %12579, %v14314_v1   ;;  %v1241_v49 = vsub.f32 0.0, %v1154_v40 }
  0xfe   : > { %v850_v50 = vpop.xlane.xlu0 %849  ;;  %v12696_v51 = vpop.eup %12695  ;;  %12721 = vrcp.f32 %v1493_v44  ;;  %v1495_v52 = vadd.f32 1.0, %v12694_v42  ;;  %v1370_v39 = vmul.f32 1.442695, %v1242_v45  ;;  %v1157_v54 = vadd.f32 %v1070_v5, %v854_v47  ;;  %2357 = vperm.xlu0 %12580, %v12688_v33   ;;  %v1078_v42 = vld [vmem:[%s18845_s2 + $0x198] sm:$0xff] }
  0xff   : > { %v14377_v56 = vpop.eup %12697  ;;  %12723 = vrcp.f32 %v1492_v46  ;;  %v1494_v57 = vadd.f32 1.0, %v12696_v51  ;;  %v1368_v27 = vmul.f32 1.442695, %v1241_v49  ;;  %v1156_v61 = vadd.f32 %v1069_v48, %v850_v50 }
 0x100   : > { %v12700_v62 = vpop.eup %12699  ;;  %12725 = vrcp.f32 %v1495_v52  ;;  %v1244_v1 = vsub.f32 0.0, %v1157_v54 }
 0x101   : > { %v12702_v0 = vpop.eup %12701  ;;  %12727 = vrcp.f32 %v1494_v57  ;;  %v862_v2 = vpop.xlane.xlu1 %861  ;;  %2312 = vperm.xlu1 %12579, %v14323_v16   ;;  %v1243_v23 = vsub.f32 0.0, %v1156_v61 }
 0x102   : > { %v858_v3 = vpop.xlane.xlu0 %857  ;;  %v12704_v4 = vpop.eup %12703  ;;  %v1497_v55 = vadd.f32 1.0, %v12702_v0  ;;  %12729 = vpow2.f32 %v1370_v39  ;;  %v1374_v6 = vmul.f32 1.442695, %v1244_v1  ;;  %v1159_v24 = vadd.f32 %v1072_v58, %v862_v2  ;;  %2367 = vperm.xlu0 %12580, %v12700_v62   ;;  %v1080_v1 = vld [vmem:[%s18845_s2 + $0x1a8] sm:$0xff] }
 0x103   : > { %v14386_v7 = vpop.eup %12705  ;;  %v1496_v25 = vadd.f32 1.0, %v12704_v4  ;;  %12731 = vpow2.f32 %v1368_v27  ;;  %v1372_v59 = vmul.f32 1.442695, %v1243_v23  ;;  %v1158_v11 = vadd.f32 %v1071_v63, %v858_v3  ;;  %v1079_v23 = vld [vmem:[%s18845_s2 + $0x1a0] sm:$0xff] }
 0x104   : > { %v12708_v12 = vpop.eup %12707  ;;  %12733 = vrcp.f32 %v1497_v55  ;;  %v1246_v16 = vsub.f32 0.0, %v1159_v24 }
 0x105   : > { %v12710_v14 = vpop.eup %12709  ;;  %12735 = vrcp.f32 %v1496_v25  ;;  %v870_v17 = vpop.xlane.xlu1 %869  ;;  %2322 = vperm.xlu1 %12579, %v14332_v34   ;;  %v1245_v18 = vsub.f32 0.0, %v1158_v11 }
 0x106   : > { %v866_v20 = vpop.xlane.xlu0 %865  ;;  %v12712_v21 = vpop.eup %12711  ;;  %v1499_v22 = vadd.f32 1.0, %v12710_v14  ;;  %12737 = vpow2.f32 %v1374_v6  ;;  %v1378_v9 = vmul.f32 1.442695, %v1246_v16  ;;  %v1161_v26 = vadd.f32 %v1074_v10, %v870_v17  ;;  %2377 = vperm.xlu0 %12580, %v12708_v12   ;;  %v1082_v12 = vld [vmem:[%s18845_s2 + $0x1b8] sm:$0xff] }
 0x107   : > { %v14395_v15 = vpop.eup %12713  ;;  %v1498_v19 = vadd.f32 1.0, %v12712_v21  ;;  %12739 = vpow2.f32 %v1372_v59  ;;  %v1376_v53 = vmul.f32 1.442695, %v1245_v18  ;;  %v1160_v30 = vadd.f32 %v1073_v13, %v866_v20  ;;  %v1081_v13 = vld [vmem:[%s18845_s2 + $0x1b0] sm:$0xff] }
 0x108   : > { %v12716_v31 = vpop.eup %12715  ;;  %12741 = vrcp.f32 %v1499_v22  ;;  %v1248_v34 = vsub.f32 0.0, %v1161_v26 }
 0x109   : > { %v12718_v33 = vpop.eup %12717  ;;  %12743 = vrcp.f32 %v1498_v19  ;;  %v878_v35 = vpop.xlane.xlu1 %877  ;;  %2332 = vperm.xlu1 %12579, %v14340_v43   ;;  %v1247_v36 = vsub.f32 0.0, %v1160_v30  ;;  %v1077_v43 = vld [vmem:[%s18845_s2 + $0x190] sm:$0xff] }
 0x10a   : > { %v874_v37 = vpop.xlane.xlu0 %873  ;;  %v12720_v38 = vpop.eup %12719  ;;  %v1501_v5 = vadd.f32 1.0, %v12718_v33  ;;  %12745 = vpow2.f32 %v1378_v9  ;;  %v1382_v40 = vmul.f32 1.442695, %v1248_v34  ;;  %v1163_v41 = vadd.f32 %v1076_v28, %v878_v35  ;;  %2387 = vperm.xlu0 %12580, %v12716_v31   ;;  %v1084_v34 = vld [vmem:[%s18845_s2 + $0x1c8] sm:$0xff] }
 0x10b   : > { %v14404_v44 = vpop.eup %12721  ;;  %v1500_v45 = vadd.f32 1.0, %v12720_v38  ;;  %12747 = vpow2.f32 %v1376_v53  ;;  %v1380_v48 = vmul.f32 1.442695, %v1247_v36  ;;  %v1162_v46 = vadd.f32 %v1075_v32, %v874_v37  ;;  %v1083_v36 = vld [vmem:[%s18845_s2 + $0x1c0] sm:$0xff] }
 0x10c   : > { %v12724_v47 = vpop.eup %12723  ;;  %12749 = vrcp.f32 %v1501_v5  ;;  %v1250_v49 = vsub.f32 0.0, %v1163_v41 }
 0x10d   : > { %v14412_v50 = vpop.eup %12725  ;;  %12751 = vrcp.f32 %v1500_v45  ;;  %v886_v51 = vpop.xlane.xlu1 %885  ;;  %2342 = vperm.xlu1 %12579, %v14349_v60   ;;  %v1249_v52 = vsub.f32 0.0, %v1162_v46 }
 0x10e   : > { %v882_v39 = vpop.xlane.xlu0 %881  ;;  %v12728_v54 = vpop.eup %12727  ;;  %12753 = vpow2.f32 %v1382_v40  ;;  %v1386_v57 = vmul.f32 1.442695, %v1250_v49  ;;  %v1165_v27 = vadd.f32 %v1078_v42, %v886_v51  ;;  %2397 = vperm.xlu0 %12580, %v12724_v47  }
 0x10f   : > { %v1164_v58 = vadd.f32 %v1077_v43, %v882_v39  ;;  %v12730_v61 = vpop.eup %12729  ;;  %12755 = vpow2.f32 %v1380_v48  ;;  %v1384_v62 = vmul.f32 1.442695, %v1249_v52  ;;  %v1086_v43 = vld [vmem:[%s18845_s2 + $0x1d8] sm:$0xff] }
 0x110   : > { %v12732_v63 = vpop.eup %12731  ;;  %v1503_v0 = vadd.f32 1.0, %v12730_v61  ;;  %12757 = vpow2.f32 %v1386_v57  ;;  %v1252_v2 = vsub.f32 0.0, %v1165_v27 }
 0x111   : > { %v1251_v60 = vsub.f32 0.0, %v1164_v58  ;;  %v14421_v3 = vpop.eup %12733  ;;  %v1502_v4 = vadd.f32 1.0, %v12732_v63  ;;  %12759 = vpow2.f32 %v1384_v62  ;;  %v894_v55 = vpop.xlane.xlu1 %893  ;;  %2352 = vperm.xlu1 %12579, %v14358_v8  }
 0x112   : > { %v890_v6 = vpop.xlane.xlu0 %889  ;;  %v12736_v24 = vpop.eup %12735  ;;  %12761 = vrcp.f32 %v1503_v0  ;;  %v1390_v25 = vmul.f32 1.442695, %v1252_v2  ;;  %v1167_v59 = vadd.f32 %v1080_v1, %v894_v55  ;;  %2407 = vperm.xlu0 %12580, %v12728_v54  }
 0x113   : > { %v1388_v10 = vmul.f32 1.442695, %v1251_v60  ;;  %v12738_v11 = vpop.eup %12737  ;;  %12763 = vrcp.f32 %v1502_v4  ;;  %v1166_v16 = vadd.f32 %v1079_v23, %v890_v6  ;;  %v1088_v23 = vld [vmem:[%s18845_s2 + $0x1e8] sm:$0xff]  ;;  %v1087_v6 = vld [vmem:[%s18845_s2 + $0x1e0] sm:$0xff] }
 0x114   : > { %v12740_v14 = vpop.eup %12739  ;;  %v1505_v8 = vadd.f32 1.0, %v12738_v11  ;;  %12765 = vpow2.f32 %v1390_v25  ;;  %v1254_v17 = vsub.f32 0.0, %v1167_v59 }
 0x115   : > { %v14430_v18 = vpop.eup %12741  ;;  %v1504_v20 = vadd.f32 1.0, %v12740_v14  ;;  %12767 = vpow2.f32 %v1388_v10  ;;  %v902_v21 = vpop.xlane.xlu1 %901  ;;  %2362 = vperm.xlu1 %12579, %v14367_v29   ;;  %v1253_v22 = vsub.f32 0.0, %v1166_v16 }
 0x116   : > { %v898_v9 = vpop.xlane.xlu0 %897  ;;  %v12744_v26 = vpop.eup %12743  ;;  %12769 = vrcp.f32 %v1505_v8  ;;  %v1394_v19 = vmul.f32 1.442695, %v1254_v17  ;;  %v1169_v53 = vadd.f32 %v1082_v12, %v902_v21  ;;  %2417 = vperm.xlu0 %12580, %v12736_v24  }
 0x117   : > { %v1168_v28 = vadd.f32 %v1081_v13, %v898_v9  ;;  %v12746_v30 = vpop.eup %12745  ;;  %12771 = vrcp.f32 %v1504_v20  ;;  %v1392_v31 = vmul.f32 1.442695, %v1253_v22  ;;  %v1090_v20 = vld [vmem:[%s18845_s2 + $0x1f8] sm:$0xff]  ;;  %v1089_v9 = vld [vmem:[%s18845_s2 + $0x1f0] sm:$0xff] }
 0x118   : > { %v12748_v32 = vpop.eup %12747  ;;  %v1507_v33 = vadd.f32 1.0, %v12746_v30  ;;  %12773 = vpow2.f32 %v1394_v19  ;;  %v1256_v35 = vsub.f32 0.0, %v1169_v53 }
 0x119   : > { %v1255_v29 = vsub.f32 0.0, %v1168_v28  ;;  %v14439_v37 = vpop.eup %12749  ;;  %v1506_v38 = vadd.f32 1.0, %v12748_v32  ;;  %12775 = vpow2.f32 %v1392_v31  ;;  %v910_v5 = vpop.xlane.xlu1 %909  ;;  %2372 = vperm.xlu1 %12579, %v14377_v56   ;;  %v1085_v56 = vld [vmem:[%s18845_s2 + $0x1d0] sm:$0xff] }
 0x11a   : > { %v906_v40 = vpop.xlane.xlu0 %905  ;;  %v12752_v41 = vpop.eup %12751  ;;  %12777 = vrcp.f32 %v1507_v33  ;;  %v1398_v45 = vmul.f32 1.442695, %v1256_v35  ;;  %v1171_v48 = vadd.f32 %v1084_v34, %v910_v5  ;;  %2427 = vperm.xlu0 %12580, %v12744_v26  }
 0x11b   : > { %v1396_v42 = vmul.f32 1.442695, %v1255_v29  ;;  %v12754_v46 = vpop.eup %12753  ;;  %12779 = vrcp.f32 %v1506_v38  ;;  %v1170_v47 = vadd.f32 %v1083_v36, %v906_v40  ;;  %v1092_v36 = vld [vmem:[%s18845_s2 + $0x208] sm:$0xff]  ;;  %v1091_v40 = vld [vmem:[%s18845_s2 + $0x200] sm:$0xff] }
 0x11c   : > { %v12756_v49 = vpop.eup %12755  ;;  %v1509_v51 = vadd.f32 1.0, %v12754_v46  ;;  %12781 = vpow2.f32 %v1398_v45  ;;  %v1258_v52 = vsub.f32 0.0, %v1171_v48 }
 0x11d   : > { %v12758_v39 = vpop.eup %12757  ;;  %v1508_v54 = vadd.f32 1.0, %v12756_v49  ;;  %12783 = vpow2.f32 %v1396_v42  ;;  %v918_v57 = vpop.xlane.xlu1 %917  ;;  %2382 = vperm.xlu1 %12579, %v14386_v7   ;;  %v1257_v27 = vsub.f32 0.0, %v1170_v47 }
 0x11e   : > { %v914_v58 = vpop.xlane.xlu0 %913  ;;  %v12760_v61 = vpop.eup %12759  ;;  %12785 = vrcp.f32 %v1509_v51  ;;  %v1511_v62 = vadd.f32 1.0, %v12758_v39  ;;  %v1402_v1 = vmul.f32 1.442695, %v1258_v52  ;;  %v1173_v63 = vadd.f32 %v1086_v43, %v918_v57  ;;  %2437 = vperm.xlu0 %12580, %v12752_v41   ;;  %v1094_v39 = vld [vmem:[%s18845_s2 + $0x218] sm:$0xff] }
 0x11f   : > { %v14449_v0 = vpop.eup %12761  ;;  %12787 = vrcp.f32 %v1508_v54  ;;  %v1510_v2 = vadd.f32 1.0, %v12760_v61  ;;  %v1400_v60 = vmul.f32 1.442695, %v1257_v27  ;;  %v1172_v4 = vadd.f32 %v1085_v56, %v914_v58 }
 0x120   : > { %v12764_v55 = vpop.eup %12763  ;;  %12789 = vrcp.f32 %v1511_v62  ;;  %v1260_v7 = vsub.f32 0.0, %v1173_v63 }
 0x121   : > { %v12766_v24 = vpop.eup %12765  ;;  %12791 = vrcp.f32 %v1510_v2  ;;  %v926_v25 = vpop.xlane.xlu1 %925  ;;  %2392 = vperm.xlu1 %12579, %v14395_v15   ;;  %v1259_v59 = vsub.f32 0.0, %v1172_v4 }
 0x122   : > { %v922_v10 = vpop.xlane.xlu0 %921  ;;  %v12768_v11 = vpop.eup %12767  ;;  %v1513_v12 = vadd.f32 1.0, %v12766_v24  ;;  %12793 = vpow2.f32 %v1402_v1  ;;  %v1406_v16 = vmul.f32 1.442695, %v1260_v7  ;;  %v1175_v13 = vadd.f32 %v1088_v23, %v926_v25  ;;  %2447 = vperm.xlu0 %12580, %v12764_v55   ;;  %v1096_v7 = vld [vmem:[%s18845_s2 + $0x228] sm:$0xff] }
 0x123   : > { %v14458_v14 = vpop.eup %12769  ;;  %v1512_v8 = vadd.f32 1.0, %v12768_v11  ;;  %12795 = vpow2.f32 %v1400_v60  ;;  %v1404_v17 = vmul.f32 1.442695, %v1259_v59  ;;  %v1174_v21 = vadd.f32 %v1087_v6, %v922_v10  ;;  %v1095_v59 = vld [vmem:[%s18845_s2 + $0x220] sm:$0xff] }
 0x124   : > { %v12772_v22 = vpop.eup %12771  ;;  %12797 = vrcp.f32 %v1513_v12  ;;  %v1262_v15 = vsub.f32 0.0, %v1175_v13 }
 0x125   : > { %v12774_v26 = vpop.eup %12773  ;;  %12799 = vrcp.f32 %v1512_v8  ;;  %v934_v19 = vpop.xlane.xlu1 %933  ;;  %2402 = vperm.xlu1 %12579, %v14404_v44   ;;  %v1261_v53 = vsub.f32 0.0, %v1174_v21 }
 0x126   : > { %v930_v28 = vpop.xlane.xlu0 %929  ;;  %v12776_v30 = vpop.eup %12775  ;;  %v1515_v31 = vadd.f32 1.0, %v12774_v26  ;;  %12801 = vpow2.f32 %v1406_v16  ;;  %v1410_v34 = vmul.f32 1.442695, %v1262_v15  ;;  %v1177_v32 = vadd.f32 %v1090_v20, %v934_v19  ;;  %2457 = vperm.xlu0 %12580, %v12772_v22   ;;  %v1098_v22 = vld [vmem:[%s18845_s2 + $0x238] sm:$0xff] }
 0x127   : > { %v14467_v33 = vpop.eup %12777  ;;  %v1514_v35 = vadd.f32 1.0, %v12776_v30  ;;  %12803 = vpow2.f32 %v1404_v17  ;;  %v1408_v29 = vmul.f32 1.442695, %v1261_v53  ;;  %v1176_v38 = vadd.f32 %v1089_v9, %v930_v28  ;;  %v1097_v9 = vld [vmem:[%s18845_s2 + $0x230] sm:$0xff] }
 0x128   : > { %v12780_v5 = vpop.eup %12779  ;;  %12805 = vrcp.f32 %v1515_v31  ;;  %v1264_v44 = vsub.f32 0.0, %v1177_v32 }
 0x129   : > { %v12782_v41 = vpop.eup %12781  ;;  %12807 = vrcp.f32 %v1514_v35  ;;  %v942_v45 = vpop.xlane.xlu1 %941  ;;  %2412 = vperm.xlu1 %12579, %v14412_v50   ;;  %v1263_v48 = vsub.f32 0.0, %v1176_v38  ;;  %v1093_v50 = vld [vmem:[%s18845_s2 + $0x210] sm:$0xff] }
 0x12a   : > { %v938_v42 = vpop.xlane.xlu0 %937  ;;  %v12784_v46 = vpop.eup %12783  ;;  %v1517_v43 = vadd.f32 1.0, %v12782_v41  ;;  %12809 = vpow2.f32 %v1410_v34  ;;  %v1414_v47 = vmul.f32 1.442695, %v1264_v44  ;;  %v1179_v49 = vadd.f32 %v1092_v36, %v942_v45  ;;  %2467 = vperm.xlu0 %12580, %v12780_v5   ;;  %v1100_v44 = vld [vmem:[%s18845_s2 + $0x248] sm:$0xff] }
 0x12b   : > { %v14476_v51 = vpop.eup %12785  ;;  %v1516_v52 = vadd.f32 1.0, %v12784_v46  ;;  %12811 = vpow2.f32 %v1408_v29  ;;  %v1412_v56 = vmul.f32 1.442695, %v1263_v48  ;;  %v1178_v54 = vadd.f32 %v1091_v40, %v938_v42  ;;  %v1099_v48 = vld [vmem:[%s18845_s2 + $0x240] sm:$0xff] }
 0x12c   : > { %v12788_v57 = vpop.eup %12787  ;;  %12813 = vrcp.f32 %v1517_v43  ;;  %v1266_v27 = vsub.f32 0.0, %v1179_v49 }
 0x12d   : > { %v14484_v58 = vpop.eup %12789  ;;  %12815 = vrcp.f32 %v1516_v52  ;;  %v950_v61 = vpop.xlane.xlu1 %949  ;;  %2422 = vperm.xlu1 %12579, %v14421_v3   ;;  %v1265_v62 = vsub.f32 0.0, %v1178_v54 }
 0x12e   : > { %v946_v1 = vpop.xlane.xlu0 %945  ;;  %v12792_v63 = vpop.eup %12791  ;;  %12817 = vpow2.f32 %v1414_v47  ;;  %v1418_v2 = vmul.f32 1.442695, %v1266_v27  ;;  %v1181_v60 = vadd.f32 %v1094_v39, %v950_v61  ;;  %2477 = vperm.xlu0 %12580, %v12788_v57  }
 0x12f   : > { %v1180_v23 = vadd.f32 %v1093_v50, %v946_v1  ;;  %v12794_v4 = vpop.eup %12793  ;;  %12819 = vpow2.f32 %v1412_v56  ;;  %v1416_v55 = vmul.f32 1.442695, %v1265_v62  ;;  %v1102_v50 = vld [vmem:[%s18845_s2 + $0x258] sm:$0xff] }
 0x130   : > { %v12796_v6 = vpop.eup %12795  ;;  %v1519_v24 = vadd.f32 1.0, %v12794_v4  ;;  %12821 = vpow2.f32 %v1418_v2  ;;  %v1268_v25 = vsub.f32 0.0, %v1181_v60 }
 0x131   : > { %v1267_v3 = vsub.f32 0.0, %v1180_v23  ;;  %v14493_v10 = vpop.eup %12797  ;;  %v1518_v11 = vadd.f32 1.0, %v12796_v6  ;;  %12823 = vpow2.f32 %v1416_v55  ;;  %v958_v12 = vpop.xlane.xlu1 %957  ;;  %2432 = vperm.xlu1 %12579, %v14430_v18  }
 0x132   : > { %v954_v16 = vpop.xlane.xlu0 %953  ;;  %v12800_v13 = vpop.eup %12799  ;;  %12825 = vrcp.f32 %v1519_v24  ;;  %v1422_v8 = vmul.f32 1.442695, %v1268_v25  ;;  %v1183_v17 = vadd.f32 %v1096_v7, %v958_v12  ;;  %2487 = vperm.xlu0 %12580, %v12792_v63  }
 0x133   : > { %v1420_v20 = vmul.f32 1.442695, %v1267_v3  ;;  %v12802_v21 = vpop.eup %12801  ;;  %12827 = vrcp.f32 %v1518_v11  ;;  %v1182_v15 = vadd.f32 %v1095_v59, %v954_v16  ;;  %v1104_v59 = vld [vmem:[%s18845_s2 + $0x268] sm:$0xff]  ;;  %v1103_v16 = vld [vmem:[%s18845_s2 + $0x260] sm:$0xff] }
 0x134   : > { %v12804_v26 = vpop.eup %12803  ;;  %v1521_v18 = vadd.f32 1.0, %v12802_v21  ;;  %12829 = vpow2.f32 %v1422_v8  ;;  %v1270_v19 = vsub.f32 0.0, %v1183_v17 }
 0x135   : > { %v14502_v53 = vpop.eup %12805  ;;  %v1520_v28 = vadd.f32 1.0, %v12804_v26  ;;  %12831 = vpow2.f32 %v1420_v20  ;;  %v966_v30 = vpop.xlane.xlu1 %965  ;;  %2442 = vperm.xlu1 %12579, %v14439_v37   ;;  %v1269_v31 = vsub.f32 0.0, %v1182_v15 }
 0x136   : > { %v962_v34 = vpop.xlane.xlu0 %961  ;;  %v12808_v32 = vpop.eup %12807  ;;  %12833 = vrcp.f32 %v1521_v18  ;;  %v1426_v35 = vmul.f32 1.442695, %v1270_v19  ;;  %v1185_v29 = vadd.f32 %v1098_v22, %v966_v30  ;;  %2497 = vperm.xlu0 %12580, %v12800_v13  }
 0x137   : > { %v1184_v36 = vadd.f32 %v1097_v9, %v962_v34  ;;  %v12810_v38 = vpop.eup %12809  ;;  %12835 = vrcp.f32 %v1520_v28  ;;  %v1424_v5 = vmul.f32 1.442695, %v1269_v31  ;;  %v1106_v28 = vld [vmem:[%s18845_s2 + $0x278] sm:$0xff]  ;;  %v1105_v34 = vld [vmem:[%s18845_s2 + $0x270] sm:$0xff] }
 0x138   : > { %v12812_v40 = vpop.eup %12811  ;;  %v1523_v41 = vadd.f32 1.0, %v12810_v38  ;;  %12837 = vpow2.f32 %v1426_v35  ;;  %v1272_v45 = vsub.f32 0.0, %v1185_v29 }
 0x139   : > { %v1271_v37 = vsub.f32 0.0, %v1184_v36  ;;  %v14511_v42 = vpop.eup %12813  ;;  %v1522_v46 = vadd.f32 1.0, %v12812_v40  ;;  %12839 = vpow2.f32 %v1424_v5  ;;  %v974_v43 = vpop.xlane.xlu1 %973  ;;  %2452 = vperm.xlu1 %12579, %v14449_v0   ;;  %v1101_v0 = vld [vmem:[%s18845_s2 + $0x250] sm:$0xff] }
 0x13a   : > { %v970_v47 = vpop.xlane.xlu0 %969  ;;  %v12816_v49 = vpop.eup %12815  ;;  %12841 = vrcp.f32 %v1523_v41  ;;  %v1430_v52 = vmul.f32 1.442695, %v1272_v45  ;;  %v1187_v56 = vadd.f32 %v1100_v44, %v974_v43  ;;  %2507 = vperm.xlu0 %12580, %v12808_v32  }
 0x13b   : > { %v1428_v39 = vmul.f32 1.442695, %v1271_v37  ;;  %v12818_v54 = vpop.eup %12817  ;;  %12843 = vrcp.f32 %v1522_v46  ;;  %v1186_v57 = vadd.f32 %v1099_v48, %v970_v47  ;;  %v1108_v48 = vld [vmem:[%s18845_s2 + $0x288] sm:$0xff]  ;;  %v1107_v47 = vld [vmem:[%s18845_s2 + $0x280] sm:$0xff] }
 0x13c   : > { %v12820_v27 = vpop.eup %12819  ;;  %v1525_v61 = vadd.f32 1.0, %v12818_v54  ;;  %12845 = vpow2.f32 %v1430_v52  ;;  %v1274_v62 = vsub.f32 0.0, %v1187_v56 }
 0x13d   : > { %v12822_v1 = vpop.eup %12821  ;;  %v1524_v63 = vadd.f32 1.0, %v12820_v27  ;;  %12847 = vpow2.f32 %v1428_v39  ;;  %v982_v2 = vpop.xlane.xlu1 %981  ;;  %2462 = vperm.xlu1 %12579, %v14458_v14   ;;  %v1273_v60 = vsub.f32 0.0, %v1186_v57 }
 0x13e   : > { %v978_v23 = vpop.xlane.xlu0 %977  ;;  %v12824_v4 = vpop.eup %12823  ;;  %12849 = vrcp.f32 %v1525_v61  ;;  %v1527_v55 = vadd.f32 1.0, %v12822_v1  ;;  %v1434_v7 = vmul.f32 1.442695, %v1274_v62  ;;  %v1189_v6 = vadd.f32 %v1102_v50, %v982_v2  ;;  %2517 = vperm.xlu0 %12580, %v12816_v49   ;;  %v1110_v1 = vld [vmem:[%s18845_s2 + $0x298] sm:$0xff] }
 0x13f   : > { %v14521_v24 = vpop.eup %12825  ;;  %12851 = vrcp.f32 %v1524_v63  ;;  %v1526_v25 = vadd.f32 1.0, %v12824_v4  ;;  %v1432_v3 = vmul.f32 1.442695, %v1273_v60  ;;  %v1188_v11 = vadd.f32 %v1101_v0, %v978_v23 }
 0x140   : > { %v12828_v12 = vpop.eup %12827  ;;  %12853 = vrcp.f32 %v1527_v55  ;;  %v1276_v14 = vsub.f32 0.0, %v1189_v6 }
 0x141   : > { %v12830_v13 = vpop.eup %12829  ;;  %12855 = vrcp.f32 %v1526_v25  ;;  %v990_v8 = vpop.xlane.xlu1 %989  ;;  %2472 = vperm.xlu1 %12579, %v14467_v33   ;;  %v1275_v17 = vsub.f32 0.0, %v1188_v11 }
 0x142   : > { %v986_v20 = vpop.xlane.xlu0 %985  ;;  %v12832_v21 = vpop.eup %12831  ;;  %v1529_v22 = vadd.f32 1.0, %v12830_v13  ;;  %12857 = vpow2.f32 %v1434_v7  ;;  %v1438_v15 = vmul.f32 1.442695, %v1276_v14  ;;  %v1191_v9 = vadd.f32 %v1104_v59, %v990_v8  ;;  %2527 = vperm.xlu0 %12580, %v12828_v12   ;;  %v1112_v14 = vld [vmem:[%s18845_s2 + $0x2a8] sm:$0xff] }
 0x143   : > { %v14530_v26 = vpop.eup %12833  ;;  %v1528_v18 = vadd.f32 1.0, %v12832_v21  ;;  %12859 = vpow2.f32 %v1432_v3  ;;  %v1436_v19 = vmul.f32 1.442695, %v1275_v17  ;;  %v1190_v30 = vadd.f32 %v1103_v16, %v986_v20  ;;  %v1111_v17 = vld [vmem:[%s18845_s2 + $0x2a0] sm:$0xff] }
 0x144   : > { %v12836_v31 = vpop.eup %12835  ;;  %12861 = vrcp.f32 %v1529_v22  ;;  %v1278_v33 = vsub.f32 0.0, %v1191_v9 }
 0x145   : > { %v12838_v32 = vpop.eup %12837  ;;  %12863 = vrcp.f32 %v1528_v18  ;;  %v998_v35 = vpop.xlane.xlu1 %997  ;;  %2482 = vperm.xlu1 %12579, %v14476_v51   ;;  %v1277_v29 = vsub.f32 0.0, %v1190_v30 }
 0x146   : > { %v994_v36 = vpop.xlane.xlu0 %993  ;;  %v12840_v38 = vpop.eup %12839  ;;  %v1531_v5 = vadd.f32 1.0, %v12838_v32  ;;  %12865 = vpow2.f32 %v1438_v15  ;;  %v1442_v44 = vmul.f32 1.442695, %v1278_v33  ;;  %v1193_v40 = vadd.f32 %v1106_v28, %v998_v35  ;;  %2537 = vperm.xlu0 %12580, %v12836_v31   ;;  %v1636_v31 = vld [vmem:[%s18846_s3] sm:$0xff]  ;;  %v1637_v33 = vld [vmem:[%s18846_s3 + $0x8] sm:$0xff] }
 0x147   : > { %v14539_v41 = vpop.eup %12841  ;;  %v1530_v45 = vadd.f32 1.0, %v12840_v38  ;;  %12867 = vpow2.f32 %v1436_v19  ;;  %v1440_v37 = vmul.f32 1.442695, %v1277_v29  ;;  %v1192_v46 = vadd.f32 %v1105_v34, %v994_v36  ;;  %v1638_v29 = vld [vmem:[%s18846_s3 + $0x10] sm:$0xff]  ;;  %v1639_v36 = vld [vmem:[%s18846_s3 + $0x18] sm:$0xff]  ;;  %v1640_v38 = vld [vmem:[%s18846_s3 + $0x20] sm:$0xff] }
 0x148   : > { %v12844_v43 = vpop.eup %12843  ;;  %12869 = vrcp.f32 %v1531_v5  ;;  %v1280_v51 = vsub.f32 0.0, %v1193_v40  ;;  %v1641_v40 = vld [vmem:[%s18846_s3 + $0x28] sm:$0xff] }
 0x149   : > { %v12846_v49 = vpop.eup %12845  ;;  %12871 = vrcp.f32 %v1530_v45  ;;  %v1006_v52 = vpop.xlane.xlu1 %1005  ;;  %2492 = vperm.xlu1 %12579, %v14484_v58   ;;  %v1279_v56 = vsub.f32 0.0, %v1192_v46  ;;  %v1109_v58 = vld [vmem:[%s18845_s2 + $0x290] sm:$0xff] }
 0x14a   : > { %v1002_v39 = vpop.xlane.xlu0 %1001  ;;  %v12848_v54 = vpop.eup %12847  ;;  %v1533_v50 = vadd.f32 1.0, %v12846_v49  ;;  %12873 = vpow2.f32 %v1442_v44  ;;  %v1446_v57 = vmul.f32 1.442695, %v1280_v51  ;;  %v1195_v27 = vadd.f32 %v1108_v48, %v1006_v52  ;;  %2547 = vperm.xlu0 %12580, %v12844_v43   ;;  %v1642_v45 = vld [vmem:[%s18846_s3 + $0x30] sm:$0xff] }
 0x14b   : > { %v14548_v61 = vpop.eup %12849  ;;  %v1532_v62 = vadd.f32 1.0, %v12848_v54  ;;  %12875 = vpow2.f32 %v1440_v37  ;;  %v1444_v0 = vmul.f32 1.442695, %v1279_v56  ;;  %v1194_v63 = vadd.f32 %v1107_v47, %v1002_v39  ;;  %v1650_v54 = vld [vmem:[%s18846_s3 + $0x70] sm:$0xff] }
 0x14c   : > { %v12852_v2 = vpop.eup %12851  ;;  %12877 = vrcp.f32 %v1533_v50  ;;  %v1282_v60 = vsub.f32 0.0, %v1195_v27 }
 0x14d   : > { %v14556_v23 = vpop.eup %12853  ;;  %12879 = vrcp.f32 %v1532_v62  ;;  %v1014_v4 = vpop.xlane.xlu1 %1013  ;;  %2502 = vperm.xlu1 %12579, %v14493_v10   ;;  %v1281_v55 = vsub.f32 0.0, %v1194_v63  ;;  %v1653_v63 = vld [vmem:[%s18846_s3 + $0x88] sm:$0xff] }
 0x14e   : > { %v1010_v7 = vpop.xlane.xlu0 %1009  ;;  %v12856_v6 = vpop.eup %12855  ;;  %12881 = vpow2.f32 %v1446_v57  ;;  %v1450_v25 = vmul.f32 1.442695, %v1282_v60  ;;  %v1197_v3 = vadd.f32 %v1110_v1, %v1014_v4  ;;  %2557 = vperm.xlu0 %12580, %v12852_v2   ;;  %v1652_v1 = vld [vmem:[%s18846_s3 + $0x80] sm:$0xff] }
 0x14f   : > { %v1196_v59 = vadd.f32 %v1109_v58, %v1010_v7  ;;  %v12858_v11 = vpop.eup %12857  ;;  %12883 = vpow2.f32 %v1444_v0  ;;  %v1448_v12 = vmul.f32 1.442695, %v1281_v55  ;;  %v1651_v0 = vld [vmem:[%s18846_s3 + $0x78] sm:$0xff]  ;;  %v1654_v7 = vld [vmem:[%s18846_s3 + $0x90] sm:$0xff] }
 0x150   : > { %v12860_v16 = vpop.eup %12859  ;;  %v1535_v13 = vadd.f32 1.0, %v12858_v11  ;;  %12885 = vpow2.f32 %v1450_v25  ;;  %v1284_v8 = vsub.f32 0.0, %v1197_v3 }
 0x151   : > { %v1283_v10 = vsub.f32 0.0, %v1196_v59  ;;  %v14565_v20 = vpop.eup %12861  ;;  %v1534_v21 = vadd.f32 1.0, %v12860_v16  ;;  %12887 = vpow2.f32 %v1448_v12  ;;  %v1022_v22 = vpop.xlane.xlu1 %1021  ;;  %2512 = vperm.xlu1 %12579, %v14502_v53   ;;  %v1656_v12 = vld [vmem:[%s18846_s3 + $0xa0] sm:$0xff] }
 0x152   : > { %v1018_v15 = vpop.xlane.xlu0 %1017  ;;  %v12864_v9 = vpop.eup %12863  ;;  %12889 = vrcp.f32 %v1535_v13  ;;  %v1454_v18 = vmul.f32 1.442695, %v1284_v8  ;;  %v1199_v19 = vadd.f32 %v1112_v14, %v1022_v22  ;;  %2567 = vperm.xlu0 %12580, %v12856_v6   ;;  %v1655_v6 = vld [vmem:[%s18846_s3 + $0x98] sm:$0xff] }
 0x153   : > { %v1452_v28 = vmul.f32 1.442695, %v1283_v10  ;;  %v12866_v30 = vpop.eup %12865  ;;  %12891 = vrcp.f32 %v1534_v21  ;;  %v1198_v34 = vadd.f32 %v1111_v17, %v1018_v15 }
 0x154   : > { %v12868_v32 = vpop.eup %12867  ;;  %v1537_v53 = vadd.f32 1.0, %v12866_v30  ;;  %12893 = vpow2.f32 %v1454_v18  ;;  %v1286_v35 = vsub.f32 0.0, %v1199_v19 }
 0x155   : > { %v14583_v5 = vpop.eup %12869  ;;  %v1536_v44 = vadd.f32 1.0, %v12868_v32  ;;  %12895 = vpow2.f32 %v1452_v28  ;;  %v2248_v37 = vpop.permute.xlu1 %2247  ;;  %2522 = vperm.xlu1 %12579, %v14511_v42   ;;  %v1285_v48 = vsub.f32 0.0, %v1198_v34  ;;  %v1659_v34 = vld [vmem:[%s18846_s3 + $0xb8] sm:$0xff] }
 0x156   : > { %v12872_v46 = vpop.eup %12871  ;;  %12897 = vrcp.f32 %v1537_v53  ;;  %v1458_v43 = vmul.f32 1.442695, %v1286_v35  ;;  %v2680_v51 = vmul.f32 %v2248_v37, %v1636_v31  ;;  %v2681_v47 = vmul.f32 %v2248_v37, %v1637_v33  ;;  %2577 = vperm.xlu0 %12580, %v12864_v9   ;;  %v1026_v50 = vpop.xlane.xlu0 %1025  ;;  %v1657_v9 = vld [vmem:[%s18846_s3 + $0xa8] sm:$0xff]  ;;  %v1658_v33 = vld [vmem:[%s18846_s3 + $0xb0] sm:$0xff] }
 0x157   : > { %v12874_v49 = vpop.eup %12873  ;;  %12899 = vrcp.f32 %v1536_v44  ;;  %v2682_v52 = vmul.f32 %v2248_v37, %v1638_v29  ;;  %v2683_v56 = vmul.f32 %v2248_v37, %v1639_v36  ;;  %v2684_v39 = vmul.f32 %v2248_v37, %v1640_v38  ;;  %v1660_v44 = vld [vmem:[%s18846_s3 + $0xc0] sm:$0xff] }
 0x158   : > { %v12876_v57 = vpop.eup %12875  ;;  %v1539_v27 = vadd.f32 1.0, %v12874_v49  ;;  %12901 = vpow2.f32 %v1458_v43  ;;  %v2685_v42 = vmul.f32 %v2248_v37, %v1641_v40  ;;  %v2686_v62 = vmul.f32 %v2248_v37, %v1642_v45  ;;  %v1661_v40 = vld [vmem:[%s18846_s3 + $0xc8] sm:$0xff]  ;;  %v1662_v45 = vld [vmem:[%s18846_s3 + $0xd0] sm:$0xff] }
 0x159   : > { %v14604_v58 = vpop.eup %12877  ;;  %v1538_v2 = vadd.f32 1.0, %v12876_v57  ;;  %v11891_v60 = vpack.c.bf16 %v2681_v47, %v2680_v51  ;;  %v11892_v4 = vpack.c.bf16 %v2683_v56, %v2682_v52  ;;  %v1456_v55 = vmul.f32 1.442695, %v1285_v48  ;;  %v2258_v25 = vpop.permute.xlu1 %2257  ;;  %2532 = vperm.xlu1 %12579, %v14521_v24   ;;  %v1113_v24 = vld [vmem:[%s18845_s2 + $0x2b0] sm:$0xff]  ;;  %v1643_v56 = vld [vmem:[%s18846_s3 + $0x38] sm:$0xff] }
 0x15a   : > { %v12880_v3 = vpop.eup %12879  ;;  %12903 = vrcp.f32 %v1539_v27  ;;  %v11893_v59 = vpack.c.bf16 %v2685_v42, %v2684_v39  ;;  %v11894_v11 = vpack.c.bf16 %v2686_v62, %v2686_v62  ;;  %v2694_v14 = vmul.f32 %v2258_v25, %v1650_v54  ;;  %2587 = vperm.xlu0 %12580, %v12872_v46   ;;  %v1663_v46 = vld [vmem:[%s18846_s3 + $0xd8] sm:$0xff]  ;;  %v1644_v27 = vld [vmem:[%s18846_s3 + $0x40] sm:$0xff]  ;;  %v1645_v42 = vld [vmem:[%s18846_s3 + $0x48] sm:$0xff] }
 0x15b   : > { %v12882_v16 = vpop.eup %12881  ;;  %12905 = vrcp.f32 %v1538_v2  ;;  %5210 = vst [vmem:[#allocation2] sm:$0xff] %v11891_v60  ;;  %5211 = vst [vmem:[#allocation2 + $0x8] sm:$0xff] %v11892_v4  ;;  %v2695_v13 = vmul.f32 %v2258_v25, %v1651_v0  ;;  %v2696_v8 = vmul.f32 %v2258_v25, %v1652_v1  ;;  %v2697_v10 = vmul.f32 %v2258_v25, %v1653_v63 }
 0x15c   : > { %v12884_v17 = vpop.eup %12883  ;;  %v1541_v21 = vadd.f32 1.0, %v12882_v16  ;;  %5212 = vst [vmem:[#allocation2 + $0x10] sm:$0xff] %v11893_v59  ;;  %5214 = vst.msk [vmem:[#allocation2 + $0x18] sm:$0xf] %vm5213_vm1, %v11894_v11  ;;  %12907 = vpow2.f32 %v1456_v55  ;;  %v2698_v22 = vmul.f32 %v2258_v25, %v1654_v7  ;;  %v2699_v15 = vmul.f32 %v2258_v25, %v1655_v6  ;;  %v1646_v55 = vld [vmem:[%s18846_s3 + $0x50] sm:$0xff]  ;;  %v1647_v7 = vld [vmem:[%s18846_s3 + $0x58] sm:$0xff] }
 0x15d   : > { %v12886_v18 = vpop.eup %12885  ;;  %v1540_v19 = vadd.f32 1.0, %v12884_v17  ;;  %v2700_v28 = vmul.f32 %v2258_v25, %v1656_v12  ;;  %v11899_v30 = vpack.c.bf16 %v2695_v13, %v2694_v14  ;;  %v11900_v31 = vpack.c.bf16 %v2697_v10, %v2696_v8  ;;  %v2263_v32 = vpop.permute.xlu1 %2262  ;;  %2542 = vperm.xlu1 %12579, %v14530_v26   ;;  %v1648_v6 = vld [vmem:[%s18846_s3 + $0x60] sm:$0xff]  ;;  %v1649_v11 = vld [vmem:[%s18846_s3 + $0x68] sm:$0xff] }
 0x15e   : > { %v14630_v53 = vpop.permute.xlu0 %2252  ;;  %v12888_v35 = vpop.eup %12887  ;;  %12909 = vrcp.f32 %v1541_v21  ;;  %v1543_v29 = vadd.f32 1.0, %v12886_v18  ;;  %v11901_v36 = vpack.c.bf16 %v2699_v15, %v2698_v22  ;;  %v1200_v38 = vadd.f32 %v1113_v24, %v1026_v50  ;;  %2597 = vperm.xlu0 %12580, %v12880_v3   ;;  %v1664_v10 = vld [vmem:[%s18846_s3 + $0xe0] sm:$0xff]  ;;  %v1665_v24 = vld [vmem:[%s18846_s3 + $0xe8] sm:$0xff]  ;;  %v1667_v18 = vld [vmem:[%s18846_s3 + $0xf8] sm:$0xff] }
 0x15f   : > { %v14641_v26 = vpop.eup %12889  ;;  %12911 = vrcp.f32 %v1540_v19  ;;  %v1542_v37 = vadd.f32 1.0, %v12888_v35  ;;  %v11902_v48 = vpack.c.bf16 %v2700_v28, %v2700_v28  ;;  %5219 = vst [vmem:[#allocation2 + $0x38] sm:$0xff] %v11899_v30  ;;  %5220 = vst [vmem:[#allocation2 + $0x40] sm:$0xff] %v11900_v31  ;;  %v2701_v43 = vmul.f32 %v2263_v32, %v1657_v9  ;;  %v1666_v9 = vld [vmem:[%s18846_s3 + $0xf0] sm:$0xff] }
 0x160   : > { %v12892_v51 = vpop.eup %12891  ;;  %12913 = vrcp.f32 %v1543_v29  ;;  %5221 = vst [vmem:[#allocation2 + $0x48] sm:$0xff] %v11901_v36  ;;  %v1287_v47 = vsub.f32 0.0, %v1200_v38  ;;  %v2702_v49 = vmul.f32 %v2263_v32, %v1658_v33  ;;  %v2703_v52 = vmul.f32 %v2263_v32, %v1659_v34  ;;  %v1668_v34 = vld [vmem:[%s18846_s3 + $0x100] sm:$0xff] }
 0x161   : > { %v12894_v39 = vpop.eup %12893  ;;  %12915 = vrcp.f32 %v1542_v37  ;;  %5222 = vst.msk [vmem:[#allocation2 + $0x50] sm:$0xf] %vm5213_vm1, %v11902_v48  ;;  %v2704_v54 = vmul.f32 %v2263_v32, %v1660_v44  ;;  %v2705_v50 = vmul.f32 %v2263_v32, %v1661_v40  ;;  %v2706_v57 = vmul.f32 %v2263_v32, %v1662_v45  ;;  %v14656_v62 = vpop.permute.xlu1 %2267  ;;  %2552 = vperm.xlu1 %12579, %v14539_v41   ;;  %v1706_v44 = vld [vmem:[%s18846_s3 + $0x230] sm:$0xff]  ;;  %v1707_v40 = vld [vmem:[%s18846_s3 + $0x238] sm:$0xff] }
 0x162   : > { %v14659_v0 = vpop.permute.xlu0 %2297  ;;  %v12896_v1 = vpop.eup %12895  ;;  %v1545_v63 = vadd.f32 1.0, %v12894_v39  ;;  %v1460_v2 = vmul.f32 1.442695, %v1287_v47  ;;  %v2707_v60 = vmul.f32 %v2263_v32, %v1663_v46  ;;  %v11903_v4 = vpack.c.bf16 %v2702_v49, %v2701_v43  ;;  %2607 = vperm.xlu0 %12580, %v12892_v51   ;;  %v1669_v32 = vld [vmem:[%s18846_s3 + $0x108] sm:$0xff]  ;;  %v1708_v43 = vld [vmem:[%s18846_s3 + $0x240] sm:$0xff] }
 0x163   : > { %v14670_v41 = vpop.eup %12897  ;;  %v1544_v25 = vadd.f32 1.0, %v12896_v1  ;;  %v11904_v3 = vpack.c.bf16 %v2704_v54, %v2703_v52  ;;  %v11905_v59 = vpack.c.bf16 %v2706_v57, %v2705_v50  ;;  %v2687_v12 = vmul.f32 %v14630_v53, %v1643_v56  ;;  %v1709_v51 = vld [vmem:[%s18846_s3 + $0x248] sm:$0xff]  ;;  %v1710_v54 = vld [vmem:[%s18846_s3 + $0x250] sm:$0xff]  ;;  %v1711_v50 = vld [vmem:[%s18846_s3 + $0x258] sm:$0xff] }
 0x164   : > { %v12900_v14 = vpop.eup %12899  ;;  %12917 = vrcp.f32 %v1545_v63  ;;  %v11906_v16 = vpack.c.bf16 %v2707_v60, %v2707_v60  ;;  %5223 = vst [vmem:[#allocation2 + $0x54] sm:$0xff] %v11903_v4  ;;  %v2688_v13 = vmul.f32 %v14630_v53, %v1644_v27  ;;  %v2689_v8 = vmul.f32 %v14630_v53, %v1645_v42  ;;  %v1712_v57 = vld [vmem:[%s18846_s3 + $0x260] sm:$0xff]  ;;  %v1671_v60 = vld [vmem:[%s18846_s3 + $0x118] sm:$0xff] }
 0x165   : > { %v12902_v17 = vpop.eup %12901  ;;  %12919 = vrcp.f32 %v1544_v25  ;;  %5224 = vst [vmem:[#allocation2 + $0x5c] sm:$0xff] %v11904_v3  ;;  %5225 = vst [vmem:[#allocation2 + $0x64] sm:$0xff] %v11905_v59  ;;  %v2690_v21 = vmul.f32 %v14630_v53, %v1646_v55  ;;  %v2691_v22 = vmul.f32 %v14630_v53, %v1647_v7  ;;  %v2692_v15 = vmul.f32 %v14630_v53, %v1648_v6  ;;  %v14693_v19 = vpop.permute.xlu1 %2272  ;;  %v1672_v4 = vld [vmem:[%s18846_s3 + $0x120] sm:$0xff]  ;;  %v1673_v3 = vld [vmem:[%s18846_s3 + $0x128] sm:$0xff] }
 0x166   : > { %2562 = vperm.xlu1 %12579, %v14548_v61   ;;  %v14696_v28 = vpop.permute.xlu0 %2307  ;;  %v1547_v30 = vadd.f32 1.0, %v12902_v17  ;;  %12921 = vpow2.f32 %v1460_v2  ;;  %5226 = vst.msk [vmem:[#allocation2 + $0x6c] sm:$0xf] %vm5213_vm1, %v11906_v16  ;;  %v2693_v31 = vmul.f32 %v14630_v53, %v1649_v11  ;;  %v11895_v33 = vpack.c.bf16 %v2688_v13, %v2687_v12  ;;  %v1670_v61 = vld [vmem:[%s18846_s3 + $0x110] sm:$0xff]  ;;  %2617 = vperm.xlu0 %12580, %v12900_v14   ;;  %v1675_v13 = vld [vmem:[%s18846_s3 + $0x138] sm:$0xff] }
 0x167   : > { %v14709_v35 = vpop.eup %12903  ;;  %v11896_v29 = vpack.c.bf16 %v2690_v21, %v2689_v8  ;;  %v11897_v36 = vpack.c.bf16 %v2692_v15, %v2691_v22  ;;  %v2708_v53 = vmul.f32 %v14656_v62, %v1664_v10  ;;  %v2709_v38 = vmul.f32 %v14656_v62, %v1665_v24  ;;  %v1674_v59 = vld [vmem:[%s18846_s3 + $0x130] sm:$0xff]  ;;  %v1676_v8 = vld [vmem:[%s18846_s3 + $0x140] sm:$0xff]  ;;  %v1677_v10 = vld [vmem:[%s18846_s3 + $0x148] sm:$0xff] }
 0x168   : > { %v12906_v45 = vpop.eup %12905  ;;  %12923 = vrcp.f32 %v1547_v30  ;;  %v11898_v37 = vpack.c.bf16 %v2693_v31, %v2693_v31  ;;  %5215 = vst [vmem:[#allocation2 + $0x1c] sm:$0xff] %v11895_v33  ;;  %v2710_v48 = vmul.f32 %v14656_v62, %v1666_v9  ;;  %v2711_v46 = vmul.f32 %v14656_v62, %v1667_v18  ;;  %v1720_v15 = vld [vmem:[%s18846_s3 + $0x2a0] sm:$0xff]  ;;  %v1721_v9 = vld [vmem:[%s18846_s3 + $0x2a8] sm:$0xff]  ;;  %v1722_v18 = vld [vmem:[%s18846_s3 + $0x2b0] sm:$0xff] }
 0x169   : > { %v12908_v47 = vpop.eup %12907  ;;  %5216 = vst [vmem:[#allocation2 + $0x24] sm:$0xff] %v11896_v29  ;;  %5217 = vst [vmem:[#allocation2 + $0x2c] sm:$0xff] %v11897_v36  ;;  %v2712_v49 = vmul.f32 %v14656_v62, %v1668_v34  ;;  %v2713_v52 = vmul.f32 %v14656_v62, %v1669_v32  ;;  %v2714_v56 = vmul.f32 %v14656_v62, %v1670_v61  ;;  %v14739_v27 = vpop.permute.xlu1 %2277  ;;  %v1723_v36 = vld [vmem:[%s18846_s3 + $0x2b8] sm:$0xff] }
 0x16a   : > { %v11907_v39 = vpack.c.bf16 %v2709_v38, %v2708_v53  ;;  %2572 = vperm.xlu1 %12579, %v14556_v23   ;;  %v14742_v42 = vpop.permute.xlu0 %2317  ;;  %v1546_v62 = vadd.f32 1.0, %v12908_v47  ;;  %5218 = vst.msk [vmem:[#allocation2 + $0x34] sm:$0xf] %vm5213_vm1, %v11898_v37  ;;  %v11908_v1 = vpack.c.bf16 %v2711_v46, %v2710_v48  ;;  %v2750_v63 = vmul.f32 %v14659_v0, %v1706_v44  ;;  %v1724_v53 = vld [vmem:[%s18846_s3 + $0x2c0] sm:$0xff]  ;;  %v1726_v37 = vld [vmem:[%s18846_s3 + $0x2d0] sm:$0xff]  ;;  %v1679_v47 = vld [vmem:[%s18846_s3 + $0x158] sm:$0xff] }
 0x16b   : > { %v2751_v2 = vmul.f32 %v14659_v0, %v1707_v40  ;;  %2627 = vperm.xlu0 %12580, %v12906_v45   ;;  %v14753_v23 = vpop.eup %12909  ;;  %v11909_v55 = vpack.c.bf16 %v2713_v52, %v2712_v49  ;;  %v11910_v7 = vpack.c.bf16 %v2714_v56, %v2714_v56  ;;  %v2752_v6 = vmul.f32 %v14659_v0, %v1708_v43  ;;  %v1725_v45 = vld [vmem:[%s18846_s3 + $0x2c8] sm:$0xff]  ;;  %v1678_v48 = vld [vmem:[%s18846_s3 + $0x150] sm:$0xff]  ;;  %v1680_v49 = vld [vmem:[%s18846_s3 + $0x160] sm:$0xff] }
 0x16c   : > { %5227 = vst [vmem:[#allocation2 + $0x70] sm:$0xff] %v11907_v39  ;;  %v2753_v25 = vmul.f32 %v14659_v0, %v1709_v51  ;;  %v12912_v11 = vpop.eup %12911  ;;  %12925 = vrcp.f32 %v1546_v62  ;;  %5228 = vst [vmem:[#allocation2 + $0x78] sm:$0xff] %v11908_v1  ;;  %v2754_v12 = vmul.f32 %v14659_v0, %v1710_v54  ;;  %v2755_v14 = vmul.f32 %v14659_v0, %v1711_v50  ;;  %v1681_v52 = vld [vmem:[%s18846_s3 + $0x168] sm:$0xff]  ;;  %v1682_v62 = vld [vmem:[%s18846_s3 + $0x170] sm:$0xff] }
 0x16d   : > { %v2756_v16 = vmul.f32 %v14659_v0, %v1712_v57  ;;  %v14775_v24 = vpop.eup %12913  ;;  %5229 = vst [vmem:[#allocation2 + $0x80] sm:$0xff] %v11909_v55  ;;  %5230 = vst.msk [vmem:[#allocation2 + $0x88] sm:$0xf] %vm5213_vm1, %v11910_v7  ;;  %v11931_v17 = vpack.c.bf16 %v2751_v2, %v2750_v63  ;;  %v2715_v0 = vmul.f32 %v14693_v19, %v1671_v60  ;;  %v14789_v30 = vpop.permute.xlu1 %2282  ;;  %v1683_v7 = vld [vmem:[%s18846_s3 + $0x178] sm:$0xff] }
 0x16e   : > { %v11932_v21 = vpack.c.bf16 %v2753_v25, %v2752_v6  ;;  %v2716_v22 = vmul.f32 %v14693_v19, %v1672_v4  ;;  %2582 = vperm.xlu1 %12579, %v14565_v20   ;;  %v14792_v31 = vpop.permute.xlu0 %2327  ;;  %v12916_v33 = vpop.eup %12915  ;;  %v11933_v34 = vpack.c.bf16 %v2755_v14, %v2754_v12  ;;  %v2717_v61 = vmul.f32 %v14693_v19, %v1673_v3  ;;  %v1684_v6 = vld [vmem:[%s18846_s3 + $0x180] sm:$0xff]  ;;  %v1734_v12 = vld [vmem:[%s18846_s3 + $0x310] sm:$0xff]  ;;  %v1735_v14 = vld [vmem:[%s18846_s3 + $0x318] sm:$0xff] }
 0x16f   : > { %v11934_v32 = vpack.c.bf16 %v2756_v16, %v2756_v16  ;;  %v2718_v29 = vmul.f32 %v14693_v19, %v1674_v59  ;;  %2637 = vperm.xlu0 %12580, %v12912_v11   ;;  %5251 = vst [vmem:[#allocation2 + $0x118] sm:$0xff] %v11931_v17  ;;  %v2719_v20 = vmul.f32 %v14693_v19, %v1675_v13  ;;  %v1736_v16 = vld [vmem:[%s18846_s3 + $0x320] sm:$0xff] }
 0x170   : > { %5252 = vst [vmem:[#allocation2 + $0x120] sm:$0xff] %v11932_v21  ;;  %v2720_v38 = vmul.f32 %v14693_v19, %v1676_v8  ;;  %v2721_v44 = vmul.f32 %v14693_v19, %v1677_v10  ;;  %v11911_v40 = vpack.c.bf16 %v2716_v22, %v2715_v0  ;;  %5253 = vst [vmem:[#allocation2 + $0x128] sm:$0xff] %v11933_v34  ;;  %v1737_v21 = vld [vmem:[%s18846_s3 + $0x328] sm:$0xff]  ;;  %v1738_v0 = vld [vmem:[%s18846_s3 + $0x330] sm:$0xff] }
 0x171   : > { %5254 = vst.msk [vmem:[#allocation2 + $0x130] sm:$0xf] %vm5213_vm1, %v11934_v32  ;;  %v11912_v46 = vpack.c.bf16 %v2718_v29, %v2717_v61  ;;  %v2764_v43 = vmul.f32 %v14696_v28, %v1720_v15  ;;  %v2765_v19 = vmul.f32 %v14696_v28, %v1721_v9  ;;  %v2766_v51 = vmul.f32 %v14696_v28, %v1722_v18  ;;  %v14827_v56 = vpop.eup %12917  ;;  %v14835_v1 = vpop.permute.xlu1 %2287  ;;  %v1739_v34 = vld [vmem:[%s18846_s3 + $0x338] sm:$0xff]  ;;  %v1740_v32 = vld [vmem:[%s18846_s3 + $0x340] sm:$0xff]  ;;  %v1685_v61 = vld [vmem:[%s18846_s3 + $0x188] sm:$0xff] }
 0x172   : > { %v11913_v39 = vpack.c.bf16 %v2720_v38, %v2719_v20  ;;  %v11914_v54 = vpack.c.bf16 %v2721_v44, %v2721_v44  ;;  %5231 = vst [vmem:[#allocation2 + $0x8c] sm:$0xff] %v11911_v40  ;;  %v2767_v50 = vmul.f32 %v14696_v28, %v1723_v36  ;;  %v2768_v57 = vmul.f32 %v14696_v28, %v1724_v53  ;;  %v14837_v63 = vpop.permute.xlu0 %2337  ;;  %v12920_v2 = vpop.eup %12919  ;;  %v1686_v38 = vld [vmem:[%s18846_s3 + $0x190] sm:$0xff]  ;;  %v1688_v44 = vld [vmem:[%s18846_s3 + $0x1a0] sm:$0xff] }
 0x173   : > { %2592 = vperm.xlu1 %12579, %v14583_v5   ;;  %5232 = vst [vmem:[#allocation2 + $0x94] sm:$0xff] %v11912_v46  ;;  %v2769_v60 = vmul.f32 %v14696_v28, %v1725_v45  ;;  %v2770_v4 = vmul.f32 %v14696_v28, %v1726_v37  ;;  %v11939_v55 = vpack.c.bf16 %v2765_v19, %v2764_v43  ;;  %v12922_v25 = vpop.eup %12921  ;;  %v1689_v46 = vld [vmem:[%s18846_s3 + $0x1a8] sm:$0xff]  ;;  %v1690_v43 = vld [vmem:[%s18846_s3 + $0x1b0] sm:$0xff] }
 0x174   : > { %v2722_v5 = vmul.f32 %v14739_v27, %v1678_v48  ;;  %2647 = vperm.xlu0 %12580, %v12916_v33   ;;  %5233 = vst [vmem:[#allocation2 + $0x9c] sm:$0xff] %v11913_v39  ;;  %5234 = vst.msk [vmem:[#allocation2 + $0xa4] sm:$0xf] %vm5213_vm1, %v11914_v54  ;;  %v11940_v3 = vpack.c.bf16 %v2767_v50, %v2766_v51  ;;  %v2723_v59 = vmul.f32 %v14739_v27, %v1679_v47  ;;  %v1748_v39 = vld [vmem:[%s18846_s3 + $0x380] sm:$0xff] }
 0x175   : > { %v2724_v28 = vmul.f32 %v14739_v27, %v1680_v49  ;;  %v2725_v11 = vmul.f32 %v14739_v27, %v1681_v52  ;;  %v1548_v13 = vadd.f32 1.0, %v12922_v25  ;;  %v11941_v8 = vpack.c.bf16 %v2769_v60, %v2768_v57  ;;  %5259 = vst [vmem:[#allocation2 + $0x150] sm:$0xff] %v11939_v55  ;;  %v14868_v22 = vpop.eup %12923  ;;  %v14882_v29 = vpop.permute.xlu1 %2292  ;;  %v1691_v49 = vld [vmem:[%s18846_s3 + $0x1b8] sm:$0xff]  ;;  %v1750_v60 = vld [vmem:[%s18846_s3 + $0x390] sm:$0xff] }
 0x176   : > { %v11942_v10 = vpack.c.bf16 %v2770_v4, %v2770_v4  ;;  %v2726_v17 = vmul.f32 %v14739_v27, %v1682_v62  ;;  %5260 = vst [vmem:[#allocation2 + $0x158] sm:$0xff] %v11940_v3  ;;  %v2727_v15 = vmul.f32 %v14739_v27, %v1683_v7  ;;  %v2728_v9 = vmul.f32 %v14739_v27, %v1684_v6  ;;  %v14884_v36 = vpop.permute.xlu0 %2347  ;;  %v1751_v4 = vld [vmem:[%s18846_s3 + $0x398] sm:$0xff] }
 0x177   : > { %v11915_v18 = vpack.c.bf16 %v2723_v59, %v2722_v5  ;;  %v11916_v33 = vpack.c.bf16 %v2725_v11, %v2724_v28  ;;  %2602 = vperm.xlu1 %12579, %v14604_v58   ;;  %12927 = vrcp.f32 %v1548_v13  ;;  %5261 = vst [vmem:[#allocation2 + $0x160] sm:$0xff] %v11941_v8  ;;  %v2778_v27 = vmul.f32 %v14742_v42, %v1734_v12  ;;  %v1687_v58 = vld [vmem:[%s18846_s3 + $0x198] sm:$0xff]  ;;  %v1752_v59 = vld [vmem:[%s18846_s3 + $0x3a0] sm:$0xff]  ;;  %v1753_v28 = vld [vmem:[%s18846_s3 + $0x3a8] sm:$0xff] }
 0x178   : > { %5262 = vst.msk [vmem:[#allocation2 + $0x168] sm:$0xf] %vm5213_vm1, %v11942_v10  ;;  %v2779_v53 = vmul.f32 %v14742_v42, %v1735_v14  ;;  %v2780_v20 = vmul.f32 %v14742_v42, %v1736_v16  ;;  %2657 = vperm.xlu0 %12580, %v12920_v2   ;;  %v11917_v40 = vpack.c.bf16 %v2727_v15, %v2726_v17  ;;  %v1749_v2 = vld [vmem:[%s18846_s3 + $0x388] sm:$0xff]  ;;  %v1692_v13 = vld [vmem:[%s18846_s3 + $0x1c0] sm:$0xff]  ;;  %v1695_v15 = vld [vmem:[%s18846_s3 + $0x1d8] sm:$0xff] }
 0x179   : > { %v11918_v45 = vpack.c.bf16 %v2728_v9, %v2728_v9  ;;  %5235 = vst [vmem:[#allocation2 + $0xa8] sm:$0xff] %v11915_v18  ;;  %5236 = vst [vmem:[#allocation2 + $0xb0] sm:$0xff] %v11916_v33  ;;  %v2781_v37 = vmul.f32 %v14742_v42, %v1737_v21  ;;  %v2782_v48 = vmul.f32 %v14742_v42, %v1738_v0  ;;  %v12926_v54 = vpop.eup %12925  ;;  %v14930_v55 = vpop.permute.xlu1 %2302  ;;  %v1693_v8 = vld [vmem:[%s18846_s3 + $0x1c8] sm:$0xff]  ;;  %v1694_v0 = vld [vmem:[%s18846_s3 + $0x1d0] sm:$0xff] }
 0x17a   : > { %v2783_v19 = vmul.f32 %v14742_v42, %v1739_v34  ;;  %v2784_v51 = vmul.f32 %v14742_v42, %v1740_v32  ;;  %v11947_v47 = vpack.c.bf16 %v2779_v53, %v2778_v27  ;;  %v2729_v52 = vmul.f32 %v14789_v30, %v1685_v61  ;;  %5237 = vst [vmem:[#allocation2 + $0xb8] sm:$0xff] %v11917_v40  ;;  %v14932_v7 = vpop.permute.xlu0 %2357  ;;  %v1696_v32 = vld [vmem:[%s18846_s3 + $0x1e0] sm:$0xff]  ;;  %v1697_v61 = vld [vmem:[%s18846_s3 + $0x1e8] sm:$0xff]  ;;  %v1698_v27 = vld [vmem:[%s18846_s3 + $0x1f0] sm:$0xff] }
 0x17b   : > { %5238 = vst.msk [vmem:[#allocation2 + $0xc0] sm:$0xf] %vm5213_vm1, %v11918_v45  ;;  %v11948_v50 = vpack.c.bf16 %v2781_v37, %v2780_v20  ;;  %v2730_v57 = vmul.f32 %v14789_v30, %v1686_v38  ;;  %v2731_v42 = vmul.f32 %v14789_v30, %v1687_v58  ;;  %v2732_v62 = vmul.f32 %v14789_v30, %v1688_v44  ;;  %v1762_v44 = vld [vmem:[%s18846_s3 + $0x3f0] sm:$0xff]  ;;  %v1763_v40 = vld [vmem:[%s18846_s3 + $0x3f8] sm:$0xff] }
 0x17c   : > { %2612 = vperm.xlu1 %12579, %v14641_v26   ;;  %v11949_v6 = vpack.c.bf16 %v2783_v19, %v2782_v48  ;;  %v11950_v5 = vpack.c.bf16 %v2784_v51, %v2784_v51  ;;  %5267 = vst [vmem:[#allocation2 + $0x188] sm:$0xff] %v11947_v47  ;;  %v2733_v25 = vmul.f32 %v14789_v30, %v1689_v46  ;;  %v1754_v26 = vld [vmem:[%s18846_s3 + $0x3b0] sm:$0xff] }
 0x17d   : > { %v2734_v3 = vmul.f32 %v14789_v30, %v1690_v43  ;;  %2667 = vperm.xlu0 %12580, %v12926_v54   ;;  %5268 = vst [vmem:[#allocation2 + $0x190] sm:$0xff] %v11948_v50  ;;  %v2735_v11 = vmul.f32 %v14789_v30, %v1691_v49  ;;  %v11919_v12 = vpack.c.bf16 %v2730_v57, %v2729_v52  ;;  %v14976_v53 = vpop.permute.xlu1 %2312  ;;  %v1765_v43 = vld [vmem:[%s18846_s3 + $0x408] sm:$0xff]  ;;  %v1766_v19 = vld [vmem:[%s18846_s3 + $0x410] sm:$0xff]  ;;  %v1767_v54 = vld [vmem:[%s18846_s3 + $0x418] sm:$0xff] }
 0x17e   : > { %v11920_v14 = vpack.c.bf16 %v2732_v62, %v2731_v42  ;;  %v2792_v16 = vmul.f32 %v14792_v31, %v1748_v39  ;;  %5269 = vst [vmem:[#allocation2 + $0x198] sm:$0xff] %v11949_v6  ;;  %5270 = vst.msk [vmem:[#allocation2 + $0x1a0] sm:$0xf] %vm5213_vm1, %v11950_v5  ;;  %v2793_v17 = vmul.f32 %v14792_v31, %v1749_v2  ;;  %v14998_v51 = vpop.permute.xlu0 %2367  ;;  %v1768_v50 = vld [vmem:[%s18846_s3 + $0x420] sm:$0xff]  ;;  %v1699_v57 = vld [vmem:[%s18846_s3 + $0x1f8] sm:$0xff] }
 0x17f   : > { %v11921_v10 = vpack.c.bf16 %v2734_v3, %v2733_v25  ;;  %v2794_v30 = vmul.f32 %v14792_v31, %v1750_v60  ;;  %v2795_v21 = vmul.f32 %v14792_v31, %v1751_v4  ;;  %v11922_v9 = vpack.c.bf16 %v2735_v11, %v2735_v11  ;;  %5239 = vst [vmem:[#allocation2 + $0xc4] sm:$0xff] %v11919_v12  ;;  %v1700_v60 = vld [vmem:[%s18846_s3 + $0x200] sm:$0xff]  ;;  %v1701_v4 = vld [vmem:[%s18846_s3 + $0x208] sm:$0xff]  ;;  %v1702_v6 = vld [vmem:[%s18846_s3 + $0x210] sm:$0xff] }
 0x180   : > { %5240 = vst [vmem:[#allocation2 + $0xcc] sm:$0xff] %v11920_v14  ;;  %v2796_v18 = vmul.f32 %v14792_v31, %v1752_v59  ;;  %v2797_v33 = vmul.f32 %v14792_v31, %v1753_v28  ;;  %v2798_v34 = vmul.f32 %v14792_v31, %v1754_v26  ;;  %2622 = vperm.xlu1 %12579, %v14670_v41   ;;  %v1764_v41 = vld [vmem:[%s18846_s3 + $0x400] sm:$0xff]  ;;  %v1703_v26 = vld [vmem:[%s18846_s3 + $0x218] sm:$0xff] }
 0x181   : > { %5241 = vst [vmem:[#allocation2 + $0xd4] sm:$0xff] %v11921_v10  ;;  %v11955_v20 = vpack.c.bf16 %v2793_v17, %v2792_v16  ;;  %v11956_v38 = vpack.c.bf16 %v2795_v21, %v2794_v30  ;;  %v2736_v31 = vmul.f32 %v14835_v1, %v1692_v13  ;;  %v2737_v58 = vmul.f32 %v14835_v1, %v1693_v8  ;;  %v15026_v5 = vpop.permute.xlu1 %2322  ;;  %v1704_v11 = vld [vmem:[%s18846_s3 + $0x220] sm:$0xff]  ;;  %v1705_v13 = vld [vmem:[%s18846_s3 + $0x228] sm:$0xff] }
 0x182   : > { %5242 = vst.msk [vmem:[#allocation2 + $0xdc] sm:$0xf] %vm5213_vm1, %v11922_v9  ;;  %v11957_v45 = vpack.c.bf16 %v2797_v33, %v2796_v18  ;;  %v11958_v37 = vpack.c.bf16 %v2798_v34, %v2798_v34  ;;  %v2738_v48 = vmul.f32 %v14835_v1, %v1694_v0  ;;  %v2739_v46 = vmul.f32 %v14835_v1, %v1695_v15  ;;  %v1776_v10 = vld [vmem:[%s18846_s3 + $0x460] sm:$0xff]  ;;  %v1777_v0 = vld [vmem:[%s18846_s3 + $0x468] sm:$0xff]  ;;  %v1778_v15 = vld [vmem:[%s18846_s3 + $0x470] sm:$0xff] }
 0x183   : > { %5275 = vst [vmem:[#allocation2 + $0x1c0] sm:$0xff] %v11955_v20  ;;  %5276 = vst [vmem:[#allocation2 + $0x1c8] sm:$0xff] %v11956_v38  ;;  %v2740_v47 = vmul.f32 %v14835_v1, %v1696_v32  ;;  %v2741_v49 = vmul.f32 %v14835_v1, %v1697_v61  ;;  %v2742_v52 = vmul.f32 %v14835_v1, %v1698_v27  ;;  %v1779_v9 = vld [vmem:[%s18846_s3 + $0x478] sm:$0xff]  ;;  %v1780_v61 = vld [vmem:[%s18846_s3 + $0x480] sm:$0xff]  ;;  %v15069_v38 = vpop.permute.xlu0 %2377 }
 0x184   : > { %v11923_v39 = vpack.c.bf16 %v2737_v58, %v2736_v31  ;;  %5277 = vst [vmem:[#allocation2 + $0x1d0] sm:$0xff] %v11957_v45  ;;  %5278 = vst.msk [vmem:[#allocation2 + $0x1d8] sm:$0xf] %vm5213_vm1, %v11958_v37  ;;  %v11924_v42 = vpack.c.bf16 %v2739_v46, %v2738_v48  ;;  %v2806_v62 = vmul.f32 %v14837_v63, %v1762_v44  ;;  %2632 = vperm.xlu1 %12579, %v14709_v35   ;;  %v12928_v12 = vpop.eup %12927  ;;  %v1781_v27 = vld [vmem:[%s18846_s3 + $0x488] sm:$0xff]  ;;  %v1782_v20 = vld [vmem:[%s18846_s3 + $0x490] sm:$0xff] }
 0x185   : > { %v2807_v1 = vmul.f32 %v14837_v63, %v1763_v40  ;;  %v2808_v2 = vmul.f32 %v14837_v63, %v1764_v41  ;;  %v11925_v25 = vpack.c.bf16 %v2741_v49, %v2740_v47  ;;  %v11926_v3 = vpack.c.bf16 %v2742_v52, %v2742_v52  ;;  %2677 = vperm.xlu0 %12580, %v12928_v12   ;;  %v15072_v31 = vpop.permute.xlu1 %2332  ;;  %v1713_v45 = vld [vmem:[%s18846_s3 + $0x268] sm:$0xff]  ;;  %v1714_v37 = vld [vmem:[%s18846_s3 + $0x270] sm:$0xff] }
 0x186   : > { %5243 = vst [vmem:[#allocation2 + $0xe0] sm:$0xff] %v11923_v39  ;;  %v2809_v59 = vmul.f32 %v14837_v63, %v1765_v43  ;;  %v2810_v28 = vmul.f32 %v14837_v63, %v1766_v19  ;;  %5244 = vst [vmem:[#allocation2 + $0xe8] sm:$0xff] %v11924_v42  ;;  %v2811_v35 = vmul.f32 %v14837_v63, %v1767_v54  ;;  %v1715_v43 = vld [vmem:[%s18846_s3 + $0x278] sm:$0xff]  ;;  %v1716_v19 = vld [vmem:[%s18846_s3 + $0x280] sm:$0xff] }
 0x187   : > { %v2812_v14 = vmul.f32 %v14837_v63, %v1768_v50  ;;  %v11963_v16 = vpack.c.bf16 %v2807_v1, %v2806_v62  ;;  %v2743_v8 = vmul.f32 %v14882_v29, %v1699_v57  ;;  %5245 = vst [vmem:[#allocation2 + $0xf0] sm:$0xff] %v11925_v25  ;;  %5246 = vst.msk [vmem:[#allocation2 + $0xf8] sm:$0xf] %vm5213_vm1, %v11926_v3  ;;  %v1717_v54 = vld [vmem:[%s18846_s3 + $0x288] sm:$0xff]  ;;  %v1718_v50 = vld [vmem:[%s18846_s3 + $0x290] sm:$0xff] }
 0x188   : > { %v11964_v17 = vpack.c.bf16 %v2809_v59, %v2808_v2  ;;  %v2744_v30 = vmul.f32 %v14882_v29, %v1700_v60  ;;  %v2745_v21 = vmul.f32 %v14882_v29, %v1701_v4  ;;  %v2746_v63 = vmul.f32 %v14882_v29, %v1702_v6  ;;  %2642 = vperm.xlu1 %12579, %v14753_v23   ;;  %v1719_v57 = vld [vmem:[%s18846_s3 + $0x298] sm:$0xff]  ;;  %v1792_v4 = vld [vmem:[%s18846_s3 + $0x4e0] sm:$0xff] }
 0x189   : > { %v11965_v18 = vpack.c.bf16 %v2811_v35, %v2810_v28  ;;  %v11966_v33 = vpack.c.bf16 %v2812_v14, %v2812_v14  ;;  %5283 = vst [vmem:[#allocation2 + $0x1f8] sm:$0xff] %v11963_v16  ;;  %v2747_v34 = vmul.f32 %v14882_v29, %v1703_v26  ;;  %v2748_v32 = vmul.f32 %v14882_v29, %v1704_v11  ;;  %v1791_v60 = vld [vmem:[%s18846_s3 + $0x4d8] sm:$0xff]  ;;  %v15116_v6 = vpop.permute.xlu1 %2342  ;;  %v1793_v26 = vld [vmem:[%s18846_s3 + $0x4e8] sm:$0xff]  ;;  %v1794_v11 = vld [vmem:[%s18846_s3 + $0x4f0] sm:$0xff] }
 0x18a   : > { %5284 = vst [vmem:[#allocation2 + $0x200] sm:$0xff] %v11964_v17  ;;  %v2749_v58 = vmul.f32 %v14882_v29, %v1705_v13  ;;  %v11927_v44 = vpack.c.bf16 %v2744_v30, %v2743_v8  ;;  %v11928_v40 = vpack.c.bf16 %v2746_v63, %v2745_v21  ;;  %v2820_v41 = vmul.f32 %v14884_v36, %v1776_v10  ;;  %v1795_v16 = vld [vmem:[%s18846_s3 + $0x4f8] sm:$0xff]  ;;  %v1796_v13 = vld [vmem:[%s18846_s3 + $0x500] sm:$0xff]  ;;  %v15139_v10 = vpop.permute.xlu0 %2387 }
 0x18b   : > { %5285 = vst [vmem:[#allocation2 + $0x208] sm:$0xff] %v11965_v18  ;;  %5286 = vst.msk [vmem:[#allocation2 + $0x210] sm:$0xf] %vm5213_vm1, %v11966_v33  ;;  %v11929_v23 = vpack.c.bf16 %v2748_v32, %v2747_v34  ;;  %v2821_v48 = vmul.f32 %v14884_v36, %v1777_v0  ;;  %v2822_v29 = vmul.f32 %v14884_v36, %v1778_v15  ;;  %v1727_v8 = vld [vmem:[%s18846_s3 + $0x2d8] sm:$0xff]  ;;  %v1728_v63 = vld [vmem:[%s18846_s3 + $0x2e0] sm:$0xff] }
 0x18c   : > { %v2823_v46 = vmul.f32 %v14884_v36, %v1779_v9  ;;  %v11930_v47 = vpack.c.bf16 %v2749_v58, %v2749_v58  ;;  %5247 = vst [vmem:[#allocation2 + $0xfc] sm:$0xff] %v11927_v44  ;;  %5248 = vst [vmem:[#allocation2 + $0x104] sm:$0xff] %v11928_v40  ;;  %v2824_v49 = vmul.f32 %v14884_v36, %v1780_v61  ;;  %2652 = vperm.xlu1 %12579, %v14775_v24   ;;  %v1729_v0 = vld [vmem:[%s18846_s3 + $0x2e8] sm:$0xff]  ;;  %v1730_v15 = vld [vmem:[%s18846_s3 + $0x2f0] sm:$0xff] }
 0x18d   : > { %v2825_v52 = vmul.f32 %v14884_v36, %v1781_v27  ;;  %v2826_v39 = vmul.f32 %v14884_v36, %v1782_v20  ;;  %5249 = vst [vmem:[#allocation2 + $0x10c] sm:$0xff] %v11929_v23  ;;  %v11971_v42 = vpack.c.bf16 %v2821_v48, %v2820_v41  ;;  %v2757_v1 = vmul.f32 %v14930_v55, %v1713_v45  ;;  %v1790_v36 = vld [vmem:[%s18846_s3 + $0x4d0] sm:$0xff]  ;;  %v1731_v32 = vld [vmem:[%s18846_s3 + $0x2f8] sm:$0xff]  ;;  %v1732_v61 = vld [vmem:[%s18846_s3 + $0x300] sm:$0xff]  ;;  %v15163_v27 = vpop.permute.xlu1 %2352 }
 0x18e   : > { %v11972_v62 = vpack.c.bf16 %v2823_v46, %v2822_v29  ;;  %v2758_v2 = vmul.f32 %v14930_v55, %v1714_v37  ;;  %5250 = vst.msk [vmem:[#allocation2 + $0x114] sm:$0xf] %vm5213_vm1, %v11930_v47  ;;  %v2759_v59 = vmul.f32 %v14930_v55, %v1715_v43  ;;  %v2760_v28 = vmul.f32 %v14930_v55, %v1716_v19  ;;  %v1733_v40 = vld [vmem:[%s18846_s3 + $0x308] sm:$0xff]  ;;  %v1804_v45 = vld [vmem:[%s18846_s3 + $0x540] sm:$0xff]  ;;  %v1806_v29 = vld [vmem:[%s18846_s3 + $0x550] sm:$0xff] }
 0x18f   : > { %v11973_v25 = vpack.c.bf16 %v2825_v52, %v2824_v49  ;;  %v11974_v3 = vpack.c.bf16 %v2826_v39, %v2826_v39  ;;  %5291 = vst [vmem:[#allocation2 + $0x230] sm:$0xff] %v11971_v42  ;;  %v2761_v24 = vmul.f32 %v14930_v55, %v1717_v54  ;;  %v2762_v12 = vmul.f32 %v14930_v55, %v1718_v50  ;;  %v1805_v48 = vld [vmem:[%s18846_s3 + $0x548] sm:$0xff]  ;;  %v1807_v46 = vld [vmem:[%s18846_s3 + $0x558] sm:$0xff]  ;;  %v1808_v52 = vld [vmem:[%s18846_s3 + $0x560] sm:$0xff] }
 0x190   : > { %5292 = vst [vmem:[#allocation2 + $0x238] sm:$0xff] %v11972_v62  ;;  %v2763_v35 = vmul.f32 %v14930_v55, %v1719_v57  ;;  %v11935_v14 = vpack.c.bf16 %v2758_v2, %v2757_v1  ;;  %v11936_v17 = vpack.c.bf16 %v2760_v28, %v2759_v59  ;;  %v2834_v55 = vmul.f32 %v14932_v7, %v1790_v36  ;;  %v1809_v39 = vld [vmem:[%s18846_s3 + $0x568] sm:$0xff]  ;;  %v1810_v54 = vld [vmem:[%s18846_s3 + $0x570] sm:$0xff]  ;;  %v15206_v36 = vpop.permute.xlu0 %2397  ;;  %v1743_v59 = vld [vmem:[%s18846_s3 + $0x358] sm:$0xff] }
 0x191   : > { %5293 = vst [vmem:[#allocation2 + $0x240] sm:$0xff] %v11973_v25  ;;  %5294 = vst.msk [vmem:[#allocation2 + $0x248] sm:$0xf] %vm5213_vm1, %v11974_v3  ;;  %v2835_v30 = vmul.f32 %v14932_v7, %v1791_v60  ;;  %v2836_v21 = vmul.f32 %v14932_v7, %v1792_v4  ;;  %v11937_v9 = vpack.c.bf16 %v2762_v12, %v2761_v24  ;;  %2662 = vperm.xlu1 %12579, %v14827_v56   ;;  %v1741_v1 = vld [vmem:[%s18846_s3 + $0x348] sm:$0xff]  ;;  %v1742_v2 = vld [vmem:[%s18846_s3 + $0x350] sm:$0xff]  ;;  %v15209_v60 = vpop.permute.xlu1 %2362 }
 0x192   : > { %v11938_v18 = vpack.c.bf16 %v2763_v35, %v2763_v35  ;;  %5255 = vst [vmem:[#allocation2 + $0x134] sm:$0xff] %v11935_v14  ;;  %v2837_v33 = vmul.f32 %v14932_v7, %v1793_v26  ;;  %v2838_v34 = vmul.f32 %v14932_v7, %v1794_v11  ;;  %5256 = vst [vmem:[#allocation2 + $0x13c] sm:$0xff] %v11936_v17  ;;  %v1745_v12 = vld [vmem:[%s18846_s3 + $0x368] sm:$0xff]  ;;  %v1746_v35 = vld [vmem:[%s18846_s3 + $0x370] sm:$0xff] }
 0x193   : > { %v2839_v20 = vmul.f32 %v14932_v7, %v1795_v16  ;;  %v2840_v58 = vmul.f32 %v14932_v7, %v1796_v13  ;;  %v11979_v44 = vpack.c.bf16 %v2835_v30, %v2834_v55  ;;  %v2771_v41 = vmul.f32 %v14976_v53, %v1727_v8  ;;  %5257 = vst [vmem:[#allocation2 + $0x144] sm:$0xff] %v11937_v9  ;;  %v1747_v14 = vld [vmem:[%s18846_s3 + $0x378] sm:$0xff]  ;;  %v1820_v30 = vld [vmem:[%s18846_s3 + $0x5c0] sm:$0xff]  ;;  %v1821_v9 = vld [vmem:[%s18846_s3 + $0x5c8] sm:$0xff] }
 0x194   : > { %5258 = vst.msk [vmem:[#allocation2 + $0x14c] sm:$0xf] %vm5213_vm1, %v11938_v18  ;;  %v11980_v56 = vpack.c.bf16 %v2837_v33, %v2836_v21  ;;  %v2772_v37 = vmul.f32 %v14976_v53, %v1728_v63  ;;  %v2773_v23 = vmul.f32 %v14976_v53, %v1729_v0  ;;  %v2774_v7 = vmul.f32 %v14976_v53, %v1730_v15  ;;  %v1819_v55 = vld [vmem:[%s18846_s3 + $0x5b8] sm:$0xff]  ;;  %v1822_v18 = vld [vmem:[%s18846_s3 + $0x5d0] sm:$0xff] }
 0x195   : > { %v11981_v43 = vpack.c.bf16 %v2839_v20, %v2838_v34  ;;  %v11982_v19 = vpack.c.bf16 %v2840_v58, %v2840_v58  ;;  %5299 = vst [vmem:[#allocation2 + $0x268] sm:$0xff] %v11979_v44  ;;  %v2775_v47 = vmul.f32 %v14976_v53, %v1731_v32  ;;  %v2776_v49 = vmul.f32 %v14976_v53, %v1732_v61  ;;  %v15253_v33 = vpop.permute.xlu1 %2372  ;;  %v1823_v58 = vld [vmem:[%s18846_s3 + $0x5d8] sm:$0xff]  ;;  %v1824_v44 = vld [vmem:[%s18846_s3 + $0x5e0] sm:$0xff] }
 0x196   : > { %5300 = vst [vmem:[#allocation2 + $0x270] sm:$0xff] %v11980_v56  ;;  %v2777_v50 = vmul.f32 %v14976_v53, %v1733_v40  ;;  %v11943_v57 = vpack.c.bf16 %v2772_v37, %v2771_v41  ;;  %v11944_v42 = vpack.c.bf16 %v2774_v7, %v2773_v23  ;;  %v2848_v62 = vmul.f32 %v14998_v51, %v1804_v45  ;;  %v1755_v40 = vld [vmem:[%s18846_s3 + $0x3b8] sm:$0xff]  ;;  %v1756_v37 = vld [vmem:[%s18846_s3 + $0x3c0] sm:$0xff]  ;;  %v1757_v23 = vld [vmem:[%s18846_s3 + $0x3c8] sm:$0xff] }
 0x197   : > { %2672 = vperm.xlu1 %12579, %v14868_v22   ;;  %5301 = vst [vmem:[#allocation2 + $0x278] sm:$0xff] %v11981_v43  ;;  %5302 = vst.msk [vmem:[#allocation2 + $0x280] sm:$0xf] %vm5213_vm1, %v11982_v19  ;;  %v11945_v53 = vpack.c.bf16 %v2776_v49, %v2775_v47  ;;  %v2849_v4 = vmul.f32 %v14998_v51, %v1805_v48  ;;  %v2850_v25 = vmul.f32 %v14998_v51, %v1806_v29  ;;  %v1744_v22 = vld [vmem:[%s18846_s3 + $0x360] sm:$0xff]  ;;  %v1758_v7 = vld [vmem:[%s18846_s3 + $0x3d0] sm:$0xff]  ;;  %v15280_v48 = vpop.permute.xlu0 %2407 }
 0x198   : > { %v2851_v3 = vmul.f32 %v14998_v51, %v1807_v46  ;;  %v11946_v28 = vpack.c.bf16 %v2777_v50, %v2777_v50  ;;  %5263 = vst [vmem:[#allocation2 + $0x16c] sm:$0xff] %v11943_v57  ;;  %5264 = vst [vmem:[#allocation2 + $0x174] sm:$0xff] %v11944_v42  ;;  %v2852_v26 = vmul.f32 %v14998_v51, %v1808_v52  ;;  %v1759_v47 = vld [vmem:[%s18846_s3 + $0x3d8] sm:$0xff]  ;;  %v1760_v49 = vld [vmem:[%s18846_s3 + $0x3e0] sm:$0xff] }
 0x199   : > { %v2853_v11 = vmul.f32 %v14998_v51, %v1809_v39  ;;  %v2854_v24 = vmul.f32 %v14998_v51, %v1810_v54  ;;  %5265 = vst [vmem:[#allocation2 + $0x17c] sm:$0xff] %v11945_v53  ;;  %v11987_v16 = vpack.c.bf16 %v2849_v4, %v2848_v62  ;;  %v2785_v8 = vmul.f32 %v15026_v5, %v1741_v1  ;;  %v1818_v51 = vld [vmem:[%s18846_s3 + $0x5b0] sm:$0xff]  ;;  %v1761_v50 = vld [vmem:[%s18846_s3 + $0x3e8] sm:$0xff]  ;;  %v1832_v42 = vld [vmem:[%s18846_s3 + $0x620] sm:$0xff]  ;;  %v15299_v62 = vpop.permute.xlu1 %2382 }
 0x19a   : > { %v11988_v13 = vpack.c.bf16 %v2851_v3, %v2850_v25  ;;  %v2786_v17 = vmul.f32 %v15026_v5, %v1742_v2  ;;  %5266 = vst.msk [vmem:[#allocation2 + $0x184] sm:$0xf] %vm5213_vm1, %v11946_v28  ;;  %v2787_v0 = vmul.f32 %v15026_v5, %v1743_v59  ;;  %v2788_v15 = vmul.f32 %v15026_v5, %v1744_v22  ;;  %v1833_v4 = vld [vmem:[%s18846_s3 + $0x628] sm:$0xff]  ;;  %v1834_v25 = vld [vmem:[%s18846_s3 + $0x630] sm:$0xff]  ;;  %v1835_v3 = vld [vmem:[%s18846_s3 + $0x638] sm:$0xff] }
 0x19b   : > { %v11989_v21 = vpack.c.bf16 %v2853_v11, %v2852_v26  ;;  %v11990_v63 = vpack.c.bf16 %v2854_v24, %v2854_v24  ;;  %5307 = vst [vmem:[#allocation2 + $0x2a0] sm:$0xff] %v11987_v16  ;;  %v2789_v34 = vmul.f32 %v15026_v5, %v1745_v12  ;;  %v2790_v32 = vmul.f32 %v15026_v5, %v1746_v35  ;;  %v1836_v11 = vld [vmem:[%s18846_s3 + $0x640] sm:$0xff]  ;;  %v1837_v24 = vld [vmem:[%s18846_s3 + $0x648] sm:$0xff]  ;;  %v1838_v12 = vld [vmem:[%s18846_s3 + $0x650] sm:$0xff] }
 0x19c   : > { %5308 = vst [vmem:[#allocation2 + $0x2a8] sm:$0xff] %v11988_v13  ;;  %v2791_v61 = vmul.f32 %v15026_v5, %v1747_v14  ;;  %v11951_v20 = vpack.c.bf16 %v2786_v17, %v2785_v8  ;;  %v11952_v41 = vpack.c.bf16 %v2788_v15, %v2787_v0  ;;  %v2862_v45 = vmul.f32 %v15069_v38, %v1818_v51  ;;  %v1769_v8 = vld [vmem:[%s18846_s3 + $0x428] sm:$0xff]  ;;  %v1770_v17 = vld [vmem:[%s18846_s3 + $0x430] sm:$0xff]  ;;  %v15343_v0 = vpop.permute.xlu0 %2417 }
 0x19d   : > { %5309 = vst [vmem:[#allocation2 + $0x2b0] sm:$0xff] %v11989_v21  ;;  %5310 = vst.msk [vmem:[#allocation2 + $0x2b8] sm:$0xf] %vm5213_vm1, %v11990_v63  ;;  %v2863_v5 = vmul.f32 %v15069_v38, %v1819_v55  ;;  %v2864_v56 = vmul.f32 %v15069_v38, %v1820_v30  ;;  %v11953_v29 = vpack.c.bf16 %v2790_v32, %v2789_v34  ;;  %v1771_v21 = vld [vmem:[%s18846_s3 + $0x438] sm:$0xff]  ;;  %v1772_v63 = vld [vmem:[%s18846_s3 + $0x440] sm:$0xff] }
 0x19e   : > { %v11954_v46 = vpack.c.bf16 %v2791_v61, %v2791_v61  ;;  %5271 = vst [vmem:[#allocation2 + $0x1a4] sm:$0xff] %v11951_v20  ;;  %v2865_v43 = vmul.f32 %v15069_v38, %v1821_v9  ;;  %v2866_v19 = vmul.f32 %v15069_v38, %v1822_v18  ;;  %5272 = vst [vmem:[#allocation2 + $0x1ac] sm:$0xff] %v11952_v41  ;;  %v1773_v32 = vld [vmem:[%s18846_s3 + $0x448] sm:$0xff]  ;;  %v1774_v61 = vld [vmem:[%s18846_s3 + $0x450] sm:$0xff] }
 0x19f   : > { %v2867_v52 = vmul.f32 %v15069_v38, %v1823_v58  ;;  %v2868_v39 = vmul.f32 %v15069_v38, %v1824_v44  ;;  %v11995_v54 = vpack.c.bf16 %v2863_v5, %v2862_v45  ;;  %v2799_v57 = vmul.f32 %v15072_v31, %v1755_v40  ;;  %5273 = vst [vmem:[#allocation2 + $0x1b4] sm:$0xff] %v11953_v29  ;;  %v1775_v20 = vld [vmem:[%s18846_s3 + $0x458] sm:$0xff]  ;;  %v15357_v58 = vpop.permute.xlu1 %2392  ;;  %v1846_v45 = vld [vmem:[%s18846_s3 + $0x690] sm:$0xff] }
 0x1a0   : > { %5274 = vst.msk [vmem:[#allocation2 + $0x1bc] sm:$0xf] %vm5213_vm1, %v11954_v46  ;;  %v11996_v1 = vpack.c.bf16 %v2865_v43, %v2864_v56  ;;  %v2800_v2 = vmul.f32 %v15072_v31, %v1756_v37  ;;  %v2801_v38 = vmul.f32 %v15072_v31, %v1757_v23  ;;  %v2802_v53 = vmul.f32 %v15072_v31, %v1758_v7  ;;  %v1847_v5 = vld [vmem:[%s18846_s3 + $0x698] sm:$0xff]  ;;  %v1848_v56 = vld [vmem:[%s18846_s3 + $0x6a0] sm:$0xff]  ;;  %v1849_v46 = vld [vmem:[%s18846_s3 + $0x6a8] sm:$0xff] }
 0x1a1   : > { %v11997_v59 = vpack.c.bf16 %v2867_v52, %v2866_v19  ;;  %v11998_v22 = vpack.c.bf16 %v2868_v39, %v2868_v39  ;;  %5315 = vst [vmem:[#allocation2 + $0x2d8] sm:$0xff] %v11995_v54  ;;  %v2803_v28 = vmul.f32 %v15072_v31, %v1759_v47  ;;  %v2804_v26 = vmul.f32 %v15072_v31, %v1760_v49  ;;  %v1850_v43 = vld [vmem:[%s18846_s3 + $0x6b0] sm:$0xff]  ;;  %v1851_v39 = vld [vmem:[%s18846_s3 + $0x6b8] sm:$0xff]  ;;  %v1852_v54 = vld [vmem:[%s18846_s3 + $0x6c0] sm:$0xff] }
 0x1a2   : > { %5316 = vst [vmem:[#allocation2 + $0x2e0] sm:$0xff] %v11996_v1  ;;  %v2805_v35 = vmul.f32 %v15072_v31, %v1761_v50  ;;  %v11959_v14 = vpack.c.bf16 %v2800_v2, %v2799_v57  ;;  %v11960_v16 = vpack.c.bf16 %v2802_v53, %v2801_v38  ;;  %v2876_v13 = vmul.f32 %v15139_v10, %v1832_v42  ;;  %v1783_v50 = vld [vmem:[%s18846_s3 + $0x498] sm:$0xff]  ;;  %v1784_v2 = vld [vmem:[%s18846_s3 + $0x4a0] sm:$0xff]  ;;  %v1785_v38 = vld [vmem:[%s18846_s3 + $0x4a8] sm:$0xff] }
 0x1a3   : > { %5317 = vst [vmem:[#allocation2 + $0x2e8] sm:$0xff] %v11997_v59  ;;  %5318 = vst.msk [vmem:[#allocation2 + $0x2f0] sm:$0xf] %vm5213_vm1, %v11998_v22  ;;  %v11961_v51 = vpack.c.bf16 %v2804_v26, %v2803_v28  ;;  %v2877_v55 = vmul.f32 %v15139_v10, %v1833_v4  ;;  %v2878_v31 = vmul.f32 %v15139_v10, %v1834_v25  ;;  %v1786_v53 = vld [vmem:[%s18846_s3 + $0x4b0] sm:$0xff]  ;;  %v1787_v22 = vld [vmem:[%s18846_s3 + $0x4b8] sm:$0xff]  ;;  %v15412_v26 = vpop.permute.xlu0 %2427 }
 0x1a4   : > { %v2879_v30 = vmul.f32 %v15139_v10, %v1835_v3  ;;  %v11962_v15 = vpack.c.bf16 %v2805_v35, %v2805_v35  ;;  %5279 = vst [vmem:[#allocation2 + $0x1dc] sm:$0xff] %v11959_v14  ;;  %5280 = vst [vmem:[#allocation2 + $0x1e4] sm:$0xff] %v11960_v16  ;;  %v2880_v9 = vmul.f32 %v15139_v10, %v1836_v11  ;;  %v1788_v28 = vld [vmem:[%s18846_s3 + $0x4c0] sm:$0xff]  ;;  %v1789_v35 = vld [vmem:[%s18846_s3 + $0x4c8] sm:$0xff] }
 0x1a5   : > { %v2881_v18 = vmul.f32 %v15139_v10, %v1837_v24  ;;  %v2882_v34 = vmul.f32 %v15139_v10, %v1838_v12  ;;  %5281 = vst [vmem:[#allocation2 + $0x1ec] sm:$0xff] %v11961_v51  ;;  %v12003_v44 = vpack.c.bf16 %v2877_v55, %v2876_v13  ;;  %v2813_v41 = vmul.f32 %v15116_v6, %v1769_v8  ;;  %v1860_v16 = vld [vmem:[%s18846_s3 + $0x700] sm:$0xff]  ;;  %v15423_v13 = vpop.permute.xlu1 %2402  ;;  %v1861_v55 = vld [vmem:[%s18846_s3 + $0x708] sm:$0xff] }
 0x1a6   : > { %v12004_v40 = vpack.c.bf16 %v2879_v30, %v2878_v31  ;;  %v2814_v10 = vmul.f32 %v15116_v6, %v1770_v17  ;;  %5282 = vst.msk [vmem:[#allocation2 + $0x1f4] sm:$0xf] %vm5213_vm1, %v11962_v15  ;;  %v2815_v7 = vmul.f32 %v15116_v6, %v1771_v21  ;;  %v2816_v29 = vmul.f32 %v15116_v6, %v1772_v63  ;;  %v1862_v31 = vld [vmem:[%s18846_s3 + $0x710] sm:$0xff]  ;;  %v1863_v30 = vld [vmem:[%s18846_s3 + $0x718] sm:$0xff] }
 0x1a7   : > { %v12005_v37 = vpack.c.bf16 %v2881_v18, %v2880_v9  ;;  %v12006_v23 = vpack.c.bf16 %v2882_v34, %v2882_v34  ;;  %5323 = vst [vmem:[#allocation2 + $0x310] sm:$0xff] %v12003_v44  ;;  %v2817_v19 = vmul.f32 %v15116_v6, %v1773_v32  ;;  %v2818_v47 = vmul.f32 %v15116_v6, %v1774_v61  ;;  %v1864_v18 = vld [vmem:[%s18846_s3 + $0x720] sm:$0xff]  ;;  %v1865_v34 = vld [vmem:[%s18846_s3 + $0x728] sm:$0xff]  ;;  %v1866_v32 = vld [vmem:[%s18846_s3 + $0x730] sm:$0xff] }
 0x1a8   : > { %5324 = vst [vmem:[#allocation2 + $0x318] sm:$0xff] %v12004_v40  ;;  %v2819_v49 = vmul.f32 %v15116_v6, %v1775_v20  ;;  %v11967_v52 = vpack.c.bf16 %v2814_v10, %v2813_v41  ;;  %v11968_v57 = vpack.c.bf16 %v2816_v29, %v2815_v7  ;;  %v2890_v42 = vmul.f32 %v15206_v36, %v1846_v45  ;;  %v1797_v41 = vld [vmem:[%s18846_s3 + $0x508] sm:$0xff]  ;;  %v1798_v10 = vld [vmem:[%s18846_s3 + $0x510] sm:$0xff] }
 0x1a9   : > { %5325 = vst [vmem:[#allocation2 + $0x320] sm:$0xff] %v12005_v37  ;;  %5326 = vst.msk [vmem:[#allocation2 + $0x328] sm:$0xf] %vm5213_vm1, %v12006_v23  ;;  %v2891_v6 = vmul.f32 %v15206_v36, %v1847_v5  ;;  %v2892_v1 = vmul.f32 %v15206_v36, %v1848_v56  ;;  %v11969_v4 = vpack.c.bf16 %v2818_v47, %v2817_v19  ;;  %v1799_v37 = vld [vmem:[%s18846_s3 + $0x518] sm:$0xff]  ;;  %v1800_v23 = vld [vmem:[%s18846_s3 + $0x520] sm:$0xff] }
 0x1aa   : > { %v11970_v25 = vpack.c.bf16 %v2819_v49, %v2819_v49  ;;  %5287 = vst [vmem:[#allocation2 + $0x214] sm:$0xff] %v11967_v52  ;;  %v2893_v3 = vmul.f32 %v15206_v36, %v1849_v46  ;;  %v2894_v59 = vmul.f32 %v15206_v36, %v1850_v43  ;;  %5288 = vst [vmem:[#allocation2 + $0x21c] sm:$0xff] %v11968_v57  ;;  %v1801_v19 = vld [vmem:[%s18846_s3 + $0x528] sm:$0xff]  ;;  %v1802_v47 = vld [vmem:[%s18846_s3 + $0x530] sm:$0xff]  ;;  %v15479_v52 = vpop.permute.xlu0 %2437 }
 0x1ab   : > { %v2895_v11 = vmul.f32 %v15206_v36, %v1851_v39  ;;  %v2896_v24 = vmul.f32 %v15206_v36, %v1852_v54  ;;  %v12011_v12 = vpack.c.bf16 %v2891_v6, %v2890_v42  ;;  %v2827_v14 = vmul.f32 %v15163_v27, %v1783_v50  ;;  %5289 = vst [vmem:[#allocation2 + $0x224] sm:$0xff] %v11969_v4  ;;  %v1803_v49 = vld [vmem:[%s18846_s3 + $0x538] sm:$0xff]  ;;  %v1874_v57 = vld [vmem:[%s18846_s3 + $0x770] sm:$0xff]  ;;  %v1876_v6 = vld [vmem:[%s18846_s3 + $0x780] sm:$0xff] }
 0x1ac   : > { %5290 = vst.msk [vmem:[#allocation2 + $0x22c] sm:$0xf] %vm5213_vm1, %v11970_v25  ;;  %v12012_v8 = vpack.c.bf16 %v2893_v3, %v2892_v1  ;;  %v2828_v17 = vmul.f32 %v15163_v27, %v1784_v2  ;;  %v2829_v36 = vmul.f32 %v15163_v27, %v1785_v38  ;;  %v2830_v51 = vmul.f32 %v15163_v27, %v1786_v53  ;;  %v1875_v42 = vld [vmem:[%s18846_s3 + $0x778] sm:$0xff]  ;;  %v15492_v1 = vpop.permute.xlu1 %2412  ;;  %v1877_v25 = vld [vmem:[%s18846_s3 + $0x788] sm:$0xff]  ;;  %v1878_v3 = vld [vmem:[%s18846_s3 + $0x790] sm:$0xff] }
 0x1ad   : > { %v12013_v21 = vpack.c.bf16 %v2895_v11, %v2894_v59  ;;  %v12014_v63 = vpack.c.bf16 %v2896_v24, %v2896_v24  ;;  %5331 = vst [vmem:[#allocation2 + $0x348] sm:$0xff] %v12011_v12  ;;  %v2831_v15 = vmul.f32 %v15163_v27, %v1787_v22  ;;  %v2832_v9 = vmul.f32 %v15163_v27, %v1788_v28  ;;  %v1879_v24 = vld [vmem:[%s18846_s3 + $0x798] sm:$0xff]  ;;  %v1880_v12 = vld [vmem:[%s18846_s3 + $0x7a0] sm:$0xff] }
 0x1ae   : > { %5332 = vst [vmem:[#allocation2 + $0x350] sm:$0xff] %v12012_v8  ;;  %v2833_v61 = vmul.f32 %v15163_v27, %v1789_v35  ;;  %v11975_v20 = vpack.c.bf16 %v2828_v17, %v2827_v14  ;;  %v11976_v44 = vpack.c.bf16 %v2830_v51, %v2829_v36  ;;  %v2904_v40 = vmul.f32 %v15280_v48, %v1860_v16  ;;  %v1811_v35 = vld [vmem:[%s18846_s3 + $0x578] sm:$0xff]  ;;  %v1812_v17 = vld [vmem:[%s18846_s3 + $0x580] sm:$0xff]  ;;  %v1813_v36 = vld [vmem:[%s18846_s3 + $0x588] sm:$0xff] }
 0x1af   : > { %5333 = vst [vmem:[#allocation2 + $0x358] sm:$0xff] %v12013_v21  ;;  %5334 = vst.msk [vmem:[#allocation2 + $0x360] sm:$0xf] %vm5213_vm1, %v12014_v63  ;;  %v11977_v45 = vpack.c.bf16 %v2832_v9, %v2831_v15  ;;  %v2905_v5 = vmul.f32 %v15280_v48, %v1861_v55  ;;  %v2906_v27 = vmul.f32 %v15280_v48, %v1862_v31  ;;  %v1814_v51 = vld [vmem:[%s18846_s3 + $0x590] sm:$0xff]  ;;  %v1815_v63 = vld [vmem:[%s18846_s3 + $0x598] sm:$0xff] }
 0x1b0   : > { %v2907_v56 = vmul.f32 %v15280_v48, %v1863_v30  ;;  %v11978_v7 = vpack.c.bf16 %v2833_v61, %v2833_v61  ;;  %5295 = vst [vmem:[#allocation2 + $0x24c] sm:$0xff] %v11975_v20  ;;  %5296 = vst [vmem:[#allocation2 + $0x254] sm:$0xff] %v11976_v44  ;;  %v2908_v29 = vmul.f32 %v15280_v48, %v1864_v18  ;;  %v1816_v15 = vld [vmem:[%s18846_s3 + $0x5a0] sm:$0xff]  ;;  %v15545_v44 = vpop.permute.xlu0 %2447 }
 0x1b1   : > { %v2909_v46 = vmul.f32 %v15280_v48, %v1865_v34  ;;  %v2910_v43 = vmul.f32 %v15280_v48, %v1866_v32  ;;  %5297 = vst [vmem:[#allocation2 + $0x25c] sm:$0xff] %v11977_v45  ;;  %v12019_v39 = vpack.c.bf16 %v2905_v5, %v2904_v40  ;;  %v2841_v50 = vmul.f32 %v15209_v60, %v1797_v41  ;;  %v1817_v32 = vld [vmem:[%s18846_s3 + $0x5a8] sm:$0xff]  ;;  %v1888_v20 = vld [vmem:[%s18846_s3 + $0x7e0] sm:$0xff]  ;;  %v1890_v5 = vld [vmem:[%s18846_s3 + $0x7f0] sm:$0xff] }
 0x1b2   : > { %v12020_v54 = vpack.c.bf16 %v2907_v56, %v2906_v27  ;;  %v2842_v48 = vmul.f32 %v15209_v60, %v1798_v10  ;;  %5298 = vst.msk [vmem:[#allocation2 + $0x264] sm:$0xf] %vm5213_vm1, %v11978_v7  ;;  %v2843_v53 = vmul.f32 %v15209_v60, %v1799_v37  ;;  %v2844_v4 = vmul.f32 %v15209_v60, %v1800_v23  ;;  %v1889_v45 = vld [vmem:[%s18846_s3 + $0x7e8] sm:$0xff]  ;;  %v1891_v27 = vld [vmem:[%s18846_s3 + $0x7f8] sm:$0xff]  ;;  %v15560_v56 = vpop.permute.xlu1 %2422 }
 0x1b3   : > { %v12021_v2 = vpack.c.bf16 %v2909_v46, %v2908_v29  ;;  %v12022_v38 = vpack.c.bf16 %v2910_v43, %v2910_v43  ;;  %5339 = vst [vmem:[#allocation2 + $0x380] sm:$0xff] %v12019_v39  ;;  %v2845_v59 = vmul.f32 %v15209_v60, %v1801_v19  ;;  %v2846_v22 = vmul.f32 %v15209_v60, %v1802_v47  ;;  %v1892_v46 = vld [vmem:[%s18846_s3 + $0x800] sm:$0xff]  ;;  %v1893_v43 = vld [vmem:[%s18846_s3 + $0x808] sm:$0xff]  ;;  %v1894_v19 = vld [vmem:[%s18846_s3 + $0x810] sm:$0xff] }
 0x1b4   : > { %5340 = vst [vmem:[#allocation2 + $0x388] sm:$0xff] %v12020_v54  ;;  %v2847_v28 = vmul.f32 %v15209_v60, %v1803_v49  ;;  %v11983_v11 = vpack.c.bf16 %v2842_v48, %v2841_v50  ;;  %v11984_v14 = vpack.c.bf16 %v2844_v4, %v2843_v53  ;;  %v2918_v16 = vmul.f32 %v15343_v0, %v1874_v57  ;;  %v1825_v50 = vld [vmem:[%s18846_s3 + $0x5e8] sm:$0xff]  ;;  %v1826_v48 = vld [vmem:[%s18846_s3 + $0x5f0] sm:$0xff] }
 0x1b5   : > { %5341 = vst [vmem:[#allocation2 + $0x390] sm:$0xff] %v12021_v2  ;;  %5342 = vst.msk [vmem:[#allocation2 + $0x398] sm:$0xf] %vm5213_vm1, %v12022_v38  ;;  %v2919_v60 = vmul.f32 %v15343_v0, %v1875_v42  ;;  %v2920_v8 = vmul.f32 %v15343_v0, %v1876_v6  ;;  %v11985_v55 = vpack.c.bf16 %v2846_v22, %v2845_v59  ;;  %v1827_v2 = vld [vmem:[%s18846_s3 + $0x5f8] sm:$0xff]  ;;  %v1828_v38 = vld [vmem:[%s18846_s3 + $0x600] sm:$0xff] }
 0x1b6   : > { %v11986_v31 = vpack.c.bf16 %v2847_v28, %v2847_v28  ;;  %5303 = vst [vmem:[#allocation2 + $0x284] sm:$0xff] %v11983_v11  ;;  %v2921_v30 = vmul.f32 %v15343_v0, %v1877_v25  ;;  %v2922_v21 = vmul.f32 %v15343_v0, %v1878_v3  ;;  %5304 = vst [vmem:[#allocation2 + $0x28c] sm:$0xff] %v11984_v14  ;;  %v1829_v59 = vld [vmem:[%s18846_s3 + $0x608] sm:$0xff]  ;;  %v1830_v22 = vld [vmem:[%s18846_s3 + $0x610] sm:$0xff] }
 0x1b7   : > { %v2923_v9 = vmul.f32 %v15343_v0, %v1879_v24  ;;  %v2924_v18 = vmul.f32 %v15343_v0, %v1880_v12  ;;  %v12027_v34 = vpack.c.bf16 %v2919_v60, %v2918_v16  ;;  %v2855_v61 = vmul.f32 %v15253_v33, %v1811_v35  ;;  %5305 = vst [vmem:[#allocation2 + $0x294] sm:$0xff] %v11985_v55  ;;  %v1831_v28 = vld [vmem:[%s18846_s3 + $0x618] sm:$0xff]  ;;  %v1904_v16 = vld [vmem:[%s18846_s3 + $0x860] sm:$0xff]  ;;  %v15614_v60 = vpop.permute.xlu0 %2457  ;;  %v1905_v55 = vld [vmem:[%s18846_s3 + $0x868] sm:$0xff] }
 0x1b8   : > { %5306 = vst.msk [vmem:[#allocation2 + $0x29c] sm:$0xf] %vm5213_vm1, %v11986_v31  ;;  %v12028_v40 = vpack.c.bf16 %v2921_v30, %v2920_v8  ;;  %v2856_v41 = vmul.f32 %v15253_v33, %v1812_v17  ;;  %v2857_v0 = vmul.f32 %v15253_v33, %v1813_v36  ;;  %v2858_v10 = vmul.f32 %v15253_v33, %v1814_v51  ;;  %v1903_v14 = vld [vmem:[%s18846_s3 + $0x858] sm:$0xff]  ;;  %v1906_v31 = vld [vmem:[%s18846_s3 + $0x870] sm:$0xff]  ;;  %v15625_v30 = vpop.permute.xlu1 %2432 }
 0x1b9   : > { %v12029_v37 = vpack.c.bf16 %v2923_v9, %v2922_v21  ;;  %v12030_v23 = vpack.c.bf16 %v2924_v18, %v2924_v18  ;;  %5347 = vst [vmem:[#allocation2 + $0x3b8] sm:$0xff] %v12027_v34  ;;  %v2859_v7 = vmul.f32 %v15253_v33, %v1815_v63  ;;  %v2860_v29 = vmul.f32 %v15253_v33, %v1816_v15  ;;  %v1907_v18 = vld [vmem:[%s18846_s3 + $0x878] sm:$0xff]  ;;  %v1908_v34 = vld [vmem:[%s18846_s3 + $0x880] sm:$0xff] }
 0x1ba   : > { %5348 = vst [vmem:[#allocation2 + $0x3c0] sm:$0xff] %v12028_v40  ;;  %v2861_v47 = vmul.f32 %v15253_v33, %v1817_v32  ;;  %v11991_v49 = vpack.c.bf16 %v2856_v41, %v2855_v61  ;;  %v11992_v39 = vpack.c.bf16 %v2858_v10, %v2857_v0  ;;  %v2932_v54 = vmul.f32 %v15412_v26, %v1888_v20  ;;  %v1839_v32 = vld [vmem:[%s18846_s3 + $0x658] sm:$0xff]  ;;  %v1840_v41 = vld [vmem:[%s18846_s3 + $0x660] sm:$0xff]  ;;  %v1841_v0 = vld [vmem:[%s18846_s3 + $0x668] sm:$0xff] }
 0x1bb   : > { %5349 = vst [vmem:[#allocation2 + $0x3c8] sm:$0xff] %v12029_v37  ;;  %5350 = vst.msk [vmem:[#allocation2 + $0x3d0] sm:$0xf] %vm5213_vm1, %v12030_v23  ;;  %v11993_v57 = vpack.c.bf16 %v2860_v29, %v2859_v7  ;;  %v2933_v42 = vmul.f32 %v15412_v26, %v1889_v45  ;;  %v2934_v33 = vmul.f32 %v15412_v26, %v1890_v5  ;;  %v1842_v10 = vld [vmem:[%s18846_s3 + $0x670] sm:$0xff]  ;;  %v1843_v23 = vld [vmem:[%s18846_s3 + $0x678] sm:$0xff] }
 0x1bc   : > { %v2935_v6 = vmul.f32 %v15412_v26, %v1891_v27  ;;  %v11994_v53 = vpack.c.bf16 %v2861_v47, %v2861_v47  ;;  %5311 = vst [vmem:[#allocation2 + $0x2bc] sm:$0xff] %v11991_v49  ;;  %5312 = vst [vmem:[#allocation2 + $0x2c4] sm:$0xff] %v11992_v39  ;;  %v2936_v4 = vmul.f32 %v15412_v26, %v1892_v46  ;;  %v1844_v7 = vld [vmem:[%s18846_s3 + $0x680] sm:$0xff] }
 0x1bd   : > { %v2937_v25 = vmul.f32 %v15412_v26, %v1893_v43  ;;  %v2938_v3 = vmul.f32 %v15412_v26, %v1894_v19  ;;  %5313 = vst [vmem:[#allocation2 + $0x2cc] sm:$0xff] %v11993_v57  ;;  %v12035_v11 = vpack.c.bf16 %v2933_v42, %v2932_v54  ;;  %v2869_v12 = vmul.f32 %v15299_v62, %v1825_v50  ;;  %v1902_v26 = vld [vmem:[%s18846_s3 + $0x850] sm:$0xff]  ;;  %v1845_v19 = vld [vmem:[%s18846_s3 + $0x688] sm:$0xff]  ;;  %v1916_v49 = vld [vmem:[%s18846_s3 + $0x8c0] sm:$0xff] }
 0x1be   : > { %v12036_v24 = vpack.c.bf16 %v2935_v6, %v2934_v33  ;;  %v2870_v35 = vmul.f32 %v15299_v62, %v1826_v48  ;;  %5314 = vst.msk [vmem:[#allocation2 + $0x2d4] sm:$0xf] %vm5213_vm1, %v11994_v53  ;;  %v2871_v36 = vmul.f32 %v15299_v62, %v1827_v2  ;;  %v2872_v51 = vmul.f32 %v15299_v62, %v1828_v38  ;;  %v1917_v48 = vld [vmem:[%s18846_s3 + $0x8c8] sm:$0xff]  ;;  %v1918_v57 = vld [vmem:[%s18846_s3 + $0x8d0] sm:$0xff]  ;;  %v1919_v42 = vld [vmem:[%s18846_s3 + $0x8d8] sm:$0xff]  ;;  %v15682_v33 = vpop.permute.xlu0 %2467 }
 0x1bf   : > { %v12037_v8 = vpack.c.bf16 %v2937_v25, %v2936_v4  ;;  %v12038_v17 = vpack.c.bf16 %v2938_v3, %v2938_v3  ;;  %5355 = vst [vmem:[#allocation2 + $0x3f0] sm:$0xff] %v12035_v11  ;;  %v2873_v21 = vmul.f32 %v15299_v62, %v1829_v59  ;;  %v2874_v63 = vmul.f32 %v15299_v62, %v1830_v22  ;;  %v1920_v4 = vld [vmem:[%s18846_s3 + $0x8e0] sm:$0xff]  ;;  %v1921_v25 = vld [vmem:[%s18846_s3 + $0x8e8] sm:$0xff]  ;;  %v1922_v3 = vld [vmem:[%s18846_s3 + $0x8f0] sm:$0xff]  ;;  %v15695_v59 = vpop.permute.xlu1 %2442 }
 0x1c0   : > { %5356 = vst [vmem:[#allocation2 + $0x3f8] sm:$0xff] %v12036_v24  ;;  %v2875_v15 = vmul.f32 %v15299_v62, %v1831_v28  ;;  %v11999_v9 = vpack.c.bf16 %v2870_v35, %v2869_v12  ;;  %v12000_v61 = vpack.c.bf16 %v2872_v51, %v2871_v36  ;;  %v2946_v20 = vmul.f32 %v15479_v52, %v1902_v26  ;;  %v1853_v12 = vld [vmem:[%s18846_s3 + $0x6c8] sm:$0xff]  ;;  %v1854_v35 = vld [vmem:[%s18846_s3 + $0x6d0] sm:$0xff] }
 0x1c1   : > { %5357 = vst [vmem:[#allocation2 + $0x400] sm:$0xff] %v12037_v8  ;;  %5358 = vst.msk [vmem:[#allocation2 + $0x408] sm:$0xf] %vm5213_vm1, %v12038_v17  ;;  %v2947_v62 = vmul.f32 %v15479_v52, %v1903_v14  ;;  %v2948_v40 = vmul.f32 %v15479_v52, %v1904_v16  ;;  %v12001_v45 = vpack.c.bf16 %v2874_v63, %v2873_v21  ;;  %v1855_v8 = vld [vmem:[%s18846_s3 + $0x6d8] sm:$0xff]  ;;  %v1856_v17 = vld [vmem:[%s18846_s3 + $0x6e0] sm:$0xff] }
 0x1c2   : > { %v12002_v5 = vpack.c.bf16 %v2875_v15, %v2875_v15  ;;  %5319 = vst [vmem:[#allocation2 + $0x2f4] sm:$0xff] %v11999_v9  ;;  %v2949_v27 = vmul.f32 %v15479_v52, %v1905_v55  ;;  %v2950_v37 = vmul.f32 %v15479_v52, %v1906_v31  ;;  %5320 = vst [vmem:[#allocation2 + $0x2fc] sm:$0xff] %v12000_v61  ;;  %v1857_v21 = vld [vmem:[%s18846_s3 + $0x6e8] sm:$0xff]  ;;  %v1858_v63 = vld [vmem:[%s18846_s3 + $0x6f0] sm:$0xff] }
 0x1c3   : > { %v2951_v29 = vmul.f32 %v15479_v52, %v1907_v18  ;;  %v2952_v46 = vmul.f32 %v15479_v52, %v1908_v34  ;;  %v12043_v43 = vpack.c.bf16 %v2947_v62, %v2946_v20  ;;  %v2883_v47 = vmul.f32 %v15357_v58, %v1839_v32  ;;  %5321 = vst [vmem:[#allocation2 + $0x304] sm:$0xff] %v12001_v45  ;;  %v1859_v15 = vld [vmem:[%s18846_s3 + $0x6f8] sm:$0xff]  ;;  %v1932_v20 = vld [vmem:[%s18846_s3 + $0x940] sm:$0xff]  ;;  %v1934_v45 = vld [vmem:[%s18846_s3 + $0x950] sm:$0xff] }
 0x1c4   : > { %5322 = vst.msk [vmem:[#allocation2 + $0x30c] sm:$0xf] %vm5213_vm1, %v12002_v5  ;;  %v12044_v39 = vpack.c.bf16 %v2949_v27, %v2948_v40  ;;  %v2884_v54 = vmul.f32 %v15357_v58, %v1840_v41  ;;  %v2885_v50 = vmul.f32 %v15357_v58, %v1841_v0  ;;  %v2886_v52 = vmul.f32 %v15357_v58, %v1842_v10  ;;  %v1931_v61 = vld [vmem:[%s18846_s3 + $0x938] sm:$0xff]  ;;  %v1933_v10 = vld [vmem:[%s18846_s3 + $0x948] sm:$0xff]  ;;  %v15747_v5 = vpop.permute.xlu0 %2477 }
 0x1c5   : > { %v12045_v6 = vpack.c.bf16 %v2951_v29, %v2950_v37  ;;  %v12046_v2 = vpack.c.bf16 %v2952_v46, %v2952_v46  ;;  %5363 = vst [vmem:[#allocation2 + $0x428] sm:$0xff] %v12043_v43  ;;  %v2887_v38 = vmul.f32 %v15357_v58, %v1843_v23  ;;  %v2888_v53 = vmul.f32 %v15357_v58, %v1844_v7  ;;  %v1935_v29 = vld [vmem:[%s18846_s3 + $0x958] sm:$0xff]  ;;  %v1936_v46 = vld [vmem:[%s18846_s3 + $0x960] sm:$0xff] }
 0x1c6   : > { %5364 = vst [vmem:[#allocation2 + $0x430] sm:$0xff] %v12044_v39  ;;  %v2889_v22 = vmul.f32 %v15357_v58, %v1845_v19  ;;  %v12007_v28 = vpack.c.bf16 %v2884_v54, %v2883_v47  ;;  %v12008_v11 = vpack.c.bf16 %v2886_v52, %v2885_v50  ;;  %v2960_v24 = vmul.f32 %v15545_v44, %v1916_v49  ;;  %v1867_v43 = vld [vmem:[%s18846_s3 + $0x738] sm:$0xff]  ;;  %v15761_v19 = vpop.permute.xlu1 %2452  ;;  %v1868_v54 = vld [vmem:[%s18846_s3 + $0x740] sm:$0xff]  ;;  %v1869_v50 = vld [vmem:[%s18846_s3 + $0x748] sm:$0xff] }
 0x1c7   : > { %5365 = vst [vmem:[#allocation2 + $0x438] sm:$0xff] %v12045_v6  ;;  %5366 = vst.msk [vmem:[#allocation2 + $0x440] sm:$0xf] %vm5213_vm1, %v12046_v2  ;;  %v12009_v26 = vpack.c.bf16 %v2888_v53, %v2887_v38  ;;  %v2961_v14 = vmul.f32 %v15545_v44, %v1917_v48  ;;  %v2962_v58 = vmul.f32 %v15545_v44, %v1918_v57  ;;  %v1870_v52 = vld [vmem:[%s18846_s3 + $0x750] sm:$0xff]  ;;  %v1871_v2 = vld [vmem:[%s18846_s3 + $0x758] sm:$0xff] }
 0x1c8   : > { %v2963_v16 = vmul.f32 %v15545_v44, %v1919_v42  ;;  %v12010_v36 = vpack.c.bf16 %v2889_v22, %v2889_v22  ;;  %5327 = vst [vmem:[#allocation2 + $0x32c] sm:$0xff] %v12007_v28  ;;  %5328 = vst [vmem:[#allocation2 + $0x334] sm:$0xff] %v12008_v11  ;;  %v2964_v51 = vmul.f32 %v15545_v44, %v1920_v4  ;;  %v1872_v38 = vld [vmem:[%s18846_s3 + $0x760] sm:$0xff] }
 0x1c9   : > { %v2965_v55 = vmul.f32 %v15545_v44, %v1921_v25  ;;  %v2966_v31 = vmul.f32 %v15545_v44, %v1922_v3  ;;  %5329 = vst [vmem:[#allocation2 + $0x33c] sm:$0xff] %v12009_v26  ;;  %v12051_v9 = vpack.c.bf16 %v2961_v14, %v2960_v24  ;;  %v2897_v34 = vmul.f32 %v15423_v13, %v1853_v12  ;;  %v1930_v44 = vld [vmem:[%s18846_s3 + $0x930] sm:$0xff]  ;;  %v1873_v3 = vld [vmem:[%s18846_s3 + $0x768] sm:$0xff]  ;;  %v1944_v28 = vld [vmem:[%s18846_s3 + $0x9a0] sm:$0xff] }
 0x1ca   : > { %v12052_v18 = vpack.c.bf16 %v2963_v16, %v2962_v58  ;;  %v2898_v32 = vmul.f32 %v15423_v13, %v1854_v35  ;;  %5330 = vst.msk [vmem:[#allocation2 + $0x344] sm:$0xf] %vm5213_vm1, %v12010_v36  ;;  %v2899_v41 = vmul.f32 %v15423_v13, %v1855_v8  ;;  %v2900_v0 = vmul.f32 %v15423_v13, %v1856_v17  ;;  %v1945_v35 = vld [vmem:[%s18846_s3 + $0x9a8] sm:$0xff]  ;;  %v1946_v26 = vld [vmem:[%s18846_s3 + $0x9b0] sm:$0xff]  ;;  %v1947_v14 = vld [vmem:[%s18846_s3 + $0x9b8] sm:$0xff] }
 0x1cb   : > { %v12053_v62 = vpack.c.bf16 %v2965_v55, %v2964_v51  ;;  %v12054_v40 = vpack.c.bf16 %v2966_v31, %v2966_v31  ;;  %5371 = vst [vmem:[#allocation2 + $0x460] sm:$0xff] %v12051_v9  ;;  %v2901_v27 = vmul.f32 %v15423_v13, %v1857_v21  ;;  %v2902_v37 = vmul.f32 %v15423_v13, %v1858_v63  ;;  %v1948_v36 = vld [vmem:[%s18846_s3 + $0x9c0] sm:$0xff]  ;;  %v1949_v51 = vld [vmem:[%s18846_s3 + $0x9c8] sm:$0xff]  ;;  %v1950_v55 = vld [vmem:[%s18846_s3 + $0x9d0] sm:$0xff]  ;;  %v15817_v31 = vpop.permute.xlu0 %2487 }
 0x1cc   : > { %5372 = vst [vmem:[#allocation2 + $0x468] sm:$0xff] %v12052_v18  ;;  %v2903_v23 = vmul.f32 %v15423_v13, %v1859_v15  ;;  %v12015_v7 = vpack.c.bf16 %v2898_v32, %v2897_v34  ;;  %v12016_v47 = vpack.c.bf16 %v2900_v0, %v2899_v41  ;;  %v2974_v13 = vmul.f32 %v15614_v60, %v1930_v44  ;;  %v1881_v18 = vld [vmem:[%s18846_s3 + $0x7a8] sm:$0xff]  ;;  %v1882_v34 = vld [vmem:[%s18846_s3 + $0x7b0] sm:$0xff]  ;;  %v15827_v32 = vpop.permute.xlu1 %2462 }
 0x1cd   : > { %5373 = vst [vmem:[#allocation2 + $0x470] sm:$0xff] %v12053_v62  ;;  %5374 = vst.msk [vmem:[#allocation2 + $0x478] sm:$0xf] %vm5213_vm1, %v12054_v40  ;;  %v2975_v49 = vmul.f32 %v15614_v60, %v1931_v61  ;;  %v2976_v39 = vmul.f32 %v15614_v60, %v1932_v20  ;;  %v12017_v48 = vpack.c.bf16 %v2902_v37, %v2901_v27  ;;  %v1883_v62 = vld [vmem:[%s18846_s3 + $0x7b8] sm:$0xff]  ;;  %v1884_v40 = vld [vmem:[%s18846_s3 + $0x7c0] sm:$0xff] }
 0x1ce   : > { %v12018_v57 = vpack.c.bf16 %v2903_v23, %v2903_v23  ;;  %5335 = vst [vmem:[#allocation2 + $0x364] sm:$0xff] %v12015_v7  ;;  %v2977_v42 = vmul.f32 %v15614_v60, %v1933_v10  ;;  %v2978_v6 = vmul.f32 %v15614_v60, %v1934_v45  ;;  %5336 = vst [vmem:[#allocation2 + $0x36c] sm:$0xff] %v12016_v47  ;;  %v1885_v27 = vld [vmem:[%s18846_s3 + $0x7c8] sm:$0xff]  ;;  %v1886_v37 = vld [vmem:[%s18846_s3 + $0x7d0] sm:$0xff] }
 0x1cf   : > { %v2979_v53 = vmul.f32 %v15614_v60, %v1935_v29  ;;  %v2980_v4 = vmul.f32 %v15614_v60, %v1936_v46  ;;  %v12059_v25 = vpack.c.bf16 %v2975_v49, %v2974_v13  ;;  %v2911_v22 = vmul.f32 %v15492_v1, %v1867_v43  ;;  %5337 = vst [vmem:[#allocation2 + $0x374] sm:$0xff] %v12017_v48  ;;  %v1887_v23 = vld [vmem:[%s18846_s3 + $0x7d8] sm:$0xff]  ;;  %v1960_v13 = vld [vmem:[%s18846_s3 + $0xa20] sm:$0xff]  ;;  %v1962_v48 = vld [vmem:[%s18846_s3 + $0xa30] sm:$0xff] }
 0x1d0   : > { %5338 = vst.msk [vmem:[#allocation2 + $0x37c] sm:$0xf] %vm5213_vm1, %v12018_v57  ;;  %v12060_v11 = vpack.c.bf16 %v2977_v42, %v2976_v39  ;;  %v2912_v24 = vmul.f32 %v15492_v1, %v1868_v54  ;;  %v2913_v12 = vmul.f32 %v15492_v1, %v1869_v50  ;;  %v2914_v60 = vmul.f32 %v15492_v1, %v1870_v52  ;;  %v1959_v47 = vld [vmem:[%s18846_s3 + $0xa18] sm:$0xff]  ;;  %v1961_v52 = vld [vmem:[%s18846_s3 + $0xa28] sm:$0xff] }
 0x1d1   : > { %v12061_v58 = vpack.c.bf16 %v2979_v53, %v2978_v6  ;;  %v12062_v16 = vpack.c.bf16 %v2980_v4, %v2980_v4  ;;  %5379 = vst [vmem:[#allocation2 + $0x498] sm:$0xff] %v12059_v25  ;;  %v2915_v8 = vmul.f32 %v15492_v1, %v1871_v2  ;;  %v2916_v17 = vmul.f32 %v15492_v1, %v1872_v38  ;;  %v1963_v38 = vld [vmem:[%s18846_s3 + $0xa38] sm:$0xff]  ;;  %v1964_v53 = vld [vmem:[%s18846_s3 + $0xa40] sm:$0xff]  ;;  %v15883_v25 = vpop.permute.xlu0 %2497 }
 0x1d2   : > { %5380 = vst [vmem:[#allocation2 + $0x4a0] sm:$0xff] %v12060_v11  ;;  %v2917_v21 = vmul.f32 %v15492_v1, %v1873_v3  ;;  %v12023_v63 = vpack.c.bf16 %v2912_v24, %v2911_v22  ;;  %v12024_v15 = vpack.c.bf16 %v2914_v60, %v2913_v12  ;;  %v2988_v9 = vmul.f32 %v15682_v33, %v1944_v28  ;;  %v1895_v4 = vld [vmem:[%s18846_s3 + $0x818] sm:$0xff]  ;;  %v1896_v11 = vld [vmem:[%s18846_s3 + $0x820] sm:$0xff]  ;;  %v1897_v24 = vld [vmem:[%s18846_s3 + $0x828] sm:$0xff]  ;;  %v15898_v60 = vpop.permute.xlu1 %2472 }
 0x1d3   : > { %5381 = vst [vmem:[#allocation2 + $0x4a8] sm:$0xff] %v12061_v58  ;;  %5382 = vst.msk [vmem:[#allocation2 + $0x4b0] sm:$0xf] %vm5213_vm1, %v12062_v16  ;;  %v12025_v44 = vpack.c.bf16 %v2916_v17, %v2915_v8  ;;  %v2989_v1 = vmul.f32 %v15682_v33, %v1945_v35  ;;  %v2990_v61 = vmul.f32 %v15682_v33, %v1946_v26  ;;  %v1898_v12 = vld [vmem:[%s18846_s3 + $0x830] sm:$0xff]  ;;  %v1899_v16 = vld [vmem:[%s18846_s3 + $0x838] sm:$0xff] }
 0x1d4   : > { %v2991_v20 = vmul.f32 %v15682_v33, %v1947_v14  ;;  %v12026_v41 = vpack.c.bf16 %v2917_v21, %v2917_v21  ;;  %5343 = vst [vmem:[#allocation2 + $0x39c] sm:$0xff] %v12023_v63  ;;  %5344 = vst [vmem:[#allocation2 + $0x3a4] sm:$0xff] %v12024_v15  ;;  %v2992_v0 = vmul.f32 %v15682_v33, %v1948_v36  ;;  %v1900_v8 = vld [vmem:[%s18846_s3 + $0x840] sm:$0xff] }
 0x1d5   : > { %v2993_v10 = vmul.f32 %v15682_v33, %v1949_v51  ;;  %v2994_v45 = vmul.f32 %v15682_v33, %v1950_v55  ;;  %5345 = vst [vmem:[#allocation2 + $0x3ac] sm:$0xff] %v12025_v44  ;;  %v12067_v7 = vpack.c.bf16 %v2989_v1, %v2988_v9  ;;  %v2925_v46 = vmul.f32 %v15560_v56, %v1881_v18  ;;  %v1958_v33 = vld [vmem:[%s18846_s3 + $0xa10] sm:$0xff]  ;;  %v1901_v55 = vld [vmem:[%s18846_s3 + $0x848] sm:$0xff]  ;;  %v1972_v63 = vld [vmem:[%s18846_s3 + $0xa80] sm:$0xff] }
 0x1d6   : > { %v12068_v29 = vpack.c.bf16 %v2991_v20, %v2990_v61  ;;  %v2926_v43 = vmul.f32 %v15560_v56, %v1882_v34  ;;  %5346 = vst.msk [vmem:[#allocation2 + $0x3b4] sm:$0xf] %vm5213_vm1, %v12026_v41  ;;  %v2927_v54 = vmul.f32 %v15560_v56, %v1883_v62  ;;  %v2928_v50 = vmul.f32 %v15560_v56, %v1884_v40  ;;  %v1973_v34 = vld [vmem:[%s18846_s3 + $0xa88] sm:$0xff]  ;;  %v1974_v44 = vld [vmem:[%s18846_s3 + $0xa90] sm:$0xff]  ;;  %v1975_v1 = vld [vmem:[%s18846_s3 + $0xa98] sm:$0xff] }
 0x1d7   : > { %v12069_v49 = vpack.c.bf16 %v2993_v10, %v2992_v0  ;;  %v12070_v39 = vpack.c.bf16 %v2994_v45, %v2994_v45  ;;  %5387 = vst [vmem:[#allocation2 + $0x4d0] sm:$0xff] %v12067_v7  ;;  %v2929_v57 = vmul.f32 %v15560_v56, %v1885_v27  ;;  %v2930_v42 = vmul.f32 %v15560_v56, %v1886_v37  ;;  %v1976_v41 = vld [vmem:[%s18846_s3 + $0xaa0] sm:$0xff]  ;;  %v1977_v0 = vld [vmem:[%s18846_s3 + $0xaa8] sm:$0xff]  ;;  %v1978_v10 = vld [vmem:[%s18846_s3 + $0xab0] sm:$0xff] }
 0x1d8   : > { %5388 = vst [vmem:[#allocation2 + $0x4d8] sm:$0xff] %v12068_v29  ;;  %v2931_v6 = vmul.f32 %v15560_v56, %v1887_v23  ;;  %v12031_v2 = vpack.c.bf16 %v2926_v43, %v2925_v46  ;;  %v12032_v3 = vpack.c.bf16 %v2928_v50, %v2927_v54  ;;  %v3002_v56 = vmul.f32 %v15747_v5, %v1958_v33  ;;  %v1909_v7 = vld [vmem:[%s18846_s3 + $0x888] sm:$0xff]  ;;  %v1910_v29 = vld [vmem:[%s18846_s3 + $0x890] sm:$0xff]  ;;  %v15949_v46 = vpop.permute.xlu0 %2507 }
 0x1d9   : > { %5389 = vst [vmem:[#allocation2 + $0x4e0] sm:$0xff] %v12069_v49  ;;  %5390 = vst.msk [vmem:[#allocation2 + $0x4e8] sm:$0xf] %vm5213_vm1, %v12070_v39  ;;  %v3003_v22 = vmul.f32 %v15747_v5, %v1959_v47  ;;  %v3004_v28 = vmul.f32 %v15747_v5, %v1960_v13  ;;  %v12033_v35 = vpack.c.bf16 %v2930_v42, %v2929_v57  ;;  %v1911_v13 = vld [vmem:[%s18846_s3 + $0x898] sm:$0xff]  ;;  %v1912_v49 = vld [vmem:[%s18846_s3 + $0x8a0] sm:$0xff]  ;;  %v15961_v39 = vpop.permute.xlu1 %2482 }
 0x1da   : > { %v12034_v26 = vpack.c.bf16 %v2931_v6, %v2931_v6  ;;  %5351 = vst [vmem:[#allocation2 + $0x3d4] sm:$0xff] %v12031_v2  ;;  %v3005_v14 = vmul.f32 %v15747_v5, %v1961_v52  ;;  %v3006_v58 = vmul.f32 %v15747_v5, %v1962_v48  ;;  %5352 = vst [vmem:[#allocation2 + $0x3dc] sm:$0xff] %v12032_v3  ;;  %v1913_v57 = vld [vmem:[%s18846_s3 + $0x8a8] sm:$0xff]  ;;  %v1914_v42 = vld [vmem:[%s18846_s3 + $0x8b0] sm:$0xff] }
 0x1db   : > { %v3007_v17 = vmul.f32 %v15747_v5, %v1963_v38  ;;  %v3008_v36 = vmul.f32 %v15747_v5, %v1964_v53  ;;  %v12075_v51 = vpack.c.bf16 %v3003_v22, %v3002_v56  ;;  %v2939_v21 = vmul.f32 %v15625_v30, %v1895_v4  ;;  %5353 = vst [vmem:[#allocation2 + $0x3e4] sm:$0xff] %v12033_v35  ;;  %v1915_v6 = vld [vmem:[%s18846_s3 + $0x8b8] sm:$0xff]  ;;  %v1988_v56 = vld [vmem:[%s18846_s3 + $0xb00] sm:$0xff]  ;;  %v1990_v35 = vld [vmem:[%s18846_s3 + $0xb10] sm:$0xff] }
 0x1dc   : > { %5354 = vst.msk [vmem:[#allocation2 + $0x3ec] sm:$0xf] %vm5213_vm1, %v12034_v26  ;;  %v12076_v15 = vpack.c.bf16 %v3005_v14, %v3004_v28  ;;  %v2940_v9 = vmul.f32 %v15625_v30, %v1896_v11  ;;  %v2941_v18 = vmul.f32 %v15625_v30, %v1897_v24  ;;  %v2942_v5 = vmul.f32 %v15625_v30, %v1898_v12  ;;  %v1987_v3 = vld [vmem:[%s18846_s3 + $0xaf8] sm:$0xff]  ;;  %v1989_v12 = vld [vmem:[%s18846_s3 + $0xb08] sm:$0xff] }
 0x1dd   : > { %v12077_v61 = vpack.c.bf16 %v3007_v17, %v3006_v58  ;;  %v12078_v20 = vpack.c.bf16 %v3008_v36, %v3008_v36  ;;  %5395 = vst [vmem:[#allocation2 + $0x508] sm:$0xff] %v12075_v51  ;;  %v2943_v62 = vmul.f32 %v15625_v30, %v1899_v16  ;;  %v2944_v40 = vmul.f32 %v15625_v30, %v1900_v8  ;;  %v1991_v8 = vld [vmem:[%s18846_s3 + $0xb18] sm:$0xff]  ;;  %v1992_v17 = vld [vmem:[%s18846_s3 + $0xb20] sm:$0xff] }
 0x1de   : > { %5396 = vst [vmem:[#allocation2 + $0x510] sm:$0xff] %v12076_v15  ;;  %v2945_v45 = vmul.f32 %v15625_v30, %v1901_v55  ;;  %v12039_v27 = vpack.c.bf16 %v2940_v9, %v2939_v21  ;;  %v12040_v37 = vpack.c.bf16 %v2942_v5, %v2941_v18  ;;  %v3016_v23 = vmul.f32 %v15817_v31, %v1972_v63  ;;  %v1923_v36 = vld [vmem:[%s18846_s3 + $0x8f8] sm:$0xff]  ;;  %v1924_v63 = vld [vmem:[%s18846_s3 + $0x900] sm:$0xff]  ;;  %v1925_v15 = vld [vmem:[%s18846_s3 + $0x908] sm:$0xff]  ;;  %v16020_v18 = vpop.permute.xlu0 %2517 }
 0x1df   : > { %5397 = vst [vmem:[#allocation2 + $0x518] sm:$0xff] %v12077_v61  ;;  %5398 = vst.msk [vmem:[#allocation2 + $0x520] sm:$0xf] %vm5213_vm1, %v12078_v20  ;;  %v12041_v43 = vpack.c.bf16 %v2944_v40, %v2943_v62  ;;  %v3017_v30 = vmul.f32 %v15817_v31, %v1973_v34  ;;  %v3018_v33 = vmul.f32 %v15817_v31, %v1974_v44  ;;  %v1926_v9 = vld [vmem:[%s18846_s3 + $0x910] sm:$0xff]  ;;  %v1927_v61 = vld [vmem:[%s18846_s3 + $0x918] sm:$0xff]  ;;  %v16030_v62 = vpop.permute.xlu1 %2492 }
 0x1e0   : > { %v3019_v47 = vmul.f32 %v15817_v31, %v1975_v1  ;;  %v12042_v54 = vpack.c.bf16 %v2945_v45, %v2945_v45  ;;  %5359 = vst [vmem:[#allocation2 + $0x40c] sm:$0xff] %v12039_v27  ;;  %5360 = vst [vmem:[#allocation2 + $0x414] sm:$0xff] %v12040_v37  ;;  %v3020_v50 = vmul.f32 %v15817_v31, %v1976_v41  ;;  %v1928_v20 = vld [vmem:[%s18846_s3 + $0x920] sm:$0xff] }
 0x1e1   : > { %v3021_v52 = vmul.f32 %v15817_v31, %v1977_v0  ;;  %v3022_v48 = vmul.f32 %v15817_v31, %v1978_v10  ;;  %5361 = vst [vmem:[#allocation2 + $0x41c] sm:$0xff] %v12041_v43  ;;  %v12083_v2 = vpack.c.bf16 %v3017_v30, %v3016_v23  ;;  %v2953_v53 = vmul.f32 %v15695_v59, %v1909_v7  ;;  %v1986_v31 = vld [vmem:[%s18846_s3 + $0xaf0] sm:$0xff]  ;;  %v1929_v10 = vld [vmem:[%s18846_s3 + $0x928] sm:$0xff]  ;;  %v2000_v27 = vld [vmem:[%s18846_s3 + $0xb60] sm:$0xff] }
 0x1e2   : > { %v12084_v38 = vpack.c.bf16 %v3019_v47, %v3018_v33  ;;  %v2954_v4 = vmul.f32 %v15695_v59, %v1910_v29  ;;  %5362 = vst.msk [vmem:[#allocation2 + $0x424] sm:$0xf] %vm5213_vm1, %v12042_v54  ;;  %v2955_v11 = vmul.f32 %v15695_v59, %v1911_v13  ;;  %v2956_v24 = vmul.f32 %v15695_v59, %v1912_v49  ;;  %v2001_v29 = vld [vmem:[%s18846_s3 + $0xb68] sm:$0xff]  ;;  %v2002_v43 = vld [vmem:[%s18846_s3 + $0xb70] sm:$0xff]  ;;  %v2003_v30 = vld [vmem:[%s18846_s3 + $0xb78] sm:$0xff] }
 0x1e3   : > { %v12085_v22 = vpack.c.bf16 %v3021_v52, %v3020_v50  ;;  %v12086_v28 = vpack.c.bf16 %v3022_v48, %v3022_v48  ;;  %5403 = vst [vmem:[#allocation2 + $0x540] sm:$0xff] %v12083_v2  ;;  %v2957_v26 = vmul.f32 %v15695_v59, %v1913_v57  ;;  %v2958_v14 = vmul.f32 %v15695_v59, %v1914_v42  ;;  %v2004_v54 = vld [vmem:[%s18846_s3 + $0xb80] sm:$0xff]  ;;  %v2005_v50 = vld [vmem:[%s18846_s3 + $0xb88] sm:$0xff]  ;;  %v2006_v52 = vld [vmem:[%s18846_s3 + $0xb90] sm:$0xff] }
 0x1e4   : > { %5404 = vst [vmem:[#allocation2 + $0x548] sm:$0xff] %v12084_v38  ;;  %v2959_v58 = vmul.f32 %v15695_v59, %v1915_v6  ;;  %v12047_v16 = vpack.c.bf16 %v2954_v4, %v2953_v53  ;;  %v12048_v51 = vpack.c.bf16 %v2956_v24, %v2955_v11  ;;  %v3030_v55 = vmul.f32 %v15883_v25, %v1986_v31  ;;  %v1937_v2 = vld [vmem:[%s18846_s3 + $0x968] sm:$0xff]  ;;  %v1938_v38 = vld [vmem:[%s18846_s3 + $0x970] sm:$0xff] }
 0x1e5   : > { %5405 = vst [vmem:[#allocation2 + $0x550] sm:$0xff] %v12085_v22  ;;  %5406 = vst.msk [vmem:[#allocation2 + $0x558] sm:$0xf] %vm5213_vm1, %v12086_v28  ;;  %v3031_v59 = vmul.f32 %v15883_v25, %v1987_v3  ;;  %v3032_v21 = vmul.f32 %v15883_v25, %v1988_v56  ;;  %v12049_v5 = vpack.c.bf16 %v2958_v14, %v2957_v26  ;;  %v1939_v3 = vld [vmem:[%s18846_s3 + $0x978] sm:$0xff]  ;;  %v1940_v56 = vld [vmem:[%s18846_s3 + $0x980] sm:$0xff]  ;;  %v16083_v22 = vpop.permute.xlu0 %2527 }
 0x1e6   : > { %v12050_v34 = vpack.c.bf16 %v2959_v58, %v2959_v58  ;;  %5367 = vst [vmem:[#allocation2 + $0x444] sm:$0xff] %v12047_v16  ;;  %v3033_v44 = vmul.f32 %v15883_v25, %v1989_v12  ;;  %v3034_v1 = vmul.f32 %v15883_v25, %v1990_v35  ;;  %5368 = vst [vmem:[#allocation2 + $0x44c] sm:$0xff] %v12048_v51  ;;  %v1941_v35 = vld [vmem:[%s18846_s3 + $0x988] sm:$0xff]  ;;  %v1942_v26 = vld [vmem:[%s18846_s3 + $0x990] sm:$0xff]  ;;  %v16097_v58 = vpop.permute.xlu1 %2502 }
 0x1e7   : > { %v3035_v40 = vmul.f32 %v15883_v25, %v1991_v8  ;;  %v3036_v41 = vmul.f32 %v15883_v25, %v1992_v17  ;;  %v12091_v0 = vpack.c.bf16 %v3031_v59, %v3030_v55  ;;  %v2967_v45 = vmul.f32 %v15761_v19, %v1923_v36  ;;  %5369 = vst [vmem:[#allocation2 + $0x454] sm:$0xff] %v12049_v5  ;;  %v1943_v14 = vld [vmem:[%s18846_s3 + $0x998] sm:$0xff]  ;;  %v2014_v36 = vld [vmem:[%s18846_s3 + $0xbd0] sm:$0xff]  ;;  %v2016_v55 = vld [vmem:[%s18846_s3 + $0xbe0] sm:$0xff] }
 0x1e8   : > { %5370 = vst.msk [vmem:[#allocation2 + $0x45c] sm:$0xf] %vm5213_vm1, %v12050_v34  ;;  %v12092_v37 = vpack.c.bf16 %v3033_v44, %v3032_v21  ;;  %v2968_v23 = vmul.f32 %v15761_v19, %v1924_v63  ;;  %v2969_v7 = vmul.f32 %v15761_v19, %v1925_v15  ;;  %v2970_v25 = vmul.f32 %v15761_v19, %v1926_v9  ;;  %v2015_v51 = vld [vmem:[%s18846_s3 + $0xbd8] sm:$0xff]  ;;  %v2017_v9 = vld [vmem:[%s18846_s3 + $0xbe8] sm:$0xff]  ;;  %v2018_v5 = vld [vmem:[%s18846_s3 + $0xbf0] sm:$0xff] }
 0x1e9   : > { %v12093_v33 = vpack.c.bf16 %v3035_v40, %v3034_v1  ;;  %v12094_v47 = vpack.c.bf16 %v3036_v41, %v3036_v41  ;;  %5411 = vst [vmem:[#allocation2 + $0x578] sm:$0xff] %v12091_v0  ;;  %v2971_v13 = vmul.f32 %v15761_v19, %v1927_v61  ;;  %v2972_v49 = vmul.f32 %v15761_v19, %v1928_v20  ;;  %v2019_v20 = vld [vmem:[%s18846_s3 + $0xbf8] sm:$0xff]  ;;  %v2020_v40 = vld [vmem:[%s18846_s3 + $0xc00] sm:$0xff] }
 0x1ea   : > { %5412 = vst [vmem:[#allocation2 + $0x580] sm:$0xff] %v12092_v37  ;;  %v2973_v48 = vmul.f32 %v15761_v19, %v1929_v10  ;;  %v12055_v57 = vpack.c.bf16 %v2968_v23, %v2967_v45  ;;  %v12056_v42 = vpack.c.bf16 %v2970_v25, %v2969_v7  ;;  %v3044_v6 = vmul.f32 %v15949_v46, %v2000_v27  ;;  %v1951_v41 = vld [vmem:[%s18846_s3 + $0x9d8] sm:$0xff]  ;;  %v1952_v27 = vld [vmem:[%s18846_s3 + $0x9e0] sm:$0xff]  ;;  %v1953_v37 = vld [vmem:[%s18846_s3 + $0x9e8] sm:$0xff] }
 0x1eb   : > { %5413 = vst [vmem:[#allocation2 + $0x588] sm:$0xff] %v12093_v33  ;;  %5414 = vst.msk [vmem:[#allocation2 + $0x590] sm:$0xf] %vm5213_vm1, %v12094_v47  ;;  %v12057_v53 = vpack.c.bf16 %v2972_v49, %v2971_v13  ;;  %v3045_v4 = vmul.f32 %v15949_v46, %v2001_v29  ;;  %v3046_v19 = vmul.f32 %v15949_v46, %v2002_v43  ;;  %v1954_v23 = vld [vmem:[%s18846_s3 + $0x9f0] sm:$0xff]  ;;  %v1956_v33 = vld [vmem:[%s18846_s3 + $0xa00] sm:$0xff]  ;;  %v16152_v47 = vpop.permute.xlu0 %2537 }
 0x1ec   : > { %v3047_v31 = vmul.f32 %v15949_v46, %v2003_v30  ;;  %v12058_v28 = vpack.c.bf16 %v2973_v48, %v2973_v48  ;;  %5375 = vst [vmem:[#allocation2 + $0x47c] sm:$0xff] %v12055_v57  ;;  %5376 = vst [vmem:[#allocation2 + $0x484] sm:$0xff] %v12056_v42  ;;  %v3048_v11 = vmul.f32 %v15949_v46, %v2004_v54  ;;  %v1955_v30 = vld [vmem:[%s18846_s3 + $0x9f8] sm:$0xff]  ;;  %v2028_v48 = vld [vmem:[%s18846_s3 + $0xc40] sm:$0xff]  ;;  %v16163_v57 = vpop.permute.xlu1 %2512 }
 0x1ed   : > { %v3049_v24 = vmul.f32 %v15949_v46, %v2005_v50  ;;  %v3050_v12 = vmul.f32 %v15949_v46, %v2006_v52  ;;  %5377 = vst [vmem:[#allocation2 + $0x48c] sm:$0xff] %v12057_v53  ;;  %v12099_v16 = vpack.c.bf16 %v3045_v4, %v3044_v6  ;;  %v2981_v17 = vmul.f32 %v15827_v32, %v1937_v2  ;;  %v1957_v50 = vld [vmem:[%s18846_s3 + $0xa08] sm:$0xff]  ;;  %v2030_v53 = vld [vmem:[%s18846_s3 + $0xc50] sm:$0xff]  ;;  %v2031_v4 = vld [vmem:[%s18846_s3 + $0xc58] sm:$0xff] }
 0x1ee   : > { %v12100_v8 = vpack.c.bf16 %v3047_v31, %v3046_v19  ;;  %v2982_v46 = vmul.f32 %v15827_v32, %v1938_v38  ;;  %5378 = vst.msk [vmem:[#allocation2 + $0x494] sm:$0xf] %vm5213_vm1, %v12058_v28  ;;  %v2983_v63 = vmul.f32 %v15827_v32, %v1939_v3  ;;  %v2984_v15 = vmul.f32 %v15827_v32, %v1940_v56  ;;  %v2029_v38 = vld [vmem:[%s18846_s3 + $0xc48] sm:$0xff]  ;;  %v2032_v28 = vld [vmem:[%s18846_s3 + $0xc60] sm:$0xff] }
 0x1ef   : > { %v12101_v59 = vpack.c.bf16 %v3049_v24, %v3048_v11  ;;  %v12102_v21 = vpack.c.bf16 %v3050_v12, %v3050_v12  ;;  %5419 = vst [vmem:[#allocation2 + $0x5b0] sm:$0xff] %v12099_v16  ;;  %v2985_v34 = vmul.f32 %v15827_v32, %v1941_v35  ;;  %v2986_v44 = vmul.f32 %v15827_v32, %v1942_v26  ;;  %v2033_v11 = vld [vmem:[%s18846_s3 + $0xc68] sm:$0xff]  ;;  %v2034_v24 = vld [vmem:[%s18846_s3 + $0xc70] sm:$0xff] }
 0x1f0   : > { %5420 = vst [vmem:[#allocation2 + $0x5b8] sm:$0xff] %v12100_v8  ;;  %v2987_v1 = vmul.f32 %v15827_v32, %v1943_v14  ;;  %v12063_v61 = vpack.c.bf16 %v2982_v46, %v2981_v17  ;;  %v12064_v0 = vpack.c.bf16 %v2984_v15, %v2983_v63  ;;  %v3058_v10 = vmul.f32 %v16020_v18, %v2014_v36  ;;  %v1965_v16 = vld [vmem:[%s18846_s3 + $0xa48] sm:$0xff]  ;;  %v1966_v8 = vld [vmem:[%s18846_s3 + $0xa50] sm:$0xff] }
 0x1f1   : > { %5421 = vst [vmem:[#allocation2 + $0x5c0] sm:$0xff] %v12101_v59  ;;  %5422 = vst.msk [vmem:[#allocation2 + $0x5c8] sm:$0xf] %vm5213_vm1, %v12102_v21  ;;  %v3059_v32 = vmul.f32 %v16020_v18, %v2015_v51  ;;  %v3060_v45 = vmul.f32 %v16020_v18, %v2016_v55  ;;  %v12065_v7 = vpack.c.bf16 %v2986_v44, %v2985_v34  ;;  %v1967_v51 = vld [vmem:[%s18846_s3 + $0xa58] sm:$0xff]  ;;  %v1968_v55 = vld [vmem:[%s18846_s3 + $0xa60] sm:$0xff]  ;;  %v16219_v44 = vpop.permute.xlu0 %2547 }
 0x1f2   : > { %v12066_v25 = vpack.c.bf16 %v2987_v1, %v2987_v1  ;;  %5383 = vst [vmem:[#allocation2 + $0x4b4] sm:$0xff] %v12063_v61  ;;  %v3061_v29 = vmul.f32 %v16020_v18, %v2017_v9  ;;  %v3062_v43 = vmul.f32 %v16020_v18, %v2018_v5  ;;  %5384 = vst [vmem:[#allocation2 + $0x4bc] sm:$0xff] %v12064_v0  ;;  %v1969_v9 = vld [vmem:[%s18846_s3 + $0xa68] sm:$0xff]  ;;  %v1970_v5 = vld [vmem:[%s18846_s3 + $0xa70] sm:$0xff] }
 0x1f3   : > { %v3063_v13 = vmul.f32 %v16020_v18, %v2019_v20  ;;  %v3064_v49 = vmul.f32 %v16020_v18, %v2020_v40  ;;  %v12107_v54 = vpack.c.bf16 %v3059_v32, %v3058_v10  ;;  %v2995_v52 = vmul.f32 %v15898_v60, %v1951_v41  ;;  %5385 = vst [vmem:[#allocation2 + $0x4c4] sm:$0xff] %v12065_v7  ;;  %v1971_v34 = vld [vmem:[%s18846_s3 + $0xa78] sm:$0xff]  ;;  %v2042_v40 = vld [vmem:[%s18846_s3 + $0xcb0] sm:$0xff]  ;;  %v2044_v0 = vld [vmem:[%s18846_s3 + $0xcc0] sm:$0xff]  ;;  %v16232_v10 = vpop.permute.xlu1 %2522 }
 0x1f4   : > { %5386 = vst.msk [vmem:[#allocation2 + $0x4cc] sm:$0xf] %vm5213_vm1, %v12066_v25  ;;  %v12108_v42 = vpack.c.bf16 %v3061_v29, %v3060_v45  ;;  %v2996_v6 = vmul.f32 %v15898_v60, %v1952_v27  ;;  %v2997_v18 = vmul.f32 %v15898_v60, %v1953_v37  ;;  %v2998_v2 = vmul.f32 %v15898_v60, %v1954_v23  ;;  %v2043_v41 = vld [vmem:[%s18846_s3 + $0xcb8] sm:$0xff]  ;;  %v2045_v23 = vld [vmem:[%s18846_s3 + $0xcc8] sm:$0xff]  ;;  %v2046_v7 = vld [vmem:[%s18846_s3 + $0xcd0] sm:$0xff] }
 0x1f5   : > { %v12109_v19 = vpack.c.bf16 %v3063_v13, %v3062_v43  ;;  %v12110_v31 = vpack.c.bf16 %v3064_v49, %v3064_v49  ;;  %5427 = vst [vmem:[#allocation2 + $0x5e8] sm:$0xff] %v12107_v54  ;;  %v2999_v3 = vmul.f32 %v15898_v60, %v1955_v30  ;;  %v3000_v56 = vmul.f32 %v15898_v60, %v1956_v33  ;;  %v2047_v33 = vld [vmem:[%s18846_s3 + $0xcd8] sm:$0xff]  ;;  %v2048_v13 = vld [vmem:[%s18846_s3 + $0xce0] sm:$0xff] }
 0x1f6   : > { %5428 = vst [vmem:[#allocation2 + $0x5f0] sm:$0xff] %v12108_v42  ;;  %v3001_v12 = vmul.f32 %v15898_v60, %v1957_v50  ;;  %v12071_v35 = vpack.c.bf16 %v2996_v6, %v2995_v52  ;;  %v12072_v26 = vpack.c.bf16 %v2998_v2, %v2997_v18  ;;  %v3072_v14 = vmul.f32 %v16083_v22, %v2028_v48  ;;  %v1979_v49 = vld [vmem:[%s18846_s3 + $0xab8] sm:$0xff]  ;;  %v1980_v48 = vld [vmem:[%s18846_s3 + $0xac0] sm:$0xff]  ;;  %v1981_v42 = vld [vmem:[%s18846_s3 + $0xac8] sm:$0xff] }
 0x1f7   : > { %5429 = vst [vmem:[#allocation2 + $0x5f8] sm:$0xff] %v12109_v19  ;;  %5430 = vst.msk [vmem:[#allocation2 + $0x600] sm:$0xf] %vm5213_vm1, %v12110_v31  ;;  %v12073_v17 = vpack.c.bf16 %v3000_v56, %v2999_v3  ;;  %v3073_v46 = vmul.f32 %v16083_v22, %v2029_v38  ;;  %v3074_v60 = vmul.f32 %v16083_v22, %v2030_v53  ;;  %v1982_v6 = vld [vmem:[%s18846_s3 + $0xad0] sm:$0xff]  ;;  %v1984_v19 = vld [vmem:[%s18846_s3 + $0xae0] sm:$0xff] }
 0x1f8   : > { %v3075_v36 = vmul.f32 %v16083_v22, %v2031_v4  ;;  %v12074_v59 = vpack.c.bf16 %v3001_v12, %v3001_v12  ;;  %5391 = vst [vmem:[#allocation2 + $0x4ec] sm:$0xff] %v12071_v35  ;;  %5392 = vst [vmem:[#allocation2 + $0x4f4] sm:$0xff] %v12072_v26  ;;  %v3076_v21 = vmul.f32 %v16083_v22, %v2032_v28  ;;  %v1983_v4 = vld [vmem:[%s18846_s3 + $0xad8] sm:$0xff]  ;;  %v1985_v28 = vld [vmem:[%s18846_s3 + $0xae8] sm:$0xff]  ;;  %v16285_v12 = vpop.permute.xlu0 %2557 }
 0x1f9   : > { %v3077_v63 = vmul.f32 %v16083_v22, %v2033_v11  ;;  %v3078_v15 = vmul.f32 %v16083_v22, %v2034_v24  ;;  %5393 = vst [vmem:[#allocation2 + $0x4fc] sm:$0xff] %v12073_v17  ;;  %v12115_v1 = vpack.c.bf16 %v3073_v46, %v3072_v14  ;;  %v3009_v20 = vmul.f32 %v15961_v39, %v1965_v16  ;;  %v2056_v24 = vld [vmem:[%s18846_s3 + $0xd20] sm:$0xff]  ;;  %v2057_v16 = vld [vmem:[%s18846_s3 + $0xd28] sm:$0xff]  ;;  %v2059_v17 = vld [vmem:[%s18846_s3 + $0xd38] sm:$0xff]  ;;  %v16300_v46 = vpop.permute.xlu1 %2532 }
 0x1fa   : > { %v12116_v61 = vpack.c.bf16 %v3075_v36, %v3074_v60  ;;  %v3010_v22 = vmul.f32 %v15961_v39, %v1966_v8  ;;  %5394 = vst.msk [vmem:[#allocation2 + $0x504] sm:$0xf] %vm5213_vm1, %v12074_v59  ;;  %v3011_v27 = vmul.f32 %v15961_v39, %v1967_v51  ;;  %v3012_v37 = vmul.f32 %v15961_v39, %v1968_v55  ;;  %v2058_v8 = vld [vmem:[%s18846_s3 + $0xd30] sm:$0xff]  ;;  %v2060_v59 = vld [vmem:[%s18846_s3 + $0xd40] sm:$0xff] }
 0x1fb   : > { %v12117_v32 = vpack.c.bf16 %v3077_v63, %v3076_v21  ;;  %v12118_v45 = vpack.c.bf16 %v3078_v15, %v3078_v15  ;;  %5435 = vst [vmem:[#allocation2 + $0x620] sm:$0xff] %v12115_v1  ;;  %v3013_v25 = vmul.f32 %v15961_v39, %v1969_v9  ;;  %v3014_v29 = vmul.f32 %v15961_v39, %v1970_v5  ;;  %v2061_v21 = vld [vmem:[%s18846_s3 + $0xd48] sm:$0xff]  ;;  %v2062_v63 = vld [vmem:[%s18846_s3 + $0xd50] sm:$0xff] }
 0x1fc   : > { %5436 = vst [vmem:[#allocation2 + $0x628] sm:$0xff] %v12116_v61  ;;  %v3015_v43 = vmul.f32 %v15961_v39, %v1971_v34  ;;  %v12079_v30 = vpack.c.bf16 %v3010_v22, %v3009_v20  ;;  %v12080_v54 = vpack.c.bf16 %v3012_v37, %v3011_v27  ;;  %v3086_v50 = vmul.f32 %v16152_v47, %v2042_v40  ;;  %v1993_v1 = vld [vmem:[%s18846_s3 + $0xb28] sm:$0xff]  ;;  %v1994_v61 = vld [vmem:[%s18846_s3 + $0xb30] sm:$0xff] }
 0x1fd   : > { %5437 = vst [vmem:[#allocation2 + $0x630] sm:$0xff] %v12117_v32  ;;  %5438 = vst.msk [vmem:[#allocation2 + $0x638] sm:$0xf] %vm5213_vm1, %v12118_v45  ;;  %v3087_v39 = vmul.f32 %v16152_v47, %v2043_v41  ;;  %v3088_v52 = vmul.f32 %v16152_v47, %v2044_v0  ;;  %v12081_v18 = vpack.c.bf16 %v3014_v29, %v3013_v25  ;;  %v1995_v41 = vld [vmem:[%s18846_s3 + $0xb38] sm:$0xff]  ;;  %v1996_v0 = vld [vmem:[%s18846_s3 + $0xb40] sm:$0xff] }
 0x1fe   : > { %v12082_v2 = vpack.c.bf16 %v3015_v43, %v3015_v43  ;;  %5399 = vst [vmem:[#allocation2 + $0x524] sm:$0xff] %v12079_v30  ;;  %v3089_v38 = vmul.f32 %v16152_v47, %v2045_v23  ;;  %v3090_v53 = vmul.f32 %v16152_v47, %v2046_v7  ;;  %5400 = vst [vmem:[#allocation2 + $0x52c] sm:$0xff] %v12080_v54  ;;  %v1997_v23 = vld [vmem:[%s18846_s3 + $0xb48] sm:$0xff]  ;;  %v1998_v7 = vld [vmem:[%s18846_s3 + $0xb50] sm:$0xff]  ;;  %v16354_v54 = vpop.permute.xlu0 %2567 }
 0x1ff   : > { %v3091_v31 = vmul.f32 %v16152_v47, %v2047_v33  ;;  %v3092_v3 = vmul.f32 %v16152_v47, %v2048_v13  ;;  %v12123_v56 = vpack.c.bf16 %v3087_v39, %v3086_v50  ;;  %v3023_v11 = vmul.f32 %v16030_v62, %v1979_v49  ;;  %5401 = vst [vmem:[#allocation2 + $0x534] sm:$0xff] %v12081_v18  ;;  %v1999_v25 = vld [vmem:[%s18846_s3 + $0xb58] sm:$0xff]  ;;  %v2072_v49 = vld [vmem:[%s18846_s3 + $0xda0] sm:$0xff]  ;;  %v16365_v18 = vpop.permute.xlu1 %2542 }
 0x200   : > { %5402 = vst.msk [vmem:[#allocation2 + $0x53c] sm:$0xf] %vm5213_vm1, %v12082_v2  ;;  %v12124_v35 = vpack.c.bf16 %v3089_v38, %v3088_v52  ;;  %v3024_v26 = vmul.f32 %v16030_v62, %v1980_v48  ;;  %v3025_v47 = vmul.f32 %v16030_v62, %v1981_v42  ;;  %v3026_v14 = vmul.f32 %v16030_v62, %v1982_v6  ;;  %v2071_v13 = vld [vmem:[%s18846_s3 + $0xd98] sm:$0xff]  ;;  %v2073_v42 = vld [vmem:[%s18846_s3 + $0xda8] sm:$0xff]  ;;  %v2074_v6 = vld [vmem:[%s18846_s3 + $0xdb0] sm:$0xff] }
 0x201   : > { %v12125_v60 = vpack.c.bf16 %v3091_v31, %v3090_v53  ;;  %v12126_v36 = vpack.c.bf16 %v3092_v3, %v3092_v3  ;;  %5443 = vst [vmem:[#allocation2 + $0x658] sm:$0xff] %v12123_v56  ;;  %v3027_v51 = vmul.f32 %v16030_v62, %v1983_v4  ;;  %v3028_v55 = vmul.f32 %v16030_v62, %v1984_v19  ;;  %v2075_v19 = vld [vmem:[%s18846_s3 + $0xdb8] sm:$0xff]  ;;  %v2076_v31 = vld [vmem:[%s18846_s3 + $0xdc0] sm:$0xff] }
 0x202   : > { %5444 = vst [vmem:[#allocation2 + $0x660] sm:$0xff] %v12124_v35  ;;  %v3029_v15 = vmul.f32 %v16030_v62, %v1985_v28  ;;  %v12087_v9 = vpack.c.bf16 %v3024_v26, %v3023_v11  ;;  %v12088_v5 = vpack.c.bf16 %v3026_v14, %v3025_v47  ;;  %v3100_v34 = vmul.f32 %v16219_v44, %v2056_v24  ;;  %v2007_v3 = vld [vmem:[%s18846_s3 + $0xb98] sm:$0xff]  ;;  %v2008_v24 = vld [vmem:[%s18846_s3 + $0xba0] sm:$0xff]  ;;  %v2009_v35 = vld [vmem:[%s18846_s3 + $0xba8] sm:$0xff] }
 0x203   : > { %5445 = vst [vmem:[#allocation2 + $0x668] sm:$0xff] %v12125_v60  ;;  %5446 = vst.msk [vmem:[#allocation2 + $0x670] sm:$0xf] %vm5213_vm1, %v12126_v36  ;;  %v12089_v20 = vpack.c.bf16 %v3028_v55, %v3027_v51  ;;  %v3101_v22 = vmul.f32 %v16219_v44, %v2057_v16  ;;  %v3102_v62 = vmul.f32 %v16219_v44, %v2058_v8  ;;  %v2010_v26 = vld [vmem:[%s18846_s3 + $0xbb0] sm:$0xff]  ;;  %v2012_v60 = vld [vmem:[%s18846_s3 + $0xbc0] sm:$0xff] }
 0x204   : > { %v3103_v40 = vmul.f32 %v16219_v44, %v2059_v17  ;;  %v12090_v32 = vpack.c.bf16 %v3029_v15, %v3029_v15  ;;  %5407 = vst [vmem:[#allocation2 + $0x55c] sm:$0xff] %v12087_v9  ;;  %5408 = vst [vmem:[#allocation2 + $0x564] sm:$0xff] %v12088_v5  ;;  %v3104_v45 = vmul.f32 %v16219_v44, %v2060_v59  ;;  %v2011_v17 = vld [vmem:[%s18846_s3 + $0xbb8] sm:$0xff]  ;;  %v2013_v59 = vld [vmem:[%s18846_s3 + $0xbc8] sm:$0xff] }
 0x205   : > { %v3105_v27 = vmul.f32 %v16219_v44, %v2061_v21  ;;  %v3106_v37 = vmul.f32 %v16219_v44, %v2062_v63  ;;  %5409 = vst [vmem:[#allocation2 + $0x56c] sm:$0xff] %v12089_v20  ;;  %v12131_v29 = vpack.c.bf16 %v3101_v22, %v3100_v34  ;;  %v3037_v30 = vmul.f32 %v16097_v58, %v1993_v1  ;;  %v2070_v44 = vld [vmem:[%s18846_s3 + $0xd90] sm:$0xff]  ;;  %v2084_v63 = vld [vmem:[%s18846_s3 + $0xe00] sm:$0xff]  ;;  %v2085_v34 = vld [vmem:[%s18846_s3 + $0xe08] sm:$0xff]  ;;  %v16422_v20 = vpop.permute.xlu0 %2577 }
 0x206   : > { %v12132_v43 = vpack.c.bf16 %v3103_v40, %v3102_v62  ;;  %v3038_v33 = vmul.f32 %v16097_v58, %v1994_v61  ;;  %5410 = vst.msk [vmem:[#allocation2 + $0x574] sm:$0xf] %vm5213_vm1, %v12090_v32  ;;  %v3039_v52 = vmul.f32 %v16097_v58, %v1995_v41  ;;  %v3040_v48 = vmul.f32 %v16097_v58, %v1996_v0  ;;  %v2086_v1 = vld [vmem:[%s18846_s3 + $0xe10] sm:$0xff]  ;;  %v2087_v61 = vld [vmem:[%s18846_s3 + $0xe18] sm:$0xff]  ;;  %v2088_v0 = vld [vmem:[%s18846_s3 + $0xe20] sm:$0xff] }
 0x207   : > { %v12133_v50 = vpack.c.bf16 %v3105_v27, %v3104_v45  ;;  %v12134_v39 = vpack.c.bf16 %v3106_v37, %v3106_v37  ;;  %5451 = vst [vmem:[#allocation2 + $0x690] sm:$0xff] %v12131_v29  ;;  %v3041_v2 = vmul.f32 %v16097_v58, %v1997_v23  ;;  %v3042_v38 = vmul.f32 %v16097_v58, %v1998_v7  ;;  %v2089_v32 = vld [vmem:[%s18846_s3 + $0xe28] sm:$0xff]  ;;  %v2090_v45 = vld [vmem:[%s18846_s3 + $0xe30] sm:$0xff]  ;;  %v16435_v27 = vpop.permute.xlu1 %2552 }
 0x208   : > { %5452 = vst [vmem:[#allocation2 + $0x698] sm:$0xff] %v12132_v43  ;;  %v3043_v53 = vmul.f32 %v16097_v58, %v1999_v25  ;;  %v12095_v4 = vpack.c.bf16 %v3038_v33, %v3037_v30  ;;  %v12096_v56 = vpack.c.bf16 %v3040_v48, %v3039_v52  ;;  %v3114_v28 = vmul.f32 %v16285_v12, %v2070_v44  ;;  %v2021_v29 = vld [vmem:[%s18846_s3 + $0xc08] sm:$0xff]  ;;  %v2022_v43 = vld [vmem:[%s18846_s3 + $0xc10] sm:$0xff] }
 0x209   : > { %5453 = vst [vmem:[#allocation2 + $0x6a0] sm:$0xff] %v12133_v50  ;;  %5454 = vst.msk [vmem:[#allocation2 + $0x6a8] sm:$0xf] %vm5213_vm1, %v12134_v39  ;;  %v3115_v58 = vmul.f32 %v16285_v12, %v2071_v13  ;;  %v3116_v11 = vmul.f32 %v16285_v12, %v2072_v49  ;;  %v12097_v47 = vpack.c.bf16 %v3042_v38, %v3041_v2  ;;  %v2023_v13 = vld [vmem:[%s18846_s3 + $0xc18] sm:$0xff]  ;;  %v2024_v49 = vld [vmem:[%s18846_s3 + $0xc20] sm:$0xff] }
 0x20a   : > { %v12098_v14 = vpack.c.bf16 %v3043_v53, %v3043_v53  ;;  %5415 = vst [vmem:[#allocation2 + $0x594] sm:$0xff] %v12095_v4  ;;  %v3117_v16 = vmul.f32 %v16285_v12, %v2073_v42  ;;  %v3118_v8 = vmul.f32 %v16285_v12, %v2074_v6  ;;  %5416 = vst [vmem:[#allocation2 + $0x59c] sm:$0xff] %v12096_v56  ;;  %v2025_v42 = vld [vmem:[%s18846_s3 + $0xc28] sm:$0xff]  ;;  %v2026_v6 = vld [vmem:[%s18846_s3 + $0xc30] sm:$0xff] }
 0x20b   : > { %v3119_v36 = vmul.f32 %v16285_v12, %v2075_v19  ;;  %v3120_v51 = vmul.f32 %v16285_v12, %v2076_v31  ;;  %v12139_v55 = vpack.c.bf16 %v3115_v58, %v3114_v28  ;;  %v3051_v21 = vmul.f32 %v16163_v57, %v2007_v3  ;;  %5417 = vst [vmem:[#allocation2 + $0x5a4] sm:$0xff] %v12097_v47  ;;  %v2027_v2 = vld [vmem:[%s18846_s3 + $0xc38] sm:$0xff]  ;;  %v2100_v3 = vld [vmem:[%s18846_s3 + $0xe80] sm:$0xff] }
 0x20c   : > { %5418 = vst.msk [vmem:[#allocation2 + $0x5ac] sm:$0xf] %vm5213_vm1, %v12098_v14  ;;  %v12140_v15 = vpack.c.bf16 %v3117_v16, %v3116_v11  ;;  %v3052_v9 = vmul.f32 %v16163_v57, %v2008_v24  ;;  %v3053_v5 = vmul.f32 %v16163_v57, %v2009_v35  ;;  %v3054_v12 = vmul.f32 %v16163_v57, %v2010_v26  ;;  %v2099_v31 = vld [vmem:[%s18846_s3 + $0xe78] sm:$0xff]  ;;  %v2101_v24 = vld [vmem:[%s18846_s3 + $0xe88] sm:$0xff]  ;;  %v2102_v35 = vld [vmem:[%s18846_s3 + $0xe90] sm:$0xff]  ;;  %v16487_v26 = vpop.permute.xlu0 %2587 }
 0x20d   : > { %v12141_v22 = vpack.c.bf16 %v3119_v36, %v3118_v8  ;;  %v12142_v62 = vpack.c.bf16 %v3120_v51, %v3120_v51  ;;  %5459 = vst [vmem:[#allocation2 + $0x6c8] sm:$0xff] %v12139_v55  ;;  %v3055_v40 = vmul.f32 %v16163_v57, %v2011_v17  ;;  %v3056_v41 = vmul.f32 %v16163_v57, %v2012_v60  ;;  %v2103_v17 = vld [vmem:[%s18846_s3 + $0xe98] sm:$0xff]  ;;  %v2104_v60 = vld [vmem:[%s18846_s3 + $0xea0] sm:$0xff]  ;;  %v16501_v51 = vpop.permute.xlu1 %2562 }
 0x20e   : > { %5460 = vst [vmem:[#allocation2 + $0x6d0] sm:$0xff] %v12140_v15  ;;  %v3057_v37 = vmul.f32 %v16163_v57, %v2013_v59  ;;  %v12103_v23 = vpack.c.bf16 %v3052_v9, %v3051_v21  ;;  %v12104_v7 = vpack.c.bf16 %v3054_v12, %v3053_v5  ;;  %v3128_v25 = vmul.f32 %v16354_v54, %v2084_v63  ;;  %v2035_v36 = vld [vmem:[%s18846_s3 + $0xc78] sm:$0xff]  ;;  %v2036_v63 = vld [vmem:[%s18846_s3 + $0xc80] sm:$0xff]  ;;  %v2037_v15 = vld [vmem:[%s18846_s3 + $0xc88] sm:$0xff] }
 0x20f   : > { %5461 = vst [vmem:[#allocation2 + $0x6d8] sm:$0xff] %v12141_v22  ;;  %5462 = vst.msk [vmem:[#allocation2 + $0x6e0] sm:$0xf] %vm5213_vm1, %v12142_v62  ;;  %v12105_v30 = vpack.c.bf16 %v3056_v41, %v3055_v40  ;;  %v3129_v33 = vmul.f32 %v16354_v54, %v2085_v34  ;;  %v3130_v57 = vmul.f32 %v16354_v54, %v2086_v1  ;;  %v2038_v9 = vld [vmem:[%s18846_s3 + $0xc90] sm:$0xff]  ;;  %v2040_v22 = vld [vmem:[%s18846_s3 + $0xca0] sm:$0xff] }
 0x210   : > { %v3131_v44 = vmul.f32 %v16354_v54, %v2087_v61  ;;  %v12106_v50 = vpack.c.bf16 %v3057_v37, %v3057_v37  ;;  %5423 = vst [vmem:[#allocation2 + $0x5cc] sm:$0xff] %v12103_v23  ;;  %5424 = vst [vmem:[#allocation2 + $0x5d4] sm:$0xff] %v12104_v7  ;;  %v3132_v39 = vmul.f32 %v16354_v54, %v2088_v0  ;;  %v2039_v61 = vld [vmem:[%s18846_s3 + $0xc98] sm:$0xff]  ;;  %v2041_v0 = vld [vmem:[%s18846_s3 + $0xca8] sm:$0xff] }
 0x211   : > { %v3133_v52 = vmul.f32 %v16354_v54, %v2089_v32  ;;  %v3134_v48 = vmul.f32 %v16354_v54, %v2090_v45  ;;  %5425 = vst [vmem:[#allocation2 + $0x5dc] sm:$0xff] %v12105_v30  ;;  %v12147_v38 = vpack.c.bf16 %v3129_v33, %v3128_v25  ;;  %v3065_v4 = vmul.f32 %v16232_v10, %v2021_v29  ;;  %v2098_v54 = vld [vmem:[%s18846_s3 + $0xe70] sm:$0xff]  ;;  %v2112_v45 = vld [vmem:[%s18846_s3 + $0xee0] sm:$0xff]  ;;  %v2113_v25 = vld [vmem:[%s18846_s3 + $0xee8] sm:$0xff] }
 0x212   : > { %v12148_v53 = vpack.c.bf16 %v3131_v44, %v3130_v57  ;;  %v3066_v19 = vmul.f32 %v16232_v10, %v2022_v43  ;;  %5426 = vst.msk [vmem:[#allocation2 + $0x5e4] sm:$0xf] %vm5213_vm1, %v12106_v50  ;;  %v3067_v58 = vmul.f32 %v16232_v10, %v2023_v13  ;;  %v3068_v11 = vmul.f32 %v16232_v10, %v2024_v49  ;;  %v2114_v29 = vld [vmem:[%s18846_s3 + $0xef0] sm:$0xff]  ;;  %v2115_v43 = vld [vmem:[%s18846_s3 + $0xef8] sm:$0xff]  ;;  %v2116_v13 = vld [vmem:[%s18846_s3 + $0xf00] sm:$0xff] }
 0x213   : > { %v12149_v56 = vpack.c.bf16 %v3133_v52, %v3132_v39  ;;  %v12150_v28 = vpack.c.bf16 %v3134_v48, %v3134_v48  ;;  %5467 = vst [vmem:[#allocation2 + $0x700] sm:$0xff] %v12147_v38  ;;  %v3069_v47 = vmul.f32 %v16232_v10, %v2025_v42  ;;  %v3070_v14 = vmul.f32 %v16232_v10, %v2026_v6  ;;  %v2117_v49 = vld [vmem:[%s18846_s3 + $0xf08] sm:$0xff]  ;;  %v2118_v50 = vld [vmem:[%s18846_s3 + $0xf10] sm:$0xff]  ;;  %v16557_v39 = vpop.permute.xlu0 %2597 }
 0x214   : > { %5468 = vst [vmem:[#allocation2 + $0x708] sm:$0xff] %v12148_v53  ;;  %v3071_v16 = vmul.f32 %v16232_v10, %v2027_v2  ;;  %v12111_v8 = vpack.c.bf16 %v3066_v19, %v3065_v4  ;;  %v12112_v55 = vpack.c.bf16 %v3068_v11, %v3067_v58  ;;  %v3142_v10 = vmul.f32 %v16422_v20, %v2098_v54  ;;  %v2049_v2 = vld [vmem:[%s18846_s3 + $0xce8] sm:$0xff]  ;;  %v2050_v38 = vld [vmem:[%s18846_s3 + $0xcf0] sm:$0xff]  ;;  %v16567_v53 = vpop.permute.xlu1 %2572 }
 0x215   : > { %5469 = vst [vmem:[#allocation2 + $0x710] sm:$0xff] %v12149_v56  ;;  %5470 = vst.msk [vmem:[#allocation2 + $0x718] sm:$0xf] %vm5213_vm1, %v12150_v28  ;;  %v3143_v59 = vmul.f32 %v16422_v20, %v2099_v31  ;;  %v3144_v21 = vmul.f32 %v16422_v20, %v2100_v3  ;;  %v12113_v5 = vpack.c.bf16 %v3070_v14, %v3069_v47  ;;  %v2051_v31 = vld [vmem:[%s18846_s3 + $0xcf8] sm:$0xff]  ;;  %v2052_v3 = vld [vmem:[%s18846_s3 + $0xd00] sm:$0xff] }
 0x216   : > { %v12114_v12 = vpack.c.bf16 %v3071_v16, %v3071_v16  ;;  %5431 = vst [vmem:[#allocation2 + $0x604] sm:$0xff] %v12111_v8  ;;  %v3145_v34 = vmul.f32 %v16422_v20, %v2101_v24  ;;  %v3146_v1 = vmul.f32 %v16422_v20, %v2102_v35  ;;  %5432 = vst [vmem:[#allocation2 + $0x60c] sm:$0xff] %v12112_v55  ;;  %v2053_v24 = vld [vmem:[%s18846_s3 + $0xd08] sm:$0xff]  ;;  %v2054_v35 = vld [vmem:[%s18846_s3 + $0xd10] sm:$0xff] }
 0x217   : > { %v3147_v62 = vmul.f32 %v16422_v20, %v2103_v17  ;;  %v3148_v40 = vmul.f32 %v16422_v20, %v2104_v60  ;;  %v12155_v41 = vpack.c.bf16 %v3143_v59, %v3142_v10  ;;  %v3079_v32 = vmul.f32 %v16300_v46, %v2035_v36  ;;  %5433 = vst [vmem:[#allocation2 + $0x614] sm:$0xff] %v12113_v5  ;;  %v2055_v47 = vld [vmem:[%s18846_s3 + $0xd18] sm:$0xff]  ;;  %v2128_v36 = vld [vmem:[%s18846_s3 + $0xf60] sm:$0xff] }
 0x218   : > { %5434 = vst.msk [vmem:[#allocation2 + $0x61c] sm:$0xf] %vm5213_vm1, %v12114_v12  ;;  %v12156_v37 = vpack.c.bf16 %v3145_v34, %v3144_v21  ;;  %v3080_v23 = vmul.f32 %v16300_v46, %v2036_v63  ;;  %v3081_v7 = vmul.f32 %v16300_v46, %v2037_v15  ;;  %v3082_v20 = vmul.f32 %v16300_v46, %v2038_v9  ;;  %v2127_v60 = vld [vmem:[%s18846_s3 + $0xf58] sm:$0xff]  ;;  %v2129_v63 = vld [vmem:[%s18846_s3 + $0xf68] sm:$0xff]  ;;  %v2130_v15 = vld [vmem:[%s18846_s3 + $0xf70] sm:$0xff] }
 0x219   : > { %v12157_v30 = vpack.c.bf16 %v3147_v62, %v3146_v1  ;;  %v12158_v33 = vpack.c.bf16 %v3148_v40, %v3148_v40  ;;  %5475 = vst [vmem:[#allocation2 + $0x738] sm:$0xff] %v12155_v41  ;;  %v3083_v57 = vmul.f32 %v16300_v46, %v2039_v61  ;;  %v3084_v44 = vmul.f32 %v16300_v46, %v2040_v22  ;;  %v2131_v1 = vld [vmem:[%s18846_s3 + $0xf78] sm:$0xff]  ;;  %v2132_v61 = vld [vmem:[%s18846_s3 + $0xf80] sm:$0xff]  ;;  %v16623_v62 = vpop.permute.xlu0 %2607 }
 0x21a   : > { %5476 = vst [vmem:[#allocation2 + $0x740] sm:$0xff] %v12156_v37  ;;  %v3085_v52 = vmul.f32 %v16300_v46, %v2041_v0  ;;  %v12119_v48 = vpack.c.bf16 %v3080_v23, %v3079_v32  ;;  %v12120_v42 = vpack.c.bf16 %v3082_v20, %v3081_v7  ;;  %v3156_v6 = vmul.f32 %v16487_v26, %v2112_v45  ;;  %v2063_v22 = vld [vmem:[%s18846_s3 + $0xd58] sm:$0xff]  ;;  %v2064_v32 = vld [vmem:[%s18846_s3 + $0xd60] sm:$0xff]  ;;  %v2065_v45 = vld [vmem:[%s18846_s3 + $0xd68] sm:$0xff]  ;;  %v16638_v23 = vpop.permute.xlu1 %2582 }
 0x21b   : > { %5477 = vst [vmem:[#allocation2 + $0x748] sm:$0xff] %v12157_v30  ;;  %5478 = vst.msk [vmem:[#allocation2 + $0x750] sm:$0xf] %vm5213_vm1, %v12158_v33  ;;  %v12121_v4 = vpack.c.bf16 %v3084_v44, %v3083_v57  ;;  %v3157_v46 = vmul.f32 %v16487_v26, %v2113_v25  ;;  %v3158_v19 = vmul.f32 %v16487_v26, %v2114_v29  ;;  %v2066_v37 = vld [vmem:[%s18846_s3 + $0xd70] sm:$0xff]  ;;  %v2068_v30 = vld [vmem:[%s18846_s3 + $0xd80] sm:$0xff] }
 0x21c   : > { %v3159_v54 = vmul.f32 %v16487_v26, %v2115_v43  ;;  %v12122_v56 = vpack.c.bf16 %v3085_v52, %v3085_v52  ;;  %5439 = vst [vmem:[#allocation2 + $0x63c] sm:$0xff] %v12119_v48  ;;  %5440 = vst [vmem:[#allocation2 + $0x644] sm:$0xff] %v12120_v42  ;;  %v3160_v28 = vmul.f32 %v16487_v26, %v2116_v13  ;;  %v2067_v43 = vld [vmem:[%s18846_s3 + $0xd78] sm:$0xff]  ;;  %v2069_v13 = vld [vmem:[%s18846_s3 + $0xd88] sm:$0xff] }
 0x21d   : > { %v3161_v58 = vmul.f32 %v16487_v26, %v2117_v49  ;;  %v3162_v11 = vmul.f32 %v16487_v26, %v2118_v50  ;;  %5441 = vst [vmem:[#allocation2 + $0x64c] sm:$0xff] %v12121_v4  ;;  %v12163_v14 = vpack.c.bf16 %v3157_v46, %v3156_v6  ;;  %v3093_v8 = vmul.f32 %v16365_v18, %v2049_v2  ;;  %v2126_v26 = vld [vmem:[%s18846_s3 + $0xf50] sm:$0xff]  ;;  %v2140_v50 = vld [vmem:[%s18846_s3 + $0xfc0] sm:$0xff]  ;;  %v2141_v6 = vld [vmem:[%s18846_s3 + $0xfc8] sm:$0xff] }
 0x21e   : > { %v12164_v16 = vpack.c.bf16 %v3159_v54, %v3158_v19  ;;  %v3094_v17 = vmul.f32 %v16365_v18, %v2050_v38  ;;  %5442 = vst.msk [vmem:[#allocation2 + $0x654] sm:$0xf] %vm5213_vm1, %v12122_v56  ;;  %v3095_v59 = vmul.f32 %v16365_v18, %v2051_v31  ;;  %v3096_v21 = vmul.f32 %v16365_v18, %v2052_v3  ;;  %v2142_v2 = vld [vmem:[%s18846_s3 + $0xfd0] sm:$0xff]  ;;  %v2143_v38 = vld [vmem:[%s18846_s3 + $0xfd8] sm:$0xff]  ;;  %v2144_v31 = vld [vmem:[%s18846_s3 + $0xfe0] sm:$0xff] }
 0x21f   : > { %v12165_v55 = vpack.c.bf16 %v3161_v58, %v3160_v28  ;;  %v12166_v10 = vpack.c.bf16 %v3162_v11, %v3162_v11  ;;  %5483 = vst [vmem:[#allocation2 + $0x770] sm:$0xff] %v12163_v14  ;;  %v3097_v9 = vmul.f32 %v16365_v18, %v2053_v24  ;;  %v3098_v5 = vmul.f32 %v16365_v18, %v2054_v35  ;;  %v2145_v3 = vld [vmem:[%s18846_s3 + $0xfe8] sm:$0xff]  ;;  %v2146_v56 = vld [vmem:[%s18846_s3 + $0xff0] sm:$0xff]  ;;  %v16689_v14 = vpop.permute.xlu0 %2617 }
 0x220   : > { %5484 = vst [vmem:[#allocation2 + $0x778] sm:$0xff] %v12164_v16  ;;  %v3099_v12 = vmul.f32 %v16365_v18, %v2055_v47  ;;  %v12127_v34 = vpack.c.bf16 %v3094_v17, %v3093_v8  ;;  %v12128_v40 = vpack.c.bf16 %v3096_v21, %v3095_v59  ;;  %v3170_v18 = vmul.f32 %v16557_v39, %v2126_v26  ;;  %v2077_v35 = vld [vmem:[%s18846_s3 + $0xdc8] sm:$0xff]  ;;  %v2078_v47 = vld [vmem:[%s18846_s3 + $0xdd0] sm:$0xff]  ;;  %v2079_v26 = vld [vmem:[%s18846_s3 + $0xdd8] sm:$0xff] }
 0x221   : > { %5485 = vst [vmem:[#allocation2 + $0x780] sm:$0xff] %v12165_v55  ;;  %5486 = vst.msk [vmem:[#allocation2 + $0x788] sm:$0xf] %vm5213_vm1, %v12166_v10  ;;  %v3171_v41 = vmul.f32 %v16557_v39, %v2127_v60  ;;  %v3172_v0 = vmul.f32 %v16557_v39, %v2128_v36  ;;  %v12129_v7 = vpack.c.bf16 %v3098_v5, %v3097_v9  ;;  %v2080_v60 = vld [vmem:[%s18846_s3 + $0xde0] sm:$0xff]  ;;  %v16701_v36 = vpop.permute.xlu1 %2592  ;;  %v2083_v9 = vld [vmem:[%s18846_s3 + $0xdf8] sm:$0xff] }
 0x222   : > { %v12130_v20 = vpack.c.bf16 %v3099_v12, %v3099_v12  ;;  %5447 = vst [vmem:[#allocation2 + $0x674] sm:$0xff] %v12127_v34  ;;  %v3173_v25 = vmul.f32 %v16557_v39, %v2129_v63  ;;  %v3174_v29 = vmul.f32 %v16557_v39, %v2130_v15  ;;  %5448 = vst [vmem:[#allocation2 + $0x67c] sm:$0xff] %v12128_v40  ;;  %v2081_v63 = vld [vmem:[%s18846_s3 + $0xde8] sm:$0xff]  ;;  %v2082_v15 = vld [vmem:[%s18846_s3 + $0xdf0] sm:$0xff] }
 0x223   : > { %v3175_v33 = vmul.f32 %v16557_v39, %v2131_v1  ;;  %v3176_v57 = vmul.f32 %v16557_v39, %v2132_v61  ;;  %v12171_v44 = vpack.c.bf16 %v3171_v41, %v3170_v18  ;;  %v3107_v49 = vmul.f32 %v16435_v27, %v2063_v22  ;;  %5449 = vst [vmem:[#allocation2 + $0x684] sm:$0xff] %v12129_v7  ;;  %v2154_v61 = vld [vmem:[%s18846_s3 + $0x1030] sm:$0xff]  ;;  %v2155_v22 = vld [vmem:[%s18846_s3 + $0x1038] sm:$0xff] }
 0x224   : > { %5450 = vst.msk [vmem:[#allocation2 + $0x68c] sm:$0xf] %vm5213_vm1, %v12130_v20  ;;  %v12172_v52 = vpack.c.bf16 %v3173_v25, %v3172_v0  ;;  %v3108_v48 = vmul.f32 %v16435_v27, %v2064_v32  ;;  %v3109_v42 = vmul.f32 %v16435_v27, %v2065_v45  ;;  %v3110_v39 = vmul.f32 %v16435_v27, %v2066_v37  ;;  %v2157_v32 = vld [vmem:[%s18846_s3 + $0x1048] sm:$0xff]  ;;  %v2158_v45 = vld [vmem:[%s18846_s3 + $0x1050] sm:$0xff] }
 0x225   : > { %v12173_v4 = vpack.c.bf16 %v3175_v33, %v3174_v29  ;;  %v12174_v46 = vpack.c.bf16 %v3176_v57, %v3176_v57  ;;  %5491 = vst [vmem:[#allocation2 + $0x7a8] sm:$0xff] %v12171_v44  ;;  %v3111_v19 = vmul.f32 %v16435_v27, %v2067_v43  ;;  %v3112_v54 = vmul.f32 %v16435_v27, %v2068_v30  ;;  %v2159_v29 = vld [vmem:[%s18846_s3 + $0x1058] sm:$0xff]  ;;  %v2160_v43 = vld [vmem:[%s18846_s3 + $0x1060] sm:$0xff] }
 0x226   : > { %5492 = vst [vmem:[#allocation2 + $0x7b0] sm:$0xff] %v12172_v52  ;;  %v3113_v28 = vmul.f32 %v16435_v27, %v2069_v13  ;;  %v12135_v58 = vpack.c.bf16 %v3108_v48, %v3107_v49  ;;  %v12136_v11 = vpack.c.bf16 %v3110_v39, %v3109_v42  ;;  %v3184_v24 = vmul.f32 %v16623_v62, %v2140_v50  ;;  %v2091_v30 = vld [vmem:[%s18846_s3 + $0xe38] sm:$0xff]  ;;  %v2092_v13 = vld [vmem:[%s18846_s3 + $0xe40] sm:$0xff]  ;;  %v2093_v49 = vld [vmem:[%s18846_s3 + $0xe48] sm:$0xff]  ;;  %v2628_v52 = vpop.permute.xlu0 %2627 }
 0x227   : > { %5493 = vst [vmem:[#allocation2 + $0x7b8] sm:$0xff] %v12173_v4  ;;  %5494 = vst.msk [vmem:[#allocation2 + $0x7c0] sm:$0xf] %vm5213_vm1, %v12174_v46  ;;  %v12137_v16 = vpack.c.bf16 %v3112_v54, %v3111_v19  ;;  %v3185_v27 = vmul.f32 %v16623_v62, %v2141_v6  ;;  %v3186_v8 = vmul.f32 %v16623_v62, %v2142_v2  ;;  %v2094_v50 = vld [vmem:[%s18846_s3 + $0xe50] sm:$0xff]  ;;  %v2095_v2 = vld [vmem:[%s18846_s3 + $0xe58] sm:$0xff]  ;;  %v16768_v4 = vpop.permute.xlu1 %2602 }
 0x228   : > { %v3187_v17 = vmul.f32 %v16623_v62, %v2143_v38  ;;  %v12138_v55 = vpack.c.bf16 %v3113_v28, %v3113_v28  ;;  %5455 = vst [vmem:[#allocation2 + $0x6ac] sm:$0xff] %v12135_v58  ;;  %5456 = vst [vmem:[#allocation2 + $0x6b4] sm:$0xff] %v12136_v11  ;;  %v3188_v10 = vmul.f32 %v16623_v62, %v2144_v31  ;;  %v2096_v38 = vld [vmem:[%s18846_s3 + $0xe60] sm:$0xff]  ;;  %v2097_v31 = vld [vmem:[%s18846_s3 + $0xe68] sm:$0xff] }
 0x229   : > { %v3189_v59 = vmul.f32 %v16623_v62, %v2145_v3  ;;  %v3190_v21 = vmul.f32 %v16623_v62, %v2146_v56  ;;  %5457 = vst [vmem:[#allocation2 + $0x6bc] sm:$0xff] %v12137_v16  ;;  %v12179_v5 = vpack.c.bf16 %v3185_v27, %v3184_v24  ;;  %v3121_v34 = vmul.f32 %v16501_v51, %v2077_v35  ;;  %v2156_v62 = vld [vmem:[%s18846_s3 + $0x1040] sm:$0xff]  ;;  %v2169_v35 = vld [vmem:[%s18846_s3 + $0x10a8] sm:$0xff] }
 0x22a   : > { %v12180_v12 = vpack.c.bf16 %v3187_v17, %v3186_v8  ;;  %v3122_v1 = vmul.f32 %v16501_v51, %v2078_v47  ;;  %5458 = vst.msk [vmem:[#allocation2 + $0x6c4] sm:$0xf] %vm5213_vm1, %v12138_v55  ;;  %v3123_v41 = vmul.f32 %v16501_v51, %v2079_v26  ;;  %v3124_v0 = vmul.f32 %v16501_v51, %v2080_v60  ;;  %v2168_v56 = vld [vmem:[%s18846_s3 + $0x10a0] sm:$0xff]  ;;  %v2170_v47 = vld [vmem:[%s18846_s3 + $0x10b0] sm:$0xff]  ;;  %v2173_v60 = vld [vmem:[%s18846_s3 + $0x10c8] sm:$0xff] }
 0x22b   : > { %v12181_v40 = vpack.c.bf16 %v3189_v59, %v3188_v10  ;;  %v12182_v18 = vpack.c.bf16 %v3190_v21, %v3190_v21  ;;  %5499 = vst [vmem:[#allocation2 + $0x7e0] sm:$0xff] %v12179_v5  ;;  %v3125_v37 = vmul.f32 %v16501_v51, %v2081_v63  ;;  %v3126_v7 = vmul.f32 %v16501_v51, %v2082_v15  ;;  %v2172_v26 = vld [vmem:[%s18846_s3 + $0x10c0] sm:$0xff]  ;;  %v2174_v55 = vld [vmem:[%s18846_s3 + $0x10d0] sm:$0xff]  ;;  %v2105_v15 = vld [vmem:[%s18846_s3 + $0xea8] sm:$0xff] }
 0x22c   : > { %5500 = vst [vmem:[#allocation2 + $0x7e8] sm:$0xff] %v12180_v12  ;;  %v3127_v20 = vmul.f32 %v16501_v51, %v2083_v9  ;;  %v12143_v25 = vpack.c.bf16 %v3122_v1, %v3121_v34  ;;  %v12144_v33 = vpack.c.bf16 %v3124_v0, %v3123_v41  ;;  %v3198_v57 = vmul.f32 %v16689_v14, %v2154_v61  ;;  %v2106_v9 = vld [vmem:[%s18846_s3 + $0xeb0] sm:$0xff]  ;;  %v2108_v61 = vld [vmem:[%s18846_s3 + $0xec0] sm:$0xff]  ;;  %v2109_v0 = vld [vmem:[%s18846_s3 + $0xec8] sm:$0xff] }
 0x22d   : > { %5501 = vst [vmem:[#allocation2 + $0x7f0] sm:$0xff] %v12181_v40  ;;  %5502 = vst.msk [vmem:[#allocation2 + $0x7f8] sm:$0xf] %vm5213_vm1, %v12182_v18  ;;  %v3199_v51 = vmul.f32 %v16689_v14, %v2155_v22  ;;  %v3200_v44 = vmul.f32 %v16689_v14, %v2156_v62  ;;  %v12145_v48 = vpack.c.bf16 %v3126_v7, %v3125_v37  ;;  %v2638_v22 = vpop.permute.xlu0 %2637  ;;  %v16826_v37 = vpop.permute.xlu1 %2612 }
 0x22e   : > { %v12146_v42 = vpack.c.bf16 %v3127_v20, %v3127_v20  ;;  %5463 = vst [vmem:[#allocation2 + $0x6e4] sm:$0xff] %v12143_v25  ;;  %v3201_v39 = vmul.f32 %v16689_v14, %v2157_v32  ;;  %v3202_v6 = vmul.f32 %v16689_v14, %v2158_v45  ;;  %5464 = vst [vmem:[#allocation2 + $0x6ec] sm:$0xff] %v12144_v33  ;;  %v2110_v32 = vld [vmem:[%s18846_s3 + $0xed0] sm:$0xff]  ;;  %v2111_v45 = vld [vmem:[%s18846_s3 + $0xed8] sm:$0xff] }
 0x22f   : > { %v3203_v46 = vmul.f32 %v16689_v14, %v2159_v29  ;;  %v3204_v19 = vmul.f32 %v16689_v14, %v2160_v43  ;;  %v12187_v54 = vpack.c.bf16 %v3199_v51, %v3198_v57  ;;  %v3135_v3 = vmul.f32 %v16567_v53, %v2091_v30  ;;  %5465 = vst [vmem:[#allocation2 + $0x6f4] sm:$0xff] %v12145_v48  ;;  %v2171_v14 = vld [vmem:[%s18846_s3 + $0x10b8] sm:$0xff]  ;;  %v2182_v43 = vld [vmem:[%s18846_s3 + $0x1110] sm:$0xff]  ;;  %v2184_v33 = vld [vmem:[%s18846_s3 + $0x1120] sm:$0xff] }
 0x230   : > { %5466 = vst.msk [vmem:[#allocation2 + $0x6fc] sm:$0xf] %vm5213_vm1, %v12146_v42  ;;  %v12188_v28 = vpack.c.bf16 %v3201_v39, %v3200_v44  ;;  %v3136_v58 = vmul.f32 %v16567_v53, %v2092_v13  ;;  %v3137_v11 = vmul.f32 %v16567_v53, %v2093_v49  ;;  %v3138_v24 = vmul.f32 %v16567_v53, %v2094_v50  ;;  %v2183_v30 = vld [vmem:[%s18846_s3 + $0x1118] sm:$0xff]  ;;  %v2185_v49 = vld [vmem:[%s18846_s3 + $0x1128] sm:$0xff]  ;;  %v2186_v50 = vld [vmem:[%s18846_s3 + $0x1130] sm:$0xff] }
 0x231   : > { %v12189_v16 = vpack.c.bf16 %v3203_v46, %v3202_v6  ;;  %v12190_v27 = vpack.c.bf16 %v3204_v19, %v3204_v19  ;;  %5507 = vst [vmem:[#allocation2 + $0x818] sm:$0xff] %v12187_v54  ;;  %v3139_v8 = vmul.f32 %v16567_v53, %v2095_v2  ;;  %v3140_v17 = vmul.f32 %v16567_v53, %v2096_v38  ;;  %v2187_v6 = vld [vmem:[%s18846_s3 + $0x1138] sm:$0xff]  ;;  %v2188_v2 = vld [vmem:[%s18846_s3 + $0x1140] sm:$0xff] }
 0x232   : > { %5508 = vst [vmem:[#allocation2 + $0x820] sm:$0xff] %v12188_v28  ;;  %v3141_v10 = vmul.f32 %v16567_v53, %v2097_v31  ;;  %v12151_v59 = vpack.c.bf16 %v3136_v58, %v3135_v3  ;;  %v12152_v21 = vpack.c.bf16 %v3138_v24, %v3137_v11  ;;  %v3212_v63 = vmul.f32 %v2628_v52, %v2168_v56  ;;  %v2107_v53 = vld [vmem:[%s18846_s3 + $0xeb8] sm:$0xff]  ;;  %v2120_v31 = vld [vmem:[%s18846_s3 + $0xf20] sm:$0xff]  ;;  %v2121_v3 = vld [vmem:[%s18846_s3 + $0xf28] sm:$0xff] }
 0x233   : > { %5509 = vst [vmem:[#allocation2 + $0x828] sm:$0xff] %v12189_v16  ;;  %5510 = vst.msk [vmem:[#allocation2 + $0x830] sm:$0xf] %vm5213_vm1, %v12190_v27  ;;  %v12153_v5 = vpack.c.bf16 %v3140_v17, %v3139_v8  ;;  %v3213_v12 = vmul.f32 %v2628_v52, %v2169_v35  ;;  %v3214_v34 = vmul.f32 %v2628_v52, %v2170_v47  ;;  %v2119_v38 = vld [vmem:[%s18846_s3 + $0xf18] sm:$0xff]  ;;  %v2122_v56 = vld [vmem:[%s18846_s3 + $0xf30] sm:$0xff] }
 0x234   : > { %v3215_v1 = vmul.f32 %v2628_v52, %v2171_v14  ;;  %v12154_v62 = vpack.c.bf16 %v3141_v10, %v3141_v10  ;;  %5471 = vst [vmem:[#allocation2 + $0x71c] sm:$0xff] %v12151_v59  ;;  %5472 = vst [vmem:[#allocation2 + $0x724] sm:$0xff] %v12152_v21  ;;  %v3216_v40 = vmul.f32 %v2628_v52, %v2172_v26  ;;  %v2123_v35 = vld [vmem:[%s18846_s3 + $0xf38] sm:$0xff]  ;;  %v2124_v47 = vld [vmem:[%s18846_s3 + $0xf40] sm:$0xff]  ;;  %v2648_v14 = vpop.permute.xlu0 %2647 }
 0x235   : > { %v3217_v18 = vmul.f32 %v2628_v52, %v2173_v60  ;;  %v3218_v41 = vmul.f32 %v2628_v52, %v2174_v55  ;;  %5473 = vst [vmem:[#allocation2 + $0x72c] sm:$0xff] %v12153_v5  ;;  %v12195_v7 = vpack.c.bf16 %v3213_v12, %v3212_v63  ;;  %v3149_v25 = vmul.f32 %v16638_v23, %v2105_v15  ;;  %v2125_v17 = vld [vmem:[%s18846_s3 + $0xf48] sm:$0xff]  ;;  %v2196_v60 = vld [vmem:[%s18846_s3 + $0x1180] sm:$0xff]  ;;  %v16883_v55 = vpop.permute.xlu1 %2622  ;;  %v2199_v5 = vld [vmem:[%s18846_s3 + $0x1198] sm:$0xff] }
 0x236   : > { %v12196_v20 = vpack.c.bf16 %v3215_v1, %v3214_v34  ;;  %v3150_v29 = vmul.f32 %v16638_v23, %v2106_v9  ;;  %5474 = vst.msk [vmem:[#allocation2 + $0x734] sm:$0xf] %vm5213_vm1, %v12154_v62  ;;  %v3151_v44 = vmul.f32 %v16638_v23, %v2107_v53  ;;  %v3152_v13 = vmul.f32 %v16638_v23, %v2108_v61  ;;  %v2197_v15 = vld [vmem:[%s18846_s3 + $0x1188] sm:$0xff]  ;;  %v2198_v9 = vld [vmem:[%s18846_s3 + $0x1190] sm:$0xff]  ;;  %v2200_v61 = vld [vmem:[%s18846_s3 + $0x11a0] sm:$0xff] }
 0x237   : > { %v12197_v57 = vpack.c.bf16 %v3217_v18, %v3216_v40  ;;  %v12198_v51 = vpack.c.bf16 %v3218_v41, %v3218_v41  ;;  %5515 = vst [vmem:[#allocation2 + $0x850] sm:$0xff] %v12195_v7  ;;  %v3153_v52 = vmul.f32 %v16638_v23, %v2109_v0  ;;  %v3154_v48 = vmul.f32 %v16638_v23, %v2110_v32  ;;  %v2202_v62 = vld [vmem:[%s18846_s3 + $0x11b0] sm:$0xff]  ;;  %v2133_v32 = vld [vmem:[%s18846_s3 + $0xf88] sm:$0xff] }
 0x238   : > { %5516 = vst [vmem:[#allocation2 + $0x858] sm:$0xff] %v12196_v20  ;;  %v3155_v42 = vmul.f32 %v16638_v23, %v2111_v45  ;;  %v12159_v39 = vpack.c.bf16 %v3150_v29, %v3149_v25  ;;  %v12160_v46 = vpack.c.bf16 %v3152_v13, %v3151_v44  ;;  %v3226_v19 = vmul.f32 %v2638_v22, %v2182_v43  ;;  %v2134_v45 = vld [vmem:[%s18846_s3 + $0xf90] sm:$0xff]  ;;  %v2136_v43 = vld [vmem:[%s18846_s3 + $0xfa0] sm:$0xff]  ;;  %v2137_v44 = vld [vmem:[%s18846_s3 + $0xfa8] sm:$0xff] }
 0x239   : > { %5517 = vst [vmem:[#allocation2 + $0x860] sm:$0xff] %v12197_v57  ;;  %5518 = vst.msk [vmem:[#allocation2 + $0x868] sm:$0xf] %vm5213_vm1, %v12198_v51  ;;  %v3227_v54 = vmul.f32 %v2638_v22, %v2183_v30  ;;  %v3228_v23 = vmul.f32 %v2638_v22, %v2184_v33  ;;  %v12161_v28 = vpack.c.bf16 %v3154_v48, %v3153_v52  ;;  %v2138_v13 = vld [vmem:[%s18846_s3 + $0xfb0] sm:$0xff] }
 0x23a   : > { %v12162_v58 = vpack.c.bf16 %v3155_v42, %v3155_v42  ;;  %5479 = vst [vmem:[#allocation2 + $0x754] sm:$0xff] %v12159_v39  ;;  %v3229_v11 = vmul.f32 %v2638_v22, %v2185_v49  ;;  %v3230_v24 = vmul.f32 %v2638_v22, %v2186_v50  ;;  %5480 = vst [vmem:[#allocation2 + $0x75c] sm:$0xff] %v12160_v46  ;;  %v2139_v49 = vld [vmem:[%s18846_s3 + $0xfb8] sm:$0xff]  ;;  %v2658_v50 = vpop.permute.xlu0 %2657  ;;  %v16943_v46 = vpop.permute.xlu1 %2632 }
 0x23b   : > { %v3231_v16 = vmul.f32 %v2638_v22, %v2187_v6  ;;  %v3232_v27 = vmul.f32 %v2638_v22, %v2188_v2  ;;  %v12203_v8 = vpack.c.bf16 %v3227_v54, %v3226_v19  ;;  %v3163_v26 = vmul.f32 %v16701_v36, %v2119_v38  ;;  %5481 = vst [vmem:[#allocation2 + $0x764] sm:$0xff] %v12161_v28  ;;  %v2201_v22 = vld [vmem:[%s18846_s3 + $0x11a8] sm:$0xff]  ;;  %v2210_v6 = vld [vmem:[%s18846_s3 + $0x11f0] sm:$0xff]  ;;  %v2211_v2 = vld [vmem:[%s18846_s3 + $0x11f8] sm:$0xff] }
 0x23c   : > { %5482 = vst.msk [vmem:[#allocation2 + $0x76c] sm:$0xf] %vm5213_vm1, %v12162_v58  ;;  %v12204_v10 = vpack.c.bf16 %v3229_v11, %v3228_v23  ;;  %v3164_v59 = vmul.f32 %v16701_v36, %v2120_v31  ;;  %v3165_v21 = vmul.f32 %v16701_v36, %v2121_v3  ;;  %v3166_v63 = vmul.f32 %v16701_v36, %v2122_v56  ;;  %v2212_v38 = vld [vmem:[%s18846_s3 + $0x1200] sm:$0xff]  ;;  %v2213_v3 = vld [vmem:[%s18846_s3 + $0x1208] sm:$0xff]  ;;  %v2214_v56 = vld [vmem:[%s18846_s3 + $0x1210] sm:$0xff] }
 0x23d   : > { %v12205_v12 = vpack.c.bf16 %v3231_v16, %v3230_v24  ;;  %v12206_v34 = vpack.c.bf16 %v3232_v27, %v3232_v27  ;;  %5523 = vst [vmem:[#allocation2 + $0x888] sm:$0xff] %v12203_v8  ;;  %v3167_v1 = vmul.f32 %v16701_v36, %v2123_v35  ;;  %v3168_v53 = vmul.f32 %v16701_v36, %v2124_v47  ;;  %v2215_v35 = vld [vmem:[%s18846_s3 + $0x1218] sm:$0xff]  ;;  %v2216_v47 = vld [vmem:[%s18846_s3 + $0x1220] sm:$0xff] }
 0x23e   : > { %5524 = vst [vmem:[#allocation2 + $0x890] sm:$0xff] %v12204_v10  ;;  %v3169_v40 = vmul.f32 %v16701_v36, %v2125_v17  ;;  %v12167_v18 = vpack.c.bf16 %v3164_v59, %v3163_v26  ;;  %v12168_v41 = vpack.c.bf16 %v3166_v63, %v3165_v21  ;;  %v3240_v0 = vmul.f32 %v2648_v14, %v2196_v60  ;;  %v2135_v36 = vld [vmem:[%s18846_s3 + $0xf98] sm:$0xff]  ;;  %v2148_v17 = vld [vmem:[%s18846_s3 + $0x1000] sm:$0xff]  ;;  %v2149_v26 = vld [vmem:[%s18846_s3 + $0x1008] sm:$0xff] }
 0x23f   : > { %5525 = vst [vmem:[#allocation2 + $0x898] sm:$0xff] %v12205_v12  ;;  %5526 = vst.msk [vmem:[#allocation2 + $0x8a0] sm:$0xf] %vm5213_vm1, %v12206_v34  ;;  %v12169_v7 = vpack.c.bf16 %v3168_v53, %v3167_v1  ;;  %v3241_v20 = vmul.f32 %v2648_v14, %v2197_v15  ;;  %v3242_v25 = vmul.f32 %v2648_v14, %v2198_v9  ;;  %v2150_v60 = vld [vmem:[%s18846_s3 + $0x1010] sm:$0xff]  ;;  %v2151_v15 = vld [vmem:[%s18846_s3 + $0x1018] sm:$0xff] }
 0x240   : > { %v3243_v29 = vmul.f32 %v2648_v14, %v2199_v5  ;;  %v12170_v30 = vpack.c.bf16 %v3169_v40, %v3169_v40  ;;  %5487 = vst [vmem:[#allocation2 + $0x78c] sm:$0xff] %v12167_v18  ;;  %5488 = vst [vmem:[#allocation2 + $0x794] sm:$0xff] %v12168_v41  ;;  %v3244_v33 = vmul.f32 %v2648_v14, %v2200_v61  ;;  %v2152_v9 = vld [vmem:[%s18846_s3 + $0x1020] sm:$0xff]  ;;  %v2153_v1 = vld [vmem:[%s18846_s3 + $0x1028] sm:$0xff] }
 0x241   : > { %v3245_v57 = vmul.f32 %v2648_v14, %v2201_v22  ;;  %v3246_v51 = vmul.f32 %v2648_v14, %v2202_v62  ;;  %5489 = vst [vmem:[#allocation2 + $0x79c] sm:$0xff] %v12169_v7  ;;  %v12211_v52 = vpack.c.bf16 %v3241_v20, %v3240_v0  ;;  %v3177_v42 = vmul.f32 %v16768_v4, %v2133_v32  ;;  %v2147_v14 = vld [vmem:[%s18846_s3 + $0xff8] sm:$0xff]  ;;  %v2224_v61 = vld [vmem:[%s18846_s3 + $0x1260] sm:$0xff]  ;;  %v2668_v22 = vpop.permute.xlu0 %2667  ;;  %v2225_v0 = vld [vmem:[%s18846_s3 + $0x1268] sm:$0xff]  ;;  %v17002_v7 = vpop.permute.xlu1 %2642 }
 0x242   : > { %v12212_v48 = vpack.c.bf16 %v3243_v29, %v3242_v25  ;;  %v3178_v39 = vmul.f32 %v16768_v4, %v2134_v45  ;;  %5490 = vst.msk [vmem:[#allocation2 + $0x7a4] sm:$0xf] %vm5213_vm1, %v12170_v30  ;;  %v3179_v23 = vmul.f32 %v16768_v4, %v2135_v36  ;;  %v3180_v31 = vmul.f32 %v16768_v4, %v2136_v43  ;;  %v2226_v32 = vld [vmem:[%s18846_s3 + $0x1270] sm:$0xff]  ;;  %v2227_v45 = vld [vmem:[%s18846_s3 + $0x1278] sm:$0xff]  ;;  %v2228_v43 = vld [vmem:[%s18846_s3 + $0x1280] sm:$0xff] }
 0x243   : > { %v12213_v19 = vpack.c.bf16 %v3245_v57, %v3244_v33  ;;  %v12214_v54 = vpack.c.bf16 %v3246_v51, %v3246_v51  ;;  %5531 = vst [vmem:[#allocation2 + $0x8c0] sm:$0xff] %v12211_v52  ;;  %v3181_v28 = vmul.f32 %v16768_v4, %v2137_v44  ;;  %v3182_v58 = vmul.f32 %v16768_v4, %v2138_v13  ;;  %v2229_v30 = vld [vmem:[%s18846_s3 + $0x1288] sm:$0xff]  ;;  %v2230_v33 = vld [vmem:[%s18846_s3 + $0x1290] sm:$0xff] }
 0x244   : > { %5532 = vst [vmem:[#allocation2 + $0x8c8] sm:$0xff] %v12212_v48  ;;  %v3183_v11 = vmul.f32 %v16768_v4, %v2139_v49  ;;  %v12175_v24 = vpack.c.bf16 %v3178_v39, %v3177_v42  ;;  %v12176_v16 = vpack.c.bf16 %v3180_v31, %v3179_v23  ;;  %v3254_v27 = vmul.f32 %v2658_v50, %v2210_v6  ;;  %v2161_v49 = vld [vmem:[%s18846_s3 + $0x1068] sm:$0xff]  ;;  %v2164_v6 = vld [vmem:[%s18846_s3 + $0x1080] sm:$0xff]  ;;  %v2166_v31 = vld [vmem:[%s18846_s3 + $0x1090] sm:$0xff] }
 0x245   : > { %5533 = vst [vmem:[#allocation2 + $0x8d0] sm:$0xff] %v12213_v19  ;;  %5534 = vst.msk [vmem:[#allocation2 + $0x8d8] sm:$0xf] %vm5213_vm1, %v12214_v54  ;;  %v3255_v8 = vmul.f32 %v2658_v50, %v2211_v2  ;;  %v3256_v4 = vmul.f32 %v2658_v50, %v2212_v38  ;;  %v12177_v10 = vpack.c.bf16 %v3182_v58, %v3181_v28  ;;  %v2165_v23 = vld [vmem:[%s18846_s3 + $0x1088] sm:$0xff] }
 0x246   : > { %v12178_v59 = vpack.c.bf16 %v3183_v11, %v3183_v11  ;;  %5495 = vst [vmem:[#allocation2 + $0x7c4] sm:$0xff] %v12175_v24  ;;  %v3257_v21 = vmul.f32 %v2658_v50, %v2213_v3  ;;  %v3258_v63 = vmul.f32 %v2658_v50, %v2214_v56  ;;  %5496 = vst [vmem:[#allocation2 + $0x7cc] sm:$0xff] %v12176_v16  ;;  %v2167_v3 = vld [vmem:[%s18846_s3 + $0x1098] sm:$0xff]  ;;  %v2238_v24 = vld [vmem:[%s18846_s3 + $0x12d0] sm:$0xff] }
 0x247   : > { %v3259_v5 = vmul.f32 %v2658_v50, %v2215_v35  ;;  %v3260_v12 = vmul.f32 %v2658_v50, %v2216_v47  ;;  %v12219_v34 = vpack.c.bf16 %v3255_v8, %v3254_v27  ;;  %v3191_v53 = vmul.f32 %v16826_v37, %v2147_v14  ;;  %5497 = vst [vmem:[#allocation2 + $0x7d4] sm:$0xff] %v12177_v10  ;;  %v2162_v50 = vld [vmem:[%s18846_s3 + $0x1070] sm:$0xff]  ;;  %v2239_v35 = vld [vmem:[%s18846_s3 + $0x12d8] sm:$0xff]  ;;  %v2240_v47 = vld [vmem:[%s18846_s3 + $0x12e0] sm:$0xff]  ;;  %v2678_v14 = vpop.permute.xlu0 %2677 }
 0x248   : > { %5498 = vst.msk [vmem:[#allocation2 + $0x7dc] sm:$0xf] %vm5213_vm1, %v12178_v59  ;;  %v12220_v62 = vpack.c.bf16 %v3257_v21, %v3256_v4  ;;  %v3192_v40 = vmul.f32 %v16826_v37, %v2148_v17  ;;  %v3193_v18 = vmul.f32 %v16826_v37, %v2149_v26  ;;  %v3194_v41 = vmul.f32 %v16826_v37, %v2150_v60  ;;  %v2241_v17 = vld [vmem:[%s18846_s3 + $0x12e8] sm:$0xff]  ;;  %v2242_v26 = vld [vmem:[%s18846_s3 + $0x12f0] sm:$0xff]  ;;  %v17058_v60 = vpop.permute.xlu1 %2652 }
 0x249   : > { %v12221_v20 = vpack.c.bf16 %v3259_v5, %v3258_v63  ;;  %v12222_v25 = vpack.c.bf16 %v3260_v12, %v3260_v12  ;;  %5539 = vst [vmem:[#allocation2 + $0x8f8] sm:$0xff] %v12219_v34  ;;  %v3195_v29 = vmul.f32 %v16826_v37, %v2151_v15  ;;  %v3196_v36 = vmul.f32 %v16826_v37, %v2152_v9  ;;  %v2243_v15 = vld [vmem:[%s18846_s3 + $0x12f8] sm:$0xff]  ;;  %v2244_v9 = vld [vmem:[%s18846_s3 + $0x1300] sm:$0xff] }
 0x24a   : > { %5540 = vst [vmem:[#allocation2 + $0x900] sm:$0xff] %v12220_v62  ;;  %v3197_v57 = vmul.f32 %v16826_v37, %v2153_v1  ;;  %v12183_v51 = vpack.c.bf16 %v3192_v40, %v3191_v53  ;;  %v12184_v44 = vpack.c.bf16 %v3194_v41, %v3193_v18  ;;  %v3268_v13 = vmul.f32 %v2668_v22, %v2224_v61  ;;  %v2163_v37 = vld [vmem:[%s18846_s3 + $0x1078] sm:$0xff]  ;;  %v2176_v53 = vld [vmem:[%s18846_s3 + $0x10e0] sm:$0xff]  ;;  %v2177_v61 = vld [vmem:[%s18846_s3 + $0x10e8] sm:$0xff] }
 0x24b   : > { %5541 = vst [vmem:[#allocation2 + $0x908] sm:$0xff] %v12221_v20  ;;  %5542 = vst.msk [vmem:[#allocation2 + $0x910] sm:$0xf] %vm5213_vm1, %v12222_v25  ;;  %v12185_v52 = vpack.c.bf16 %v3196_v36, %v3195_v29  ;;  %v3269_v48 = vmul.f32 %v2668_v22, %v2225_v0  ;;  %v3270_v42 = vmul.f32 %v2668_v22, %v2226_v32  ;;  %v2175_v5 = vld [vmem:[%s18846_s3 + $0x10d8] sm:$0xff]  ;;  %v2180_v32 = vld [vmem:[%s18846_s3 + $0x1100] sm:$0xff] }
 0x24c   : > { %v3271_v39 = vmul.f32 %v2668_v22, %v2227_v45  ;;  %v12186_v2 = vpack.c.bf16 %v3197_v57, %v3197_v57  ;;  %5503 = vst [vmem:[#allocation2 + $0x7fc] sm:$0xff] %v12183_v51  ;;  %5504 = vst [vmem:[#allocation2 + $0x804] sm:$0xff] %v12184_v44  ;;  %v3272_v38 = vmul.f32 %v2668_v22, %v2228_v43  ;;  %v2179_v0 = vld [vmem:[%s18846_s3 + $0x10f8] sm:$0xff]  ;;  %v2181_v29 = vld [vmem:[%s18846_s3 + $0x1108] sm:$0xff] }
 0x24d   : > { %v3273_v19 = vmul.f32 %v2668_v22, %v2229_v30  ;;  %v3274_v54 = vmul.f32 %v2668_v22, %v2230_v33  ;;  %5505 = vst [vmem:[#allocation2 + $0x80c] sm:$0xff] %v12185_v52  ;;  %v12227_v56 = vpack.c.bf16 %v3269_v48, %v3268_v13  ;;  %v3205_v58 = vmul.f32 %v16883_v55, %v2161_v49  ;;  %v2178_v22 = vld [vmem:[%s18846_s3 + $0x10f0] sm:$0xff]  ;;  %v2189_v43 = vld [vmem:[%s18846_s3 + $0x1148] sm:$0xff]  ;;  %v2191_v13 = vld [vmem:[%s18846_s3 + $0x1158] sm:$0xff] }
 0x24e   : > { %v12228_v28 = vpack.c.bf16 %v3271_v39, %v3270_v42  ;;  %v3206_v11 = vmul.f32 %v16883_v55, %v2162_v50  ;;  %5506 = vst.msk [vmem:[#allocation2 + $0x814] sm:$0xf] %vm5213_vm1, %v12186_v2  ;;  %v3207_v8 = vmul.f32 %v16883_v55, %v2163_v37  ;;  %v3208_v4 = vmul.f32 %v16883_v55, %v2164_v6  ;;  %v2190_v44 = vld [vmem:[%s18846_s3 + $0x1150] sm:$0xff]  ;;  %v2192_v49 = vld [vmem:[%s18846_s3 + $0x1160] sm:$0xff]  ;;  %v2193_v39 = vld [vmem:[%s18846_s3 + $0x1168] sm:$0xff]  ;;  %v17119_v2 = vpop.permute.xlu1 %2662 }
 0x24f   : > { %v12229_v16 = vpack.c.bf16 %v3273_v19, %v3272_v38  ;;  %v12230_v27 = vpack.c.bf16 %v3274_v54, %v3274_v54  ;;  %5547 = vst [vmem:[#allocation2 + $0x930] sm:$0xff] %v12227_v56  ;;  %v3209_v10 = vmul.f32 %v16883_v55, %v2165_v23  ;;  %v3210_v59 = vmul.f32 %v16883_v55, %v2166_v31  ;;  %v2194_v37 = vld [vmem:[%s18846_s3 + $0x1170] sm:$0xff]  ;;  %v2195_v6 = vld [vmem:[%s18846_s3 + $0x1178] sm:$0xff] }
 0x250   : > { %5548 = vst [vmem:[#allocation2 + $0x938] sm:$0xff] %v12228_v28  ;;  %v3211_v21 = vmul.f32 %v16883_v55, %v2167_v3  ;;  %v12191_v63 = vpack.c.bf16 %v3206_v11, %v3205_v58  ;;  %v12192_v12 = vpack.c.bf16 %v3208_v4, %v3207_v8  ;;  %v3282_v34 = vmul.f32 %v2678_v14, %v2238_v24  ;;  %v2203_v31 = vld [vmem:[%s18846_s3 + $0x11b8] sm:$0xff]  ;;  %v2204_v3 = vld [vmem:[%s18846_s3 + $0x11c0] sm:$0xff]  ;;  %v2205_v11 = vld [vmem:[%s18846_s3 + $0x11c8] sm:$0xff] }
 0x251   : > { %5549 = vst [vmem:[#allocation2 + $0x940] sm:$0xff] %v12229_v16  ;;  %5550 = vst.msk [vmem:[#allocation2 + $0x948] sm:$0xf] %vm5213_vm1, %v12230_v27  ;;  %v3283_v1 = vmul.f32 %v2678_v14, %v2239_v35  ;;  %v3284_v55 = vmul.f32 %v2678_v14, %v2240_v47  ;;  %v12193_v62 = vpack.c.bf16 %v3210_v59, %v3209_v10  ;;  %v2206_v24 = vld [vmem:[%s18846_s3 + $0x11d0] sm:$0xff]  ;;  %v2207_v27 = vld [vmem:[%s18846_s3 + $0x11d8] sm:$0xff] }
 0x252   : > { %v12194_v40 = vpack.c.bf16 %v3211_v21, %v3211_v21  ;;  %5511 = vst [vmem:[#allocation2 + $0x834] sm:$0xff] %v12191_v63  ;;  %v3285_v18 = vmul.f32 %v2678_v14, %v2241_v17  ;;  %v3286_v41 = vmul.f32 %v2678_v14, %v2242_v26  ;;  %5512 = vst [vmem:[#allocation2 + $0x83c] sm:$0xff] %v12192_v12  ;;  %v2208_v8 = vld [vmem:[%s18846_s3 + $0x11e0] sm:$0xff]  ;;  %v2209_v4 = vld [vmem:[%s18846_s3 + $0x11e8] sm:$0xff] }
 0x253   : > { %v3287_v45 = vmul.f32 %v2678_v14, %v2243_v15  ;;  %v3288_v20 = vmul.f32 %v2678_v14, %v2244_v9  ;;  %v12235_v25 = vpack.c.bf16 %v3283_v1, %v3282_v34  ;;  %v3219_v36 = vmul.f32 %v16943_v46, %v2175_v5  ;;  %5513 = vst [vmem:[#allocation2 + $0x844] sm:$0xff] %v12193_v62  ;;  %v2218_v21 = vld [vmem:[%s18846_s3 + $0x1230] sm:$0xff]  ;;  %v2219_v63 = vld [vmem:[%s18846_s3 + $0x1238] sm:$0xff]  ;;  %v2220_v34 = vld [vmem:[%s18846_s3 + $0x1240] sm:$0xff] }
 0x254   : > { %5514 = vst.msk [vmem:[#allocation2 + $0x84c] sm:$0xf] %vm5213_vm1, %v12194_v40  ;;  %v12236_v30 = vpack.c.bf16 %v3285_v18, %v3284_v55  ;;  %v3220_v33 = vmul.f32 %v16943_v46, %v2176_v53  ;;  %v3221_v57 = vmul.f32 %v16943_v46, %v2177_v61  ;;  %v3222_v51 = vmul.f32 %v16943_v46, %v2178_v22  ;;  %v2221_v1 = vld [vmem:[%s18846_s3 + $0x1248] sm:$0xff]  ;;  %v2222_v62 = vld [vmem:[%s18846_s3 + $0x1250] sm:$0xff]  ;;  %v2223_v40 = vld [vmem:[%s18846_s3 + $0x1258] sm:$0xff] }
 0x255   : > { %v12237_v50 = vpack.c.bf16 %v3287_v45, %v3286_v41  ;;  %v12238_v52 = vpack.c.bf16 %v3288_v20, %v3288_v20  ;;  %5555 = vst [vmem:[#allocation2 + $0x968] sm:$0xff] %v12235_v25  ;;  %v3223_v48 = vmul.f32 %v16943_v46, %v2179_v0  ;;  %v3224_v42 = vmul.f32 %v16943_v46, %v2180_v32  ;;  %v2231_v18 = vld [vmem:[%s18846_s3 + $0x1298] sm:$0xff]  ;;  %v2673_v41 = vpop.permute.xlu1 %2672  ;;  %v2232_v20 = vld [vmem:[%s18846_s3 + $0x12a0] sm:$0xff]  ;;  %v2233_v25 = vld [vmem:[%s18846_s3 + $0x12a8] sm:$0xff] }
 0x256   : > { %5556 = vst [vmem:[#allocation2 + $0x970] sm:$0xff] %v12236_v30  ;;  %v3225_v38 = vmul.f32 %v16943_v46, %v2181_v29  ;;  %v12199_v19 = vpack.c.bf16 %v3220_v33, %v3219_v36  ;;  %v12200_v54 = vpack.c.bf16 %v3222_v51, %v3221_v57  ;;  %v3233_v23 = vmul.f32 %v17002_v7, %v2189_v43  ;;  %v2234_v29 = vld [vmem:[%s18846_s3 + $0x12b0] sm:$0xff]  ;;  %v2235_v57 = vld [vmem:[%s18846_s3 + $0x12b8] sm:$0xff]  ;;  %v2236_v51 = vld [vmem:[%s18846_s3 + $0x12c0] sm:$0xff] }
 0x257   : > { %5557 = vst [vmem:[#allocation2 + $0x978] sm:$0xff] %v12237_v50  ;;  %5558 = vst.msk [vmem:[#allocation2 + $0x980] sm:$0xf] %vm5213_vm1, %v12238_v52  ;;  %v12201_v56 = vpack.c.bf16 %v3224_v42, %v3223_v48  ;;  %v3234_v28 = vmul.f32 %v17002_v7, %v2190_v44  ;;  %v3235_v46 = vmul.f32 %v17002_v7, %v2191_v13  ;;  %v2237_v50 = vld [vmem:[%s18846_s3 + $0x12c8] sm:$0xff] }
 0x258   : > { %v3236_v58 = vmul.f32 %v17002_v7, %v2192_v49  ;;  %v12202_v35 = vpack.c.bf16 %v3225_v38, %v3225_v38  ;;  %5519 = vst [vmem:[#allocation2 + $0x86c] sm:$0xff] %v12199_v19  ;;  %5520 = vst [vmem:[#allocation2 + $0x874] sm:$0xff] %v12200_v54  ;;  %v3237_v47 = vmul.f32 %v17002_v7, %v2193_v39 }
 0x259   : > { %v3238_v14 = vmul.f32 %v17002_v7, %v2194_v37  ;;  %v3239_v16 = vmul.f32 %v17002_v7, %v2195_v6  ;;  %5521 = vst [vmem:[#allocation2 + $0x87c] sm:$0xff] %v12201_v56  ;;  %v12207_v17 = vpack.c.bf16 %v3234_v28, %v3233_v23  ;;  %v3247_v10 = vmul.f32 %v17058_v60, %v2203_v31  ;;  %v2217_v7 = vld [vmem:[%s18846_s3 + $0x1228] sm:$0xff] }
 0x25a   : > { %v12208_v26 = vpack.c.bf16 %v3236_v58, %v3235_v46  ;;  %v3248_v59 = vmul.f32 %v17058_v60, %v2204_v3  ;;  %5522 = vst.msk [vmem:[#allocation2 + $0x884] sm:$0xf] %vm5213_vm1, %v12202_v35  ;;  %v3249_v5 = vmul.f32 %v17058_v60, %v2205_v11  ;;  %v3250_v12 = vmul.f32 %v17058_v60, %v2206_v24 }
 0x25b   : > { %v12209_v15 = vpack.c.bf16 %v3238_v14, %v3237_v47  ;;  %v12210_v9 = vpack.c.bf16 %v3239_v16, %v3239_v16  ;;  %5527 = vst [vmem:[#allocation2 + $0x8a4] sm:$0xff] %v12207_v17  ;;  %v3251_v55 = vmul.f32 %v17058_v60, %v2207_v27  ;;  %v3252_v53 = vmul.f32 %v17058_v60, %v2208_v8 }
 0x25c   : > { %5528 = vst [vmem:[#allocation2 + $0x8ac] sm:$0xff] %v12208_v26  ;;  %v3253_v61 = vmul.f32 %v17058_v60, %v2209_v4  ;;  %v12215_v22 = vpack.c.bf16 %v3248_v59, %v3247_v10  ;;  %v12216_v0 = vpack.c.bf16 %v3250_v12, %v3249_v5  ;;  %v3261_v60 = vmul.f32 %v17119_v2, %v2217_v7 }
 0x25d   : > { %5529 = vst [vmem:[#allocation2 + $0x8b4] sm:$0xff] %v12209_v15  ;;  %5530 = vst.msk [vmem:[#allocation2 + $0x8bc] sm:$0xf] %vm5213_vm1, %v12210_v9  ;;  %v3262_v32 = vmul.f32 %v17119_v2, %v2218_v21  ;;  %v3263_v45 = vmul.f32 %v17119_v2, %v2219_v63  ;;  %v12217_v36 = vpack.c.bf16 %v3252_v53, %v3251_v55 }
 0x25e   : > { %v12218_v43 = vpack.c.bf16 %v3253_v61, %v3253_v61  ;;  %5535 = vst [vmem:[#allocation2 + $0x8dc] sm:$0xff] %v12215_v22  ;;  %v3264_v30 = vmul.f32 %v17119_v2, %v2220_v34  ;;  %v3265_v33 = vmul.f32 %v17119_v2, %v2221_v1  ;;  %5536 = vst [vmem:[#allocation2 + $0x8e4] sm:$0xff] %v12216_v0 }
 0x25f   : > { %v3266_v44 = vmul.f32 %v17119_v2, %v2222_v62  ;;  %v3267_v13 = vmul.f32 %v17119_v2, %v2223_v40  ;;  %v12223_v49 = vpack.c.bf16 %v3262_v32, %v3261_v60  ;;  %v3275_v52 = vmul.f32 %v2673_v41, %v2231_v18  ;;  %5537 = vst [vmem:[#allocation2 + $0x8ec] sm:$0xff] %v12217_v36 }
 0x260   : > { %5538 = vst.msk [vmem:[#allocation2 + $0x8f4] sm:$0xf] %vm5213_vm1, %v12218_v43  ;;  %v12224_v48 = vpack.c.bf16 %v3264_v30, %v3263_v45  ;;  %v3276_v42 = vmul.f32 %v2673_v41, %v2232_v20  ;;  %v3277_v39 = vmul.f32 %v2673_v41, %v2233_v25  ;;  %v3278_v37 = vmul.f32 %v2673_v41, %v2234_v29 }
 0x261   : > { %v12225_v6 = vpack.c.bf16 %v3266_v44, %v3265_v33  ;;  %v12226_v38 = vpack.c.bf16 %v3267_v13, %v3267_v13  ;;  %5543 = vst [vmem:[#allocation2 + $0x914] sm:$0xff] %v12223_v49  ;;  %v3279_v19 = vmul.f32 %v2673_v41, %v2235_v57  ;;  %v3280_v54 = vmul.f32 %v2673_v41, %v2236_v51 }
 0x262   : > { %5544 = vst [vmem:[#allocation2 + $0x91c] sm:$0xff] %v12224_v48  ;;  %v3281_v2 = vmul.f32 %v2673_v41, %v2237_v50  ;;  %v12231_v23 = vpack.c.bf16 %v3276_v42, %v3275_v52  ;;  %v12232_v31 = vpack.c.bf16 %v3278_v37, %v3277_v39 }
 0x263   : > { %5545 = vst [vmem:[#allocation2 + $0x924] sm:$0xff] %v12225_v6  ;;  %5546 = vst.msk [vmem:[#allocation2 + $0x92c] sm:$0xf] %vm5213_vm1, %v12226_v38  ;;  %v12233_v3 = vpack.c.bf16 %v3280_v54, %v3279_v19 }
 0x264   : > { %v12234_v56 = vpack.c.bf16 %v3281_v2, %v3281_v2  ;;  %5551 = vst [vmem:[#allocation2 + $0x94c] sm:$0xff] %v12231_v23  ;;  %5552 = vst [vmem:[#allocation2 + $0x954] sm:$0xff] %v12232_v31 }
 0x265   : > { %5553 = vst [vmem:[#allocation2 + $0x95c] sm:$0xff] %v12233_v3 }
 0x266   : > { %5554 = vst.msk [vmem:[#allocation2 + $0x964] sm:$0xf] %vm5213_vm1, %v12234_v56 }
 0x267 PF: > { %v12929_v28 = vld [vmem:[#allocation2 + $0x18c] ss:$28 sps:$4 sm:$0xff]   ;;  %v12935_v24 = vld [vmem:[#allocation2 + $0x154] ss:$28 sps:$4 sm:$0xff]   ;;  %v12941_v16 = vld [vmem:[#allocation2 + $0x11c] ss:$28 sps:$4 sm:$0xff]  }
 0x268   : > { %v12931_v46 = vld [vmem:[#allocation2 + $0x50c] ss:$28 sps:$4 sm:$0xff]   ;;  %8054 = vmatprep.subr.bf16.mxu0 %v12929_v28  ;;  %v12937_v35 = vld [vmem:[#allocation2 + $0x4d4] ss:$28 sps:$4 sm:$0xff]   ;;  %v12943_v27 = vld [vmem:[#allocation2 + $0x49c] ss:$28 sps:$4 sm:$0xff]  }
 0x269   : > { %v12933_v58 = vld [vmem:[#allocation2 + $0x188] ss:$28 sps:$4 sm:$0xff]   ;;  %8235 = vmatprep.subr.bf16.mxu1 %v12931_v46  ;;  %v12939_v47 = vld [vmem:[#allocation2 + $0x150] ss:$28 sps:$4 sm:$0xff]   ;;  %v12945_v8 = vld [vmem:[#allocation2 + $0x118] ss:$28 sps:$4 sm:$0xff]  }
 0x26a   : > { %v12934_v11 = vld [vmem:[#allocation2 + $0x508] ss:$28 sps:$4 sm:$0xff]   ;;  %8055 = vmatpush1.bf16.msra.mxu0 %v12933_v58  ;;  %v12940_v14 = vld [vmem:[#allocation2 + $0x4d0] ss:$28 sps:$4 sm:$0xff]   ;;  %v12946_v4 = vld [vmem:[#allocation2 + $0x498] ss:$28 sps:$4 sm:$0xff]  }
 0x26b   : > { %8236 = vmatpush1.bf16.msra.mxu1 %v12934_v11  ;;  %8056 = vmatprep.subr.bf16.mxu0 %v12935_v24  ;;  %v12947_v17 = vld [vmem:[#allocation2 + $0xe4] ss:$28 sps:$4 sm:$0xff]   ;;  %v12953_v7 = vld [vmem:[#allocation2 + $0xac] ss:$28 sps:$4 sm:$0xff]   ;;  %v12959_v9 = vld [vmem:[#allocation2 + $0x74] ss:$28 sps:$4 sm:$0xff]  }
 0x26c   : > { %8237 = vmatprep.subr.bf16.mxu1 %v12937_v35  ;;  %v12949_v26 = vld [vmem:[#allocation2 + $0x464] ss:$28 sps:$4 sm:$0xff]   ;;  %v12955_v21 = vld [vmem:[#allocation2 + $0x42c] ss:$28 sps:$4 sm:$0xff]   ;;  %v12961_v5 = vld [vmem:[#allocation2 + $0x3f4] ss:$28 sps:$4 sm:$0xff]  }
 0x26d   : > { %v12951_v10 = vld [vmem:[#allocation2 + $0xe0] ss:$28 sps:$4 sm:$0xff]   ;;  %v12957_v63 = vld [vmem:[#allocation2 + $0xa8] ss:$28 sps:$4 sm:$0xff]   ;;  %v12963_v12 = vld [vmem:[#allocation2 + $0x70] ss:$28 sps:$4 sm:$0xff]  }
 0x26e   : > { %8057 = vmatpush1.bf16.msra.mxu0 %v12939_v47  ;;  %v12952_v59 = vld [vmem:[#allocation2 + $0x460] ss:$28 sps:$4 sm:$0xff]   ;;  %v12958_v15 = vld [vmem:[#allocation2 + $0x428] ss:$28 sps:$4 sm:$0xff]   ;;  %v12964_v34 = vld [vmem:[#allocation2 + $0x3f0] ss:$28 sps:$4 sm:$0xff]  }
 0x26f   : > { %8238 = vmatpush1.bf16.msra.mxu1 %v12940_v14  ;;  %8058 = vmatprep.subr.bf16.mxu0 %v12941_v16  ;;  %v12965_v1 = vld [vmem:[#allocation2 + $0x3c] ss:$28 sps:$4 sm:$0xff]   ;;  %v12971_v22 = vld [vmem:[#allocation2 + $0x4] ss:$28 sps:$4 sm:$0xff]   ;;  %v12977_v41 = vld [vmem:[#allocation2 + $0x34c] ss:$28 sps:$4 sm:$0xff]  }
 0x270   : > { %8239 = vmatprep.subr.bf16.mxu1 %v12943_v27  ;;  %v12967_v55 = vld [vmem:[#allocation2 + $0x3bc] ss:$28 sps:$4 sm:$0xff]   ;;  %v12973_v62 = vld [vmem:[#allocation2 + $0x384] ss:$28 sps:$4 sm:$0xff]   ;;  %v12979_v0 = vld [vmem:[#allocation2 + $0x6cc] ss:$28 sps:$4 sm:$0xff]  }
 0x271   : > { %v12969_v53 = vld [vmem:[#allocation2 + $0x38] ss:$28 sps:$4 sm:$0xff]   ;;  %v12975_v40 = vld [vmem:[#allocation2] ss:$28 sps:$4 sm:$0xff]   ;;  %v12981_v60 = vld [vmem:[#allocation2 + $0x348] ss:$28 sps:$4 sm:$0xff]  }
 0x272   : > { %8059 = vmatpush1.bf16.msra.mxu0 %v12945_v8  ;;  %v12970_v61 = vld [vmem:[#allocation2 + $0x3b8] ss:$28 sps:$4 sm:$0xff]   ;;  %v12976_v18 = vld [vmem:[#allocation2 + $0x380] ss:$28 sps:$4 sm:$0xff]   ;;  %v12982_v32 = vld [vmem:[#allocation2 + $0x6c8] ss:$28 sps:$4 sm:$0xff]  }
 0x273   : > { %8240 = vmatpush1.bf16.msra.mxu1 %v12946_v4  ;;  %8060 = vmatprep.subr.bf16.mxu0 %v12947_v17  ;;  %v12983_v45 = vld [vmem:[#allocation2 + $0x314] ss:$28 sps:$4 sm:$0xff]   ;;  %v12989_v36 = vld [vmem:[#allocation2 + $0x2dc] ss:$28 sps:$4 sm:$0xff]   ;;  %v12995_v57 = vld [vmem:[#allocation2 + $0x2a4] ss:$28 sps:$4 sm:$0xff]  }
 0x274   : > { %8241 = vmatprep.subr.bf16.mxu1 %v12949_v26  ;;  %v12985_v20 = vld [vmem:[#allocation2 + $0x694] ss:$28 sps:$4 sm:$0xff]   ;;  %v12991_v43 = vld [vmem:[#allocation2 + $0x65c] ss:$28 sps:$4 sm:$0xff]   ;;  %v12997_v51 = vld [vmem:[#allocation2 + $0x624] ss:$28 sps:$4 sm:$0xff]  }
 0x275   : > { %v12987_v25 = vld [vmem:[#allocation2 + $0x310] ss:$28 sps:$4 sm:$0xff]   ;;  %v12993_v30 = vld [vmem:[#allocation2 + $0x2d8] ss:$28 sps:$4 sm:$0xff]   ;;  %v12999_v44 = vld [vmem:[#allocation2 + $0x2a0] ss:$28 sps:$4 sm:$0xff]  }
 0x276   : > { %8061 = vmatpush1.bf16.msra.mxu0 %v12951_v10  ;;  %v12988_v29 = vld [vmem:[#allocation2 + $0x690] ss:$28 sps:$4 sm:$0xff]   ;;  %v12994_v33 = vld [vmem:[#allocation2 + $0x658] ss:$28 sps:$4 sm:$0xff]   ;;  %v13000_v13 = vld [vmem:[#allocation2 + $0x620] ss:$28 sps:$4 sm:$0xff]  }
 0x277   : > { %8242 = vmatpush1.bf16.msra.mxu1 %v12952_v59  ;;  %8062 = vmatprep.subr.bf16.mxu0 %v12953_v7  ;;  %v17213_v49 = vld [vmem:[%s13661_s25 + $0x4] ss:$24 sps:$4 sm:$0xff]   ;;  %v13001_v50 = vld [vmem:[#allocation2 + $0x26c] ss:$28 sps:$4 sm:$0xff]   ;;  %v13007_v37 = vld [vmem:[#allocation2 + $0x234] ss:$28 sps:$4 sm:$0xff]  }
 0x278   : > { %8243 = vmatprep.subr.bf16.mxu1 %v12955_v21  ;;  %v13027_v52 = vld [vmem:[%s13661_s25 + $0xc] ss:$24 sps:$4 sm:$0xff]   ;;  %8086 = vmatprep.mubr.bf16.mxu0 %v17213_v49  ;;  %v13009_v6 = vld [vmem:[#allocation2 + $0x5b4] ss:$28 sps:$4 sm:$0xff]   ;;  %v13013_v54 = vld [vmem:[#allocation2 + $0x1fc] ss:$28 sps:$4 sm:$0xff]  }
 0x279   : > { %v13003_v48 = vld [vmem:[#allocation2 + $0x5ec] ss:$28 sps:$4 sm:$0xff]   ;;  %8267 = vmatprep.mubr.bf16.mxu1 %v13027_v52  ;;  %v13015_v2 = vld [vmem:[#allocation2 + $0x57c] ss:$28 sps:$4 sm:$0xff]   ;;  %v13019_v3 = vld [vmem:[#allocation2 + $0x1c4] ss:$28 sps:$4 sm:$0xff]  }
 0x27a   : > { %8063 = vmatpush1.bf16.msra.mxu0 %v12957_v63  ;;  %v13005_v42 = vld [vmem:[#allocation2 + $0x268] ss:$28 sps:$4 sm:$0xff]   ;;  %v13011_v38 = vld [vmem:[#allocation2 + $0x230] ss:$28 sps:$4 sm:$0xff]   ;;  %v13017_v23 = vld [vmem:[#allocation2 + $0x1f8] ss:$28 sps:$4 sm:$0xff]  }
 0x27b   : > { %8244 = vmatpush1.bf16.msra.mxu1 %v12958_v15  ;;  %8064 = vmatprep.subr.bf16.mxu0 %v12959_v9  ;;  %v13006_v39 = vld [vmem:[#allocation2 + $0x5e8] ss:$28 sps:$4 sm:$0xff]   ;;  %v13012_v19 = vld [vmem:[#allocation2 + $0x5b0] ss:$28 sps:$4 sm:$0xff]   ;;  %v13018_v31 = vld [vmem:[#allocation2 + $0x578] ss:$28 sps:$4 sm:$0xff]  }
 0x27c   : > { %8245 = vmatprep.subr.bf16.mxu1 %v12961_v5  ;;  %v13021_v56 = vld [vmem:[#allocation2 + $0x544] ss:$28 sps:$4 sm:$0xff]   ;;  %v13033_v58 = vld [vmem:[#allocation2 + $0x88c] ss:$28 sps:$4 sm:$0xff]   ;;  %v13036_v11 = vld [vmem:[#allocation2 + $0x194] ss:$28 sps:$4 sm:$0xff]  }
 0x27d   : > { %v13023_v28 = vld [vmem:[#allocation2 + $0x1c0] ss:$28 sps:$4 sm:$0xff]   ;;  %v13031_v47 = vld [vmem:[#allocation2 + $0x888] ss:$28 sps:$4 sm:$0xff]   ;;  %v13034_v14 = vld [vmem:[#allocation2 + $0x190] ss:$28 sps:$4 sm:$0xff]  }
 0x27e   : > { %8065 = vmatpush1.bf16.msra.mxu0 %v12963_v12  ;;  %v13024_v46 = vld [vmem:[#allocation2 + $0x540] ss:$28 sps:$4 sm:$0xff]   ;;  %v17222_v16 = vld [vmem:[%s13661_s25 + $0x34] ss:$24 sps:$4 sm:$0xff]   ;;  %v17228_v59 = vld [vmem:[%s13661_s25 + $0x30] ss:$24 sps:$4 sm:$0xff]  }
 0x27f   : > { %8246 = vmatpush1.bf16.msra.mxu1 %v12964_v34  ;;  %8066 = vmatprep.subr.bf16.mxu0 %v12965_v1  ;;  %v17218_v24 = vld [vmem:[%s13661_s25] ss:$24 sps:$4 sm:$0xff]   ;;  %v13039_v27 = vld [vmem:[%s13661_s25 + $0x3c] ss:$24 sps:$4 sm:$0xff]   ;;  %v13043_v17 = vld [vmem:[#allocation2 + $0x850] ss:$28 sps:$4 sm:$0xff]  }
 0x280   : > { %8247 = vmatprep.subr.bf16.mxu1 %v12967_v55  ;;  %v13030_v35 = vld [vmem:[%s13661_s25 + $0x8] ss:$24 sps:$4 sm:$0xff]   ;;  %v13045_v8 = vld [vmem:[#allocation2 + $0x854] ss:$28 sps:$4 sm:$0xff]   ;;  %v13048_v4 = vld [vmem:[#allocation2 + $0x15c] ss:$28 sps:$4 sm:$0xff]  }
 0x281   : > { %v13046_v26 = vld [vmem:[#allocation2 + $0x158] ss:$28 sps:$4 sm:$0xff]   ;;  %v13060_v7 = vld [vmem:[#allocation2 + $0x124] ss:$28 sps:$4 sm:$0xff]   ;;  %v13069_v12 = vld [vmem:[#allocation2 + $0xec] ss:$28 sps:$4 sm:$0xff]  }
 0x282   : > { %8067 = vmatpush1.bf16.msra.mxu0 %v12969_v53  ;;  %v13057_v10 = vld [vmem:[#allocation2 + $0x81c] ss:$28 sps:$4 sm:$0xff]   ;;  %v13051_v15 = vld [vmem:[%s13661_s25 + $0x6c] ss:$24 sps:$4 sm:$0xff]   ;;  %v13054_v53 = vld [vmem:[%s13661_s25 + $0x68] ss:$24 sps:$4 sm:$0xff]  }
 0x283   : > { %8248 = vmatpush1.bf16.msra.mxu1 %v12970_v61  ;;  %8068 = vmatprep.subr.bf16.mxu0 %v12971_v22  ;;  %v13042_v21 = vld [vmem:[%s13661_s25 + $0x38] ss:$24 sps:$4 sm:$0xff]   ;;  %v17232_v63 = vld [vmem:[%s13661_s25 + $0x64] ss:$24 sps:$4 sm:$0xff]   ;;  %vm8032_vm2 = vcmask 1043456   ;;  %vm7986_vm3 = vcmask 457728  }
 0x284   : > { %8249 = vmatprep.subr.bf16.mxu1 %v12973_v62  ;;  %v13055_v9 = vld [vmem:[#allocation2 + $0x818] ss:$28 sps:$4 sm:$0xff]   ;;  %v13058_v5 = vld [vmem:[#allocation2 + $0x120] ss:$28 sps:$4 sm:$0xff]   ;;  %v13067_v1 = vld [vmem:[#allocation2 + $0xe8] ss:$28 sps:$4 sm:$0xff]  }
 0x285   : > { %v13072_v34 = vld [vmem:[#allocation2 + $0x7e4] ss:$28 sps:$4 sm:$0xff]   ;;  %v13081_v22 = vld [vmem:[#allocation2 + $0xb4] ss:$28 sps:$4 sm:$0xff]   ;;  %v13090_v62 = vld [vmem:[#allocation2 + $0x7ac] ss:$28 sps:$4 sm:$0xff]  }
 0x286   : > { %8069 = vmatpush1.bf16.msra.mxu0 %v12975_v40  ;;  %v17238_v55 = vld [vmem:[%s13661_s25 + $0x60] ss:$24 sps:$4 sm:$0xff]   ;;  %v17242_v40 = vld [vmem:[%s13661_s25 + $0x94] ss:$24 sps:$4 sm:$0xff]   ;;  %vm10787_vm4 = vcmask 125952  }
 0x287   : > { %8250 = vmatpush1.bf16.msra.mxu1 %v12976_v18  ;;  %8070 = vmatprep.subr.bf16.mxu0 %v12977_v41  ;;  %v13070_v61 = vld [vmem:[#allocation2 + $0x7e0] ss:$28 sps:$4 sm:$0xff]   ;;  %v13079_v41 = vld [vmem:[#allocation2 + $0xb0] ss:$28 sps:$4 sm:$0xff]  }
 0x288   : > { %8251 = vmatprep.subr.bf16.mxu1 %v12979_v0  ;;  %v13063_v18 = vld [vmem:[%s13661_s25 + $0x9c] ss:$24 sps:$4 sm:$0xff]   ;;  %v13088_v0 = vld [vmem:[#allocation2 + $0x7a8] ss:$28 sps:$4 sm:$0xff]   ;;  %v17258_v52 = vld [vmem:[%s13661_s25 + $0xc0] ss:$24 sps:$4 sm:$0xff]  }
 0x28a   : > { %8071 = vmatpush2.bf16.msra.mxu0 %v12981_v60  ;;  %v13093_v60 = vld [vmem:[#allocation2 + $0x7c] ss:$28 sps:$4 sm:$0xff]  }
 0x28b   : > { %8252 = vmatpush2.bf16.msra.mxu1 %v12982_v32  ;;  %8072 = vmatprep.subr.bf16.mxu0 %v12983_v45  ;;  %v13102_v32 = vld [vmem:[#allocation2 + $0x774] ss:$28 sps:$4 sm:$0xff]  }
 0x28c   : > { %8253 = vmatprep.subr.bf16.mxu1 %v12985_v20  ;;  %v13091_v45 = vld [vmem:[#allocation2 + $0x78] ss:$28 sps:$4 sm:$0xff]   ;;  %v17248_v20 = vld [vmem:[%s13661_s25 + $0x90] ss:$24 sps:$4 sm:$0xff]  }
 0x28e   : > { %8073 = vmatpush2.bf16.msra.mxu0 %v12987_v25  ;;  %v13066_v25 = vld [vmem:[%s13661_s25 + $0x98] ss:$24 sps:$4 sm:$0xff]  }
 0x28f   : > { %8254 = vmatpush2.bf16.msra.mxu1 %v12988_v29  ;;  %8074 = vmatprep.subr.bf16.mxu0 %v12989_v36  ;;  %v13100_v29 = vld [vmem:[#allocation2 + $0x770] ss:$28 sps:$4 sm:$0xff]   ;;  %v17252_v36 = vld [vmem:[%s13661_s25 + $0xc4] ss:$24 sps:$4 sm:$0xff]  }
 0x290   : > { %8255 = vmatprep.subr.bf16.mxu1 %v12991_v43  ;;  %v13105_v43 = vld [vmem:[#allocation2 + $0x44] ss:$28 sps:$4 sm:$0xff]  }
 0x292   : > { %8075 = vmatpush2.bf16.msra.mxu0 %v12993_v30  ;;  %v13117_v30 = vld [vmem:[#allocation2 + $0x73c] ss:$28 sps:$4 sm:$0xff]  }
 0x293   : > { %8256 = vmatpush2.bf16.msra.mxu1 %v12994_v33  ;;  %8076 = vmatprep.subr.bf16.mxu0 %v12995_v57  ;;  %v13075_v33 = vld [vmem:[%s13661_s25 + $0xcc] ss:$24 sps:$4 sm:$0xff]   ;;  %v13103_v57 = vld [vmem:[#allocation2 + $0x40] ss:$28 sps:$4 sm:$0xff]  }
 0x294   : > { %8257 = vmatprep.subr.bf16.mxu1 %v12997_v51  ;;  %v13114_v51 = vld [vmem:[#allocation2 + $0xc] ss:$28 sps:$4 sm:$0xff]  }
 0x296   : > { %8077 = vmatpush2.bf16.msra.mxu0 %v12999_v44  ;;  %v13115_v44 = vld [vmem:[#allocation2 + $0x738] ss:$28 sps:$4 sm:$0xff]  }
 0x297   : > { %8258 = vmatpush2.bf16.msra.mxu1 %v13000_v13  ;;  %8078 = vmatprep.subr.bf16.mxu0 %v13001_v50  ;;  %v13129_v13 = vld [vmem:[#allocation2 + $0x704] ss:$28 sps:$4 sm:$0xff]  }
 0x298   : > { %8259 = vmatprep.subr.bf16.mxu1 %v13003_v48  ;;  %v13112_v50 = vld [vmem:[#allocation2 + $0x8] ss:$28 sps:$4 sm:$0xff]   ;;  %v13127_v48 = vld [vmem:[#allocation2 + $0x700] ss:$28 sps:$4 sm:$0xff]  }
 0x29a   : > { %8079 = vmatpush2.bf16.msra.mxu0 %v13005_v42  ;;  %v13126_v42 = vld [vmem:[#allocation2 + $0x354] ss:$28 sps:$4 sm:$0xff]  }
 0x29b   : > { %8260 = vmatpush2.bf16.msra.mxu1 %v13006_v39  ;;  %8080 = vmatprep.subr.bf16.mxu0 %v13007_v37  ;;  %v13078_v39 = vld [vmem:[%s13661_s25 + $0xc8] ss:$24 sps:$4 sm:$0xff]   ;;  %v17262_v37 = vld [vmem:[%s13661_s25 + $0xf4] ss:$24 sps:$4 sm:$0xff]  }
 0x29c   : > { %8261 = vmatprep.subr.bf16.mxu1 %v13009_v6  ;;  %v13084_v6 = vld [vmem:[%s13661_s25 + $0xfc] ss:$24 sps:$4 sm:$0xff]  }
 0x29e   : > { %8081 = vmatpush2.bf16.msra.mxu0 %v13011_v38  ;;  %v5990_v38 = vld [vmem:[#allocation2 + $0x968] sm:$0xff] }
 0x29f   : > { %8262 = vmatpush2.bf16.msra.mxu1 %v13012_v19  ;;  %8082 = vmatprep.subr.bf16.mxu0 %v13013_v54  ;;  %v13124_v19 = vld [vmem:[#allocation2 + $0x350] ss:$28 sps:$4 sm:$0xff]   ;;  %v11704_v54 = vcombine.high %v5990_v38, %v5990_v38 }
 0x2a0   : > { %8263 = vmatprep.subr.bf16.mxu1 %v13015_v2  ;;  %v11703_v2 = vcombine.low %v5990_v38, %v5990_v38  ;;  %v17334_v38 = vld [vmem:[%s13661_s25 + $0x244] ss:$24 sps:$4 sm:$0xff]  }
 0x2a2   : > { %8083 = vmatpush2.bf16.msra.mxu0 %v13017_v23  ;;  %v13138_v23 = vld [vmem:[#allocation2 + $0x31c] ss:$28 sps:$4 sm:$0xff]  }
 0x2a3   : > { %8264 = vmatpush2.bf16.msra.mxu1 %v13018_v31  ;;  %8084 = vmatprep.subr.bf16.mxu0 %v13019_v3  ;;  %v8034_v31 = vsel %vm8032_vm2, %v11703_v2, 0  ;;  %v17269_v3 = vld [vmem:[%s13661_s25 + $0xf0] ss:$24 sps:$4 sm:$0xff]  }
 0x2a4   : > { %8265 = vmatprep.subr.bf16.mxu1 %v13021_v56  ;;  %v13087_v56 = vld [vmem:[%s13661_s25 + $0xf8] ss:$24 sps:$4 sm:$0xff]   ;;  %v13170_v2 = vld [vmem:[%s13661_s25 + $0x248] ss:$24 sps:$4 sm:$0xff]  }
 0x2a6   : > { %8085 = vmatpush2.bf16.msra.mxu0 %v13023_v28  ;;  %v13136_v28 = vld [vmem:[#allocation2 + $0x318] ss:$28 sps:$4 sm:$0xff]  }
 0x2a7   : > { %8266 = vmatpush2.bf16.msra.mxu1 %v13024_v46  ;;  %8416 = vmatprep.subr.bf16.mxu0 %v13033_v58  ;;  %v13148_v46 = vld [vmem:[#allocation2 + $0x2e4] ss:$28 sps:$4 sm:$0xff]   ;;  %v13159_v58 = vld [vmem:[#allocation2 + $0x930] ss:$28 sps:$4 sm:$0xff]  }
 0x2a8   : > { %8597 = vmatprep.subr.bf16.mxu1 %v13036_v11  ;;  %v13161_v11 = vld [vmem:[#allocation2 + $0x934] ss:$28 sps:$4 sm:$0xff]  }
 0x2a9   : > { %8087 = vmatmul.mubr.bf16.vlgmr.msra.gmra.mxu0 %v17218_v24 }
 0x2aa   : > { %8268 = vmatmul.mubr.bf16.vlgmr.msra.gmra.mxu1 %v13030_v35  ;;  %8417 = vmatpush1.bf16.msra.mxu0 %v13031_v47  ;;  %v17274_v35 = vld [vmem:[%s13661_s25 + $0x124] ss:$24 sps:$4 sm:$0xff]  }
 0x2ab   : > { %8598 = vmatpush1.bf16.msra.mxu1 %v13034_v14  ;;  %8096 = vmatprep.mubr.bf16.mxu0 %v17222_v16  ;;  %v13096_v47 = vld [vmem:[%s13661_s25 + $0x12c] ss:$24 sps:$4 sm:$0xff]   ;;  %v13146_v14 = vld [vmem:[#allocation2 + $0x2e0] ss:$28 sps:$4 sm:$0xff]  }
 0x2ac   : > { %8277 = vmatprep.mubr.bf16.mxu1 %v13039_v27  ;;  %8418 = vmatprep.subr.bf16.mxu0 %v13045_v8  ;;  %v13158_v27 = vld [vmem:[#allocation2 + $0x2ac] ss:$28 sps:$4 sm:$0xff]   ;;  %v13171_v8 = vld [vmem:[#allocation2 + $0x8f8] ss:$28 sps:$4 sm:$0xff]  }
 0x2ad   : > { %8599 = vmatprep.subr.bf16.mxu1 %v13048_v4  ;;  %v13173_v4 = vld [vmem:[#allocation2 + $0x8fc] ss:$28 sps:$4 sm:$0xff]  }
 0x2ae   : > { %8419 = vmatpush1.bf16.msra.mxu0 %v13043_v17  ;;  %v13156_v17 = vld [vmem:[#allocation2 + $0x2a8] ss:$28 sps:$4 sm:$0xff]  }
 0x2af   : > { %8600 = vmatpush1.bf16.msra.mxu1 %v13046_v26  ;;  %8420 = vmatprep.subr.bf16.mxu0 %v13057_v10  ;;  %v13168_v26 = vld [vmem:[#allocation2 + $0x274] ss:$28 sps:$4 sm:$0xff]   ;;  %v17280_v10 = vld [vmem:[%s13661_s25 + $0x120] ss:$24 sps:$4 sm:$0xff]  }
 0x2b0   : > { %8601 = vmatprep.subr.bf16.mxu1 %v13060_v7  ;;  %v13099_v7 = vld [vmem:[%s13661_s25 + $0x128] ss:$24 sps:$4 sm:$0xff]  }
 0x2b1   : > { %8097 = vmatmul.mubr.bf16.gmra.mxu0 %v17228_v59 }
 0x2b2   : > { %8278 = vmatmul.mubr.bf16.gmra.mxu1 %v13042_v21  ;;  %8106 = vmatprep.mubr.bf16.mxu0 %v17232_v63  ;;  %v17284_v21 = vld [vmem:[%s13661_s25 + $0x154] ss:$24 sps:$4 sm:$0xff]  }
 0x2b3   : > { %8287 = vmatprep.mubr.bf16.mxu1 %v13051_v15  ;;  %8421 = vmatpush1.bf16.msra.mxu0 %v13055_v9  ;;  %v13108_v15 = vld [vmem:[%s13661_s25 + $0x15c] ss:$24 sps:$4 sm:$0xff]   ;;  %v13166_v9 = vld [vmem:[#allocation2 + $0x270] ss:$28 sps:$4 sm:$0xff]  }
 0x2b4   : > { %8602 = vmatpush1.bf16.msra.mxu1 %v13058_v5  ;;  %8422 = vmatprep.subr.bf16.mxu0 %v13072_v34  ;;  %v13185_v5 = vld [vmem:[#allocation2 + $0x8c4] ss:$28 sps:$4 sm:$0xff]  }
 0x2b5   : > { %8603 = vmatprep.subr.bf16.mxu1 %v13069_v12  ;;  %v13180_v12 = vld [vmem:[#allocation2 + $0x23c] ss:$28 sps:$4 sm:$0xff]  }
 0x2b6   : > { %v13183_v34 = vld [vmem:[#allocation2 + $0x8c0] ss:$28 sps:$4 sm:$0xff]  }
 0x2b7   : > { %8423 = vmatpush1.bf16.msra.mxu0 %v13070_v61  ;;  %v13188_v61 = vld [vmem:[#allocation2 + $0x204] ss:$28 sps:$4 sm:$0xff]  }
 0x2b8   : > { %8604 = vmatpush1.bf16.msra.mxu1 %v13067_v1  ;;  %8424 = vmatprep.subr.bf16.mxu0 %v13090_v62  ;;  %v17290_v1 = vld [vmem:[%s13661_s25 + $0x150] ss:$24 sps:$4 sm:$0xff]  }
 0x2b9   : > { %8605 = vmatprep.subr.bf16.mxu1 %v13081_v22  ;;  %8107 = vmatmul.mubr.bf16.gmra.mxu0 %v17238_v55  ;;  %v13111_v22 = vld [vmem:[%s13661_s25 + $0x158] ss:$24 sps:$4 sm:$0xff]  }
 0x2ba   : > { %8288 = vmatmul.mubr.bf16.gmra.mxu1 %v13054_v53  ;;  %8116 = vmatprep.mubr.bf16.mxu0 %v17242_v40  ;;  %v13178_v53 = vld [vmem:[#allocation2 + $0x238] ss:$28 sps:$4 sm:$0xff]  }
 0x2bb   : > { %8297 = vmatprep.mubr.bf16.mxu1 %v13063_v18  ;;  %8425 = vmatpush1.bf16.msra.mxu0 %v13088_v0  ;;  %v13201_v62 = vld [vmem:[#allocation2 + $0x514] ss:$28 sps:$4 sm:$0xff]   ;;  %v17294_v18 = vld [vmem:[%s13661_s25 + $0x184] ss:$24 sps:$4 sm:$0xff]  }
 0x2bc   : > { %8606 = vmatpush1.bf16.msra.mxu1 %v13079_v41  ;;  %8426 = vmatprep.subr.bf16.mxu0 %v13102_v32  ;;  %v13120_v41 = vld [vmem:[%s13661_s25 + $0x18c] ss:$24 sps:$4 sm:$0xff]   ;;  %v13186_v0 = vld [vmem:[#allocation2 + $0x200] ss:$28 sps:$4 sm:$0xff]  }
 0x2bd   : > { %8607 = vmatprep.subr.bf16.mxu1 %v13093_v60  ;;  %v13195_v60 = vld [vmem:[#allocation2 + $0x1cc] ss:$28 sps:$4 sm:$0xff]   ;;  %v17300_v32 = vld [vmem:[%s13661_s25 + $0x180] ss:$24 sps:$4 sm:$0xff]  }
 0x2bf   : > { %8427 = vmatpush1.bf16.msra.mxu0 %v13100_v29  ;;  %v13123_v29 = vld [vmem:[%s13661_s25 + $0x188] ss:$24 sps:$4 sm:$0xff]  }
 0x2c0   : > { %8608 = vmatpush1.bf16.msra.mxu1 %v13091_v45  ;;  %8428 = vmatprep.subr.bf16.mxu0 %v13117_v30  ;;  %v13193_v45 = vld [vmem:[#allocation2 + $0x1c8] ss:$28 sps:$4 sm:$0xff]   ;;  %v13132_v30 = vld [vmem:[%s13661_s25 + $0x1bc] ss:$24 sps:$4 sm:$0xff]  }
 0x2c1   : > { %8609 = vmatprep.subr.bf16.mxu1 %v13105_v43  ;;  %8117 = vmatmul.mubr.bf16.gmra.mxu0 %v17248_v20  ;;  %v17304_v43 = vld [vmem:[%s13661_s25 + $0x1b4] ss:$24 sps:$4 sm:$0xff]  }
 0x2c2   : > { %8298 = vmatmul.mubr.bf16.gmra.mxu1 %v13066_v25  ;;  %8126 = vmatprep.mubr.bf16.mxu0 %v17252_v36  ;;  %v13204_v25 = vld [vmem:[#allocation2 + $0x894] ss:$28 sps:$4 sm:$0xff]  }
 0x2c3   : > { %8307 = vmatprep.mubr.bf16.mxu1 %v13075_v33  ;;  %8429 = vmatpush1.bf16.msra.mxu0 %v13115_v44  ;;  %v17310_v33 = vld [vmem:[%s13661_s25 + $0x1b0] ss:$24 sps:$4 sm:$0xff]   ;;  %v13141_v44 = vld [vmem:[%s13661_s25 + $0x1ec] ss:$24 sps:$4 sm:$0xff]  }
 0x2c4   : > { %8610 = vmatpush1.bf16.msra.mxu1 %v13103_v57  ;;  %8430 = vmatprep.subr.bf16.mxu0 %v13129_v13  ;;  %v13135_v57 = vld [vmem:[%s13661_s25 + $0x1b8] ss:$24 sps:$4 sm:$0xff]  }
 0x2c5   : > { %8611 = vmatprep.subr.bf16.mxu1 %v13114_v51  ;;  %v17314_v51 = vld [vmem:[%s13661_s25 + $0x1e4] ss:$24 sps:$4 sm:$0xff]   ;;  %v17320_v13 = vld [vmem:[%s13661_s25 + $0x1e0] ss:$24 sps:$4 sm:$0xff]  }
 0x2c7   : > { %8431 = vmatpush1.bf16.msra.mxu0 %v13127_v48  ;;  %v17324_v48 = vld [vmem:[%s13661_s25 + $0x214] ss:$24 sps:$4 sm:$0xff]  }
 0x2c8   : > { %8612 = vmatpush1.bf16.msra.mxu1 %v13112_v50  ;;  %11710 = vmatprep.subr.msk.bf16.mxu0 %vm8032_vm2, %v11704_v54  ;;  %v13144_v50 = vld [vmem:[%s13661_s25 + $0x1e8] ss:$24 sps:$4 sm:$0xff]  }
 0x2c9   : > { %8613 = vmatprep.subr.bf16.mxu1 %v13126_v42  ;;  %8127 = vmatmul.mubr.bf16.gmra.mxu0 %v17258_v52  ;;  %v13152_v42 = vld [vmem:[%s13661_s25 + $0x21c] ss:$24 sps:$4 sm:$0xff]   ;;  %v17340_v54 = vld [vmem:[%s13661_s25 + $0x240] ss:$24 sps:$4 sm:$0xff]  }
 0x2ca   : > { %8308 = vmatmul.mubr.bf16.gmra.mxu1 %v13078_v39  ;;  %8136 = vmatprep.mubr.bf16.mxu0 %v17262_v37  ;;  %v17330_v39 = vld [vmem:[%s13661_s25 + $0x210] ss:$24 sps:$4 sm:$0xff]  }
 0x2cb   : > { %8317 = vmatprep.mubr.bf16.mxu1 %v13084_v6  ;;  %8441 = vmatpush2.bf16.msra.mxu0 %v8034_v31  ;;  %v13155_v6 = vld [vmem:[%s13661_s25 + $0x218] ss:$24 sps:$4 sm:$0xff]   ;;  %v13176_v31 = vld [vmem:[%s13661_s25 + $0x27c] ss:$24 sps:$4 sm:$0xff]  }
 0x2cc   : > { %8614 = vmatpush2.bf16.msra.mxu1 %v13124_v19  ;;  %8442 = vmatprep.subr.bf16.mxu0 %v13161_v11  ;;  %v13164_v19 = vld [vmem:[%s13661_s25 + $0x24c] ss:$24 sps:$4 sm:$0xff]  }
 0x2cd   : > { %8615 = vmatprep.subr.bf16.mxu1 %v13138_v23  ;;  %v17344_v23 = vld [vmem:[%s13661_s25 + $0x274] ss:$24 sps:$4 sm:$0xff]  }
 0x2cf   : > { %8443 = vmatpush2.bf16.msra.mxu0 %v13159_v58  ;;  %v13182_v58 = vld [vmem:[%s13661_s25 + $0x278] ss:$24 sps:$4 sm:$0xff]  }
 0x2d0   : > { %8616 = vmatpush2.bf16.msra.mxu1 %v13136_v28  ;;  %8444 = vmatprep.subr.bf16.mxu0 %v13173_v4  ;;  %v5644_v28 = vld [vmem:[%s13661_s25 + $0x2a8] sm:$0xff] }
 0x2d1   : > { %8617 = vmatprep.subr.bf16.mxu1 %v13148_v46  ;;  %8137 = vmatmul.mubr.bf16.gmra.mxu0 %v17269_v3  ;;  %v17352_v46 = vld [vmem:[%s13661_s25 + $0x270] ss:$24 sps:$4 sm:$0xff]  }
 0x2d2   : > { %8318 = vmatmul.mubr.bf16.gmra.mxu1 %v13087_v56  ;;  %8146 = vmatprep.mubr.bf16.mxu0 %v17274_v35  ;;  %v5643_v56 = vld [vmem:[%s13661_s25 + $0x2a0] sm:$0xff]  ;;  %v17375_v4 = vld [vmem:[%s13661_s25 + $0x10] ss:$24 sps:$4 sm:$0xff]  }
 0x2d3   : > { %8327 = vmatprep.mubr.bf16.mxu1 %v13096_v47  ;;  %8445 = vmatpush2.bf16.msra.mxu0 %v13171_v8  ;;  %v17355_v11 = vcombine.high %v5643_v56, %v5643_v56  ;;  %v17357_v47 = vcombine.high %v5644_v28, %v5644_v28  ;;  %v17367_v8 = vcombine.low %v5644_v28, %v5644_v28  ;;  %v5991_v28 = vld [vmem:[#allocation2 + $0x970] sm:$0xff] }
 0x2d4   : > { %8618 = vmatpush2.bf16.msra.mxu1 %v13146_v14  ;;  %8446 = vmatprep.subr.bf16.mxu0 %v13185_v5  ;;  %v17363_v14 = vld [vmem:[%s13661_s25 + $0x14] ss:$24 sps:$4 sm:$0xff]  }
 0x2d5   : > { %8619 = vmatprep.subr.bf16.mxu1 %v13158_v27  ;;  %18895 = vst [vmem:[#allocation3_spill] sm:$0xff] %v17355_v11  ;;  %v17365_v27 = vcombine.low %v5643_v56, %v5643_v56  ;;  %18897 = vst [vmem:[#allocation5_spill] sm:$0xff] %v17367_v8  ;;  %v13208_v5 = vld [vmem:[#allocation2 + $0x4d8] ss:$28 sps:$4 sm:$0xff]   ;;  %v13268_v56 = vld [vmem:[#allocation2 + $0x740] ss:$28 sps:$4 sm:$0xff]  }
 0x2d7   : > { %8447 = vmatpush2.bf16.msra.mxu0 %v13183_v34  ;;  %18896 = vst [vmem:[#allocation4_spill] sm:$0xff] %v17365_v27  ;;  %v13216_v34 = vld [vmem:[#allocation2 + $0x858] ss:$28 sps:$4 sm:$0xff]  }
 0x2d8   : > { %8620 = vmatpush2.bf16.msra.mxu1 %v13156_v17  ;;  %8778 = vmatprep.subr.bf16.mxu0 %v13201_v62  ;;  %v13199_v17 = vld [vmem:[#allocation2 + $0x510] ss:$28 sps:$4 sm:$0xff]  }
 0x2d9   : > { %8621 = vmatprep.subr.bf16.mxu1 %v13168_v26  ;;  %8147 = vmatmul.mubr.bf16.gmra.mxu0 %v17280_v10  ;;  %v13202_v26 = vld [vmem:[#allocation2 + $0x890] ss:$28 sps:$4 sm:$0xff]  }
 0x2da   : > { %8328 = vmatmul.mubr.bf16.gmra.mxu1 %v13099_v7  ;;  %8156 = vmatprep.mubr.bf16.mxu0 %v17284_v21  ;;  %v17378_v7 = vld [vmem:[%s13661_s25 + $0x44] ss:$24 sps:$4 sm:$0xff]   ;;  %v13224_v62 = vld [vmem:[#allocation2 + $0x46c] ss:$28 sps:$4 sm:$0xff]  }
 0x2db   : > { %8337 = vmatprep.mubr.bf16.mxu1 %v13108_v15  ;;  %v13210_v15 = vld [vmem:[#allocation2 + $0x4dc] ss:$28 sps:$4 sm:$0xff]  }
 0x2dc   : > { %8622 = vmatpush2.bf16.msra.mxu1 %v13166_v9  ;;  %v13218_v9 = vld [vmem:[#allocation2 + $0x85c] ss:$28 sps:$4 sm:$0xff]  }
 0x2dd   : > { %8623 = vmatprep.subr.bf16.mxu1 %v13180_v12  ;;  %v13215_v12 = vld [vmem:[#allocation2 + $0x4a4] ss:$28 sps:$4 sm:$0xff]  }
 0x2e0   : > { %8624 = vmatpush2.bf16.msra.mxu1 %v13178_v53  ;;  %v17386_v53 = vld [vmem:[%s13661_s25 + $0x40] ss:$24 sps:$4 sm:$0xff]  }
 0x2e1   : > { %8625 = vmatprep.subr.bf16.mxu1 %v13188_v61  ;;  %8157 = vmatmul.mubr.bf16.gmra.mxu0 %v17290_v1  ;;  %v17389_v61 = vld [vmem:[%s13661_s25 + $0x74] ss:$24 sps:$4 sm:$0xff]  }
 0x2e2   : > { %8338 = vmatmul.mubr.bf16.gmra.mxu1 %v13111_v22  ;;  %8166 = vmatprep.mubr.bf16.mxu0 %v17294_v18  ;;  %v13213_v22 = vld [vmem:[#allocation2 + $0x4a0] ss:$28 sps:$4 sm:$0xff]  }
 0x2e3   : > { %8347 = vmatprep.mubr.bf16.mxu1 %v13120_v41  ;;  %v13237_v41 = vld [vmem:[#allocation2 + $0x7ec] ss:$28 sps:$4 sm:$0xff]  }
 0x2e4   : > { %8626 = vmatpush2.bf16.msra.mxu1 %v13186_v0  ;;  %v13235_v0 = vld [vmem:[#allocation2 + $0x7e8] ss:$28 sps:$4 sm:$0xff]  }
 0x2e5   : > { %8627 = vmatprep.subr.bf16.mxu1 %v13195_v60  ;;  %v13231_v60 = vld [vmem:[#allocation2 + $0x434] ss:$28 sps:$4 sm:$0xff]  }
 0x2e8   : > { %8628 = vmatpush2.bf16.msra.mxu1 %v13193_v45  ;;  %v13249_v45 = vld [vmem:[#allocation2 + $0x7b4] ss:$28 sps:$4 sm:$0xff]  }
 0x2e9   : > { %8959 = vmatprep.subr.bf16.mxu1 %v13204_v25  ;;  %8167 = vmatmul.mubr.bf16.gmra.mxu0 %v17300_v32  ;;  %v17397_v25 = vld [vmem:[%s13661_s25 + $0x70] ss:$24 sps:$4 sm:$0xff]  }
 0x2ea   : > { %8348 = vmatmul.mubr.bf16.gmra.mxu1 %v13123_v29  ;;  %8176 = vmatprep.mubr.bf16.mxu0 %v17304_v43  ;;  %v17400_v29 = vld [vmem:[%s13661_s25 + $0xa4] ss:$24 sps:$4 sm:$0xff]  }
 0x2eb   : > { %8357 = vmatprep.mubr.bf16.mxu1 %v13132_v30  ;;  %v13229_v30 = vld [vmem:[#allocation2 + $0x430] ss:$28 sps:$4 sm:$0xff]  }
 0x2f1   : > { %8177 = vmatmul.mubr.bf16.gmra.mxu0 %v17310_v33 }
 0x2f2   : > { %8358 = vmatmul.mubr.bf16.gmra.mxu1 %v13135_v57  ;;  %8186 = vmatprep.mubr.bf16.mxu0 %v17314_v51  ;;  %v13240_v57 = vld [vmem:[#allocation2 + $0x3fc] ss:$28 sps:$4 sm:$0xff]  }
 0x2f3   : > { %8367 = vmatprep.mubr.bf16.mxu1 %v13141_v44  ;;  %v13238_v44 = vld [vmem:[#allocation2 + $0x3f8] ss:$28 sps:$4 sm:$0xff]  }
 0x2f9   : > { %8187 = vmatmul.mubr.bf16.gmra.mxu0 %v17320_v13 }
 0x2fa   : > { %8368 = vmatmul.mubr.bf16.gmra.mxu1 %v13144_v50  ;;  %8196 = vmatprep.mubr.bf16.mxu0 %v17324_v48  ;;  %v13258_v50 = vld [vmem:[#allocation2 + $0x778] ss:$28 sps:$4 sm:$0xff]  }
 0x2fb   : > { %8377 = vmatprep.mubr.bf16.mxu1 %v13152_v42  ;;  %v13246_v42 = vld [vmem:[#allocation2 + $0x3c4] ss:$28 sps:$4 sm:$0xff]  }
 0x301   : > { %8197 = vmatmul.mubr.bf16.gmra.mxu0 %v17330_v39 }
 0x302   : > { %8378 = vmatmul.mubr.bf16.gmra.mxu1 %v13155_v6  ;;  %8206 = vmatprep.mubr.bf16.mxu0 %v17334_v38  ;;  %v13270_v6 = vld [vmem:[#allocation2 + $0x744] ss:$28 sps:$4 sm:$0xff]  }
 0x303   : > { %8387 = vmatprep.mubr.bf16.mxu1 %v13164_v19  ;;  %v17408_v19 = vld [vmem:[%s13661_s25 + $0xa0] ss:$24 sps:$4 sm:$0xff]  }
 0x309   : > { %8207 = vmatmul.mubr.bf16.gmra.mxu0 %v17340_v54 }
 0x30a   : > { %8388 = vmatmul.mubr.bf16.gmra.mxu1 %v13170_v2  ;;  %8216 = vmatprep.mubr.bf16.mxu0 %v17344_v23  ;;  %v17411_v2 = vld [vmem:[%s13661_s25 + $0xd4] ss:$24 sps:$4 sm:$0xff]  }
 0x30b   : > { %8397 = vmatprep.mubr.bf16.mxu1 %v13176_v31  ;;  %v13244_v31 = vld [vmem:[#allocation2 + $0x3c0] ss:$28 sps:$4 sm:$0xff]  }
 0x311   : > { %8217 = vmatmul.mubr.bf16.gmra.mxu0 %v17352_v46 }
 0x312   : > { %8398 = vmatmul.mubr.bf16.gmra.mxu1 %v13182_v58  ;;  %8226 = vmatprep.mubr.bf16.mxu0 %v17355_v11  ;;  %v13253_v58 = vld [vmem:[#allocation2 + $0x388] ss:$28 sps:$4 sm:$0xff]  }
 0x313   : > { %8407 = vmatprep.mubr.bf16.mxu1 %v17357_v47 }
 0x319   : > { %8227 = vmatmul.mubr.bf16.gmra.mxu0 %v17365_v27 }
 0x31a   : > { %8408 = vmatmul.mubr.bf16.gmra.mxu1 %v17367_v8  ;;  %11711 = vmatprep.mubr.msk.bf16.mxu0 %vm7986_vm3, %v17363_v14 }
 0x31b   : > { %8629 = vmatprep.mubr.bf16.mxu1 %v17213_v49  ;;  %v13228_v49 = vld [vmem:[#allocation2 + $0x824] ss:$28 sps:$4 sm:$0xff]  }
 0x321   : > { %8449 = vmatmul.mubr.bf16.vlgmr.msra.gmra.mxu0 %v17375_v4 }
 0x322   : > { %8630 = vmatmul.mubr.bf16.vlgmr.msra.gmra.mxu1 %v17218_v24  ;;  %8779 = vmatpush1.bf16.msra.mxu0 %v13199_v17  ;;  %v13226_v24 = vld [vmem:[#allocation2 + $0x820] ss:$28 sps:$4 sm:$0xff]   ;;  %v13280_v17 = vld [vmem:[#allocation2 + $0x708] ss:$28 sps:$4 sm:$0xff]  }
 0x323   : > { %8960 = vmatpush1.bf16.msra.mxu1 %v13202_v26  ;;  %11712 = vmatprep.mubr.msk.bf16.mxu0 %vm7986_vm3, %v17378_v7  ;;  %v17419_v26 = vld [vmem:[%s13661_s25 + $0xd0] ss:$24 sps:$4 sm:$0xff]  }
 0x324   : > { %8639 = vmatprep.mubr.bf16.mxu1 %v17222_v16  ;;  %8780 = vmatprep.subr.bf16.mxu0 %v13210_v15  ;;  %v13222_v16 = vld [vmem:[#allocation2 + $0x468] ss:$28 sps:$4 sm:$0xff]  }
 0x325   : > { %8961 = vmatprep.subr.bf16.mxu1 %v13218_v9  ;;  %v17422_v15 = vld [vmem:[%s13661_s25 + $0x104] ss:$24 sps:$4 sm:$0xff]   ;;  %v13264_v9 = vld [vmem:[#allocation2 + $0x6d4] ss:$28 sps:$4 sm:$0xff]  }
 0x326   : > { %8781 = vmatpush1.bf16.msra.mxu0 %v13208_v5  ;;  %v11706_v5 = vcombine.high %v5991_v28, %v5991_v28 }
 0x327   : > { %8962 = vmatpush1.bf16.msra.mxu1 %v13216_v34  ;;  %8782 = vmatprep.subr.bf16.mxu0 %v13215_v12  ;;  %v11705_v12 = vcombine.low %v5991_v28, %v5991_v28  ;;  %v13273_v34 = vld [vmem:[#allocation2 + $0x69c] ss:$28 sps:$4 sm:$0xff]   ;;  %v17465_v28 = vld [vmem:[%s13661_s25 + $0x190] ss:$24 sps:$4 sm:$0xff]  }
 0x328   : > { %8963 = vmatprep.subr.bf16.mxu1 %v13228_v49  ;;  %v13301_v49 = vld [vmem:[#allocation2 + $0x93c] ss:$28 sps:$4 sm:$0xff]  }
 0x329   : > { %8459 = vmatmul.mubr.bf16.gmra.mxu0 %v17386_v53 }
 0x32a   : > { %8640 = vmatmul.mubr.bf16.gmra.mxu1 %v17228_v59  ;;  %11713 = vmatprep.mubr.msk.bf16.mxu0 %vm7986_vm3, %v17389_v61  ;;  %v13247_v59 = vld [vmem:[#allocation2 + $0x7b0] ss:$28 sps:$4 sm:$0xff]  }
 0x32b   : > { %8649 = vmatprep.mubr.bf16.mxu1 %v17232_v63  ;;  %8783 = vmatpush1.bf16.msra.mxu0 %v13213_v22  ;;  %v13260_v63 = vld [vmem:[#allocation2 + $0x77c] ss:$28 sps:$4 sm:$0xff]  }
 0x32c   : > { %8964 = vmatpush1.bf16.msra.mxu1 %v13226_v24  ;;  %8784 = vmatprep.subr.bf16.mxu0 %v13224_v62  ;;  %v13271_v22 = vld [vmem:[#allocation2 + $0x698] ss:$28 sps:$4 sm:$0xff]  }
 0x32d   : > { %8965 = vmatprep.subr.bf16.mxu1 %v13237_v41  ;;  %v13299_v24 = vld [vmem:[#allocation2 + $0x938] ss:$28 sps:$4 sm:$0xff]  }
 0x32e   : > { %v17432_v62 = vld [vmem:[%s13661_s25 + $0x100] ss:$24 sps:$4 sm:$0xff]   ;;  %v17435_v41 = vld [vmem:[%s13661_s25 + $0x134] ss:$24 sps:$4 sm:$0xff]  }
 0x32f   : > { %8785 = vmatpush1.bf16.msra.mxu0 %v13222_v16  ;;  %v13279_v16 = vld [vmem:[#allocation2 + $0x664] ss:$28 sps:$4 sm:$0xff]  }
 0x330   : > { %8966 = vmatpush1.bf16.msra.mxu1 %v13235_v0  ;;  %8786 = vmatprep.subr.bf16.mxu0 %v13231_v60  ;;  %v13314_v0 = vld [vmem:[#allocation2 + $0x904] ss:$28 sps:$4 sm:$0xff]  }
 0x331   : > { %8967 = vmatprep.subr.bf16.mxu1 %v13249_v45  ;;  %8469 = vmatmul.mubr.bf16.gmra.mxu0 %v17397_v25  ;;  %v13277_v60 = vld [vmem:[#allocation2 + $0x660] ss:$28 sps:$4 sm:$0xff]  }
 0x332   : > { %8650 = vmatmul.mubr.bf16.gmra.mxu1 %v17238_v55  ;;  %11714 = vmatprep.mubr.msk.bf16.mxu0 %vm7986_vm3, %v17400_v29  ;;  %v13255_v55 = vld [vmem:[#allocation2 + $0x38c] ss:$28 sps:$4 sm:$0xff]   ;;  %v13312_v45 = vld [vmem:[#allocation2 + $0x900] ss:$28 sps:$4 sm:$0xff]  }
 0x333   : > { %8659 = vmatprep.mubr.bf16.mxu1 %v17242_v40  ;;  %8787 = vmatpush1.bf16.msra.mxu0 %v13229_v30  ;;  %v13282_v40 = vld [vmem:[#allocation2 + $0x70c] ss:$28 sps:$4 sm:$0xff]  }
 0x334   : > { %8968 = vmatpush1.bf16.msra.mxu1 %v13247_v59  ;;  %8788 = vmatprep.subr.bf16.mxu0 %v13240_v57  ;;  %v13322_v30 = vld [vmem:[#allocation2 + $0x8cc] ss:$28 sps:$4 sm:$0xff]  }
 0x335   : > { %8969 = vmatprep.subr.bf16.mxu1 %v13260_v63  ;;  %v13320_v59 = vld [vmem:[#allocation2 + $0x8c8] ss:$28 sps:$4 sm:$0xff]  }
 0x336   : > { %v17443_v57 = vld [vmem:[%s13661_s25 + $0x130] ss:$24 sps:$4 sm:$0xff]   ;;  %v17446_v63 = vld [vmem:[%s13661_s25 + $0x164] ss:$24 sps:$4 sm:$0xff]  }
 0x337   : > { %8789 = vmatpush1.bf16.msra.mxu0 %v13238_v44  ;;  %v13296_v44 = vld [vmem:[#allocation2 + $0x5f4] ss:$28 sps:$4 sm:$0xff]  }
 0x338   : > { %8970 = vmatpush1.bf16.msra.mxu1 %v13258_v50  ;;  %8790 = vmatprep.subr.bf16.mxu0 %v13246_v42  ;;  %v13328_v50 = vld [vmem:[#allocation2 + $0x51c] ss:$28 sps:$4 sm:$0xff]  }
 0x339   : > { %8971 = vmatprep.subr.bf16.mxu1 %v13270_v6  ;;  %8479 = vmatmul.mubr.bf16.gmra.mxu0 %v17408_v19  ;;  %v13305_v42 = vld [vmem:[#allocation2 + $0x5bc] ss:$28 sps:$4 sm:$0xff]  }
 0x33a   : > { %8660 = vmatmul.mubr.bf16.gmra.mxu1 %v17248_v20  ;;  %11715 = vmatprep.mubr.msk.bf16.mxu0 %vm7986_vm3, %v17411_v2  ;;  %v13262_v20 = vld [vmem:[#allocation2 + $0x6d0] ss:$28 sps:$4 sm:$0xff]   ;;  %v17454_v6 = vld [vmem:[%s13661_s25 + $0x160] ss:$24 sps:$4 sm:$0xff]  }
 0x33b   : > { %8669 = vmatprep.mubr.bf16.mxu1 %v17252_v36  ;;  %8791 = vmatpush1.bf16.msra.mxu0 %v13244_v31  ;;  %v8040_v36 = vsel %vm8032_vm2, %v11705_v12, 0  ;;  %v13311_v31 = vld [vmem:[#allocation2 + $0x584] ss:$28 sps:$4 sm:$0xff]  }
 0x33c   : > { %8972 = vmatpush1.bf16.msra.mxu1 %v13268_v56  ;;  %8792 = vmatprep.subr.bf16.mxu0 %v13255_v55  ;;  %v17457_v55 = vld [vmem:[%s13661_s25 + $0x194] ss:$24 sps:$4 sm:$0xff]   ;;  %v13309_v56 = vld [vmem:[#allocation2 + $0x580] ss:$28 sps:$4 sm:$0xff]  }
 0x33d   : > { %8973 = vmatprep.subr.bf16.mxu1 %v13282_v40  ;;  %v13319_v40 = vld [vmem:[#allocation2 + $0x54c] ss:$28 sps:$4 sm:$0xff]  }
 0x33f   : > { %8793 = vmatpush1.bf16.msra.mxu0 %v13253_v58  ;;  %v17468_v58 = vld [vmem:[%s13661_s25 + $0x1c4] ss:$24 sps:$4 sm:$0xff]  }
 0x340   : > { %8974 = vmatpush1.bf16.msra.mxu1 %v13280_v17  ;;  %8794 = vmatprep.subr.bf16.mxu0 %v13264_v9 }
 0x341   : > { %11726 = vmatprep.subr.msk.bf16.mxu1 %vm8032_vm2, %v11706_v5  ;;  %8489 = vmatmul.mubr.bf16.gmra.mxu0 %v17419_v26 }
 0x342   : > { %8670 = vmatmul.mubr.bf16.gmra.mxu1 %v17258_v52  ;;  %11716 = vmatprep.mubr.msk.bf16.mxu0 %vm7986_vm3, %v17422_v15  ;;  %v13288_v52 = vld [vmem:[#allocation2 + $0x62c] ss:$28 sps:$4 sm:$0xff]  }
 0x343   : > { %8679 = vmatprep.mubr.bf16.mxu1 %v17262_v37  ;;  %8795 = vmatpush2.bf16.msra.mxu0 %v13262_v20  ;;  %v13286_v37 = vld [vmem:[#allocation2 + $0x628] ss:$28 sps:$4 sm:$0xff]  }
 0x344   : > { %8984 = vmatpush2.bf16.msra.mxu1 %v8040_v36  ;;  %8796 = vmatprep.subr.bf16.mxu0 %v13273_v34  ;;  %v17491_v36 = vld [vmem:[%s13661_s25 + $0x1f0] ss:$24 sps:$4 sm:$0xff]  }
 0x345   : > { %8985 = vmatprep.subr.bf16.mxu1 %v13301_v49 }
 0x347   : > { %8797 = vmatpush2.bf16.msra.mxu0 %v13271_v22  ;;  %v17496_v22 = vld [vmem:[%s13661_s25 + $0x224] ss:$24 sps:$4 sm:$0xff]  }
 0x348   : > { %8986 = vmatpush2.bf16.msra.mxu1 %v13299_v24  ;;  %8798 = vmatprep.subr.bf16.mxu0 %v13279_v16 }
 0x349   : > { %8987 = vmatprep.subr.bf16.mxu1 %v13314_v0  ;;  %8499 = vmatmul.mubr.bf16.gmra.mxu0 %v17432_v62 }
 0x34a   : > { %8680 = vmatmul.mubr.bf16.gmra.mxu1 %v17269_v3  ;;  %11717 = vmatprep.mubr.msk.bf16.mxu0 %vm7986_vm3, %v17435_v41  ;;  %v13294_v3 = vld [vmem:[#allocation2 + $0x5f0] ss:$28 sps:$4 sm:$0xff]  }
 0x34b   : > { %8689 = vmatprep.mubr.bf16.mxu1 %v17274_v35  ;;  %8799 = vmatpush2.bf16.msra.mxu0 %v13277_v60  ;;  %v13303_v35 = vld [vmem:[#allocation2 + $0x5b8] ss:$28 sps:$4 sm:$0xff]  }
 0x34c   : > { %8988 = vmatpush2.bf16.msra.mxu1 %v13312_v45  ;;  %8800 = vmatprep.subr.bf16.mxu0 %v13288_v52 }
 0x34d   : > { %8989 = vmatprep.subr.bf16.mxu1 %v13322_v30 }
 0x34f   : > { %8801 = vmatpush2.bf16.msra.mxu0 %v13286_v37 }
 0x350   : > { %8990 = vmatpush2.bf16.msra.mxu1 %v13320_v59  ;;  %8802 = vmatprep.subr.bf16.mxu0 %v13296_v44  ;;  %v17510_v44 = vld [vmem:[%s13661_s25 + $0x220] ss:$24 sps:$4 sm:$0xff]  }
 0x351   : > { %9321 = vmatprep.subr.bf16.mxu1 %v13328_v50  ;;  %8509 = vmatmul.mubr.bf16.gmra.mxu0 %v17443_v57 }
 0x352   : > { %8690 = vmatmul.mubr.bf16.gmra.mxu1 %v17280_v10  ;;  %11718 = vmatprep.mubr.msk.bf16.mxu0 %vm7986_vm3, %v17446_v63  ;;  %v13317_v10 = vld [vmem:[#allocation2 + $0x548] ss:$28 sps:$4 sm:$0xff]  }
 0x353   : > { %8699 = vmatprep.mubr.bf16.mxu1 %v17284_v21  ;;  %8803 = vmatpush2.bf16.msra.mxu0 %v13294_v3  ;;  %v13325_v21 = vld [vmem:[#allocation2 + $0x19c] ss:$28 sps:$4 sm:$0xff]   ;;  %v17515_v3 = vld [vmem:[%s13661_s25 + $0x254] ss:$24 sps:$4 sm:$0xff]  }
 0x354   : > { %8804 = vmatprep.subr.bf16.mxu0 %v13305_v42 }
 0x357   : > { %8805 = vmatpush2.bf16.msra.mxu0 %v13303_v35 }
 0x358   : > { %8806 = vmatprep.subr.bf16.mxu0 %v13311_v31 }
 0x359   : > { %8519 = vmatmul.mubr.bf16.gmra.mxu0 %v17454_v6 }
 0x35a   : > { %8700 = vmatmul.mubr.bf16.gmra.mxu1 %v17290_v1  ;;  %11719 = vmatprep.mubr.msk.bf16.mxu0 %vm7986_vm3, %v17457_v55  ;;  %v17476_v1 = vld [vmem:[%s13661_s25 + $0x1c0] ss:$24 sps:$4 sm:$0xff]  }
 0x35b   : > { %8709 = vmatprep.mubr.bf16.mxu1 %v17294_v18  ;;  %8807 = vmatpush2.bf16.msra.mxu0 %v13309_v56  ;;  %v17479_v18 = vld [vmem:[%s13661_s25 + $0x1f4] ss:$24 sps:$4 sm:$0xff]  }
 0x35c   : > { %8808 = vmatprep.subr.bf16.mxu0 %v13319_v40 }
 0x35f   : > { %8809 = vmatpush2.bf16.msra.mxu0 %v13317_v10 }
 0x360   : > { %9140 = vmatprep.subr.bf16.mxu0 %v13325_v21 }
 0x361   : > { %8529 = vmatmul.mubr.bf16.gmra.mxu0 %v17465_v28 }
 0x362   : > { %8710 = vmatmul.mubr.bf16.gmra.mxu1 %v17300_v32  ;;  %11720 = vmatprep.mubr.msk.bf16.mxu0 %vm7986_vm3, %v17468_v58 }
 0x363   : > { %8719 = vmatprep.mubr.bf16.mxu1 %v17304_v43 }
 0x369   : > { %v8088_v17 = vpop.f32.mrf.mxu0  ;;  %8539 = vmatmul.mubr.bf16.gmra.mxu0 %v17476_v1 }
 0x36a   : > { %v8269_v9 = vpop.f32.mrf.mxu1  ;;  %8720 = vmatmul.mubr.bf16.gmra.mxu1 %v17310_v33  ;;  %11721 = vmatprep.mubr.msk.bf16.mxu0 %vm7986_vm3, %v17479_v18 }
 0x36b   : > { %v17483_v5 = vadd.f32 %v8269_v9, %v8088_v17  ;;  %8729 = vmatprep.mubr.bf16.mxu1 %v17314_v51  ;;  %v8090_v32 = vpop.f32.mrf.mxu0 }
 0x36c   : > { %v8271_v43 = vpop.f32.mrf.mxu1 }
 0x36d   : > { %v17488_v12 = vadd.f32 %v8271_v43, %v8090_v32  ;;  %v8092_v20 = vpop.f32.mrf.mxu0  ;;  %v17529_v32 = vld [vmem:[%s13661_s25 + $0x250] ss:$24 sps:$4 sm:$0xff]  }
 0x36e   : > { %v8273_v34 = vpop.f32.mrf.mxu1 }
 0x36f   : > { %v17493_v49 = vadd.f32 %v8273_v34, %v8092_v20  ;;  %v8094_v33 = vpop.f32.mrf.mxu0  ;;  %v17534_v20 = vld [vmem:[%s13661_s25 + $0x284] ss:$24 sps:$4 sm:$0xff]  }
 0x370   : > { %v8275_v24 = vpop.f32.mrf.mxu1 }
 0x371   : > { %v17498_v16 = vadd.f32 %v8275_v24, %v8094_v33  ;;  %v8098_v0 = vpop.f32.mrf.mxu0  ;;  %8549 = vmatmul.mubr.bf16.gmra.mxu0 %v17491_v36 }
 0x372   : > { %v8279_v51 = vpop.f32.mrf.mxu1  ;;  %8730 = vmatmul.mubr.bf16.gmra.mxu1 %v17320_v13  ;;  %11722 = vmatprep.mubr.msk.bf16.mxu0 %vm7986_vm3, %v17496_v22 }
 0x373   : > { %v17502_v60 = vadd.f32 %v8279_v51, %v8098_v0  ;;  %8739 = vmatprep.mubr.bf16.mxu1 %v17324_v48  ;;  %v8100_v52 = vpop.f32.mrf.mxu0 }
 0x374   : > { %v8281_v45 = vpop.f32.mrf.mxu1 }
 0x375   : > { %v17507_v30 = vadd.f32 %v8281_v45, %v8100_v52  ;;  %v8102_v37 = vpop.f32.mrf.mxu0  ;;  %v5645_v45 = vld [vmem:[%s13661_s25 + $0x2b0] sm:$0xff] }
 0x376   : > { %v8283_v59 = vpop.f32.mrf.mxu1 }
 0x377   : > { %v17512_v50 = vadd.f32 %v8283_v59, %v8102_v37  ;;  %v8104_v13 = vpop.f32.mrf.mxu0 }
 0x378   : > { %v8285_v42 = vpop.f32.mrf.mxu1 }
 0x379   : > { %v17517_v35 = vadd.f32 %v8285_v42, %v8104_v13  ;;  %v8108_v31 = vpop.f32.mrf.mxu0  ;;  %8559 = vmatmul.mubr.bf16.gmra.mxu0 %v17510_v44  ;;  %v17549_v42 = vld [vmem:[%s13661_s25 + $0x280] ss:$24 sps:$4 sm:$0xff]  }
 0x37a   : > { %v8289_v48 = vpop.f32.mrf.mxu1  ;;  %8740 = vmatmul.mubr.bf16.gmra.mxu1 %v17330_v39  ;;  %11723 = vmatprep.mubr.msk.bf16.mxu0 %vm7986_vm3, %v17515_v3 }
 0x37b   : > { %v17521_v56 = vadd.f32 %v8289_v48, %v8108_v31  ;;  %8749 = vmatprep.mubr.bf16.mxu1 %v17334_v38  ;;  %v8110_v40 = vpop.f32.mrf.mxu0  ;;  %v17553_v48 = vcombine.high %v5645_v45, %v5645_v45 }
 0x37c   : > { %v8291_v10 = vpop.f32.mrf.mxu1 }
 0x37d   : > { %v17526_v21 = vadd.f32 %v8291_v10, %v8110_v40  ;;  %v8112_v17 = vpop.f32.mrf.mxu0  ;;  %18898 = vst [vmem:[#allocation6_spill] sm:$0xff] %v17553_v48 }
 0x37e   : > { %v8293_v9 = vpop.f32.mrf.mxu1 }
 0x37f   : > { %v17531_v43 = vadd.f32 %v8293_v9, %v8112_v17  ;;  %v8114_v39 = vpop.f32.mrf.mxu0 }
 0x380   : > { %v8295_v34 = vpop.f32.mrf.mxu1 }
 0x381   : > { %v17536_v33 = vadd.f32 %v8295_v34, %v8114_v39  ;;  %v8118_v24 = vpop.f32.mrf.mxu0  ;;  %8569 = vmatmul.mubr.bf16.gmra.mxu0 %v17529_v32 }
 0x382   : > { %v8299_v38 = vpop.f32.mrf.mxu1  ;;  %8750 = vmatmul.mubr.bf16.gmra.mxu1 %v17340_v54  ;;  %11724 = vmatprep.mubr.msk.bf16.mxu0 %vm7986_vm3, %v17534_v20 }
 0x383   : > { %v17540_v0 = vadd.f32 %v8299_v38, %v8118_v24  ;;  %8759 = vmatprep.mubr.bf16.mxu1 %v17344_v23  ;;  %v8120_v51 = vpop.f32.mrf.mxu0 }
 0x384   : > { %v8301_v52 = vpop.f32.mrf.mxu1 }
 0x385   : > { %v17546_v37 = vadd.f32 %v8301_v52, %v8120_v51  ;;  %v8122_v59 = vpop.f32.mrf.mxu0  ;;  %v17566_v52 = vcombine.low %v5645_v45, %v5645_v45 }
 0x386   : > { %v8303_v13 = vpop.f32.mrf.mxu1 }
 0x387   : > { %v17551_v31 = vadd.f32 %v8303_v13, %v8122_v59  ;;  %v8124_v54 = vpop.f32.mrf.mxu0  ;;  %18899 = vst [vmem:[#allocation7_spill] sm:$0xff] %v17566_v52 }
 0x388   : > { %v8305_v40 = vpop.f32.mrf.mxu1 }
 0x389   : > { %v17555_v10 = vadd.f32 %v8305_v40, %v8124_v54  ;;  %v8128_v17 = vpop.f32.mrf.mxu0  ;;  %8579 = vmatmul.mubr.bf16.gmra.mxu0 %v17549_v42 }
 0x38a   : > { %v8309_v9 = vpop.f32.mrf.mxu1  ;;  %8760 = vmatmul.mubr.bf16.gmra.mxu1 %v17352_v46  ;;  %11725 = vmatprep.mubr.msk.bf16.mxu0 %vm7986_vm3, %v17553_v48 }
 0x38b   : > { %v17559_v23 = vadd.f32 %v8309_v9, %v8128_v17  ;;  %8769 = vmatprep.mubr.bf16.mxu1 %v17355_v11  ;;  %v8130_v39 = vpop.f32.mrf.mxu0  ;;  %v13323_v11 = vld [vmem:[#allocation2 + $0x198] ss:$28 sps:$4 sm:$0xff]  }
 0x38c   : > { %v8311_v34 = vpop.f32.mrf.mxu1 }
 0x38d   : > { %v17564_v24 = vadd.f32 %v8311_v34, %v8130_v39  ;;  %v8132_v38 = vpop.f32.mrf.mxu0  ;;  %v17577_v39 = vld [vmem:[%s13661_s25 + $0xc] ss:$24 sps:$4 sm:$0xff]  }
 0x38e   : > { %v8313_v51 = vpop.f32.mrf.mxu1  ;;  %18902 = vst [vmem:[#allocation10_spill] sm:$0xff] %v17577_v39 }
 0x38f   : > { %v17568_v59 = vadd.f32 %v8313_v51, %v8132_v38  ;;  %v8134_v13 = vpop.f32.mrf.mxu0 }
 0x390   : > { %v8315_v46 = vpop.f32.mrf.mxu1 }
 0x391   : > { %v17570_v54 = vadd.f32 %v8315_v46, %v8134_v13  ;;  %v8138_v40 = vpop.f32.mrf.mxu0  ;;  %8589 = vmatmul.mubr.bf16.gmra.mxu0 %v17566_v52  ;;  %v13334_v52 = vld [vmem:[#allocation2 + $0x4e4] ss:$28 sps:$4 sm:$0xff]  }
 0x392   : > { %v8319_v17 = vpop.f32.mrf.mxu1  ;;  %8770 = vmatmul.mubr.bf16.gmra.mxu1 %v17365_v27  ;;  %8810 = vmatprep.mubr.bf16.mxu0 %v17577_v39  ;;  %v13326_v27 = vld [vmem:[#allocation2 + $0x518] ss:$28 sps:$4 sm:$0xff]   ;;  %v13331_v39 = vld [vmem:[#allocation2 + $0x164] ss:$28 sps:$4 sm:$0xff]  }
 0x393   : > { %18900 = vst [vmem:[#allocation8_spill] sm:$0xff] %v17570_v54  ;;  %v17574_v9 = vadd.f32 %v8319_v17, %v8138_v40  ;;  %11727 = vmatprep.mubr.msk.bf16.mxu1 %vm7986_vm3, %v17363_v14  ;;  %v8140_v45 = vpop.f32.mrf.mxu0  ;;  %v17589_v54 = vld [vmem:[%s13661_s25 + $0x8] ss:$24 sps:$4 sm:$0xff]  }
 0x394   : > { %v8321_v34 = vpop.f32.mrf.mxu1  ;;  %18905 = vst [vmem:[#allocation13_spill] sm:$0xff] %v17589_v54 }
 0x395   : > { %18901 = vst [vmem:[#allocation9_spill] sm:$0xff] %v17574_v9  ;;  %v17582_v38 = vadd.f32 %v8321_v34, %v8140_v45  ;;  %v8142_v51 = vpop.f32.mrf.mxu0  ;;  %v13329_v34 = vld [vmem:[#allocation2 + $0x160] ss:$28 sps:$4 sm:$0xff]  }
 0x396   : > { %v8323_v13 = vpop.f32.mrf.mxu1 }
 0x397   : > { %v17584_v46 = vadd.f32 %v8323_v13, %v8142_v51  ;;  %v8144_v40 = vpop.f32.mrf.mxu0  ;;  %v13332_v51 = vld [vmem:[#allocation2 + $0x4e0] ss:$28 sps:$4 sm:$0xff]  }
 0x398   : > { %v8325_v17 = vpop.f32.mrf.mxu1 }
 0x399   : > { %18903 = vst [vmem:[#allocation11_spill] sm:$0xff] %v17584_v46  ;;  %v17586_v9 = vadd.f32 %v8325_v17, %v8144_v40  ;;  %v8148_v8 = vpop.f32.mrf.mxu0  ;;  %8811 = vmatmul.mubr.bf16.vlgmr.msra.gmra.mxu0 %v17589_v54  ;;  %v17596_v40 = vld [vmem:[%s13661_s25 + $0x3c] ss:$24 sps:$4 sm:$0xff]   ;;  %v13337_v17 = vld [vmem:[#allocation2 + $0x12c] ss:$28 sps:$4 sm:$0xff]  }
 0x39a   : > { %v8329_v14 = vpop.f32.mrf.mxu1  ;;  %8992 = vmatmul.mubr.bf16.vlgmr.msra.gmra.mxu1 %v17375_v4  ;;  %9141 = vmatpush1.bf16.msra.mxu0 %v13323_v11  ;;  %18907 = vst [vmem:[#allocation15_spill] sm:$0xff] %v17596_v40 }
 0x39b   : > { %18904 = vst [vmem:[#allocation12_spill] sm:$0xff] %v17586_v9  ;;  %v17593_v45 = vadd.f32 %v8329_v14, %v8148_v8  ;;  %9322 = vmatpush1.bf16.msra.mxu1 %v13326_v27  ;;  %v8150_v13 = vpop.f32.mrf.mxu0  ;;  %8820 = vmatprep.mubr.bf16.mxu0 %v17596_v40  ;;  %v13340_v9 = vld [vmem:[#allocation2 + $0x4ac] ss:$28 sps:$4 sm:$0xff]  }
 0x39c   : > { %v8331_v46 = vpop.f32.mrf.mxu1  ;;  %11728 = vmatprep.mubr.msk.bf16.mxu1 %vm7986_vm3, %v17378_v7  ;;  %9142 = vmatprep.subr.bf16.mxu0 %v13331_v39  ;;  %v13338_v40 = vld [vmem:[#allocation2 + $0x4a8] ss:$28 sps:$4 sm:$0xff]  }
 0x39d   : > { %18906 = vst [vmem:[#allocation14_spill] sm:$0xff] %v17593_v45  ;;  %v17601_v54 = vadd.f32 %v8331_v46, %v8150_v13  ;;  %9323 = vmatprep.subr.bf16.mxu1 %v13334_v52  ;;  %v8152_v8 = vpop.f32.mrf.mxu0  ;;  %v13335_v45 = vld [vmem:[#allocation2 + $0x128] ss:$28 sps:$4 sm:$0xff]   ;;  %v13343_v46 = vld [vmem:[#allocation2 + $0xf4] ss:$28 sps:$4 sm:$0xff]  }
 0x39e   : > { %v8333_v11 = vpop.f32.mrf.mxu1  ;;  %9143 = vmatpush1.bf16.msra.mxu0 %v13329_v34  ;;  %v13346_v13 = vld [vmem:[#allocation2 + $0x474] ss:$28 sps:$4 sm:$0xff]  }
 0x39f   : > { %18908 = vst [vmem:[#allocation16_spill] sm:$0xff] %v17601_v54  ;;  %v17603_v27 = vadd.f32 %v8333_v11, %v8152_v8  ;;  %9324 = vmatpush1.bf16.msra.mxu1 %v13332_v51  ;;  %v8154_v4 = vpop.f32.mrf.mxu0  ;;  %9144 = vmatprep.subr.bf16.mxu0 %v13337_v17  ;;  %v17608_v54 = vld [vmem:[%s13661_s25 + $0x38] ss:$24 sps:$4 sm:$0xff]   ;;  %v17615_v51 = vld [vmem:[%s13661_s25 + $0x6c] ss:$24 sps:$4 sm:$0xff]  }
 0x3a0   : > { %v8335_v14 = vpop.f32.mrf.mxu1  ;;  %9325 = vmatprep.subr.bf16.mxu1 %v13340_v9  ;;  %18909 = vst [vmem:[#allocation17_spill] sm:$0xff] %v17608_v54  ;;  %18911 = vst [vmem:[#allocation19_spill] sm:$0xff] %v17615_v51  ;;  %v13341_v8 = vld [vmem:[#allocation2 + $0xf0] ss:$28 sps:$4 sm:$0xff]  }
 0x3a1   : > { %v17605_v7 = vadd.f32 %v8335_v14, %v8154_v4  ;;  %v8158_v39 = vpop.f32.mrf.mxu0  ;;  %8821 = vmatmul.mubr.bf16.gmra.mxu0 %v17608_v54  ;;  %v13344_v11 = vld [vmem:[#allocation2 + $0x470] ss:$28 sps:$4 sm:$0xff]   ;;  %v13352_v14 = vld [vmem:[#allocation2 + $0x43c] ss:$28 sps:$4 sm:$0xff]  }
 0x3a2   : > { %v8339_v52 = vpop.f32.mrf.mxu1  ;;  %9002 = vmatmul.mubr.bf16.gmra.mxu1 %v17386_v53  ;;  %8830 = vmatprep.mubr.bf16.mxu0 %v17615_v51  ;;  %v13349_v53 = vld [vmem:[#allocation2 + $0xbc] ss:$28 sps:$4 sm:$0xff]  }
 0x3a3   : > { %v17612_v34 = vadd.f32 %v8339_v52, %v8158_v39  ;;  %11729 = vmatprep.mubr.msk.bf16.mxu1 %vm7986_vm3, %v17389_v61  ;;  %v8160_v9 = vpop.f32.mrf.mxu0  ;;  %9145 = vmatpush1.bf16.msra.mxu0 %v13335_v45  ;;  %v13347_v61 = vld [vmem:[#allocation2 + $0xb8] ss:$28 sps:$4 sm:$0xff]  }
 0x3a4   : > { %v8341_v17 = vpop.f32.mrf.mxu1  ;;  %9326 = vmatpush1.bf16.msra.mxu1 %v13338_v40  ;;  %9146 = vmatprep.subr.bf16.mxu0 %v13343_v46  ;;  %v13350_v45 = vld [vmem:[#allocation2 + $0x438] ss:$28 sps:$4 sm:$0xff]   ;;  %v13355_v46 = vld [vmem:[#allocation2 + $0x84] ss:$28 sps:$4 sm:$0xff]  }
 0x3a5   : > { %18910 = vst [vmem:[#allocation18_spill] sm:$0xff] %v17612_v34  ;;  %v17620_v4 = vadd.f32 %v8341_v17, %v8160_v9  ;;  %9327 = vmatprep.subr.bf16.mxu1 %v13346_v13  ;;  %v8162_v39 = vpop.f32.mrf.mxu0  ;;  %v13358_v13 = vld [vmem:[#allocation2 + $0x404] ss:$28 sps:$4 sm:$0xff]  }
 0x3a6   : > { %v8343_v52 = vpop.f32.mrf.mxu1 }
 0x3a7   : > { %18912 = vst [vmem:[#allocation20_spill] sm:$0xff] %v17620_v4  ;;  %v17622_v34 = vadd.f32 %v8343_v52, %v8162_v39  ;;  %v8164_v51 = vpop.f32.mrf.mxu0  ;;  %9147 = vmatpush1.bf16.msra.mxu0 %v13341_v8  ;;  %v17627_v4 = vld [vmem:[%s13661_s25 + $0x68] ss:$24 sps:$4 sm:$0xff]   ;;  %v17634_v8 = vld [vmem:[%s13661_s25 + $0x9c] ss:$24 sps:$4 sm:$0xff]  }
 0x3a8   : > { %v8345_v54 = vpop.f32.mrf.mxu1  ;;  %9328 = vmatpush1.bf16.msra.mxu1 %v13344_v11  ;;  %9148 = vmatprep.subr.bf16.mxu0 %v13349_v53  ;;  %18913 = vst [vmem:[#allocation21_spill] sm:$0xff] %v17627_v4  ;;  %18915 = vst [vmem:[#allocation23_spill] sm:$0xff] %v17634_v8  ;;  %v13353_v11 = vld [vmem:[#allocation2 + $0x80] ss:$28 sps:$4 sm:$0xff]   ;;  %v13364_v52 = vld [vmem:[#allocation2 + $0x3cc] ss:$28 sps:$4 sm:$0xff]  }
 0x3a9   : > { %v17624_v40 = vadd.f32 %v8345_v54, %v8164_v51  ;;  %9329 = vmatprep.subr.bf16.mxu1 %v13352_v14  ;;  %v8168_v9 = vpop.f32.mrf.mxu0  ;;  %8831 = vmatmul.mubr.bf16.gmra.mxu0 %v17627_v4  ;;  %v13356_v53 = vld [vmem:[#allocation2 + $0x400] ss:$28 sps:$4 sm:$0xff]  }
 0x3aa   : > { %v8349_v17 = vpop.f32.mrf.mxu1  ;;  %9012 = vmatmul.mubr.bf16.gmra.mxu1 %v17397_v25  ;;  %8840 = vmatprep.mubr.bf16.mxu0 %v17634_v8  ;;  %v13361_v25 = vld [vmem:[#allocation2 + $0x4c] ss:$28 sps:$4 sm:$0xff]  }
 0x3ab   : > { %v17631_v39 = vadd.f32 %v8349_v17, %v8168_v9  ;;  %11730 = vmatprep.mubr.msk.bf16.mxu1 %vm7986_vm3, %v17400_v29  ;;  %v8170_v54 = vpop.f32.mrf.mxu0  ;;  %9149 = vmatpush1.bf16.msra.mxu0 %v13347_v61  ;;  %v13359_v29 = vld [vmem:[#allocation2 + $0x48] ss:$28 sps:$4 sm:$0xff]  }
 0x3ac   : > { %v8351_v51 = vpop.f32.mrf.mxu1  ;;  %9330 = vmatpush1.bf16.msra.mxu1 %v13350_v45  ;;  %9150 = vmatprep.subr.bf16.mxu0 %v13355_v46  ;;  %v13362_v61 = vld [vmem:[#allocation2 + $0x3c8] ss:$28 sps:$4 sm:$0xff]   ;;  %v13367_v46 = vld [vmem:[#allocation2 + $0x14] ss:$28 sps:$4 sm:$0xff]  }
 0x3ad   : > { %18914 = vst [vmem:[#allocation22_spill] sm:$0xff] %v17631_v39  ;;  %v17639_v14 = vadd.f32 %v8351_v51, %v8170_v54  ;;  %9331 = vmatprep.subr.bf16.mxu1 %v13358_v13  ;;  %v8172_v9 = vpop.f32.mrf.mxu0  ;;  %v13370_v13 = vld [vmem:[#allocation2 + $0x394] ss:$28 sps:$4 sm:$0xff]  }
 0x3ae   : > { %v8353_v17 = vpop.f32.mrf.mxu1 }
 0x3af   : > { %18916 = vst [vmem:[#allocation24_spill] sm:$0xff] %v17639_v14  ;;  %v17641_v39 = vadd.f32 %v8353_v17, %v8172_v9  ;;  %v8174_v8 = vpop.f32.mrf.mxu0  ;;  %9151 = vmatpush1.bf16.msra.mxu0 %v13353_v11  ;;  %v17646_v14 = vld [vmem:[%s13661_s25 + $0x98] ss:$24 sps:$4 sm:$0xff]   ;;  %v17653_v11 = vld [vmem:[%s13661_s25 + $0xcc] ss:$24 sps:$4 sm:$0xff]  }
 0x3b0   : > { %v8355_v4 = vpop.f32.mrf.mxu1  ;;  %9332 = vmatpush1.bf16.msra.mxu1 %v13356_v53  ;;  %9152 = vmatprep.subr.bf16.mxu0 %v13361_v25  ;;  %18917 = vst [vmem:[#allocation25_spill] sm:$0xff] %v17646_v14  ;;  %18919 = vst [vmem:[#allocation27_spill] sm:$0xff] %v17653_v11  ;;  %v13365_v53 = vld [vmem:[#allocation2 + $0x10] ss:$28 sps:$4 sm:$0xff]   ;;  %v13376_v17 = vld [vmem:[#allocation2 + $0x6dc] ss:$28 sps:$4 sm:$0xff]  }
 0x3b1   : > { %v17643_v45 = vadd.f32 %v8355_v4, %v8174_v8  ;;  %9333 = vmatprep.subr.bf16.mxu1 %v13364_v52  ;;  %v8178_v54 = vpop.f32.mrf.mxu0  ;;  %8841 = vmatmul.mubr.bf16.gmra.mxu0 %v17646_v14  ;;  %v13368_v25 = vld [vmem:[#allocation2 + $0x390] ss:$28 sps:$4 sm:$0xff]  }
 0x3b2   : > { %v8359_v51 = vpop.f32.mrf.mxu1  ;;  %9022 = vmatmul.mubr.bf16.gmra.mxu1 %v17408_v19  ;;  %8850 = vmatprep.mubr.bf16.mxu0 %v17653_v11  ;;  %v13373_v19 = vld [vmem:[#allocation2 + $0x35c] ss:$28 sps:$4 sm:$0xff]  }
 0x3b3   : > { %v17650_v9 = vadd.f32 %v8359_v51, %v8178_v54  ;;  %11731 = vmatprep.mubr.msk.bf16.mxu1 %vm7986_vm3, %v17411_v2  ;;  %v8180_v4 = vpop.f32.mrf.mxu0  ;;  %9153 = vmatpush1.bf16.msra.mxu0 %v13359_v29  ;;  %v13371_v2 = vld [vmem:[#allocation2 + $0x358] ss:$28 sps:$4 sm:$0xff]  }
 0x3b4   : > { %v8361_v8 = vpop.f32.mrf.mxu1  ;;  %9334 = vmatpush1.bf16.msra.mxu1 %v13362_v61  ;;  %9154 = vmatprep.subr.bf16.mxu0 %v13367_v46  ;;  %v13374_v29 = vld [vmem:[#allocation2 + $0x6d8] ss:$28 sps:$4 sm:$0xff]   ;;  %v13379_v46 = vld [vmem:[#allocation2 + $0x324] ss:$28 sps:$4 sm:$0xff]  }
 0x3b5   : > { %18918 = vst [vmem:[#allocation26_spill] sm:$0xff] %v17650_v9  ;;  %v17658_v52 = vadd.f32 %v8361_v8, %v8180_v4  ;;  %9335 = vmatprep.subr.bf16.mxu1 %v13370_v13  ;;  %v8182_v54 = vpop.f32.mrf.mxu0  ;;  %v13382_v13 = vld [vmem:[#allocation2 + $0x6a4] ss:$28 sps:$4 sm:$0xff]  }
 0x3b6   : > { %v8363_v51 = vpop.f32.mrf.mxu1 }
 0x3b7   : > { %18920 = vst [vmem:[#allocation28_spill] sm:$0xff] %v17658_v52  ;;  %v17660_v9 = vadd.f32 %v8363_v51, %v8182_v54  ;;  %v8184_v11 = vpop.f32.mrf.mxu0  ;;  %9155 = vmatpush1.bf16.msra.mxu0 %v13365_v53  ;;  %v17665_v52 = vld [vmem:[%s13661_s25 + $0xc8] ss:$24 sps:$4 sm:$0xff]   ;;  %v17672_v53 = vld [vmem:[%s13661_s25 + $0xfc] ss:$24 sps:$4 sm:$0xff]  }
 0x3b8   : > { %v8365_v14 = vpop.f32.mrf.mxu1  ;;  %9336 = vmatpush1.bf16.msra.mxu1 %v13368_v25  ;;  %9156 = vmatprep.subr.bf16.mxu0 %v13373_v19  ;;  %18921 = vst [vmem:[#allocation29_spill] sm:$0xff] %v17665_v52  ;;  %18923 = vst [vmem:[#allocation31_spill] sm:$0xff] %v17672_v53  ;;  %v13377_v25 = vld [vmem:[#allocation2 + $0x320] ss:$28 sps:$4 sm:$0xff]   ;;  %v13388_v51 = vld [vmem:[#allocation2 + $0x66c] ss:$28 sps:$4 sm:$0xff]  }
 0x3b9   : > { %v17662_v61 = vadd.f32 %v8365_v14, %v8184_v11  ;;  %9337 = vmatprep.subr.bf16.mxu1 %v13376_v17  ;;  %v8188_v4 = vpop.f32.mrf.mxu0  ;;  %8851 = vmatmul.mubr.bf16.gmra.mxu0 %v17665_v52  ;;  %v13380_v19 = vld [vmem:[#allocation2 + $0x6a0] ss:$28 sps:$4 sm:$0xff]  }
 0x3ba   : > { %v8369_v8 = vpop.f32.mrf.mxu1  ;;  %9032 = vmatmul.mubr.bf16.gmra.mxu1 %v17419_v26  ;;  %8860 = vmatprep.mubr.bf16.mxu0 %v17672_v53  ;;  %v13385_v26 = vld [vmem:[#allocation2 + $0x2ec] ss:$28 sps:$4 sm:$0xff]  }
 0x3bb   : > { %v17669_v54 = vadd.f32 %v8369_v8, %v8188_v4  ;;  %11732 = vmatprep.mubr.msk.bf16.mxu1 %vm7986_vm3, %v17422_v15  ;;  %v8190_v14 = vpop.f32.mrf.mxu0  ;;  %9157 = vmatpush2.bf16.msra.mxu0 %v13371_v2  ;;  %v13383_v15 = vld [vmem:[#allocation2 + $0x2e8] ss:$28 sps:$4 sm:$0xff]  }
 0x3bc   : > { %v8371_v11 = vpop.f32.mrf.mxu1  ;;  %9338 = vmatpush2.bf16.msra.mxu1 %v13374_v29  ;;  %9158 = vmatprep.subr.bf16.mxu0 %v13379_v46  ;;  %v13386_v2 = vld [vmem:[#allocation2 + $0x668] ss:$28 sps:$4 sm:$0xff]   ;;  %v13391_v46 = vld [vmem:[#allocation2 + $0x2b4] ss:$28 sps:$4 sm:$0xff]  }
 0x3bd   : > { %18922 = vst [vmem:[#allocation30_spill] sm:$0xff] %v17669_v54  ;;  %v17677_v17 = vadd.f32 %v8371_v11, %v8190_v14  ;;  %9339 = vmatprep.subr.bf16.mxu1 %v13382_v13  ;;  %v8192_v4 = vpop.f32.mrf.mxu0  ;;  %v13394_v13 = vld [vmem:[#allocation2 + $0x634] ss:$28 sps:$4 sm:$0xff]  }
 0x3be   : > { %v8373_v8 = vpop.f32.mrf.mxu1 }
 0x3bf   : > { %18924 = vst [vmem:[#allocation32_spill] sm:$0xff] %v17677_v17  ;;  %v17679_v54 = vadd.f32 %v8373_v8, %v8192_v4  ;;  %v8194_v53 = vpop.f32.mrf.mxu0  ;;  %9159 = vmatpush2.bf16.msra.mxu0 %v13377_v25  ;;  %v17684_v17 = vld [vmem:[%s13661_s25 + $0xf8] ss:$24 sps:$4 sm:$0xff]   ;;  %v17691_v25 = vld [vmem:[%s13661_s25 + $0x12c] ss:$24 sps:$4 sm:$0xff]  }
 0x3c0   : > { %v8375_v52 = vpop.f32.mrf.mxu1  ;;  %9340 = vmatpush2.bf16.msra.mxu1 %v13380_v19  ;;  %9160 = vmatprep.subr.bf16.mxu0 %v13385_v26  ;;  %18925 = vst [vmem:[#allocation33_spill] sm:$0xff] %v17684_v17  ;;  %18927 = vst [vmem:[#allocation35_spill] sm:$0xff] %v17691_v25  ;;  %v13389_v19 = vld [vmem:[#allocation2 + $0x2b0] ss:$28 sps:$4 sm:$0xff]   ;;  %v13400_v8 = vld [vmem:[#allocation2 + $0x5fc] ss:$28 sps:$4 sm:$0xff]  }
 0x3c1   : > { %v17681_v29 = vadd.f32 %v8375_v52, %v8194_v53  ;;  %9341 = vmatprep.subr.bf16.mxu1 %v13388_v51  ;;  %v8198_v14 = vpop.f32.mrf.mxu0  ;;  %8861 = vmatmul.mubr.bf16.gmra.mxu0 %v17684_v17  ;;  %v13392_v26 = vld [vmem:[#allocation2 + $0x630] ss:$28 sps:$4 sm:$0xff]  }
 0x3c2   : > { %v8379_v11 = vpop.f32.mrf.mxu1  ;;  %9042 = vmatmul.mubr.bf16.gmra.mxu1 %v17432_v62  ;;  %8870 = vmatprep.mubr.bf16.mxu0 %v17691_v25  ;;  %v13397_v62 = vld [vmem:[#allocation2 + $0x27c] ss:$28 sps:$4 sm:$0xff]  }
 0x3c3   : > { %v17688_v4 = vadd.f32 %v8379_v11, %v8198_v14  ;;  %11733 = vmatprep.mubr.msk.bf16.mxu1 %vm7986_vm3, %v17435_v41  ;;  %v8200_v52 = vpop.f32.mrf.mxu0  ;;  %9161 = vmatpush2.bf16.msra.mxu0 %v13383_v15  ;;  %v13395_v41 = vld [vmem:[#allocation2 + $0x278] ss:$28 sps:$4 sm:$0xff]  }
 0x3c4   : > { %v8381_v53 = vpop.f32.mrf.mxu1  ;;  %9342 = vmatpush2.bf16.msra.mxu1 %v13386_v2  ;;  %9162 = vmatprep.subr.bf16.mxu0 %v13391_v46  ;;  %v13398_v15 = vld [vmem:[#allocation2 + $0x5f8] ss:$28 sps:$4 sm:$0xff]   ;;  %v13403_v46 = vld [vmem:[#allocation2 + $0x244] ss:$28 sps:$4 sm:$0xff]  }
 0x3c5   : > { %18926 = vst [vmem:[#allocation34_spill] sm:$0xff] %v17688_v4  ;;  %v17696_v51 = vadd.f32 %v8381_v53, %v8200_v52  ;;  %9343 = vmatprep.subr.bf16.mxu1 %v13394_v13  ;;  %v8202_v14 = vpop.f32.mrf.mxu0  ;;  %v13406_v13 = vld [vmem:[#allocation2 + $0x5c4] ss:$28 sps:$4 sm:$0xff]  }
 0x3c6   : > { %v8383_v11 = vpop.f32.mrf.mxu1 }
 0x3c7   : > { %18928 = vst [vmem:[#allocation36_spill] sm:$0xff] %v17696_v51  ;;  %v17698_v4 = vadd.f32 %v8383_v11, %v8202_v14  ;;  %v8204_v25 = vpop.f32.mrf.mxu0  ;;  %9163 = vmatpush2.bf16.msra.mxu0 %v13389_v19  ;;  %v17703_v51 = vld [vmem:[%s13661_s25 + $0x128] ss:$24 sps:$4 sm:$0xff]   ;;  %v17710_v19 = vld [vmem:[%s13661_s25 + $0x15c] ss:$24 sps:$4 sm:$0xff]  }
 0x3c8   : > { %v8385_v17 = vpop.f32.mrf.mxu1  ;;  %9344 = vmatpush2.bf16.msra.mxu1 %v13392_v26  ;;  %9164 = vmatprep.subr.bf16.mxu0 %v13397_v62  ;;  %18929 = vst [vmem:[#allocation37_spill] sm:$0xff] %v17703_v51  ;;  %18931 = vst [vmem:[#allocation39_spill] sm:$0xff] %v17710_v19  ;;  %v13401_v26 = vld [vmem:[#allocation2 + $0x240] ss:$28 sps:$4 sm:$0xff]   ;;  %v13412_v11 = vld [vmem:[#allocation2 + $0x58c] ss:$28 sps:$4 sm:$0xff]  }
 0x3c9   : > { %v17700_v2 = vadd.f32 %v8385_v17, %v8204_v25  ;;  %9345 = vmatprep.subr.bf16.mxu1 %v13400_v8  ;;  %v8208_v52 = vpop.f32.mrf.mxu0  ;;  %8871 = vmatmul.mubr.bf16.gmra.mxu0 %v17703_v51  ;;  %v13404_v62 = vld [vmem:[#allocation2 + $0x5c0] ss:$28 sps:$4 sm:$0xff]  }
 0x3ca   : > { %v8389_v53 = vpop.f32.mrf.mxu1  ;;  %9052 = vmatmul.mubr.bf16.gmra.mxu1 %v17443_v57  ;;  %8880 = vmatprep.mubr.bf16.mxu0 %v17710_v19  ;;  %v13409_v57 = vld [vmem:[#allocation2 + $0x20c] ss:$28 sps:$4 sm:$0xff]  }
 0x3cb   : > { %v17707_v14 = vadd.f32 %v8389_v53, %v8208_v52  ;;  %11734 = vmatprep.mubr.msk.bf16.mxu1 %vm7986_vm3, %v17446_v63  ;;  %v8210_v17 = vpop.f32.mrf.mxu0  ;;  %9165 = vmatpush2.bf16.msra.mxu0 %v13395_v41  ;;  %v13407_v63 = vld [vmem:[#allocation2 + $0x208] ss:$28 sps:$4 sm:$0xff]  }
 0x3cc   : > { %v8391_v25 = vpop.f32.mrf.mxu1  ;;  %9346 = vmatpush2.bf16.msra.mxu1 %v13398_v15  ;;  %9166 = vmatprep.subr.bf16.mxu0 %v13403_v46  ;;  %v13410_v41 = vld [vmem:[#allocation2 + $0x588] ss:$28 sps:$4 sm:$0xff]   ;;  %v13415_v46 = vld [vmem:[#allocation2 + $0x1d4] ss:$28 sps:$4 sm:$0xff]  }
 0x3cd   : > { %18930 = vst [vmem:[#allocation38_spill] sm:$0xff] %v17707_v14  ;;  %v17715_v8 = vadd.f32 %v8391_v25, %v8210_v17  ;;  %9347 = vmatprep.subr.bf16.mxu1 %v13406_v13  ;;  %v8212_v52 = vpop.f32.mrf.mxu0  ;;  %v13418_v13 = vld [vmem:[#allocation2 + $0x554] ss:$28 sps:$4 sm:$0xff]  }
 0x3ce   : > { %v8393_v53 = vpop.f32.mrf.mxu1 }
 0x3cf   : > { %18932 = vst [vmem:[#allocation40_spill] sm:$0xff] %v17715_v8  ;;  %v17717_v14 = vadd.f32 %v8393_v53, %v8212_v52  ;;  %v8214_v19 = vpop.f32.mrf.mxu0  ;;  %9167 = vmatpush2.bf16.msra.mxu0 %v13401_v26  ;;  %v17722_v8 = vld [vmem:[%s13661_s25 + $0x158] ss:$24 sps:$4 sm:$0xff]   ;;  %v17729_v26 = vld [vmem:[%s13661_s25 + $0x18c] ss:$24 sps:$4 sm:$0xff]  }
 0x3d0   : > { %v8395_v51 = vpop.f32.mrf.mxu1  ;;  %9348 = vmatpush2.bf16.msra.mxu1 %v13404_v62  ;;  %9168 = vmatprep.subr.bf16.mxu0 %v13409_v57  ;;  %18934 = vst [vmem:[#allocation42_spill] sm:$0xff] %v17729_v26  ;;  %v13413_v62 = vld [vmem:[#allocation2 + $0x1d0] ss:$28 sps:$4 sm:$0xff]   ;;  %v13422_v53 = vld [vmem:[#allocation2 + $0x360] ss:$28 sps:$4 sm:$0xff]  }
 0x3d1   : > { %v17719_v15 = vadd.f32 %v8395_v51, %v8214_v19  ;;  %9349 = vmatprep.subr.bf16.mxu1 %v13412_v11  ;;  %v8218_v17 = vpop.f32.mrf.mxu0  ;;  %8881 = vmatmul.mubr.bf16.gmra.mxu0 %v17722_v8  ;;  %v13416_v57 = vld [vmem:[#allocation2 + $0x550] ss:$28 sps:$4 sm:$0xff]  }
 0x3d2   : > { %v8399_v25 = vpop.f32.mrf.mxu1  ;;  %9062 = vmatmul.mubr.bf16.gmra.mxu1 %v17454_v6  ;;  %8890 = vmatprep.mubr.bf16.mxu0 %v17729_v26  ;;  %v13421_v6 = vld [vmem:[#allocation2 + $0x89c] ss:$28 sps:$4 sm:$0xff]  }
 0x3d3   : > { %v17726_v52 = vadd.f32 %v8399_v25, %v8218_v17  ;;  %11735 = vmatprep.mubr.msk.bf16.mxu1 %vm7986_vm3, %v17457_v55  ;;  %v8220_v51 = vpop.f32.mrf.mxu0  ;;  %9169 = vmatpush2.bf16.msra.mxu0 %v13407_v63 }
 0x3d4   : > { %v8401_v19 = vpop.f32.mrf.mxu1  ;;  %9350 = vmatpush2.bf16.msra.mxu1 %v13410_v41  ;;  %9170 = vmatprep.subr.bf16.mxu0 %v13415_v46  ;;  %v17741_v46 = vld [vmem:[%s13661_s25 + $0x188] ss:$24 sps:$4 sm:$0xff]  }
 0x3d5   : > { %18933 = vst [vmem:[#allocation41_spill] sm:$0xff] %v17726_v52  ;;  %v17734_v11 = vadd.f32 %v8401_v19, %v8220_v51  ;;  %9351 = vmatprep.subr.bf16.mxu1 %v13418_v13  ;;  %v8222_v17 = vpop.f32.mrf.mxu0  ;;  %v17748_v19 = vld [vmem:[%s13661_s25 + $0x1bc] ss:$24 sps:$4 sm:$0xff]  }
 0x3d6   : > { %v8403_v25 = vpop.f32.mrf.mxu1 }
 0x3d7   : > { %v17736_v52 = vadd.f32 %v8403_v25, %v8222_v17  ;;  %v8224_v26 = vpop.f32.mrf.mxu0  ;;  %9171 = vmatpush2.bf16.msra.mxu0 %v13413_v62 }
 0x3d8   : > { %v8405_v55 = vpop.f32.mrf.mxu1  ;;  %9352 = vmatpush2.bf16.msra.mxu1 %v13416_v57  ;;  %9502 = vmatprep.subr.bf16.mxu0 %v13421_v6 }
 0x3d9   : > { %v17738_v63 = vadd.f32 %v8405_v55, %v8224_v26  ;;  %12355 = vmatprep.subr.bf16.mxu1 %v13422_v53  ;;  %v8228_v41 = vpop.f32.mrf.mxu0  ;;  %8891 = vmatmul.mubr.bf16.gmra.mxu0 %v17741_v46 }
 0x3da   : > { %v8409_v51 = vpop.f32.mrf.mxu1  ;;  %9072 = vmatmul.mubr.bf16.gmra.mxu1 %v17465_v28  ;;  %8900 = vmatprep.mubr.bf16.mxu0 %v17748_v19 }
 0x3db   : > { %v17745_v13 = vadd.f32 %v8409_v51, %v8228_v41  ;;  %11736 = vmatprep.mubr.msk.bf16.mxu1 %vm7986_vm3, %v17468_v58  ;;  %v8230_v26 = vpop.f32.mrf.mxu0  ;;  %v17758_v41 = vld [vmem:[%s13661_s25 + $0x1b8] ss:$24 sps:$4 sm:$0xff]   ;;  %v17763_v51 = vld [vmem:[%s13661_s25 + $0x1ec] ss:$24 sps:$4 sm:$0xff]  }
 0x3dc   : > { %v8411_v62 = vpop.f32.mrf.mxu1  ;;  %18936 = vst [vmem:[#allocation44_spill] sm:$0xff] %v17758_v41  ;;  %18937 = vst [vmem:[#allocation45_spill] sm:$0xff] %v17763_v51 }
 0x3dd   : > { %v17753_v57 = vadd.f32 %v8411_v62, %v8230_v26  ;;  %v8232_v6 = vpop.f32.mrf.mxu0 }
 0x3de   : > { %v8413_v53 = vpop.f32.mrf.mxu1 }
 0x3df   : > { %v8233_v17 = vpop.f32.mrf.mxu0 }
 0x3e0   : > { %v8414_v25 = vpop.f32.mrf.mxu1 }
 0x3e1   : > { %v8450_v55 = vpop.f32.mrf.mxu0  ;;  %8901 = vmatmul.mubr.bf16.gmra.mxu0 %v17758_v41 }
 0x3e2   : > { %v17755_v28 = vpop.f32.mrf.mxu1  ;;  %9082 = vmatmul.mubr.bf16.gmra.mxu1 %v17476_v1  ;;  %8910 = vmatprep.mubr.bf16.mxu0 %v17763_v51  ;;  %v8451_v62 = vadd.f32 %v8450_v55, %v17483_v5  ;;  %v17782_v5 = vld [vmem:[%s13661_s25 + $0x1e8] ss:$24 sps:$4 sm:$0xff]   ;;  %v17787_v55 = vld [vmem:[%s13661_s25 + $0x21c] ss:$24 sps:$4 sm:$0xff]  }
 0x3e3   : > { %18935 = vst [vmem:[#allocation43_spill] sm:$0xff] %v17755_v28  ;;  %11737 = vmatprep.mubr.msk.bf16.mxu1 %vm7986_vm3, %v17479_v18  ;;  %v8452_v58 = vpop.f32.mrf.mxu0 }
 0x3e4   : > { %v17768_v26 = vpop.f32.mrf.mxu1  ;;  %v8453_v6 = vadd.f32 %v8452_v58, %v17488_v12 }
 0x3e5   : > { %18938 = vst [vmem:[#allocation46_spill] sm:$0xff] %v17768_v26  ;;  %v8454_v53 = vpop.f32.mrf.mxu0 }
 0x3e6   : > { %v17772_v17 = vpop.f32.mrf.mxu1  ;;  %v12239_v1 = vpack.c.bf16 %v8453_v6, %v8451_v62  ;;  %v8455_v51 = vadd.f32 %v8454_v53, %v17493_v49 }
 0x3e7   : > { %v8456_v25 = vpop.f32.mrf.mxu0 }
 0x3e8   : > { %v17774_v28 = vpop.f32.mrf.mxu1  ;;  %10784 = vst [vmem:[%s13666_s28] sm:$0xff] %v12239_v1  ;;  %v8457_v18 = vadd.f32 %v8456_v25, %v17498_v16 }
 0x3e9   : > { %v8460_v41 = vpop.f32.mrf.mxu0  ;;  %8911 = vmatmul.mubr.bf16.gmra.mxu0 %v17782_v5 }
 0x3ea   : > { %v17779_v26 = vpop.f32.mrf.mxu1  ;;  %9092 = vmatmul.mubr.bf16.gmra.mxu1 %v17491_v36  ;;  %v12243_v12 = vpack.c.bf16 %v8457_v18, %v8455_v51  ;;  %8920 = vmatprep.mubr.bf16.mxu0 %v17787_v55  ;;  %v8461_v58 = vadd.f32 %v8460_v41, %v17502_v60  ;;  %v17807_v60 = vld [vmem:[%s13661_s25 + $0x218] ss:$24 sps:$4 sm:$0xff]   ;;  %v17812_v41 = vld [vmem:[%s13661_s25 + $0x24c] ss:$24 sps:$4 sm:$0xff]  }
 0x3eb   : > { %11738 = vmatprep.mubr.msk.bf16.mxu1 %vm7986_vm3, %v17496_v22  ;;  %v8462_v49 = vpop.f32.mrf.mxu0 }
 0x3ec   : > { %v17792_v16 = vpop.f32.mrf.mxu1  ;;  %10789 = vst [vmem:[%s13666_s28 + $0x1c] sm:$0xff] %v12243_v12  ;;  %v8463_v62 = vadd.f32 %v8462_v49, %v17507_v30 }
 0x3ed   : > { %v8464_v6 = vpop.f32.mrf.mxu0 }
 0x3ee   : > { %v17797_v36 = vpop.f32.mrf.mxu1  ;;  %v12247_v51 = vpack.c.bf16 %v8463_v62, %v8461_v58  ;;  %v8465_v22 = vadd.f32 %v8464_v6, %v17512_v50 }
 0x3ef   : > { %v8466_v53 = vpop.f32.mrf.mxu0 }
 0x3f0   : > { %v17799_v1 = vpop.f32.mrf.mxu1  ;;  %10793 = vst [vmem:[%s13666_s28 + $0x38] sm:$0xff] %v12247_v51  ;;  %v8467_v25 = vadd.f32 %v8466_v53, %v17517_v35 }
 0x3f1   : > { %v8470_v18 = vpop.f32.mrf.mxu0  ;;  %8921 = vmatmul.mubr.bf16.gmra.mxu0 %v17807_v60 }
 0x3f2   : > { %v17804_v12 = vpop.f32.mrf.mxu1  ;;  %9102 = vmatmul.mubr.bf16.gmra.mxu1 %v17510_v44  ;;  %v12251_v30 = vpack.c.bf16 %v8467_v25, %v8465_v22  ;;  %8930 = vmatprep.mubr.bf16.mxu0 %v17812_v41  ;;  %v8471_v49 = vadd.f32 %v8470_v18, %v17521_v56  ;;  %v17832_v56 = vld [vmem:[%s13661_s25 + $0x248] ss:$24 sps:$4 sm:$0xff]   ;;  %v17837_v18 = vld [vmem:[%s13661_s25 + $0x27c] ss:$24 sps:$4 sm:$0xff]  }
 0x3f3   : > { %11739 = vmatprep.mubr.msk.bf16.mxu1 %vm7986_vm3, %v17515_v3  ;;  %v8472_v50 = vpop.f32.mrf.mxu0 }
 0x3f4   : > { %v17817_v35 = vpop.f32.mrf.mxu1  ;;  %10797 = vst [vmem:[%s13666_s28 + $0x54] sm:$0xff] %v12251_v30  ;;  %v8473_v58 = vadd.f32 %v8472_v50, %v17526_v21 }
 0x3f5   : > { %v8474_v62 = vpop.f32.mrf.mxu0 }
 0x3f6   : > { %v17822_v44 = vpop.f32.mrf.mxu1  ;;  %v12255_v6 = vpack.c.bf16 %v8473_v58, %v8471_v49  ;;  %v8475_v3 = vadd.f32 %v8474_v62, %v17531_v43 }
 0x3f7   : > { %v8476_v51 = vpop.f32.mrf.mxu0 }
 0x3f8   : > { %v17824_v53 = vpop.f32.mrf.mxu1  ;;  %10801 = vst [vmem:[%s13666_s28 + $0x70] sm:$0xff] %v12255_v6  ;;  %v8477_v22 = vadd.f32 %v8476_v51, %v17536_v33 }
 0x3f9   : > { %v8480_v25 = vpop.f32.mrf.mxu0  ;;  %8931 = vmatmul.mubr.bf16.gmra.mxu0 %v17832_v56 }
 0x3fa   : > { %v17829_v30 = vpop.f32.mrf.mxu1  ;;  %9112 = vmatmul.mubr.bf16.gmra.mxu1 %v17529_v32  ;;  %v12259_v21 = vpack.c.bf16 %v8477_v22, %v8475_v3  ;;  %8940 = vmatprep.mubr.bf16.mxu0 %v17837_v18  ;;  %v8481_v50 = vadd.f32 %v8480_v25, %v17540_v0 }
 0x3fb   : > { %11740 = vmatprep.mubr.msk.bf16.mxu1 %vm7986_vm3, %v17534_v20  ;;  %v8482_v43 = vpop.f32.mrf.mxu0 }
 0x3fc   : > { %v17842_v33 = vpop.f32.mrf.mxu1  ;;  %10805 = vst [vmem:[%s13666_s28 + $0x8c] sm:$0xff] %v12259_v21  ;;  %v8483_v49 = vadd.f32 %v8482_v43, %v17546_v37  ;;  %v17857_v21 = vld [vmem:[%s13661_s25 + $0x278] ss:$24 sps:$4 sm:$0xff]  }
 0x3fd   : > { %18939 = vst [vmem:[#allocation47_spill] sm:$0xff] %v17842_v33  ;;  %v8484_v58 = vpop.f32.mrf.mxu0 }
 0x3fe   : > { %v17847_v62 = vpop.f32.mrf.mxu1  ;;  %v12263_v32 = vpack.c.bf16 %v8483_v49, %v8481_v50  ;;  %v8485_v20 = vadd.f32 %v8484_v58, %v17551_v31 }
 0x3ff   : > { %v8486_v6 = vpop.f32.mrf.mxu0 }
 0x400   : > { %v17849_v51 = vpop.f32.mrf.mxu1  ;;  %10809 = vst [vmem:[%s13666_s28 + $0xa8] sm:$0xff] %v12263_v32  ;;  %v8487_v3 = vadd.f32 %v8486_v6, %v17555_v10  ;;  %v18942_v6 = vld [vmem:[#allocation8_spill] sm:$0xff] }
 0x401   : > { %v8490_v22 = vpop.f32.mrf.mxu0  ;;  %8941 = vmatmul.mubr.bf16.gmra.mxu0 %v17857_v21 }
 0x402   : > { %v17854_v33 = vpop.f32.mrf.mxu1  ;;  %9122 = vmatmul.mubr.bf16.gmra.mxu1 %v17549_v42  ;;  %v12267_v0 = vpack.c.bf16 %v8487_v3, %v8485_v20  ;;  %8950 = vmatprep.mubr.bf16.mxu0 %v17357_v47  ;;  %v8491_v10 = vadd.f32 %v8490_v22, %v17559_v23  ;;  %v18945_v23 = vld [vmem:[#allocation7_spill] sm:$0xff] }
 0x403   : > { %11741 = vmatprep.mubr.msk.bf16.mxu1 %vm7986_vm3, %v17553_v48  ;;  %v8492_v37 = vpop.f32.mrf.mxu0  ;;  %v18944_v48 = vld [vmem:[#allocation5_spill] sm:$0xff]  ;;  %v17881_v22 = vld [vmem:[%s13661_s25 + $0x4] ss:$24 sps:$4 sm:$0xff]  }
 0x404   : > { %v17864_v31 = vpop.f32.mrf.mxu1  ;;  %10813 = vst [vmem:[%s13666_s28 + $0xc4] sm:$0xff] %v12267_v0  ;;  %v8493_v25 = vadd.f32 %v8492_v37, %v17564_v24  ;;  %18946 = vst [vmem:[#allocation50_spill] sm:$0xff] %v17881_v22  ;;  %v18947_v37 = vld [vmem:[#allocation10_spill] sm:$0xff] }
 0x405   : > { %v8494_v43 = vpop.f32.mrf.mxu0 }
 0x406   : > { %v17869_v50 = vpop.f32.mrf.mxu1  ;;  %v12271_v49 = vpack.c.bf16 %v8493_v25, %v8491_v10  ;;  %v8495_v32 = vadd.f32 %v8494_v43, %v17568_v59  ;;  %v18949_v59 = vld [vmem:[#allocation9_spill] sm:$0xff] }
 0x407   : > { %18940 = vst [vmem:[#allocation48_spill] sm:$0xff] %v17869_v50  ;;  %v8496_v42 = vpop.f32.mrf.mxu0 }
 0x408   : > { %v17871_v58 = vpop.f32.mrf.mxu1  ;;  %10817 = vst [vmem:[%s13666_s28 + $0xe0] sm:$0xff] %v12271_v49  ;;  %v8497_v20 = vadd.f32 %v8496_v42, %v18942_v6 }
 0x409   : > { %18941 = vst [vmem:[#allocation49_spill] sm:$0xff] %v17871_v58  ;;  %v8500_v3 = vpop.f32.mrf.mxu0  ;;  %8951 = vmatmul.mubr.bf16.gmra.mxu0 %v18944_v48  ;;  %v18953_v58 = vld [vmem:[#allocation12_spill] sm:$0xff] }
 0x40a   : > { %v17876_v0 = vpop.f32.mrf.mxu1  ;;  %9132 = vmatmul.mubr.bf16.gmra.mxu1 %v18945_v23  ;;  %v12275_v24 = vpack.c.bf16 %v8497_v20, %v8495_v32  ;;  %9172 = vmatprep.mubr.bf16.mxu0 %v17881_v22  ;;  %v8501_v43 = vadd.f32 %v8500_v3, %v18949_v59  ;;  %v13419_v20 = vld [vmem:[#allocation2 + $0x898] ss:$28 sps:$4 sm:$0xff]   ;;  %v13423_v23 = vld [vmem:[#allocation2 + $0x1a0] ss:$28 sps:$4 sm:$0xff]   ;;  %v13430_v3 = vld [vmem:[#allocation2 + $0x328] ss:$28 sps:$4 sm:$0xff]  }
 0x40b   : > { %18943 = vst [vmem:[#allocation8_spill] sm:$0xff] %v17876_v0  ;;  %9353 = vmatprep.mubr.bf16.mxu1 %v18947_v37  ;;  %v8502_v10 = vpop.f32.mrf.mxu0  ;;  %v18952_v37 = vld [vmem:[#allocation11_spill] sm:$0xff] }
 0x40c   : > { %v17885_v25 = vpop.f32.mrf.mxu1  ;;  %10821 = vst [vmem:[%s13666_s28 + $0xfc] sm:$0xff] %v12275_v24  ;;  %v8503_v49 = vadd.f32 %v8502_v10, %v17582_v38  ;;  %v17900_v38 = vld [vmem:[%s13661_s25] ss:$24 sps:$4 sm:$0xff]  }
 0x40d   : > { %18948 = vst [vmem:[#allocation10_spill] sm:$0xff] %v17885_v25  ;;  %v8504_v42 = vpop.f32.mrf.mxu0  ;;  %v13426_v25 = vld [vmem:[#allocation2 + $0x864] ss:$28 sps:$4 sm:$0xff]   ;;  %18955 = vst [vmem:[#allocation12_spill] sm:$0xff] %v17900_v38  ;;  %v18956_v10 = vld [vmem:[#allocation13_spill] sm:$0xff] }
 0x40e   : > { %v17890_v6 = vpop.f32.mrf.mxu1  ;;  %v12279_v32 = vpack.c.bf16 %v8503_v49, %v8501_v43  ;;  %v8505_v22 = vadd.f32 %v8504_v42, %v18952_v37  ;;  %v13424_v49 = vld [vmem:[#allocation2 + $0x860] ss:$28 sps:$4 sm:$0xff]   ;;  %v13431_v42 = vld [vmem:[#allocation2 + $0x168] ss:$28 sps:$4 sm:$0xff]  }
 0x40f   : > { %18950 = vst [vmem:[#allocation9_spill] sm:$0xff] %v17890_v6  ;;  %v8506_v0 = vpop.f32.mrf.mxu0 }
 0x410   : > { %v17892_v48 = vpop.f32.mrf.mxu1  ;;  %10825 = vst [vmem:[%s13666_s28 + $0x118] sm:$0xff] %v12279_v32  ;;  %v8507_v24 = vadd.f32 %v8506_v0, %v18953_v58  ;;  %v17907_v58 = vld [vmem:[%s13661_s25 + $0x34] ss:$24 sps:$4 sm:$0xff]   ;;  %v18959_v0 = vld [vmem:[#allocation15_spill] sm:$0xff] }
 0x411   : > { %18951 = vst [vmem:[#allocation51_spill] sm:$0xff] %v17892_v48  ;;  %v8510_v59 = vpop.f32.mrf.mxu0  ;;  %9173 = vmatmul.mubr.bf16.vlgmr.msra.gmra.mxu0 %v17900_v38  ;;  %18958 = vst [vmem:[#allocation52_spill] sm:$0xff] %v17907_v58  ;;  %v13435_v48 = vld [vmem:[#allocation2 + $0x2f0] ss:$28 sps:$4 sm:$0xff]   ;;  %v18960_v38 = vld [vmem:[#allocation14_spill] sm:$0xff] }
 0x412   : > { %v17897_v50 = vpop.f32.mrf.mxu1  ;;  %9354 = vmatmul.mubr.bf16.vlgmr.msra.gmra.mxu1 %v18956_v10  ;;  %v12283_v43 = vpack.c.bf16 %v8507_v24, %v8505_v22  ;;  %9503 = vmatpush1.bf16.msra.mxu0 %v13419_v20  ;;  %v8511_v10 = vadd.f32 %v8510_v59, %v18960_v38  ;;  %v18961_v22 = vld [vmem:[#allocation16_spill] sm:$0xff]  ;;  %v13443_v38 = vld [vmem:[#allocation2 + $0x2b8] ss:$28 sps:$4 sm:$0xff]  }
 0x413   : > { %18954 = vst [vmem:[#allocation11_spill] sm:$0xff] %v17897_v50  ;;  %12356 = vmatpush3.bf16.msra.mxu1 %v13423_v23  ;;  %v8512_v32 = vpop.f32.mrf.mxu0  ;;  %9182 = vmatprep.mubr.bf16.mxu0 %v17907_v58  ;;  %v13429_v50 = vld [vmem:[#allocation2 + $0x82c] ss:$28 sps:$4 sm:$0xff]  }
 0x414   : > { %v17904_v37 = vpop.f32.mrf.mxu1  ;;  %9363 = vmatprep.mubr.bf16.mxu1 %v18959_v0  ;;  %10829 = vst [vmem:[%s13666_s28 + $0x134] sm:$0xff] %v12283_v43  ;;  %v8513_v20 = vadd.f32 %v8512_v32, %v18961_v22  ;;  %9504 = vmatprep.subr.bf16.mxu0 %v13426_v25  ;;  %v13427_v0 = vld [vmem:[#allocation2 + $0x828] ss:$28 sps:$4 sm:$0xff]   ;;  %v13436_v43 = vld [vmem:[#allocation2 + $0x130] ss:$28 sps:$4 sm:$0xff]  }
 0x415   : > { %18957 = vst [vmem:[#allocation13_spill] sm:$0xff] %v17904_v37  ;;  %12357 = vmatprep.subr.bf16.mxu1 %v13430_v3  ;;  %v8514_v23 = vpop.f32.mrf.mxu0  ;;  %v13434_v3 = vld [vmem:[#allocation2 + $0x7f4] ss:$28 sps:$4 sm:$0xff]  }
 0x416   : > { %v17914_v24 = vpop.f32.mrf.mxu1  ;;  %v12287_v37 = vpack.c.bf16 %v8513_v20, %v8511_v10  ;;  %9505 = vmatpush1.bf16.msra.mxu0 %v13424_v49  ;;  %v8515_v59 = vadd.f32 %v8514_v23, %v17603_v27  ;;  %v17924_v49 = vld [vmem:[%s13661_s25 + $0x30] ss:$24 sps:$4 sm:$0xff]   ;;  %v13444_v22 = vld [vmem:[#allocation2 + $0xf8] ss:$28 sps:$4 sm:$0xff]   ;;  %v18968_v20 = vld [vmem:[#allocation18_spill] sm:$0xff] }
 0x417   : > { %12358 = vmatpush3.bf16.msra.mxu1 %v13431_v42  ;;  %v8516_v58 = vpop.f32.mrf.mxu0  ;;  %9506 = vmatprep.subr.bf16.mxu0 %v13429_v50  ;;  %18963 = vst [vmem:[#allocation14_spill] sm:$0xff] %v17924_v49  ;;  %v18964_v42 = vld [vmem:[#allocation17_spill] sm:$0xff]  ;;  %v18966_v27 = vld [vmem:[#allocation19_spill] sm:$0xff] }
 0x418   : > { %v17916_v6 = vpop.f32.mrf.mxu1  ;;  %12359 = vmatprep.subr.bf16.mxu1 %v13435_v48  ;;  %10833 = vst [vmem:[%s13666_s28 + $0x150] sm:$0xff] %v12287_v37  ;;  %v8517_v25 = vadd.f32 %v8516_v58, %v17605_v7  ;;  %v17929_v48 = vld [vmem:[%s13661_s25 + $0x64] ss:$24 sps:$4 sm:$0xff]   ;;  %v13432_v58 = vld [vmem:[#allocation2 + $0x7f0] ss:$28 sps:$4 sm:$0xff]  }
 0x419   : > { %v8520_v32 = vpop.f32.mrf.mxu0  ;;  %9183 = vmatmul.mubr.bf16.gmra.mxu0 %v17924_v49  ;;  %18965 = vst [vmem:[#allocation16_spill] sm:$0xff] %v17929_v48 }
 0x41a   : > { %v17921_v10 = vpop.f32.mrf.mxu1  ;;  %9364 = vmatmul.mubr.bf16.gmra.mxu1 %v18964_v42  ;;  %v12291_v50 = vpack.c.bf16 %v8517_v25, %v8515_v59  ;;  %9192 = vmatprep.mubr.bf16.mxu0 %v17929_v48  ;;  %v8521_v23 = vadd.f32 %v8520_v32, %v18968_v20  ;;  %v13439_v59 = vld [vmem:[#allocation2 + $0x7bc] ss:$28 sps:$4 sm:$0xff]  }
 0x41b   : > { %18962 = vst [vmem:[#allocation15_spill] sm:$0xff] %v17921_v10  ;;  %9373 = vmatprep.mubr.bf16.mxu1 %v18966_v27  ;;  %v8522_v7 = vpop.f32.mrf.mxu0  ;;  %9507 = vmatpush1.bf16.msra.mxu0 %v13427_v0  ;;  %v18969_v10 = vld [vmem:[#allocation20_spill] sm:$0xff]  ;;  %v13448_v25 = vld [vmem:[#allocation2 + $0x280] ss:$28 sps:$4 sm:$0xff]  }
 0x41c   : > { %v17933_v37 = vpop.f32.mrf.mxu1  ;;  %12360 = vmatpush3.bf16.msra.mxu1 %v13436_v43  ;;  %10837 = vst [vmem:[%s13666_s28 + $0x16c] sm:$0xff] %v12291_v50  ;;  %v8523_v42 = vadd.f32 %v8522_v7, %v18969_v10  ;;  %9508 = vmatprep.subr.bf16.mxu0 %v13434_v3  ;;  %v13437_v43 = vld [vmem:[#allocation2 + $0x7b8] ss:$28 sps:$4 sm:$0xff]   ;;  %v13449_v50 = vld [vmem:[#allocation2 + $0xc0] ss:$28 sps:$4 sm:$0xff]  }
 0x41d   : > { %18967 = vst [vmem:[#allocation17_spill] sm:$0xff] %v17933_v37  ;;  %12361 = vmatprep.subr.bf16.mxu1 %v13443_v38  ;;  %v8524_v48 = vpop.f32.mrf.mxu0  ;;  %v13442_v38 = vld [vmem:[#allocation2 + $0x784] ss:$28 sps:$4 sm:$0xff]  }
 0x41e   : > { %v17938_v49 = vpop.f32.mrf.mxu1  ;;  %v12295_v27 = vpack.c.bf16 %v8523_v42, %v8521_v23  ;;  %v8525_v32 = vadd.f32 %v8524_v48, %v17622_v34  ;;  %v13454_v10 = vld [vmem:[#allocation2 + $0x248] ss:$28 sps:$4 sm:$0xff]   ;;  %v17948_v23 = vld [vmem:[%s13661_s25 + $0x60] ss:$24 sps:$4 sm:$0xff]   ;;  %v17953_v42 = vld [vmem:[%s13661_s25 + $0x94] ss:$24 sps:$4 sm:$0xff]  }
 0x41f   : > { %v8526_v37 = vpop.f32.mrf.mxu0  ;;  %9509 = vmatpush1.bf16.msra.mxu0 %v13432_v58  ;;  %18972 = vst [vmem:[#allocation20_spill] sm:$0xff] %v17948_v23  ;;  %v18973_v58 = vld [vmem:[#allocation21_spill] sm:$0xff]  ;;  %v18975_v34 = vld [vmem:[#allocation23_spill] sm:$0xff] }
 0x420   : > { %v17940_v0 = vpop.f32.mrf.mxu1  ;;  %12362 = vmatpush3.bf16.msra.mxu1 %v13444_v22  ;;  %10841 = vst [vmem:[%s13666_s28 + $0x188] sm:$0xff] %v12295_v27  ;;  %v8527_v3 = vadd.f32 %v8526_v37, %v17624_v40  ;;  %9510 = vmatprep.subr.bf16.mxu0 %v13439_v59  ;;  %18974 = vst [vmem:[#allocation21_spill] sm:$0xff] %v17953_v42  ;;  %v13440_v37 = vld [vmem:[#allocation2 + $0x780] ss:$28 sps:$4 sm:$0xff]   ;;  %v13456_v59 = vld [vmem:[#allocation2 + $0x88] ss:$28 sps:$4 sm:$0xff]  }
 0x421   : > { %18970 = vst [vmem:[#allocation19_spill] sm:$0xff] %v17940_v0  ;;  %12363 = vmatprep.subr.bf16.mxu1 %v13448_v25  ;;  %v8530_v7 = vpop.f32.mrf.mxu0  ;;  %9193 = vmatmul.mubr.bf16.gmra.mxu0 %v17948_v23  ;;  %v18976_v25 = vld [vmem:[#allocation22_spill] sm:$0xff] }
 0x422   : > { %v17945_v20 = vpop.f32.mrf.mxu1  ;;  %9374 = vmatmul.mubr.bf16.gmra.mxu1 %v18973_v58  ;;  %v12299_v22 = vpack.c.bf16 %v8527_v3, %v8525_v32  ;;  %9202 = vmatprep.mubr.bf16.mxu0 %v17953_v42  ;;  %v8531_v27 = vadd.f32 %v8530_v7, %v18976_v25  ;;  %v13447_v32 = vld [vmem:[#allocation2 + $0x74c] ss:$28 sps:$4 sm:$0xff]  }
 0x423   : > { %18971 = vst [vmem:[#allocation18_spill] sm:$0xff] %v17945_v20  ;;  %9383 = vmatprep.mubr.bf16.mxu1 %v18975_v34  ;;  %v8532_v40 = vpop.f32.mrf.mxu0  ;;  %9511 = vmatpush1.bf16.msra.mxu0 %v13437_v43  ;;  %v18977_v20 = vld [vmem:[#allocation24_spill] sm:$0xff] }
 0x424   : > { %v17957_v48 = vpop.f32.mrf.mxu1  ;;  %12364 = vmatpush3.bf16.msra.mxu1 %v13449_v50  ;;  %10845 = vst [vmem:[%s13666_s28 + $0x1a4] sm:$0xff] %v12299_v22  ;;  %v8533_v58 = vadd.f32 %v8532_v40, %v18977_v20  ;;  %9512 = vmatprep.subr.bf16.mxu0 %v13442_v38  ;;  %v13460_v3 = vld [vmem:[#allocation2 + $0x210] ss:$28 sps:$4 sm:$0xff]   ;;  %v13445_v50 = vld [vmem:[#allocation2 + $0x748] ss:$28 sps:$4 sm:$0xff]   ;;  %v5992_v20 = vld [vmem:[#allocation2 + $0x978] sm:$0xff] }
 0x425   : > { %12365 = vmatprep.subr.bf16.mxu1 %v13454_v10  ;;  %v8534_v42 = vpop.f32.mrf.mxu0  ;;  %v13461_v22 = vld [vmem:[#allocation2 + $0x50] ss:$28 sps:$4 sm:$0xff]   ;;  %v13468_v40 = vld [vmem:[#allocation2 + $0x1d8] ss:$28 sps:$4 sm:$0xff]  }
 0x426   : > { %v17962_v23 = vpop.f32.mrf.mxu1  ;;  %v12303_v34 = vpack.c.bf16 %v8533_v58, %v8531_v27  ;;  %v8535_v7 = vadd.f32 %v8534_v42, %v17641_v39  ;;  %v13452_v10 = vld [vmem:[#allocation2 + $0x714] ss:$28 sps:$4 sm:$0xff]   ;;  %v18983_v39 = vld [vmem:[#allocation27_spill] sm:$0xff] }
 0x427   : > { %v8536_v0 = vpop.f32.mrf.mxu0  ;;  %9513 = vmatpush1.bf16.msra.mxu0 %v13440_v37  ;;  %v17972_v58 = vld [vmem:[%s13661_s25 + $0x90] ss:$24 sps:$4 sm:$0xff]   ;;  %v18981_v37 = vld [vmem:[#allocation25_spill] sm:$0xff] }
 0x428   : > { %v17964_v43 = vpop.f32.mrf.mxu1  ;;  %12366 = vmatpush3.bf16.msra.mxu1 %v13456_v59  ;;  %10849 = vst [vmem:[%s13666_s28 + $0x1c0] sm:$0xff] %v12303_v34  ;;  %v8537_v38 = vadd.f32 %v8536_v0, %v17643_v45  ;;  %9514 = vmatprep.subr.bf16.mxu0 %v13447_v32  ;;  %18980 = vst [vmem:[#allocation24_spill] sm:$0xff] %v17972_v58  ;;  %v17977_v34 = vld [vmem:[%s13661_s25 + $0xc4] ss:$24 sps:$4 sm:$0xff]   ;;  %v13450_v42 = vld [vmem:[#allocation2 + $0x710] ss:$28 sps:$4 sm:$0xff]   ;;  %v11708_v32 = vcombine.high %v5992_v20, %v5992_v20 }
 0x429   : > { %18978 = vst [vmem:[#allocation23_spill] sm:$0xff] %v17964_v43  ;;  %12367 = vmatprep.subr.bf16.mxu1 %v13460_v3  ;;  %v8540_v25 = vpop.f32.mrf.mxu0  ;;  %9203 = vmatmul.mubr.bf16.gmra.mxu0 %v17972_v58  ;;  %18982 = vst [vmem:[#allocation25_spill] sm:$0xff] %v17977_v34  ;;  %v13469_v3 = vld [vmem:[#allocation2 + $0x18] ss:$28 sps:$4 sm:$0xff]  }
 0x42a   : > { %v17969_v27 = vpop.f32.mrf.mxu1  ;;  %9384 = vmatmul.mubr.bf16.gmra.mxu1 %v18981_v37  ;;  %v12307_v59 = vpack.c.bf16 %v8537_v38, %v8535_v7  ;;  %9212 = vmatprep.mubr.bf16.mxu0 %v17977_v34  ;;  %v18986_v37 = vld [vmem:[#allocation28_spill] sm:$0xff]  ;;  %v11707_v38 = vcombine.low %v5992_v20, %v5992_v20  ;;  %v13459_v20 = vld [vmem:[#allocation2 + $0x944] ss:$28 sps:$4 sm:$0xff]  }
 0x42b   : > { %18979 = vst [vmem:[#allocation22_spill] sm:$0xff] %v17969_v27  ;;  %9393 = vmatprep.mubr.bf16.mxu1 %v18983_v39  ;;  %v8542_v45 = vpop.f32.mrf.mxu0  ;;  %9515 = vmatpush1.bf16.msra.mxu0 %v13445_v50  ;;  %v18985_v27 = vld [vmem:[#allocation26_spill] sm:$0xff] }
 0x42c   : > { %v17981_v0 = vpop.f32.mrf.mxu1  ;;  %12368 = vmatpush3.bf16.msra.mxu1 %v13461_v22  ;;  %10853 = vst [vmem:[%s13666_s28 + $0x1dc] sm:$0xff] %v12307_v59  ;;  %v8541_v58 = vadd.f32 %v8540_v25, %v18985_v27  ;;  %v8543_v7 = vadd.f32 %v8542_v45, %v18986_v37  ;;  %9516 = vmatprep.subr.bf16.mxu0 %v13452_v10  ;;  %v8046_v10 = vsel %vm8032_vm2, %v11707_v38, 0  ;;  %v17999_v59 = vld [vmem:[%s13661_s25 + $0xc0] ss:$24 sps:$4 sm:$0xff]  }
 0x42d   : > { %18984 = vst [vmem:[#allocation27_spill] sm:$0xff] %v17981_v0  ;;  %12369 = vmatprep.subr.bf16.mxu1 %v13468_v40  ;;  %v8544_v34 = vpop.f32.mrf.mxu0  ;;  %v18886_v40 = vmov 0   ;;  %v18987_v45 = vld [vmem:[#allocation29_spill] sm:$0xff] }
 0x42e   : > { %v17986_v43 = vpop.f32.mrf.mxu1  ;;  %v12311_v39 = vpack.c.bf16 %v8543_v7, %v8541_v58  ;;  %v8545_v22 = vadd.f32 %v8544_v34, %v17660_v9  ;;  %v18988_v34 = vld [vmem:[#allocation31_spill] sm:$0xff]  ;;  %v18991_v7 = vld [vmem:[#allocation32_spill] sm:$0xff] }
 0x42f   : > { %v8546_v0 = vpop.f32.mrf.mxu0  ;;  %9517 = vmatpush1.bf16.msra.mxu0 %v13450_v42 }
 0x430   : > { %v17988_v50 = vpop.f32.mrf.mxu1  ;;  %12370 = vmatpush3.bf16.msra.mxu1 %v13469_v3  ;;  %10857 = vst [vmem:[%s13666_s28 + $0x1f8] sm:$0xff] %v12311_v39  ;;  %v8547_v25 = vadd.f32 %v8546_v0, %v17662_v61  ;;  %11742 = vmatprep.subr.msk.bf16.mxu0 %vm8032_vm2, %v11708_v32  ;;  %v18004_v61 = vld [vmem:[%s13661_s25 + $0xf4] ss:$24 sps:$4 sm:$0xff]   ;;  %v13457_v32 = vld [vmem:[#allocation2 + $0x940] ss:$28 sps:$4 sm:$0xff]  }
 0x431   : > { %9987 = vmatprep.subr.bf16.mxu1 %v18886_v40  ;;  %v8550_v27 = vpop.f32.mrf.mxu0  ;;  %9213 = vmatmul.mubr.bf16.gmra.mxu0 %v17999_v59  ;;  %v18990_v3 = vld [vmem:[#allocation30_spill] sm:$0xff]  ;;  %v13464_v39 = vld [vmem:[#allocation2 + $0x90c] ss:$28 sps:$4 sm:$0xff]  }
 0x432   : > { %v17996_v58 = vpop.f32.mrf.mxu1  ;;  %9394 = vmatmul.mubr.bf16.gmra.mxu1 %v18987_v45  ;;  %v12315_v9 = vpack.c.bf16 %v8547_v25, %v8545_v22  ;;  %9222 = vmatprep.mubr.bf16.mxu0 %v18004_v61  ;;  %v8551_v37 = vadd.f32 %v8550_v27, %v18990_v3  ;;  %v18023_v3 = vld [vmem:[%s13661_s25 + $0xf0] ss:$24 sps:$4 sm:$0xff]  }
 0x433   : > { %9403 = vmatprep.mubr.bf16.mxu1 %v18988_v34  ;;  %v8552_v0 = vpop.f32.mrf.mxu0  ;;  %9527 = vmatpush2.bf16.msra.mxu0 %v8046_v10  ;;  %18993 = vst [vmem:[#allocation29_spill] sm:$0xff] %v18023_v3 }
 0x434   : > { %v18008_v42 = vpop.f32.mrf.mxu1  ;;  %10861 = vst [vmem:[%s13666_s28 + $0x214] sm:$0xff] %v12315_v9  ;;  %v8553_v38 = vadd.f32 %v8552_v0, %v18991_v7  ;;  %9528 = vmatprep.subr.bf16.mxu0 %v13459_v20  ;;  %v13467_v20 = vld [vmem:[#allocation2 + $0x8d4] ss:$28 sps:$4 sm:$0xff]  }
 0x435   : > { %18989 = vst [vmem:[#allocation26_spill] sm:$0xff] %v18008_v42  ;;  %v8554_v22 = vpop.f32.mrf.mxu0  ;;  %v13462_v42 = vld [vmem:[#allocation2 + $0x908] ss:$28 sps:$4 sm:$0xff]  }
 0x436   : > { %v18013_v25 = vpop.f32.mrf.mxu1  ;;  %v12319_v45 = vpack.c.bf16 %v8553_v38, %v8551_v37  ;;  %v8555_v10 = vadd.f32 %v8554_v22, %v17679_v54  ;;  %v18994_v37 = vld [vmem:[#allocation33_spill] sm:$0xff]  ;;  %v18996_v54 = vld [vmem:[#allocation35_spill] sm:$0xff]  ;;  %v18997_v22 = vld [vmem:[#allocation34_spill] sm:$0xff] }
 0x437   : > { %v8556_v34 = vpop.f32.mrf.mxu0  ;;  %9529 = vmatpush2.bf16.msra.mxu0 %v13457_v32  ;;  %v18028_v32 = vld [vmem:[%s13661_s25 + $0x124] ss:$24 sps:$4 sm:$0xff]  }
 0x438   : > { %v18015_v40 = vpop.f32.mrf.mxu1  ;;  %10865 = vst [vmem:[%s13666_s28 + $0x230] sm:$0xff] %v12319_v45  ;;  %v8557_v27 = vadd.f32 %v8556_v34, %v17681_v29  ;;  %9530 = vmatprep.subr.bf16.mxu0 %v13464_v39  ;;  %18995 = vst [vmem:[#allocation31_spill] sm:$0xff] %v18028_v32  ;;  %v13465_v39 = vld [vmem:[#allocation2 + $0x8d0] ss:$28 sps:$4 sm:$0xff]  }
 0x439   : > { %v8560_v9 = vpop.f32.mrf.mxu0  ;;  %9223 = vmatmul.mubr.bf16.gmra.mxu0 %v18023_v3  ;;  %v18998_v34 = vld [vmem:[#allocation36_spill] sm:$0xff] }
 0x43a   : > { %v18020_v0 = vpop.f32.mrf.mxu1  ;;  %9404 = vmatmul.mubr.bf16.gmra.mxu1 %v18994_v37  ;;  %v12323_v7 = vpack.c.bf16 %v8557_v27, %v8555_v10  ;;  %9232 = vmatprep.mubr.bf16.mxu0 %v18028_v32  ;;  %v8561_v45 = vadd.f32 %v8560_v9, %v18997_v22  ;;  %v13470_v10 = vld [vmem:[#allocation2 + $0x6e0] ss:$28 sps:$4 sm:$0xff]   ;;  %v19000_v22 = vld [vmem:[#allocation37_spill] sm:$0xff] }
 0x43b   : > { %18992 = vst [vmem:[#allocation28_spill] sm:$0xff] %v18020_v0  ;;  %9413 = vmatprep.mubr.bf16.mxu1 %v18996_v54  ;;  %v8562_v29 = vpop.f32.mrf.mxu0  ;;  %9531 = vmatpush2.bf16.msra.mxu0 %v13462_v42 }
 0x43c   : > { %v18032_v38 = vpop.f32.mrf.mxu1  ;;  %10869 = vst [vmem:[%s13666_s28 + $0x24c] sm:$0xff] %v12323_v7  ;;  %v8563_v0 = vadd.f32 %v8562_v29, %v18998_v34  ;;  %9532 = vmatprep.subr.bf16.mxu0 %v13467_v20  ;;  %v18047_v20 = vld [vmem:[%s13661_s25 + $0x120] ss:$24 sps:$4 sm:$0xff]  }
 0x43d   : > { %v8564_v27 = vpop.f32.mrf.mxu0 }
 0x43e   : > { %v18037_v37 = vpop.f32.mrf.mxu1  ;;  %v12327_v32 = vpack.c.bf16 %v8563_v0, %v8561_v45  ;;  %v8565_v42 = vadd.f32 %v8564_v27, %v17698_v4  ;;  %v18052_v45 = vld [vmem:[%s13661_s25 + $0x154] ss:$24 sps:$4 sm:$0xff]  }
 0x43f   : > { %v8566_v54 = vpop.f32.mrf.mxu0  ;;  %9533 = vmatpush2.bf16.msra.mxu0 %v13465_v39  ;;  %19001 = vst [vmem:[#allocation32_spill] sm:$0xff] %v18052_v45  ;;  %v19004_v39 = vld [vmem:[#allocation38_spill] sm:$0xff] }
 0x440   : > { %v18039_v3 = vpop.f32.mrf.mxu1  ;;  %10873 = vst [vmem:[%s13666_s28 + $0x268] sm:$0xff] %v12327_v32  ;;  %v8567_v9 = vadd.f32 %v8566_v54, %v17700_v2  ;;  %12461 = vmatprep.subr.bf16.mxu0 %v13470_v10  ;;  %v19002_v32 = vld [vmem:[#allocation39_spill] sm:$0xff]  ;;  %v19005_v10 = vld [vmem:[#allocation40_spill] sm:$0xff] }
 0x441   : > { %v8570_v7 = vpop.f32.mrf.mxu0  ;;  %9233 = vmatmul.mubr.bf16.gmra.mxu0 %v18047_v20 }
 0x442   : > { %v18044_v29 = vpop.f32.mrf.mxu1  ;;  %9414 = vmatmul.mubr.bf16.gmra.mxu1 %v19000_v22  ;;  %v12331_v0 = vpack.c.bf16 %v8567_v9, %v8565_v42  ;;  %9242 = vmatprep.mubr.bf16.mxu0 %v18052_v45  ;;  %v8571_v34 = vadd.f32 %v8570_v7, %v19004_v39  ;;  %v18071_v7 = vld [vmem:[%s13661_s25 + $0x150] ss:$24 sps:$4 sm:$0xff]   ;;  %v18076_v39 = vld [vmem:[%s13661_s25 + $0x184] ss:$24 sps:$4 sm:$0xff]  }
 0x443   : > { %18999 = vst [vmem:[#allocation30_spill] sm:$0xff] %v18044_v29  ;;  %9423 = vmatprep.mubr.bf16.mxu1 %v19002_v32  ;;  %v8572_v4 = vpop.f32.mrf.mxu0  ;;  %19006 = vst [vmem:[#allocation35_spill] sm:$0xff] %v18076_v39 }
 0x444   : > { %v18056_v2 = vpop.f32.mrf.mxu1  ;;  %10877 = vst [vmem:[%s13666_s28 + $0x284] sm:$0xff] %v12331_v0  ;;  %v8573_v27 = vadd.f32 %v8572_v4, %v19005_v10  ;;  %v19009_v10 = vld [vmem:[#allocation41_spill] sm:$0xff] }
 0x445   : > { %19003 = vst [vmem:[#allocation33_spill] sm:$0xff] %v18056_v2  ;;  %v8574_v54 = vpop.f32.mrf.mxu0 }
 0x446   : > { %v18061_v29 = vpop.f32.mrf.mxu1  ;;  %v12335_v42 = vpack.c.bf16 %v8573_v27, %v8571_v34  ;;  %v8575_v32 = vadd.f32 %v8574_v54, %v17717_v14  ;;  %v19007_v34 = vld [vmem:[#allocation42_spill] sm:$0xff] }
 0x447   : > { %v8576_v9 = vpop.f32.mrf.mxu0 }
 0x448   : > { %v18063_v22 = vpop.f32.mrf.mxu1  ;;  %10881 = vst [vmem:[%s13666_s28 + $0x2a0] sm:$0xff] %v12335_v42  ;;  %v8577_v45 = vadd.f32 %v8576_v9, %v17719_v15 }
 0x449   : > { %v8580_v2 = vpop.f32.mrf.mxu0  ;;  %9243 = vmatmul.mubr.bf16.gmra.mxu0 %v18071_v7 }
 0x44a   : > { %v18068_v0 = vpop.f32.mrf.mxu1  ;;  %9424 = vmatmul.mubr.bf16.gmra.mxu1 %v17722_v8  ;;  %v12339_v4 = vpack.c.bf16 %v8577_v45, %v8575_v32  ;;  %9252 = vmatprep.mubr.bf16.mxu0 %v18076_v39  ;;  %v8581_v27 = vadd.f32 %v8580_v2, %v19009_v10  ;;  %v18095_v2 = vld [vmem:[%s13661_s25 + $0x180] ss:$24 sps:$4 sm:$0xff]  }
 0x44b   : > { %9433 = vmatprep.mubr.bf16.mxu1 %v19007_v34  ;;  %v8582_v14 = vpop.f32.mrf.mxu0 }
 0x44c   : > { %v18080_v15 = vpop.f32.mrf.mxu1  ;;  %10885 = vst [vmem:[%s13666_s28 + $0x2bc] sm:$0xff] %v12339_v4  ;;  %v8583_v54 = vadd.f32 %v8582_v14, %v17734_v11  ;;  %v18100_v14 = vld [vmem:[%s13661_s25 + $0x1b4] ss:$24 sps:$4 sm:$0xff]  }
 0x44d   : > { %19008 = vst [vmem:[#allocation34_spill] sm:$0xff] %v18080_v15  ;;  %v8584_v42 = vpop.f32.mrf.mxu0  ;;  %19011 = vst [vmem:[#allocation37_spill] sm:$0xff] %v18100_v14 }
 0x44e   : > { %v18085_v9 = vpop.f32.mrf.mxu1  ;;  %v12343_v8 = vpack.c.bf16 %v8583_v54, %v8581_v27  ;;  %v8585_v34 = vadd.f32 %v8584_v42, %v17736_v52 }
 0x44f   : > { %v8586_v45 = vpop.f32.mrf.mxu0 }
 0x450   : > { %v18087_v32 = vpop.f32.mrf.mxu1  ;;  %10889 = vst [vmem:[%s13666_s28 + $0x2d8] sm:$0xff] %v12343_v8  ;;  %v8587_v39 = vadd.f32 %v8586_v45, %v17738_v63 }
 0x451   : > { %v8590_v15 = vpop.f32.mrf.mxu0  ;;  %9253 = vmatmul.mubr.bf16.gmra.mxu0 %v18095_v2 }
 0x452   : > { %v18092_v4 = vpop.f32.mrf.mxu1  ;;  %9434 = vmatmul.mubr.bf16.gmra.mxu1 %v17741_v46  ;;  %v12347_v11 = vpack.c.bf16 %v8587_v39, %v8585_v34  ;;  %9262 = vmatprep.mubr.bf16.mxu0 %v18100_v14  ;;  %v8591_v10 = vadd.f32 %v8590_v15, %v17745_v13  ;;  %v18111_v14 = vld [vmem:[%s13661_s25 + $0x1b0] ss:$24 sps:$4 sm:$0xff]   ;;  %v19017_v13 = vld [vmem:[#allocation45_spill] sm:$0xff] }
 0x453   : > { %19010 = vst [vmem:[#allocation36_spill] sm:$0xff] %v18092_v4  ;;  %9443 = vmatprep.mubr.bf16.mxu1 %v17748_v19  ;;  %v8592_v52 = vpop.f32.mrf.mxu0  ;;  %19013 = vst [vmem:[#allocation38_spill] sm:$0xff] %v18111_v14  ;;  %v19014_v19 = vld [vmem:[#allocation44_spill] sm:$0xff]  ;;  %v18117_v4 = vld [vmem:[%s13661_s25 + $0x1e4] ss:$24 sps:$4 sm:$0xff]  }
 0x454   : > { %v18104_v63 = vpop.f32.mrf.mxu1  ;;  %10893 = vst [vmem:[%s13666_s28 + $0x2f4] sm:$0xff] %v12347_v11  ;;  %v8593_v27 = vadd.f32 %v8592_v52, %v17753_v57  ;;  %19016 = vst [vmem:[#allocation40_spill] sm:$0xff] %v18117_v4  ;;  %v19018_v52 = vld [vmem:[#allocation46_spill] sm:$0xff] }
 0x455   : > { %19012 = vst [vmem:[#allocation39_spill] sm:$0xff] %v18104_v63  ;;  %v8594_v54 = vpop.f32.mrf.mxu0  ;;  %v19015_v63 = vld [vmem:[#allocation43_spill] sm:$0xff] }
 0x456   : > { %v8775_v42 = vpop.f32.mrf.mxu1  ;;  %v12351_v46 = vpack.c.bf16 %v8593_v27, %v8591_v10 }
 0x457   : > { %v8595_v39 = vpop.f32.mrf.mxu0 }
 0x458   : > { %v8776_v8 = vpop.f32.mrf.mxu1  ;;  %10897 = vst [vmem:[%s13666_s28 + $0x310] sm:$0xff] %v12351_v46 }
 0x459   : > { %v8812_v45 = vpop.f32.mrf.mxu0  ;;  %9263 = vmatmul.mubr.bf16.gmra.mxu0 %v18111_v14 }
 0x45a   : > { %v8993_v34 = vpop.f32.mrf.mxu1  ;;  %9444 = vmatmul.mubr.bf16.gmra.mxu1 %v19014_v19  ;;  %v8813_v11 = vadd.f32 %v8812_v45, %v19015_v63  ;;  %9272 = vmatprep.mubr.bf16.mxu0 %v18117_v4 }
 0x45b   : > { %9453 = vmatprep.mubr.bf16.mxu1 %v19017_v13  ;;  %v8814_v57 = vpop.f32.mrf.mxu0  ;;  %v18125_v13 = vld [vmem:[%s13661_s25 + $0x1e0] ss:$24 sps:$4 sm:$0xff]  }
 0x45c   : > { %v8995_v15 = vpop.f32.mrf.mxu1  ;;  %v8815_v10 = vadd.f32 %v8814_v57, %v19018_v52  ;;  %v8994_v42 = vadd.f32 %v8993_v34, %v8813_v11 }
 0x45d   : > { %v8816_v27 = vpop.f32.mrf.mxu0 }
 0x45e   : > { %v8997_v54 = vpop.f32.mrf.mxu1  ;;  %v8996_v46 = vadd.f32 %v8995_v15, %v8815_v10  ;;  %v8817_v39 = vadd.f32 %v8816_v27, %v17772_v17  ;;  %v18132_v17 = vld [vmem:[%s13661_s25 + $0x214] ss:$24 sps:$4 sm:$0xff]  }
 0x45f   : > { %v8818_v63 = vpop.f32.mrf.mxu0 }
 0x460   : > { %v8999_v8 = vpop.f32.mrf.mxu1  ;;  %v12240_v45 = vpack.c.bf16 %v8996_v46, %v8994_v42  ;;  %v8819_v19 = vadd.f32 %v8818_v63, %v17774_v28  ;;  %v8998_v34 = vadd.f32 %v8997_v54, %v8817_v39 }
 0x461   : > { %v8822_v4 = vpop.f32.mrf.mxu0  ;;  %9273 = vmatmul.mubr.bf16.gmra.mxu0 %v18125_v13 }
 0x462   : > { %v9003_v14 = vpop.f32.mrf.mxu1  ;;  %9454 = vmatmul.mubr.bf16.gmra.mxu1 %v17782_v5  ;;  %10785 = vst [vmem:[%s13666_s28 + $0x8] sm:$0xff] %v12240_v45  ;;  %v9000_v11 = vadd.f32 %v8999_v8, %v8819_v19  ;;  %v8823_v57 = vadd.f32 %v8822_v4, %v17779_v26  ;;  %9282 = vmatprep.mubr.bf16.mxu0 %v18132_v17  ;;  %v18141_v45 = vld [vmem:[%s13661_s25 + $0x210] ss:$24 sps:$4 sm:$0xff]  }
 0x463   : > { %9463 = vmatprep.mubr.bf16.mxu1 %v17787_v55  ;;  %v8824_v28 = vpop.f32.mrf.mxu0 }
 0x464   : > { %v9005_v15 = vpop.f32.mrf.mxu1  ;;  %v12244_v52 = vpack.c.bf16 %v9000_v11, %v8998_v34  ;;  %v8825_v10 = vadd.f32 %v8824_v28, %v17792_v16  ;;  %v9004_v54 = vadd.f32 %v9003_v14, %v8823_v57 }
 0x465   : > { %v8826_v27 = vpop.f32.mrf.mxu0 }
 0x466   : > { %v9007_v5 = vpop.f32.mrf.mxu1  ;;  %10790 = vst [vmem:[%s13666_s28 + $0x24] sm:$0xff] %v12244_v52  ;;  %v9006_v42 = vadd.f32 %v9005_v15, %v8825_v10  ;;  %v8827_v26 = vadd.f32 %v8826_v27, %v17797_v36  ;;  %v18148_v36 = vld [vmem:[%s13661_s25 + $0x244] ss:$24 sps:$4 sm:$0xff]  }
 0x467   : > { %v8828_v4 = vpop.f32.mrf.mxu0 }
 0x468   : > { %v9009_v46 = vpop.f32.mrf.mxu1  ;;  %v12248_v39 = vpack.c.bf16 %v9006_v42, %v9004_v54  ;;  %v8829_v55 = vadd.f32 %v8828_v4, %v17799_v1  ;;  %v9008_v16 = vadd.f32 %v9007_v5, %v8827_v26  ;;  %v18157_v26 = vld [vmem:[%s13661_s25 + $0x240] ss:$24 sps:$4 sm:$0xff]  }
 0x469   : > { %v8832_v63 = vpop.f32.mrf.mxu0  ;;  %9283 = vmatmul.mubr.bf16.gmra.mxu0 %v18141_v45 }
 0x46a   : > { %v9013_v8 = vpop.f32.mrf.mxu1  ;;  %9464 = vmatmul.mubr.bf16.gmra.mxu1 %v17807_v60  ;;  %10794 = vst [vmem:[%s13666_s28 + $0x40] sm:$0xff] %v12248_v39  ;;  %v9010_v14 = vadd.f32 %v9009_v46, %v8829_v55  ;;  %v8833_v19 = vadd.f32 %v8832_v63, %v17804_v12  ;;  %9292 = vmatprep.mubr.bf16.mxu0 %v18148_v36  ;;  %v19019_v63 = vld [vmem:[#allocation47_spill] sm:$0xff] }
 0x46b   : > { %9473 = vmatprep.mubr.bf16.mxu1 %v17812_v41  ;;  %v8834_v1 = vpop.f32.mrf.mxu0 }
 0x46c   : > { %v9015_v34 = vpop.f32.mrf.mxu1  ;;  %v12252_v11 = vpack.c.bf16 %v9010_v14, %v9008_v16  ;;  %v8835_v57 = vadd.f32 %v8834_v1, %v17817_v35  ;;  %v9014_v15 = vadd.f32 %v9013_v8, %v8833_v19 }
 0x46d   : > { %v8836_v28 = vpop.f32.mrf.mxu0 }
 0x46e   : > { %v9017_v60 = vpop.f32.mrf.mxu1  ;;  %10798 = vst [vmem:[%s13666_s28 + $0x5c] sm:$0xff] %v12252_v11  ;;  %v9016_v52 = vadd.f32 %v9015_v34, %v8835_v57  ;;  %v8837_v12 = vadd.f32 %v8836_v28, %v17822_v44  ;;  %v18164_v44 = vld [vmem:[%s13661_s25 + $0x274] ss:$24 sps:$4 sm:$0xff]  }
 0x46f   : > { %v8838_v10 = vpop.f32.mrf.mxu0 }
 0x470   : > { %v9019_v27 = vpop.f32.mrf.mxu1  ;;  %v12256_v5 = vpack.c.bf16 %v9016_v52, %v9014_v15  ;;  %v8839_v41 = vadd.f32 %v8838_v10, %v17824_v53  ;;  %v9018_v35 = vadd.f32 %v9017_v60, %v8837_v12  ;;  %v18173_v60 = vld [vmem:[%s13661_s25 + $0x270] ss:$24 sps:$4 sm:$0xff]  }
 0x471   : > { %v8842_v54 = vpop.f32.mrf.mxu0  ;;  %9293 = vmatmul.mubr.bf16.gmra.mxu0 %v18157_v26 }
 0x472   : > { %v9023_v42 = vpop.f32.mrf.mxu1  ;;  %9474 = vmatmul.mubr.bf16.gmra.mxu1 %v17832_v56  ;;  %10802 = vst [vmem:[%s13666_s28 + $0x78] sm:$0xff] %v12256_v5  ;;  %v9020_v4 = vadd.f32 %v9019_v27, %v8839_v41  ;;  %v8843_v46 = vadd.f32 %v8842_v54, %v17829_v30  ;;  %9302 = vmatprep.mubr.bf16.mxu0 %v18164_v44 }
 0x473   : > { %9483 = vmatprep.mubr.bf16.mxu1 %v17837_v18  ;;  %v8844_v53 = vpop.f32.mrf.mxu0 }
 0x474   : > { %v9025_v39 = vpop.f32.mrf.mxu1  ;;  %v12260_v55 = vpack.c.bf16 %v9020_v4, %v9018_v35  ;;  %v8845_v8 = vadd.f32 %v8844_v53, %v19019_v63  ;;  %v9024_v14 = vadd.f32 %v9023_v42, %v8843_v46  ;;  %v19021_v35 = vld [vmem:[#allocation48_spill] sm:$0xff] }
 0x475   : > { %v8846_v16 = vpop.f32.mrf.mxu0 }
 0x476   : > { %v9027_v56 = vpop.f32.mrf.mxu1  ;;  %10806 = vst [vmem:[%s13666_s28 + $0x94] sm:$0xff] %v12260_v55  ;;  %v9026_v19 = vadd.f32 %v9025_v39, %v8845_v8  ;;  %v8847_v30 = vadd.f32 %v8846_v16, %v17847_v62  ;;  %v19020_v62 = vld [vmem:[#allocation3_spill] sm:$0xff]  ;;  %v19022_v39 = vld [vmem:[#allocation49_spill] sm:$0xff]  ;;  %v19023_v16 = vld [vmem:[#allocation4_spill] sm:$0xff] }
 0x477   : > { %v8848_v1 = vpop.f32.mrf.mxu0 }
 0x478   : > { %v9029_v34 = vpop.f32.mrf.mxu1  ;;  %v12264_v11 = vpack.c.bf16 %v9026_v19, %v9024_v14  ;;  %v8849_v57 = vadd.f32 %v8848_v1, %v17849_v51  ;;  %v9028_v15 = vadd.f32 %v9027_v56, %v8847_v30  ;;  %v19024_v56 = vld [vmem:[#allocation5_spill] sm:$0xff]  ;;  %v19025_v19 = vld [vmem:[#allocation8_spill] sm:$0xff] }
 0x479   : > { %v8852_v18 = vpop.f32.mrf.mxu0  ;;  %9303 = vmatmul.mubr.bf16.gmra.mxu0 %v18173_v60  ;;  %v18190_v1 = vld [vmem:[%s13661_s25 + $0x14] ss:$24 sps:$4 sm:$0xff]  }
 0x47a   : > { %v9033_v28 = vpop.f32.mrf.mxu1  ;;  %9484 = vmatmul.mubr.bf16.gmra.mxu1 %v17857_v21  ;;  %10810 = vst [vmem:[%s13666_s28 + $0xb0] sm:$0xff] %v12264_v11  ;;  %v9030_v52 = vadd.f32 %v9029_v34, %v8849_v57  ;;  %v8853_v12 = vadd.f32 %v8852_v18, %v17854_v33  ;;  %9312 = vmatprep.mubr.bf16.mxu0 %v19020_v62  ;;  %v19026_v34 = vld [vmem:[#allocation50_spill] sm:$0xff] }
 0x47b   : > { %9493 = vmatprep.mubr.bf16.mxu1 %v17357_v47  ;;  %v8854_v10 = vpop.f32.mrf.mxu0 }
 0x47c   : > { %v9035_v51 = vpop.f32.mrf.mxu1  ;;  %v12268_v27 = vpack.c.bf16 %v9030_v52, %v9028_v15  ;;  %v8855_v5 = vadd.f32 %v8854_v10, %v17864_v31  ;;  %v9034_v21 = vadd.f32 %v9033_v28, %v8853_v12  ;;  %v19027_v28 = vld [vmem:[#allocation10_spill] sm:$0xff] }
 0x47d   : > { %v8856_v41 = vpop.f32.mrf.mxu0 }
 0x47e   : > { %v9037_v54 = vpop.f32.mrf.mxu1  ;;  %10814 = vst [vmem:[%s13666_s28 + $0xcc] sm:$0xff] %v12268_v27  ;;  %v9036_v42 = vadd.f32 %v9035_v51, %v8855_v5  ;;  %v8857_v4 = vadd.f32 %v8856_v41, %v19021_v35  ;;  %v19028_v27 = vld [vmem:[#allocation9_spill] sm:$0xff]  ;;  %v13471_v41 = vld [vmem:[#allocation2 + $0x520] ss:$28 sps:$4 sm:$0xff]  }
 0x47f   : > { %v8858_v46 = vpop.f32.mrf.mxu0 }
 0x480   : > { %v9039_v33 = vpop.f32.mrf.mxu1  ;;  %v12272_v53 = vpack.c.bf16 %v9036_v42, %v9034_v21  ;;  %v8859_v55 = vadd.f32 %v8858_v46, %v19022_v39  ;;  %v9038_v31 = vadd.f32 %v9037_v54, %v8857_v4  ;;  %v13472_v54 = vld [vmem:[#allocation2 + $0x8a0] ss:$28 sps:$4 sm:$0xff]   ;;  %v19029_v4 = vld [vmem:[#allocation51_spill] sm:$0xff] }
 0x481   : > { %v8862_v63 = vpop.f32.mrf.mxu0  ;;  %9313 = vmatmul.mubr.bf16.gmra.mxu0 %v19023_v16 }
 0x482   : > { %v9043_v8 = vpop.f32.mrf.mxu1  ;;  %9494 = vmatmul.mubr.bf16.gmra.mxu1 %v19024_v56  ;;  %10818 = vst [vmem:[%s13666_s28 + $0xe8] sm:$0xff] %v12272_v53  ;;  %v9040_v14 = vadd.f32 %v9039_v33, %v8859_v55  ;;  %v8863_v30 = vadd.f32 %v8862_v63, %v19025_v19  ;;  %11743 = vmatprep.mubr.msk.bf16.mxu0 %vm7986_vm3, %v18190_v1  ;;  %v13473_v33 = vld [vmem:[#allocation2 + $0x6a8] ss:$28 sps:$4 sm:$0xff]   ;;  %v19030_v63 = vld [vmem:[#allocation12_spill] sm:$0xff] }
 0x483   : > { %9715 = vmatprep.mubr.bf16.mxu1 %v19026_v34  ;;  %v8864_v11 = vpop.f32.mrf.mxu0  ;;  %v18200_v55 = vld [vmem:[%s13661_s25 + $0x10] ss:$24 sps:$4 sm:$0xff]  }
 0x484   : > { %v9045_v57 = vpop.f32.mrf.mxu1  ;;  %v12276_v18 = vpack.c.bf16 %v9040_v14, %v9038_v31  ;;  %v8865_v15 = vadd.f32 %v8864_v11, %v19027_v28  ;;  %v9044_v10 = vadd.f32 %v9043_v8, %v8863_v30  ;;  %v19031_v14 = vld [vmem:[#allocation11_spill] sm:$0xff]  ;;  %v19032_v28 = vld [vmem:[#allocation52_spill] sm:$0xff] }
 0x485   : > { %v8866_v52 = vpop.f32.mrf.mxu0  ;;  %v13474_v30 = vld [vmem:[#allocation2 + $0x4e8] ss:$28 sps:$4 sm:$0xff]  }
 0x486   : > { %v9047_v12 = vpop.f32.mrf.mxu1  ;;  %10822 = vst [vmem:[%s13666_s28 + $0x104] sm:$0xff] %v12276_v18  ;;  %v9046_v51 = vadd.f32 %v9045_v57, %v8865_v15  ;;  %v8867_v5 = vadd.f32 %v8866_v52, %v19028_v27  ;;  %v13475_v34 = vld [vmem:[#allocation2 + $0x868] ss:$28 sps:$4 sm:$0xff]   ;;  %v13477_v15 = vld [vmem:[#allocation2 + $0x670] ss:$28 sps:$4 sm:$0xff]  }
 0x487   : > { %v8868_v21 = vpop.f32.mrf.mxu0  ;;  %v18207_v18 = vld [vmem:[%s13661_s25 + $0x44] ss:$24 sps:$4 sm:$0xff]  }
 0x488   : > { %v9049_v42 = vpop.f32.mrf.mxu1  ;;  %v12280_v35 = vpack.c.bf16 %v9046_v51, %v9044_v10  ;;  %v8869_v46 = vadd.f32 %v8868_v21, %v19029_v4  ;;  %v9048_v8 = vadd.f32 %v9047_v12, %v8867_v5  ;;  %v19033_v12 = vld [vmem:[#allocation13_spill] sm:$0xff]  ;;  %v19034_v51 = vmov 0   ;;  %v13476_v4 = vld [vmem:[#allocation2 + $0x830] ss:$28 sps:$4 sm:$0xff]  }
 0x489   : > { %v8872_v53 = vpop.f32.mrf.mxu0  ;;  %9535 = vmatmul.mubr.bf16.vlgmr.msra.gmra.mxu0 %v18200_v55 }
 0x48a   : > { %v9053_v39 = vpop.f32.mrf.mxu1  ;;  %9716 = vmatmul.mubr.bf16.vlgmr.msra.gmra.mxu1 %v19030_v63  ;;  %10826 = vst [vmem:[%s13666_s28 + $0x120] sm:$0xff] %v12280_v35  ;;  %v9050_v31 = vadd.f32 %v9049_v42, %v8869_v46  ;;  %v8873_v19 = vadd.f32 %v8872_v53, %v19031_v14  ;;  %12462 = vmatpush3.bf16.msra.mxu0 %v13471_v41  ;;  %v13478_v46 = vld [vmem:[#allocation2 + $0x4b0] ss:$28 sps:$4 sm:$0xff]   ;;  %v13480_v63 = vld [vmem:[#allocation2 + $0x638] ss:$28 sps:$4 sm:$0xff]  }
 0x48b   : > { %9988 = vmatpush1.bf16.msra.mxu1 %v13472_v54  ;;  %v8874_v11 = vpop.f32.mrf.mxu0  ;;  %11744 = vmatprep.mubr.msk.bf16.mxu0 %vm7986_vm3, %v18207_v18 }
 0x48c   : > { %v9055_v57 = vpop.f32.mrf.mxu1  ;;  %9723 = vmatprep.mubr.bf16.mxu1 %v19032_v28  ;;  %v12284_v52 = vpack.c.bf16 %v9050_v31, %v9048_v8  ;;  %v8875_v10 = vadd.f32 %v8874_v11, %v19033_v12  ;;  %12463 = vmatprep.subr.bf16.mxu0 %v13473_v33  ;;  %v9054_v41 = vadd.f32 %v9053_v39, %v8873_v19  ;;  %v18219_v31 = vld [vmem:[%s13661_s25 + $0x40] ss:$24 sps:$4 sm:$0xff]   ;;  %v18226_v11 = vld [vmem:[%s13661_s25 + $0x74] ss:$24 sps:$4 sm:$0xff]  }
 0x48d   : > { %9989 = vmatprep.subr.bf16.mxu1 %v19034_v51  ;;  %v8876_v27 = vpop.f32.mrf.mxu0 }
 0x48e   : > { %v9057_v5 = vpop.f32.mrf.mxu1  ;;  %10830 = vst [vmem:[%s13666_s28 + $0x13c] sm:$0xff] %v12284_v52  ;;  %v9056_v54 = vadd.f32 %v9055_v57, %v8875_v10  ;;  %v8877_v21 = vadd.f32 %v8876_v27, %v17914_v24  ;;  %12464 = vmatpush3.bf16.msra.mxu0 %v13474_v30  ;;  %v19035_v24 = vld [vmem:[#allocation14_spill] sm:$0xff]  ;;  %v19036_v30 = vld [vmem:[#allocation15_spill] sm:$0xff]  ;;  %v13481_v52 = vld [vmem:[#allocation2 + $0x478] ss:$28 sps:$4 sm:$0xff]  }
 0x48f   : > { %9990 = vmatpush1.bf16.msra.mxu1 %v13475_v34  ;;  %v8878_v42 = vpop.f32.mrf.mxu0  ;;  %12465 = vmatprep.subr.bf16.mxu0 %v13477_v15  ;;  %v13479_v15 = vld [vmem:[#allocation2 + $0x7f8] ss:$28 sps:$4 sm:$0xff]  }
 0x490   : > { %v9059_v35 = vpop.f32.mrf.mxu1  ;;  %9991 = vmatprep.subr.bf16.mxu1 %v19034_v51  ;;  %v12288_v33 = vpack.c.bf16 %v9056_v54, %v9054_v41  ;;  %v8879_v53 = vadd.f32 %v8878_v42, %v17916_v6  ;;  %v9058_v14 = vadd.f32 %v9057_v5, %v8877_v21  ;;  %v19037_v6 = vld [vmem:[#allocation16_spill] sm:$0xff]  ;;  %v19038_v10 = vld [vmem:[#allocation17_spill] sm:$0xff]  ;;  %v13484_v5 = vld [vmem:[#allocation2 + $0x600] ss:$28 sps:$4 sm:$0xff]  }
 0x491   : > { %v8882_v39 = vpop.f32.mrf.mxu0  ;;  %9545 = vmatmul.mubr.bf16.gmra.mxu0 %v18219_v31 }
 0x492   : > { %v9063_v8 = vpop.f32.mrf.mxu1  ;;  %9724 = vmatmul.mubr.bf16.gmra.mxu1 %v19035_v24  ;;  %10834 = vst [vmem:[%s13666_s28 + $0x158] sm:$0xff] %v12288_v33  ;;  %v9060_v19 = vadd.f32 %v9059_v35, %v8879_v53  ;;  %v8883_v34 = vadd.f32 %v8882_v39, %v19036_v30  ;;  %11745 = vmatprep.mubr.msk.bf16.mxu0 %vm7986_vm3, %v18226_v11  ;;  %v13485_v53 = vld [vmem:[#allocation2 + $0x440] ss:$28 sps:$4 sm:$0xff]   ;;  %v19039_v24 = vld [vmem:[#allocation19_spill] sm:$0xff] }
 0x493   : > { %9731 = vmatprep.mubr.bf16.mxu1 %v19037_v6  ;;  %v8884_v57 = vpop.f32.mrf.mxu0  ;;  %9992 = vmatpush1.bf16.msra.mxu1 %v13476_v4  ;;  %v18238_v30 = vld [vmem:[%s13661_s25 + $0x70] ss:$24 sps:$4 sm:$0xff]  }
 0x494   : > { %v9065_v28 = vpop.f32.mrf.mxu1  ;;  %12466 = vmatpush3.bf16.msra.mxu0 %v13478_v46  ;;  %v12292_v12 = vpack.c.bf16 %v9060_v19, %v9058_v14  ;;  %v8885_v27 = vadd.f32 %v8884_v57, %v19038_v10  ;;  %9993 = vmatprep.subr.bf16.mxu1 %v19034_v51  ;;  %v9064_v21 = vadd.f32 %v9063_v8, %v8883_v34  ;;  %v13482_v46 = vld [vmem:[#allocation2 + $0x7c0] ss:$28 sps:$4 sm:$0xff]   ;;  %v13487_v14 = vld [vmem:[#allocation2 + $0x5c8] ss:$28 sps:$4 sm:$0xff]  }
 0x495   : > { %12467 = vmatprep.subr.bf16.mxu0 %v13480_v63  ;;  %v8886_v41 = vpop.f32.mrf.mxu0  ;;  %v19041_v57 = vld [vmem:[#allocation18_spill] sm:$0xff] }
 0x496   : > { %v9067_v54 = vpop.f32.mrf.mxu1  ;;  %10838 = vst [vmem:[%s13666_s28 + $0x174] sm:$0xff] %v12292_v12  ;;  %v9066_v42 = vadd.f32 %v9065_v28, %v8885_v27  ;;  %v8887_v35 = vadd.f32 %v8886_v41, %v17938_v49  ;;  %v19040_v49 = vld [vmem:[#allocation20_spill] sm:$0xff]  ;;  %v13483_v27 = vld [vmem:[#allocation2 + $0x788] ss:$28 sps:$4 sm:$0xff]  }
 0x497   : > { %v8888_v33 = vpop.f32.mrf.mxu0  ;;  %9994 = vmatpush1.bf16.msra.mxu1 %v13479_v15  ;;  %v18245_v15 = vld [vmem:[%s13661_s25 + $0xa4] ss:$24 sps:$4 sm:$0xff]  }
 0x498   : > { %v9069_v4 = vpop.f32.mrf.mxu1  ;;  %12468 = vmatpush3.bf16.msra.mxu0 %v13481_v52  ;;  %v12296_v39 = vpack.c.bf16 %v9066_v42, %v9064_v21  ;;  %v8889_v63 = vadd.f32 %v8888_v33, %v19039_v24  ;;  %9995 = vmatprep.subr.bf16.mxu1 %v19034_v51  ;;  %v9068_v34 = vadd.f32 %v9067_v54, %v8887_v35  ;;  %v19042_v52 = vld [vmem:[#allocation21_spill] sm:$0xff]  ;;  %v13491_v21 = vld [vmem:[#allocation2 + $0x590] ss:$28 sps:$4 sm:$0xff]  }
 0x499   : > { %12469 = vmatprep.subr.bf16.mxu0 %v13484_v5  ;;  %v8892_v8 = vpop.f32.mrf.mxu0  ;;  %9555 = vmatmul.mubr.bf16.gmra.mxu0 %v18238_v30  ;;  %v13488_v5 = vld [vmem:[#allocation2 + $0x408] ss:$28 sps:$4 sm:$0xff]  }
 0x49a   : > { %v9073_v19 = vpop.f32.mrf.mxu1  ;;  %9732 = vmatmul.mubr.bf16.gmra.mxu1 %v19040_v49  ;;  %10842 = vst [vmem:[%s13666_s28 + $0x190] sm:$0xff] %v12296_v39  ;;  %v9070_v6 = vadd.f32 %v9069_v4, %v8889_v63  ;;  %v8893_v28 = vadd.f32 %v8892_v8, %v19041_v57  ;;  %11746 = vmatprep.mubr.msk.bf16.mxu0 %vm7986_vm3, %v18245_v15  ;;  %v19043_v8 = vld [vmem:[#allocation23_spill] sm:$0xff]  ;;  %v13494_v49 = vld [vmem:[#allocation2 + $0x558] ss:$28 sps:$4 sm:$0xff]  }
 0x49b   : > { %9739 = vmatprep.mubr.bf16.mxu1 %v19042_v52  ;;  %v8894_v12 = vpop.f32.mrf.mxu0  ;;  %9996 = vmatpush1.bf16.msra.mxu1 %v13482_v46  ;;  %v19045_v52 = vld [vmem:[#allocation22_spill] sm:$0xff] }
 0x49c   : > { %v9075_v10 = vpop.f32.mrf.mxu1  ;;  %12470 = vmatpush3.bf16.msra.mxu0 %v13485_v53  ;;  %v12300_v41 = vpack.c.bf16 %v9070_v6, %v9068_v34  ;;  %v8895_v54 = vadd.f32 %v8894_v12, %v17957_v48  ;;  %9997 = vmatprep.subr.bf16.mxu1 %v19034_v51  ;;  %v9074_v33 = vadd.f32 %v9073_v19, %v8893_v28  ;;  %v13486_v53 = vld [vmem:[#allocation2 + $0x750] ss:$28 sps:$4 sm:$0xff]   ;;  %v18257_v6 = vld [vmem:[%s13661_s25 + $0xa0] ss:$24 sps:$4 sm:$0xff]  }
 0x49d   : > { %12471 = vmatprep.subr.bf16.mxu0 %v13487_v14  ;;  %v8896_v42 = vpop.f32.mrf.mxu0  ;;  %v13492_v48 = vld [vmem:[#allocation2 + $0x3d0] ss:$28 sps:$4 sm:$0xff]  }
 0x49e   : > { %v9077_v35 = vpop.f32.mrf.mxu1  ;;  %10846 = vst [vmem:[%s13666_s28 + $0x1ac] sm:$0xff] %v12300_v41  ;;  %v9076_v4 = vadd.f32 %v9075_v10, %v8895_v54  ;;  %v8897_v39 = vadd.f32 %v8896_v42, %v17962_v23  ;;  %v19044_v23 = vld [vmem:[#allocation24_spill] sm:$0xff]  ;;  %v13489_v54 = vld [vmem:[#allocation2 + $0x718] ss:$28 sps:$4 sm:$0xff]  }
 0x49f   : > { %v8898_v24 = vpop.f32.mrf.mxu0  ;;  %9998 = vmatpush1.bf16.msra.mxu1 %v13483_v27  ;;  %v18264_v10 = vld [vmem:[%s13661_s25 + $0xd4] ss:$24 sps:$4 sm:$0xff]  }
 0x4a0   : > { %v9079_v46 = vpop.f32.mrf.mxu1  ;;  %12472 = vmatpush3.bf16.msra.mxu0 %v13488_v5  ;;  %v12304_v63 = vpack.c.bf16 %v9076_v4, %v9074_v33  ;;  %v8899_v14 = vadd.f32 %v8898_v24, %v19043_v8  ;;  %9999 = vmatprep.subr.bf16.mxu1 %v19034_v51  ;;  %v9078_v57 = vadd.f32 %v9077_v35, %v8897_v39  ;;  %v19046_v27 = vld [vmem:[#allocation25_spill] sm:$0xff]  ;;  %v19047_v33 = vld [vmem:[#allocation27_spill] sm:$0xff]  ;;  %v13490_v4 = vld [vmem:[#allocation2 + $0x980] ss:$0 sps:$4 sm:$0xff]  }
 0x4a1   : > { %12473 = vmatprep.subr.bf16.mxu0 %v13491_v21  ;;  %v8902_v19 = vpop.f32.mrf.mxu0  ;;  %9565 = vmatmul.mubr.bf16.gmra.mxu0 %v18257_v6  ;;  %v13495_v21 = vld [vmem:[#allocation2 + $0x398] ss:$28 sps:$4 sm:$0xff]  }
 0x4a2   : > { %v9083_v34 = vpop.f32.mrf.mxu1  ;;  %9740 = vmatmul.mubr.bf16.gmra.mxu1 %v19044_v23  ;;  %10850 = vst [vmem:[%s13666_s28 + $0x1c8] sm:$0xff] %v12304_v63  ;;  %v9080_v28 = vadd.f32 %v9079_v46, %v8899_v14  ;;  %v8903_v12 = vadd.f32 %v8902_v19, %v19045_v52  ;;  %11747 = vmatprep.mubr.msk.bf16.mxu0 %vm7986_vm3, %v18264_v10 }
 0x4a3   : > { %9747 = vmatprep.mubr.bf16.mxu1 %v19046_v27  ;;  %v8904_v5 = vpop.f32.mrf.mxu0  ;;  %10000 = vmatpush1.bf16.msra.mxu1 %v13486_v53 }
 0x4a4   : > { %v9085_v41 = vpop.f32.mrf.mxu1  ;;  %12474 = vmatpush3.bf16.msra.mxu0 %v13492_v48  ;;  %v12308_v42 = vpack.c.bf16 %v9080_v28, %v9078_v57  ;;  %v8905_v35 = vadd.f32 %v8904_v5, %v19047_v33  ;;  %10001 = vmatprep.subr.bf16.mxu1 %v19034_v51  ;;  %v9084_v46 = vadd.f32 %v9083_v34, %v8903_v12  ;;  %v18277_v28 = vld [vmem:[%s13661_s25 + $0xd0] ss:$24 sps:$4 sm:$0xff]   ;;  %v18284_v12 = vld [vmem:[%s13661_s25 + $0x104] ss:$24 sps:$4 sm:$0xff]  }
 0x4a5   : > { %12475 = vmatprep.subr.bf16.mxu0 %v13494_v49  ;;  %v8906_v39 = vpop.f32.mrf.mxu0  ;;  %v8052_v49 = vsel %vm8032_vm2, %v13490_v4, 0  ;;  %v13493_v5 = vld [vmem:[#allocation2 + $0x948] ss:$28 sps:$4 sm:$0xff]  }
 0x4a6   : > { %v9087_v24 = vpop.f32.mrf.mxu1  ;;  %10854 = vst [vmem:[%s13666_s28 + $0x1e4] sm:$0xff] %v12308_v42  ;;  %v9086_v63 = vadd.f32 %v9085_v41, %v8905_v35  ;;  %v8907_v8 = vadd.f32 %v8906_v39, %v17986_v43  ;;  %v13496_v39 = vld [vmem:[#allocation2 + $0x910] ss:$28 sps:$4 sm:$0xff]  }
 0x4a7   : > { %v8908_v53 = vpop.f32.mrf.mxu0  ;;  %10002 = vmatpush1.bf16.msra.mxu1 %v13489_v54  ;;  %v19048_v54 = vld [vmem:[#allocation26_spill] sm:$0xff] }
 0x4a8   : > { %v9089_v14 = vpop.f32.mrf.mxu1  ;;  %12476 = vmatpush3.bf16.msra.mxu0 %v13495_v21  ;;  %v12312_v48 = vpack.c.bf16 %v9086_v63, %v9084_v46  ;;  %v8909_v19 = vadd.f32 %v8908_v53, %v17988_v50  ;;  %10011 = vmatprep.subr.bf16.mxu1 %v19034_v51  ;;  %v9088_v43 = vadd.f32 %v9087_v24, %v8907_v8  ;;  %v18296_v53 = vld [vmem:[%s13661_s25 + $0x100] ss:$24 sps:$4 sm:$0xff]  }
 0x4a9   : > { %v8912_v23 = vpop.f32.mrf.mxu0  ;;  %9575 = vmatmul.mubr.bf16.gmra.mxu0 %v18277_v28 }
 0x4aa   : > { %v9093_v57 = vpop.f32.mrf.mxu1  ;;  %9748 = vmatmul.mubr.bf16.gmra.mxu1 %v17999_v59  ;;  %10858 = vst [vmem:[%s13666_s28 + $0x200] sm:$0xff] %v12312_v48  ;;  %v9090_v34 = vadd.f32 %v9089_v14, %v8909_v19  ;;  %v8913_v52 = vadd.f32 %v8912_v23, %v17996_v58  ;;  %11748 = vmatprep.mubr.msk.bf16.mxu0 %vm7986_vm3, %v18284_v12  ;;  %v19049_v14 = vld [vmem:[#allocation29_spill] sm:$0xff]  ;;  %v19050_v19 = vld [vmem:[#allocation28_spill] sm:$0xff] }
 0x4ab   : > { %9755 = vmatprep.mubr.bf16.mxu1 %v18004_v61  ;;  %v8914_v50 = vpop.f32.mrf.mxu0  ;;  %10012 = vmatpush2.bf16.msra.mxu1 %v8052_v49  ;;  %v18303_v23 = vld [vmem:[%s13661_s25 + $0x134] ss:$24 sps:$4 sm:$0xff]  }
 0x4ac   : > { %v9095_v27 = vpop.f32.mrf.mxu1  ;;  %v12316_v41 = vpack.c.bf16 %v9090_v34, %v9088_v43  ;;  %v8915_v59 = vadd.f32 %v8914_v50, %v19048_v54  ;;  %10013 = vmatprep.subr.bf16.mxu1 %v19034_v51  ;;  %v9094_v58 = vadd.f32 %v9093_v57, %v8913_v52  ;;  %v13497_v34 = vld [vmem:[#allocation2 + $0x8d8] ss:$28 sps:$4 sm:$0xff]  }
 0x4ad   : > { %v8916_v21 = vpop.f32.mrf.mxu0 }
 0x4ae   : > { %v9097_v42 = vpop.f32.mrf.mxu1  ;;  %10862 = vst [vmem:[%s13666_s28 + $0x21c] sm:$0xff] %v12316_v41  ;;  %v9096_v33 = vadd.f32 %v9095_v27, %v8915_v59  ;;  %v8917_v35 = vadd.f32 %v8916_v21, %v18013_v25 }
 0x4af   : > { %v8918_v4 = vpop.f32.mrf.mxu0  ;;  %10014 = vmatpush2.bf16.msra.mxu1 %v13493_v5 }
 0x4b0   : > { %v9099_v61 = vpop.f32.mrf.mxu1  ;;  %v12320_v24 = vpack.c.bf16 %v9096_v33, %v9094_v58  ;;  %v8919_v46 = vadd.f32 %v8918_v4, %v18015_v40  ;;  %10015 = vmatprep.subr.bf16.mxu1 %v19034_v51  ;;  %v9098_v25 = vadd.f32 %v9097_v42, %v8917_v35  ;;  %v19051_v40 = vld [vmem:[#allocation31_spill] sm:$0xff] }
 0x4b1   : > { %v8922_v63 = vpop.f32.mrf.mxu0  ;;  %9585 = vmatmul.mubr.bf16.gmra.mxu0 %v18296_v53 }
 0x4b2   : > { %v9103_v8 = vpop.f32.mrf.mxu1  ;;  %9756 = vmatmul.mubr.bf16.gmra.mxu1 %v19049_v14  ;;  %10866 = vst [vmem:[%s13666_s28 + $0x238] sm:$0xff] %v12320_v24  ;;  %v9100_v48 = vadd.f32 %v9099_v61, %v8919_v46  ;;  %v8923_v49 = vadd.f32 %v8922_v63, %v19050_v19  ;;  %11749 = vmatprep.mubr.msk.bf16.mxu0 %vm7986_vm3, %v18303_v23  ;;  %v18321_v24 = vld [vmem:[%s13661_s25 + $0x164] ss:$24 sps:$4 sm:$0xff]   ;;  %v19054_v14 = vld [vmem:[#allocation33_spill] sm:$0xff] }
 0x4b3   : > { %9763 = vmatprep.mubr.bf16.mxu1 %v19051_v40  ;;  %v8924_v57 = vpop.f32.mrf.mxu0  ;;  %10016 = vmatpush2.bf16.msra.mxu1 %v13496_v39  ;;  %v19052_v39 = vld [vmem:[#allocation30_spill] sm:$0xff] }
 0x4b4   : > { %v9105_v43 = vpop.f32.mrf.mxu1  ;;  %v12324_v52 = vpack.c.bf16 %v9100_v48, %v9098_v25  ;;  %v8925_v50 = vadd.f32 %v8924_v57, %v18032_v38  ;;  %10017 = vmatprep.subr.bf16.mxu1 %v19034_v51  ;;  %v9104_v41 = vadd.f32 %v9103_v8, %v8923_v49  ;;  %v18314_v38 = vld [vmem:[%s13661_s25 + $0x130] ss:$24 sps:$4 sm:$0xff]  }
 0x4b5   : > { %v8926_v27 = vpop.f32.mrf.mxu0 }
 0x4b6   : > { %v9107_v5 = vpop.f32.mrf.mxu1  ;;  %10870 = vst [vmem:[%s13666_s28 + $0x254] sm:$0xff] %v12324_v52  ;;  %v9106_v54 = vadd.f32 %v9105_v43, %v8925_v50  ;;  %v8927_v59 = vadd.f32 %v8926_v27, %v18037_v37 }
 0x4b7   : > { %v8928_v21 = vpop.f32.mrf.mxu0  ;;  %10018 = vmatpush2.bf16.msra.mxu1 %v13497_v34 }
 0x4b8   : > { %v9109_v42 = vpop.f32.mrf.mxu1  ;;  %v12328_v58 = vpack.c.bf16 %v9106_v54, %v9104_v41  ;;  %v8929_v33 = vadd.f32 %v8928_v21, %v18039_v3  ;;  %v9108_v51 = vadd.f32 %v9107_v5, %v8927_v59  ;;  %v19053_v3 = vld [vmem:[#allocation32_spill] sm:$0xff]  ;;  %v18331_v5 = vld [vmem:[%s13661_s25 + $0x160] ss:$24 sps:$4 sm:$0xff]  }
 0x4b9   : > { %v8932_v35 = vpop.f32.mrf.mxu0  ;;  %9595 = vmatmul.mubr.bf16.gmra.mxu0 %v18314_v38 }
 0x4ba   : > { %v9113_v4 = vpop.f32.mrf.mxu1  ;;  %9764 = vmatmul.mubr.bf16.gmra.mxu1 %v18047_v20  ;;  %10874 = vst [vmem:[%s13666_s28 + $0x270] sm:$0xff] %v12328_v58  ;;  %v9110_v61 = vadd.f32 %v9109_v42, %v8929_v33  ;;  %v8933_v37 = vadd.f32 %v8932_v35, %v19052_v39  ;;  %11750 = vmatprep.mubr.msk.bf16.mxu0 %vm7986_vm3, %v18321_v24  ;;  %v19056_v33 = vld [vmem:[#allocation34_spill] sm:$0xff] }
 0x4bb   : > { %9771 = vmatprep.mubr.bf16.mxu1 %v19053_v3  ;;  %v8934_v46 = vpop.f32.mrf.mxu0 }
 0x4bc   : > { %v9115_v63 = vpop.f32.mrf.mxu1  ;;  %v12332_v8 = vpack.c.bf16 %v9110_v61, %v9108_v51  ;;  %v8935_v25 = vadd.f32 %v8934_v46, %v19054_v14  ;;  %v9114_v19 = vadd.f32 %v9113_v4, %v8933_v37  ;;  %v18348_v14 = vld [vmem:[%s13661_s25 + $0x190] ss:$24 sps:$4 sm:$0xff]  }
 0x4bd   : > { %v8936_v20 = vpop.f32.mrf.mxu0 }
 0x4be   : > { %v9117_v48 = vpop.f32.mrf.mxu1  ;;  %10878 = vst [vmem:[%s13666_s28 + $0x28c] sm:$0xff] %v12332_v8  ;;  %v9116_v49 = vadd.f32 %v9115_v63, %v8935_v25  ;;  %v8937_v40 = vadd.f32 %v8936_v20, %v18061_v29  ;;  %v18338_v29 = vld [vmem:[%s13661_s25 + $0x194] ss:$24 sps:$4 sm:$0xff]  }
 0x4bf   : > { %v8938_v57 = vpop.f32.mrf.mxu0 }
 0x4c0   : > { %v9119_v43 = vpop.f32.mrf.mxu1  ;;  %v12336_v34 = vpack.c.bf16 %v9116_v49, %v9114_v19  ;;  %v8939_v52 = vadd.f32 %v8938_v57, %v18063_v22  ;;  %v9118_v41 = vadd.f32 %v9117_v48, %v8937_v40  ;;  %v19055_v22 = vld [vmem:[#allocation35_spill] sm:$0xff]  ;;  %v19057_v48 = vld [vmem:[#allocation36_spill] sm:$0xff] }
 0x4c1   : > { %v8942_v50 = vpop.f32.mrf.mxu0  ;;  %9605 = vmatmul.mubr.bf16.gmra.mxu0 %v18331_v5 }
 0x4c2   : > { %v9123_v27 = vpop.f32.mrf.mxu1  ;;  %9772 = vmatmul.mubr.bf16.gmra.mxu1 %v18071_v7  ;;  %10882 = vst [vmem:[%s13666_s28 + $0x2a8] sm:$0xff] %v12336_v34  ;;  %v9120_v54 = vadd.f32 %v9119_v43, %v8939_v52  ;;  %v8943_v59 = vadd.f32 %v8942_v50, %v18068_v0  ;;  %11751 = vmatprep.mubr.msk.bf16.mxu0 %vm7986_vm3, %v18338_v29  ;;  %v19059_v43 = vld [vmem:[#allocation39_spill] sm:$0xff] }
 0x4c3   : > { %9779 = vmatprep.mubr.bf16.mxu1 %v19055_v22  ;;  %v8944_v21 = vpop.f32.mrf.mxu0 }
 0x4c4   : > { %v9125_v42 = vpop.f32.mrf.mxu1  ;;  %v12340_v58 = vpack.c.bf16 %v9120_v54, %v9118_v41  ;;  %v8945_v35 = vadd.f32 %v8944_v21, %v19056_v33  ;;  %v9124_v51 = vadd.f32 %v9123_v27, %v8943_v59 }
 0x4c5   : > { %v8946_v7 = vpop.f32.mrf.mxu0 }
 0x4c6   : > { %v9127_v4 = vpop.f32.mrf.mxu1  ;;  %10886 = vst [vmem:[%s13666_s28 + $0x2c4] sm:$0xff] %v12340_v58  ;;  %v9126_v0 = vadd.f32 %v9125_v42, %v8945_v35  ;;  %v8947_v61 = vadd.f32 %v8946_v7, %v18085_v9  ;;  %v18355_v9 = vld [vmem:[%s13661_s25 + $0x1c4] ss:$24 sps:$4 sm:$0xff]   ;;  %v18363_v42 = vld [vmem:[%s13661_s25 + $0x1c0] ss:$24 sps:$4 sm:$0xff]   ;;  %v19061_v7 = vld [vmem:[#allocation40_spill] sm:$0xff] }
 0x4c7   : > { %v8948_v39 = vpop.f32.mrf.mxu0  ;;  %v19060_v58 = vld [vmem:[#allocation38_spill] sm:$0xff]  ;;  %v18371_v35 = vld [vmem:[%s13661_s25 + $0x1f4] ss:$24 sps:$4 sm:$0xff]  }
 0x4c8   : > { %v9129_v37 = vpop.f32.mrf.mxu1  ;;  %v12344_v3 = vpack.c.bf16 %v9126_v0, %v9124_v51  ;;  %v8949_v46 = vadd.f32 %v8948_v39, %v18087_v32  ;;  %v9128_v25 = vadd.f32 %v9127_v4, %v8947_v61  ;;  %v19058_v32 = vld [vmem:[#allocation37_spill] sm:$0xff] }
 0x4c9   : > { %v8952_v63 = vpop.f32.mrf.mxu0  ;;  %9615 = vmatmul.mubr.bf16.gmra.mxu0 %v18348_v14 }
 0x4ca   : > { %v9133_v8 = vpop.f32.mrf.mxu1  ;;  %9780 = vmatmul.mubr.bf16.gmra.mxu1 %v18095_v2  ;;  %10890 = vst [vmem:[%s13666_s28 + $0x2e0] sm:$0xff] %v12344_v3  ;;  %v9130_v20 = vadd.f32 %v9129_v37, %v8949_v46  ;;  %v8953_v19 = vadd.f32 %v8952_v63, %v19057_v48  ;;  %11752 = vmatprep.mubr.msk.bf16.mxu0 %vm7986_vm3, %v18355_v9 }
 0x4cb   : > { %9787 = vmatprep.mubr.bf16.mxu1 %v19058_v32  ;;  %v8954_v49 = vpop.f32.mrf.mxu0 }
 0x4cc   : > { %v9135_v40 = vpop.f32.mrf.mxu1  ;;  %v12348_v57 = vpack.c.bf16 %v9130_v20, %v9128_v25  ;;  %v8955_v34 = vadd.f32 %v8954_v49, %v19059_v43  ;;  %v9134_v50 = vadd.f32 %v9133_v8, %v8953_v19  ;;  %v18383_v20 = vld [vmem:[%s13661_s25 + $0x1f0] ss:$24 sps:$4 sm:$0xff]   ;;  %v18390_v19 = vld [vmem:[%s13661_s25 + $0x224] ss:$24 sps:$4 sm:$0xff]  }
 0x4cd   : > { %v8956_v2 = vpop.f32.mrf.mxu0 }
 0x4ce   : > { %v9137_v52 = vpop.f32.mrf.mxu1  ;;  %10894 = vst [vmem:[%s13666_s28 + $0x2fc] sm:$0xff] %v12348_v57  ;;  %v9136_v27 = vadd.f32 %v9135_v40, %v8955_v34 }
 0x4cf   : > { %v8957_v41 = vpop.f32.mrf.mxu0 }
 0x4d0   : > { %v9138_v54 = vpop.f32.mrf.mxu1  ;;  %v12352_v59 = vpack.c.bf16 %v9136_v27, %v9134_v50  ;;  %v18402_v41 = vld [vmem:[%s13661_s25 + $0x220] ss:$24 sps:$4 sm:$0xff]  }
 0x4d1   : > { %v9174_v22 = vpop.f32.mrf.mxu0  ;;  %9625 = vmatmul.mubr.bf16.gmra.mxu0 %v18363_v42  ;;  %v18409_v54 = vld [vmem:[%s13661_s25 + $0x254] ss:$24 sps:$4 sm:$0xff]  }
 0x4d2   : > { %v9355_v21 = vpop.f32.mrf.mxu1  ;;  %9788 = vmatmul.mubr.bf16.gmra.mxu1 %v19060_v58  ;;  %10898 = vst [vmem:[%s13666_s28 + $0x318] sm:$0xff] %v12352_v59  ;;  %11753 = vmatprep.mubr.msk.bf16.mxu0 %vm7986_vm3, %v18371_v35 }
 0x4d3   : > { %v18368_v33 = vadd.f32 %v9355_v21, %v9174_v22  ;;  %9795 = vmatprep.mubr.bf16.mxu1 %v19061_v7  ;;  %v9176_v4 = vpop.f32.mrf.mxu0 }
 0x4d4   : > { %v9357_v51 = vpop.f32.mrf.mxu1 }
 0x4d5   : > { %v18376_v0 = vadd.f32 %v9357_v51, %v9176_v4  ;;  %v9178_v61 = vpop.f32.mrf.mxu0 }
 0x4d6   : > { %v9359_v39 = vpop.f32.mrf.mxu1 }
 0x4d7   : > { %v18378_v37 = vadd.f32 %v9359_v39, %v9178_v61  ;;  %v9180_v3 = vpop.f32.mrf.mxu0 }
 0x4d8   : > { %v9361_v46 = vpop.f32.mrf.mxu1 }
 0x4d9   : > { %v18380_v63 = vadd.f32 %v9361_v46, %v9180_v3  ;;  %v9184_v8 = vpop.f32.mrf.mxu0  ;;  %9635 = vmatmul.mubr.bf16.gmra.mxu0 %v18383_v20  ;;  %v18421_v46 = vld [vmem:[%s13661_s25 + $0x250] ss:$24 sps:$4 sm:$0xff]  }
 0x4da   : > { %v9365_v25 = vpop.f32.mrf.mxu1  ;;  %9796 = vmatmul.mubr.bf16.gmra.mxu1 %v18125_v13  ;;  %11754 = vmatprep.mubr.msk.bf16.mxu0 %vm7986_vm3, %v18390_v19 }
 0x4db   : > { %v18387_v48 = vadd.f32 %v9365_v25, %v9184_v8  ;;  %9803 = vmatprep.mubr.bf16.mxu1 %v18132_v17  ;;  %v9186_v32 = vpop.f32.mrf.mxu0  ;;  %v18428_v8 = vld [vmem:[%s13661_s25 + $0x284] ss:$24 sps:$4 sm:$0xff]  }
 0x4dc   : > { %v9367_v49 = vpop.f32.mrf.mxu1 }
 0x4dd   : > { %v18395_v40 = vadd.f32 %v9367_v49, %v9186_v32  ;;  %v9188_v57 = vpop.f32.mrf.mxu0 }
 0x4de   : > { %v9369_v43 = vpop.f32.mrf.mxu1 }
 0x4df   : > { %v18397_v34 = vadd.f32 %v9369_v43, %v9188_v57  ;;  %v9190_v13 = vpop.f32.mrf.mxu0 }
 0x4e0   : > { %v9371_v2 = vpop.f32.mrf.mxu1 }
 0x4e1   : > { %v18399_v52 = vadd.f32 %v9371_v2, %v9190_v13  ;;  %v9194_v50 = vpop.f32.mrf.mxu0  ;;  %9645 = vmatmul.mubr.bf16.gmra.mxu0 %v18402_v41 }
 0x4e2   : > { %v9375_v27 = vpop.f32.mrf.mxu1  ;;  %9804 = vmatmul.mubr.bf16.gmra.mxu1 %v18141_v45  ;;  %11755 = vmatprep.mubr.msk.bf16.mxu0 %vm7986_vm3, %v18409_v54 }
 0x4e3   : > { %v18406_v17 = vadd.f32 %v9375_v27, %v9194_v50  ;;  %9811 = vmatprep.mubr.bf16.mxu1 %v18148_v36  ;;  %v9196_v59 = vpop.f32.mrf.mxu0 }
 0x4e4   : > { %v9377_v22 = vpop.f32.mrf.mxu1 }
 0x4e5   : > { %v18414_v21 = vadd.f32 %v9377_v22, %v9196_v59  ;;  %v9198_v58 = vpop.f32.mrf.mxu0  ;;  %v18440_v22 = vld [vmem:[%s13661_s25 + $0x280] ss:$24 sps:$4 sm:$0xff]  }
 0x4e6   : > { %v9379_v7 = vpop.f32.mrf.mxu1 }
 0x4e7   : > { %v18416_v4 = vadd.f32 %v9379_v7, %v9198_v58  ;;  %v9200_v45 = vpop.f32.mrf.mxu0  ;;  %v19062_v58 = vld [vmem:[#allocation6_spill] sm:$0xff] }
 0x4e8   : > { %v9381_v51 = vpop.f32.mrf.mxu1 }
 0x4e9   : > { %v18418_v61 = vadd.f32 %v9381_v51, %v9200_v45  ;;  %v9204_v39 = vpop.f32.mrf.mxu0  ;;  %9655 = vmatmul.mubr.bf16.gmra.mxu0 %v18421_v46 }
 0x4ea   : > { %v9385_v3 = vpop.f32.mrf.mxu1  ;;  %9812 = vmatmul.mubr.bf16.gmra.mxu1 %v18157_v26  ;;  %11756 = vmatprep.mubr.msk.bf16.mxu0 %vm7986_vm3, %v18428_v8 }
 0x4eb   : > { %v18425_v36 = vadd.f32 %v9385_v3, %v9204_v39  ;;  %9819 = vmatprep.mubr.bf16.mxu1 %v18164_v44  ;;  %v9206_v25 = vpop.f32.mrf.mxu0 }
 0x4ec   : > { %v9387_v32 = vpop.f32.mrf.mxu1 }
 0x4ed   : > { %v18433_v49 = vadd.f32 %v9387_v32, %v9206_v25  ;;  %v9208_v57 = vpop.f32.mrf.mxu0 }
 0x4ee   : > { %v9389_v43 = vpop.f32.mrf.mxu1 }
 0x4ef   : > { %v18435_v13 = vadd.f32 %v9389_v43, %v9208_v57  ;;  %v9210_v2 = vpop.f32.mrf.mxu0 }
 0x4f0   : > { %v9391_v26 = vpop.f32.mrf.mxu1 }
 0x4f1   : > { %v18437_v50 = vadd.f32 %v9391_v26, %v9210_v2  ;;  %v9214_v27 = vpop.f32.mrf.mxu0  ;;  %9665 = vmatmul.mubr.bf16.gmra.mxu0 %v18440_v22  ;;  %v19063_v26 = vld [vmem:[#allocation7_spill] sm:$0xff] }
 0x4f2   : > { %v9395_v59 = vpop.f32.mrf.mxu1  ;;  %9820 = vmatmul.mubr.bf16.gmra.mxu1 %v18173_v60  ;;  %11757 = vmatprep.mubr.msk.bf16.mxu0 %vm7986_vm3, %v19062_v58 }
 0x4f3   : > { %v18444_v44 = vadd.f32 %v9395_v59, %v9214_v27  ;;  %9827 = vmatprep.mubr.bf16.mxu1 %v19020_v62  ;;  %v9216_v7 = vpop.f32.mrf.mxu0  ;;  %v13582_v27 = vld [vmem:[%s13661_s25 + $0xc] ss:$24 sps:$4 sm:$0xff]  }
 0x4f4   : > { %v9397_v45 = vpop.f32.mrf.mxu1 }
 0x4f5   : > { %v18449_v51 = vadd.f32 %v9397_v45, %v9216_v7  ;;  %v9218_v39 = vpop.f32.mrf.mxu0 }
 0x4f6   : > { %v9399_v3 = vpop.f32.mrf.mxu1 }
 0x4f7   : > { %v18451_v25 = vadd.f32 %v9399_v3, %v9218_v39  ;;  %v9220_v32 = vpop.f32.mrf.mxu0 }
 0x4f8   : > { %v9401_v57 = vpop.f32.mrf.mxu1 }
 0x4f9   : > { %v18453_v43 = vadd.f32 %v9401_v57, %v9220_v32  ;;  %v9224_v60 = vpop.f32.mrf.mxu0  ;;  %9675 = vmatmul.mubr.bf16.gmra.mxu0 %v19063_v26 }
 0x4fa   : > { %v9405_v2 = vpop.f32.mrf.mxu1  ;;  %9828 = vmatmul.mubr.bf16.gmra.mxu1 %v19023_v16  ;;  %9867 = vmatprep.mubr.bf16.mxu0 %v13582_v27  ;;  %v13584_v27 = vld [vmem:[%s13661_s25 + $0x3c] ss:$24 sps:$4 sm:$0xff]  }
 0x4fb   : > { %v18457_v62 = vadd.f32 %v9405_v2, %v9224_v60  ;;  %11758 = vmatprep.mubr.msk.bf16.mxu1 %vm7986_vm3, %v18190_v1  ;;  %v9226_v59 = vpop.f32.mrf.mxu0 }
 0x4fc   : > { %v9407_v7 = vpop.f32.mrf.mxu1 }
 0x4fd   : > { %19064 = vst [vmem:[#allocation42_spill] sm:$0xff] %v18457_v62  ;;  %v18462_v45 = vadd.f32 %v9407_v7, %v9226_v59  ;;  %v9228_v39 = vpop.f32.mrf.mxu0  ;;  %v13583_v62 = vld [vmem:[%s13661_s25 + $0x8] ss:$24 sps:$4 sm:$0xff]  }
 0x4fe   : > { %v9409_v3 = vpop.f32.mrf.mxu1 }
 0x4ff   : > { %v18464_v32 = vadd.f32 %v9409_v3, %v9228_v39  ;;  %v9230_v57 = vpop.f32.mrf.mxu0 }
 0x500   : > { %v9411_v26 = vpop.f32.mrf.mxu1 }
 0x501   : > { %v18466_v16 = vadd.f32 %v9411_v26, %v9230_v57  ;;  %v9234_v60 = vpop.f32.mrf.mxu0  ;;  %9868 = vmatmul.mubr.bf16.vlgmr.msra.gmra.mxu0 %v13583_v62 }
 0x502   : > { %v9415_v2 = vpop.f32.mrf.mxu1  ;;  %10020 = vmatmul.mubr.bf16.vlgmr.msra.gmra.mxu1 %v18200_v55  ;;  %9875 = vmatprep.mubr.bf16.mxu0 %v13584_v27  ;;  %v13586_v27 = vld [vmem:[%s13661_s25 + $0x6c] ss:$24 sps:$4 sm:$0xff]  }
 0x503   : > { %19065 = vst [vmem:[#allocation41_spill] sm:$0xff] %v18466_v16  ;;  %v18470_v1 = vadd.f32 %v9415_v2, %v9234_v60  ;;  %11759 = vmatprep.mubr.msk.bf16.mxu1 %vm7986_vm3, %v18207_v18  ;;  %v9236_v59 = vpop.f32.mrf.mxu0 }
 0x504   : > { %v9417_v7 = vpop.f32.mrf.mxu1 }
 0x505   : > { %19066 = vst [vmem:[#allocation44_spill] sm:$0xff] %v18470_v1  ;;  %v18475_v39 = vadd.f32 %v9417_v7, %v9236_v59  ;;  %v9238_v26 = vpop.f32.mrf.mxu0  ;;  %v13585_v1 = vld [vmem:[%s13661_s25 + $0x38] ss:$24 sps:$4 sm:$0xff]  }
 0x506   : > { %v9419_v3 = vpop.f32.mrf.mxu1 }
 0x507   : > { %v18477_v57 = vadd.f32 %v9419_v3, %v9238_v26  ;;  %v9240_v62 = vpop.f32.mrf.mxu0 }
 0x508   : > { %v9421_v16 = vpop.f32.mrf.mxu1 }
 0x509   : > { %v18479_v55 = vadd.f32 %v9421_v16, %v9240_v62  ;;  %v9244_v60 = vpop.f32.mrf.mxu0  ;;  %9876 = vmatmul.mubr.bf16.gmra.mxu0 %v13585_v1 }
 0x50a   : > { %v9425_v2 = vpop.f32.mrf.mxu1  ;;  %10028 = vmatmul.mubr.bf16.gmra.mxu1 %v18219_v31  ;;  %9883 = vmatprep.mubr.bf16.mxu0 %v13586_v27  ;;  %v13588_v27 = vld [vmem:[%s13661_s25 + $0x9c] ss:$24 sps:$4 sm:$0xff]  }
 0x50b   : > { %19067 = vst [vmem:[#allocation43_spill] sm:$0xff] %v18479_v55  ;;  %v18483_v18 = vadd.f32 %v9425_v2, %v9244_v60  ;;  %11760 = vmatprep.mubr.msk.bf16.mxu1 %vm7986_vm3, %v18226_v11  ;;  %v9246_v59 = vpop.f32.mrf.mxu0 }
 0x50c   : > { %v9427_v7 = vpop.f32.mrf.mxu1 }
 0x50d   : > { %19068 = vst [vmem:[#allocation45_spill] sm:$0xff] %v18483_v18  ;;  %v18488_v26 = vadd.f32 %v9427_v7, %v9246_v59  ;;  %v9248_v16 = vpop.f32.mrf.mxu0  ;;  %v13587_v18 = vld [vmem:[%s13661_s25 + $0x68] ss:$24 sps:$4 sm:$0xff]  }
 0x50e   : > { %v9429_v3 = vpop.f32.mrf.mxu1 }
 0x50f   : > { %v18490_v62 = vadd.f32 %v9429_v3, %v9248_v16  ;;  %v9250_v1 = vpop.f32.mrf.mxu0 }
 0x510   : > { %v9431_v55 = vpop.f32.mrf.mxu1 }
 0x511   : > { %v18492_v31 = vadd.f32 %v9431_v55, %v9250_v1  ;;  %v9254_v60 = vpop.f32.mrf.mxu0  ;;  %9884 = vmatmul.mubr.bf16.gmra.mxu0 %v13587_v18 }
 0x512   : > { %v9435_v2 = vpop.f32.mrf.mxu1  ;;  %10036 = vmatmul.mubr.bf16.gmra.mxu1 %v18238_v30  ;;  %9891 = vmatprep.mubr.bf16.mxu0 %v13588_v27  ;;  %v13590_v27 = vld [vmem:[%s13661_s25 + $0xcc] ss:$24 sps:$4 sm:$0xff]  }
 0x513   : > { %19069 = vst [vmem:[#allocation46_spill] sm:$0xff] %v18492_v31  ;;  %v18496_v11 = vadd.f32 %v9435_v2, %v9254_v60  ;;  %11761 = vmatprep.mubr.msk.bf16.mxu1 %vm7986_vm3, %v18245_v15  ;;  %v9256_v59 = vpop.f32.mrf.mxu0 }
 0x514   : > { %v9437_v7 = vpop.f32.mrf.mxu1 }
 0x515   : > { %19070 = vst [vmem:[#allocation47_spill] sm:$0xff] %v18496_v11  ;;  %v18501_v16 = vadd.f32 %v9437_v7, %v9256_v59  ;;  %v9258_v55 = vpop.f32.mrf.mxu0  ;;  %v13589_v11 = vld [vmem:[%s13661_s25 + $0x98] ss:$24 sps:$4 sm:$0xff]  }
 0x516   : > { %v9439_v3 = vpop.f32.mrf.mxu1 }
 0x517   : > { %v18503_v1 = vadd.f32 %v9439_v3, %v9258_v55  ;;  %v9260_v18 = vpop.f32.mrf.mxu0 }
 0x518   : > { %v9441_v31 = vpop.f32.mrf.mxu1 }
 0x519   : > { %v18505_v30 = vadd.f32 %v9441_v31, %v9260_v18  ;;  %v9264_v60 = vpop.f32.mrf.mxu0  ;;  %9892 = vmatmul.mubr.bf16.gmra.mxu0 %v13589_v11 }
 0x51a   : > { %v9445_v2 = vpop.f32.mrf.mxu1  ;;  %10044 = vmatmul.mubr.bf16.gmra.mxu1 %v18257_v6  ;;  %9899 = vmatprep.mubr.bf16.mxu0 %v13590_v27  ;;  %v13592_v27 = vld [vmem:[%s13661_s25 + $0xfc] ss:$24 sps:$4 sm:$0xff]  }
 0x51b   : > { %19071 = vst [vmem:[#allocation3_spill] sm:$0xff] %v18505_v30  ;;  %v18509_v15 = vadd.f32 %v9445_v2, %v9264_v60  ;;  %11762 = vmatprep.mubr.msk.bf16.mxu1 %vm7986_vm3, %v18264_v10  ;;  %v9266_v59 = vpop.f32.mrf.mxu0 }
 0x51c   : > { %v9447_v7 = vpop.f32.mrf.mxu1 }
 0x51d   : > { %19072 = vst [vmem:[#allocation48_spill] sm:$0xff] %v18509_v15  ;;  %v18514_v55 = vadd.f32 %v9447_v7, %v9266_v59  ;;  %v9268_v31 = vpop.f32.mrf.mxu0  ;;  %v13591_v15 = vld [vmem:[%s13661_s25 + $0xc8] ss:$24 sps:$4 sm:$0xff]  }
 0x51e   : > { %v9449_v3 = vpop.f32.mrf.mxu1 }
 0x51f   : > { %v18516_v18 = vadd.f32 %v9449_v3, %v9268_v31  ;;  %v9270_v11 = vpop.f32.mrf.mxu0 }
 0x520   : > { %v9451_v30 = vpop.f32.mrf.mxu1 }
 0x521   : > { %v18518_v6 = vadd.f32 %v9451_v30, %v9270_v11  ;;  %v9274_v60 = vpop.f32.mrf.mxu0  ;;  %9900 = vmatmul.mubr.bf16.gmra.mxu0 %v13591_v15 }
 0x522   : > { %v9455_v2 = vpop.f32.mrf.mxu1  ;;  %10052 = vmatmul.mubr.bf16.gmra.mxu1 %v18277_v28  ;;  %9907 = vmatprep.mubr.bf16.mxu0 %v13592_v27  ;;  %v13594_v27 = vld [vmem:[%s13661_s25 + $0x12c] ss:$24 sps:$4 sm:$0xff]  }
 0x523   : > { %19073 = vst [vmem:[#allocation49_spill] sm:$0xff] %v18518_v6  ;;  %v18522_v10 = vadd.f32 %v9455_v2, %v9274_v60  ;;  %11763 = vmatprep.mubr.msk.bf16.mxu1 %vm7986_vm3, %v18284_v12  ;;  %v9276_v59 = vpop.f32.mrf.mxu0 }
 0x524   : > { %v9457_v7 = vpop.f32.mrf.mxu1 }
 0x525   : > { %19074 = vst [vmem:[#allocation4_spill] sm:$0xff] %v18522_v10  ;;  %v18527_v31 = vadd.f32 %v9457_v7, %v9276_v59  ;;  %v9278_v30 = vpop.f32.mrf.mxu0  ;;  %v13593_v10 = vld [vmem:[%s13661_s25 + $0xf8] ss:$24 sps:$4 sm:$0xff]  }
 0x526   : > { %v9459_v3 = vpop.f32.mrf.mxu1 }
 0x527   : > { %v18529_v11 = vadd.f32 %v9459_v3, %v9278_v30  ;;  %v9280_v15 = vpop.f32.mrf.mxu0 }
 0x528   : > { %v9461_v6 = vpop.f32.mrf.mxu1 }
 0x529   : > { %v18531_v28 = vadd.f32 %v9461_v6, %v9280_v15  ;;  %v9284_v60 = vpop.f32.mrf.mxu0  ;;  %9908 = vmatmul.mubr.bf16.gmra.mxu0 %v13593_v10 }
 0x52a   : > { %v9465_v2 = vpop.f32.mrf.mxu1  ;;  %10060 = vmatmul.mubr.bf16.gmra.mxu1 %v18296_v53  ;;  %9915 = vmatprep.mubr.bf16.mxu0 %v13594_v27  ;;  %v13596_v27 = vld [vmem:[%s13661_s25 + $0x15c] ss:$24 sps:$4 sm:$0xff]  }
 0x52b   : > { %19075 = vst [vmem:[#allocation5_spill] sm:$0xff] %v18531_v28  ;;  %v18535_v12 = vadd.f32 %v9465_v2, %v9284_v60  ;;  %11764 = vmatprep.mubr.msk.bf16.mxu1 %vm7986_vm3, %v18303_v23  ;;  %v9286_v59 = vpop.f32.mrf.mxu0 }
 0x52c   : > { %v9467_v7 = vpop.f32.mrf.mxu1 }
 0x52d   : > { %19076 = vst [vmem:[#allocation8_spill] sm:$0xff] %v18535_v12  ;;  %v18540_v30 = vadd.f32 %v9467_v7, %v9286_v59  ;;  %v9288_v6 = vpop.f32.mrf.mxu0  ;;  %v13595_v12 = vld [vmem:[%s13661_s25 + $0x128] ss:$24 sps:$4 sm:$0xff]  }
 0x52e   : > { %v9469_v3 = vpop.f32.mrf.mxu1 }
 0x52f   : > { %v18542_v15 = vadd.f32 %v9469_v3, %v9288_v6  ;;  %v9290_v10 = vpop.f32.mrf.mxu0 }
 0x530   : > { %v9471_v28 = vpop.f32.mrf.mxu1 }
 0x531   : > { %v18544_v53 = vadd.f32 %v9471_v28, %v9290_v10  ;;  %v9294_v60 = vpop.f32.mrf.mxu0  ;;  %9916 = vmatmul.mubr.bf16.gmra.mxu0 %v13595_v12 }
 0x532   : > { %v9475_v2 = vpop.f32.mrf.mxu1  ;;  %10068 = vmatmul.mubr.bf16.gmra.mxu1 %v18314_v38  ;;  %9923 = vmatprep.mubr.bf16.mxu0 %v13596_v27  ;;  %v13598_v27 = vld [vmem:[%s13661_s25 + $0x18c] ss:$24 sps:$4 sm:$0xff]  }
 0x533   : > { %19077 = vst [vmem:[#allocation50_spill] sm:$0xff] %v18544_v53  ;;  %v18548_v23 = vadd.f32 %v9475_v2, %v9294_v60  ;;  %11765 = vmatprep.mubr.msk.bf16.mxu1 %vm7986_vm3, %v18321_v24  ;;  %v9296_v59 = vpop.f32.mrf.mxu0 }
 0x534   : > { %v9477_v7 = vpop.f32.mrf.mxu1 }
 0x535   : > { %19078 = vst [vmem:[#allocation10_spill] sm:$0xff] %v18548_v23  ;;  %v18553_v6 = vadd.f32 %v9477_v7, %v9296_v59  ;;  %v9298_v28 = vpop.f32.mrf.mxu0  ;;  %v13597_v23 = vld [vmem:[%s13661_s25 + $0x158] ss:$24 sps:$4 sm:$0xff]  }
 0x536   : > { %v9479_v3 = vpop.f32.mrf.mxu1 }
 0x537   : > { %v18555_v10 = vadd.f32 %v9479_v3, %v9298_v28  ;;  %v9300_v12 = vpop.f32.mrf.mxu0 }
 0x538   : > { %v9481_v53 = vpop.f32.mrf.mxu1 }
 0x539   : > { %v18557_v38 = vadd.f32 %v9481_v53, %v9300_v12  ;;  %v9304_v60 = vpop.f32.mrf.mxu0  ;;  %9924 = vmatmul.mubr.bf16.gmra.mxu0 %v13597_v23 }
 0x53a   : > { %v9485_v2 = vpop.f32.mrf.mxu1  ;;  %10076 = vmatmul.mubr.bf16.gmra.mxu1 %v18331_v5  ;;  %9931 = vmatprep.mubr.bf16.mxu0 %v13598_v27  ;;  %v13600_v27 = vld [vmem:[%s13661_s25 + $0x1bc] ss:$24 sps:$4 sm:$0xff]  }
 0x53b   : > { %19079 = vst [vmem:[#allocation9_spill] sm:$0xff] %v18557_v38  ;;  %v18561_v24 = vadd.f32 %v9485_v2, %v9304_v60  ;;  %11766 = vmatprep.mubr.msk.bf16.mxu1 %vm7986_vm3, %v18338_v29  ;;  %v9306_v59 = vpop.f32.mrf.mxu0 }
 0x53c   : > { %v9487_v7 = vpop.f32.mrf.mxu1 }
 0x53d   : > { %19080 = vst [vmem:[#allocation51_spill] sm:$0xff] %v18561_v24  ;;  %v18566_v28 = vadd.f32 %v9487_v7, %v9306_v59  ;;  %v9308_v53 = vpop.f32.mrf.mxu0  ;;  %v13599_v24 = vld [vmem:[%s13661_s25 + $0x188] ss:$24 sps:$4 sm:$0xff]  }
 0x53e   : > { %v9489_v3 = vpop.f32.mrf.mxu1 }
 0x53f   : > { %19081 = vst [vmem:[#allocation12_spill] sm:$0xff] %v18566_v28  ;;  %v18568_v12 = vadd.f32 %v9489_v3, %v9308_v53  ;;  %v9310_v23 = vpop.f32.mrf.mxu0  ;;  %v13601_v28 = vld [vmem:[%s13661_s25 + $0x1b8] ss:$24 sps:$4 sm:$0xff]  }
 0x540   : > { %v9491_v38 = vpop.f32.mrf.mxu1 }
 0x541   : > { %19082 = vst [vmem:[#allocation11_spill] sm:$0xff] %v18568_v12  ;;  %v18570_v5 = vadd.f32 %v9491_v38, %v9310_v23  ;;  %v9314_v60 = vpop.f32.mrf.mxu0  ;;  %9932 = vmatmul.mubr.bf16.gmra.mxu0 %v13599_v24 }
 0x542   : > { %v9495_v2 = vpop.f32.mrf.mxu1  ;;  %10084 = vmatmul.mubr.bf16.gmra.mxu1 %v18348_v14  ;;  %9939 = vmatprep.mubr.bf16.mxu0 %v13600_v27  ;;  %v13602_v14 = vld [vmem:[%s13661_s25 + $0x1ec] ss:$24 sps:$4 sm:$0xff]  }
 0x543   : > { %19083 = vst [vmem:[#allocation52_spill] sm:$0xff] %v18570_v5  ;;  %v18574_v29 = vadd.f32 %v9495_v2, %v9314_v60  ;;  %11767 = vmatprep.mubr.msk.bf16.mxu1 %vm7986_vm3, %v18355_v9  ;;  %v9316_v59 = vpop.f32.mrf.mxu0 }
 0x544   : > { %v9497_v7 = vpop.f32.mrf.mxu1 }
 0x545   : > { %v18579_v53 = vadd.f32 %v9497_v7, %v9316_v59  ;;  %v9318_v38 = vpop.f32.mrf.mxu0 }
 0x546   : > { %v9499_v3 = vpop.f32.mrf.mxu1 }
 0x547   : > { %v9319_v23 = vpop.f32.mrf.mxu0 }
 0x548   : > { %v9500_v5 = vpop.f32.mrf.mxu1 }
 0x549   : > { %v9536_v12 = vpop.f32.mrf.mxu0  ;;  %9940 = vmatmul.mubr.bf16.gmra.mxu0 %v13601_v28 }
 0x54a   : > { %v12371_v24 = vpop.f32.mrf.mxu1  ;;  %10092 = vmatmul.mubr.bf16.gmra.mxu1 %v18363_v42  ;;  %9947 = vmatprep.mubr.bf16.mxu0 %v13602_v14  ;;  %v9537_v2 = vadd.f32 %v9536_v12, %v18368_v33  ;;  %v13603_v12 = vld [vmem:[%s13661_s25 + $0x1e8] ss:$24 sps:$4 sm:$0xff]  }
 0x54b   : > { %11768 = vmatprep.mubr.msk.bf16.mxu1 %vm7986_vm3, %v18371_v35  ;;  %v9538_v9 = vpop.f32.mrf.mxu0 }
 0x54c   : > { %v12372_v60 = vpop.f32.mrf.mxu1  ;;  %v9539_v27 = vadd.f32 %v9538_v9, %v18376_v0 }
 0x54d   : > { %v18588_v5 = vadd.f32 %v12372_v60, %v12371_v24  ;;  %v9540_v59 = vpop.f32.mrf.mxu0  ;;  %v13604_v24 = vld [vmem:[%s13661_s25 + $0x21c] ss:$24 sps:$4 sm:$0xff]  }
 0x54e   : > { %v12374_v7 = vpop.f32.mrf.mxu1  ;;  %v12241_v28 = vpack.c.bf16 %v9539_v27, %v9537_v2  ;;  %v9541_v3 = vadd.f32 %v9540_v59, %v18378_v37 }
 0x54f   : > { %v9542_v38 = vpop.f32.mrf.mxu0 }
 0x550   : > { %v12375_v42 = vpop.f32.mrf.mxu1  ;;  %10786 = vst [vmem:[%s13666_s28 + $0x10] sm:$0xff] %v12241_v28  ;;  %v9543_v35 = vadd.f32 %v9542_v38, %v18380_v63 }
 0x551   : > { %v18593_v23 = vadd.f32 %v12375_v42, %v12374_v7  ;;  %v9546_v14 = vpop.f32.mrf.mxu0  ;;  %9948 = vmatmul.mubr.bf16.gmra.mxu0 %v13603_v12 }
 0x552   : > { %v12377_v33 = vpop.f32.mrf.mxu1  ;;  %10100 = vmatmul.mubr.bf16.gmra.mxu1 %v18383_v20  ;;  %v12245_v0 = vpack.c.bf16 %v9543_v35, %v9541_v3  ;;  %9955 = vmatprep.mubr.bf16.mxu0 %v13604_v24  ;;  %v9547_v37 = vadd.f32 %v9546_v14, %v18387_v48  ;;  %v13605_v35 = vld [vmem:[%s13661_s25 + $0x218] ss:$24 sps:$4 sm:$0xff]   ;;  %v13606_v14 = vld [vmem:[%s13661_s25 + $0x24c] ss:$24 sps:$4 sm:$0xff]  }
 0x553   : > { %11769 = vmatprep.mubr.msk.bf16.mxu1 %vm7986_vm3, %v18390_v19  ;;  %v9548_v9 = vpop.f32.mrf.mxu0 }
 0x554   : > { %v12378_v60 = vpop.f32.mrf.mxu1  ;;  %10791 = vst [vmem:[%s13666_s28 + $0x2c] sm:$0xff] %v12245_v0  ;;  %v9549_v63 = vadd.f32 %v9548_v9, %v18395_v40 }
 0x555   : > { %v18603_v2 = vadd.f32 %v12378_v60, %v12377_v33  ;;  %v9550_v27 = vpop.f32.mrf.mxu0 }
 0x556   : > { %v12380_v20 = vpop.f32.mrf.mxu1  ;;  %v12249_v59 = vpack.c.bf16 %v9549_v63, %v9547_v37  ;;  %v9551_v19 = vadd.f32 %v9550_v27, %v18397_v34 }
 0x557   : > { %v9552_v7 = vpop.f32.mrf.mxu0 }
 0x558   : > { %v12381_v28 = vpop.f32.mrf.mxu1  ;;  %10795 = vst [vmem:[%s13666_s28 + $0x48] sm:$0xff] %v12249_v59  ;;  %v9553_v38 = vadd.f32 %v9552_v7, %v18399_v52  ;;  %v13607_v59 = vld [vmem:[%s13661_s25 + $0x248] ss:$24 sps:$4 sm:$0xff]   ;;  %v13608_v7 = vld [vmem:[%s13661_s25 + $0x27c] ss:$24 sps:$4 sm:$0xff]  }
 0x559   : > { %v18608_v42 = vadd.f32 %v12381_v28, %v12380_v20  ;;  %v9556_v3 = vpop.f32.mrf.mxu0  ;;  %9956 = vmatmul.mubr.bf16.gmra.mxu0 %v13605_v35 }
 0x55a   : > { %v12383_v48 = vpop.f32.mrf.mxu1  ;;  %10108 = vmatmul.mubr.bf16.gmra.mxu1 %v18402_v41  ;;  %v12253_v40 = vpack.c.bf16 %v9553_v38, %v9551_v19  ;;  %9963 = vmatprep.mubr.bf16.mxu0 %v13606_v14  ;;  %v9557_v34 = vadd.f32 %v9556_v3, %v18406_v17 }
 0x55b   : > { %11770 = vmatprep.mubr.msk.bf16.mxu1 %vm7986_vm3, %v18409_v54  ;;  %v9558_v33 = vpop.f32.mrf.mxu0 }
 0x55c   : > { %v12384_v12 = vpop.f32.mrf.mxu1  ;;  %10799 = vst [vmem:[%s13666_s28 + $0x64] sm:$0xff] %v12253_v40  ;;  %v9559_v52 = vadd.f32 %v9558_v33, %v18414_v21 }
 0x55d   : > { %v18618_v0 = vadd.f32 %v12384_v12, %v12383_v48  ;;  %v9560_v24 = vpop.f32.mrf.mxu0 }
 0x55e   : > { %v12386_v41 = vpop.f32.mrf.mxu1  ;;  %v12257_v9 = vpack.c.bf16 %v9559_v52, %v9557_v34  ;;  %v9561_v54 = vadd.f32 %v9560_v24, %v18416_v4 }
 0x55f   : > { %v9562_v60 = vpop.f32.mrf.mxu0 }
 0x560   : > { %v12387_v37 = vpop.f32.mrf.mxu1  ;;  %10803 = vst [vmem:[%s13666_s28 + $0x80] sm:$0xff] %v12257_v9  ;;  %v9563_v63 = vadd.f32 %v9562_v60, %v18418_v61 }
 0x561   : > { %v18623_v27 = vadd.f32 %v12387_v37, %v12386_v41  ;;  %v9566_v20 = vpop.f32.mrf.mxu0  ;;  %9964 = vmatmul.mubr.bf16.gmra.mxu0 %v13607_v59 }
 0x562   : > { %v12389_v17 = vpop.f32.mrf.mxu1  ;;  %10116 = vmatmul.mubr.bf16.gmra.mxu1 %v18421_v46  ;;  %v12261_v21 = vpack.c.bf16 %v9563_v63, %v9561_v54  ;;  %9971 = vmatprep.mubr.bf16.mxu0 %v13608_v7  ;;  %v9567_v4 = vadd.f32 %v9566_v20, %v18425_v36  ;;  %v13609_v36 = vld [vmem:[%s13661_s25 + $0x278] ss:$24 sps:$4 sm:$0xff]   ;;  %v19085_v7 = vld [vmem:[#allocation42_spill] sm:$0xff] }
 0x563   : > { %11771 = vmatprep.mubr.msk.bf16.mxu1 %vm7986_vm3, %v18428_v8  ;;  %v9568_v28 = vpop.f32.mrf.mxu0 }
 0x564   : > { %v12390_v19 = vpop.f32.mrf.mxu1  ;;  %10807 = vst [vmem:[%s13666_s28 + $0x9c] sm:$0xff] %v12261_v21  ;;  %v9569_v61 = vadd.f32 %v9568_v28, %v18433_v49 }
 0x565   : > { %v18633_v38 = vadd.f32 %v12390_v19, %v12389_v17  ;;  %v9570_v3 = vpop.f32.mrf.mxu0 }
 0x566   : > { %v12392_v48 = vpop.f32.mrf.mxu1  ;;  %v12265_v46 = vpack.c.bf16 %v9569_v61, %v9567_v4  ;;  %v9571_v14 = vadd.f32 %v9570_v3, %v18435_v13 }
 0x567   : > { %v9572_v35 = vpop.f32.mrf.mxu0 }
 0x568   : > { %v12393_v40 = vpop.f32.mrf.mxu1  ;;  %10811 = vst [vmem:[%s13666_s28 + $0xb8] sm:$0xff] %v12265_v46  ;;  %v9573_v8 = vadd.f32 %v9572_v35, %v18437_v50  ;;  %v19086_v46 = vld [vmem:[#allocation41_spill] sm:$0xff] }
 0x569   : > { %v18638_v33 = vadd.f32 %v12393_v40, %v12392_v48  ;;  %v9576_v12 = vpop.f32.mrf.mxu0  ;;  %9972 = vmatmul.mubr.bf16.gmra.mxu0 %v13609_v36  ;;  %v19087_v36 = vld [vmem:[#allocation44_spill] sm:$0xff] }
 0x56a   : > { %v12395_v34 = vpop.f32.mrf.mxu1  ;;  %10124 = vmatmul.mubr.bf16.gmra.mxu1 %v18440_v22  ;;  %v12269_v49 = vpack.c.bf16 %v9573_v8, %v9571_v14  ;;  %9979 = vmatprep.mubr.bf16.mxu0 %v17357_v47  ;;  %v9577_v13 = vadd.f32 %v9576_v12, %v18444_v44 }
 0x56b   : > { %11772 = vmatprep.mubr.msk.bf16.mxu1 %vm7986_vm3, %v19062_v58  ;;  %v9578_v52 = vpop.f32.mrf.mxu0 }
 0x56c   : > { %v12396_v24 = vpop.f32.mrf.mxu1  ;;  %10815 = vst [vmem:[%s13666_s28 + $0xd4] sm:$0xff] %v12269_v49  ;;  %v9579_v50 = vadd.f32 %v9578_v52, %v18449_v51  ;;  %v19084_v51 = vld [vmem:[#allocation7_spill] sm:$0xff] }
 0x56d   : > { %v18648_v41 = vadd.f32 %v12396_v24, %v12395_v34  ;;  %v9580_v9 = vpop.f32.mrf.mxu0 }
 0x56e   : > { %v12398_v60 = vpop.f32.mrf.mxu1  ;;  %v12273_v37 = vpack.c.bf16 %v9579_v50, %v9577_v13  ;;  %v9581_v47 = vadd.f32 %v9580_v9, %v18451_v25 }
 0x56f   : > { %v9582_v22 = vpop.f32.mrf.mxu0 }
 0x570   : > { %v12399_v54 = vpop.f32.mrf.mxu1  ;;  %10819 = vst [vmem:[%s13666_s28 + $0xf0] sm:$0xff] %v12273_v37  ;;  %v9583_v58 = vadd.f32 %v9582_v22, %v18453_v43  ;;  %v19088_v22 = vld [vmem:[#allocation43_spill] sm:$0xff] }
 0x571   : > { %v18653_v63 = vadd.f32 %v12399_v54, %v12398_v60  ;;  %v9586_v20 = vpop.f32.mrf.mxu0  ;;  %9980 = vmatmul.mubr.bf16.gmra.mxu0 %v19024_v56 }
 0x572   : > { %v12401_v44 = vpop.f32.mrf.mxu1  ;;  %10132 = vmatmul.mubr.bf16.gmra.mxu1 %v19084_v51  ;;  %v12277_v17 = vpack.c.bf16 %v9583_v58, %v9581_v47  ;;  %v9587_v28 = vadd.f32 %v9586_v20, %v19085_v7 }
 0x573   : > { %v9588_v59 = vpop.f32.mrf.mxu0 }
 0x574   : > { %v12402_v21 = vpop.f32.mrf.mxu1  ;;  %10823 = vst [vmem:[%s13666_s28 + $0x10c] sm:$0xff] %v12277_v17  ;;  %v9589_v19 = vadd.f32 %v9588_v59, %v18462_v45  ;;  %v19089_v17 = vld [vmem:[#allocation45_spill] sm:$0xff] }
 0x575   : > { %v18660_v25 = vadd.f32 %v12402_v21, %v12401_v44  ;;  %v9590_v43 = vpop.f32.mrf.mxu0 }
 0x576   : > { %v12404_v4 = vpop.f32.mrf.mxu1  ;;  %v12281_v61 = vpack.c.bf16 %v9589_v19, %v9587_v28  ;;  %v9591_v56 = vadd.f32 %v9590_v43, %v18464_v32 }
 0x577   : > { %v9592_v3 = vpop.f32.mrf.mxu0 }
 0x578   : > { %v12405_v48 = vpop.f32.mrf.mxu1  ;;  %10827 = vst [vmem:[%s13666_s28 + $0x128] sm:$0xff] %v12281_v61  ;;  %v9593_v35 = vadd.f32 %v9592_v3, %v19086_v46  ;;  %v19090_v3 = vld [vmem:[#allocation46_spill] sm:$0xff] }
 0x579   : > { %v18665_v40 = vadd.f32 %v12405_v48, %v12404_v4  ;;  %v9596_v14 = vpop.f32.mrf.mxu0 }
 0x57a   : > { %v12407_v8 = vpop.f32.mrf.mxu1  ;;  %v12285_v12 = vpack.c.bf16 %v9593_v35, %v9591_v56  ;;  %v9597_v49 = vadd.f32 %v9596_v14, %v19087_v36 }
 0x57b   : > { %v9598_v45 = vpop.f32.mrf.mxu0 }
 0x57c   : > { %v12408_v34 = vpop.f32.mrf.mxu1  ;;  %10831 = vst [vmem:[%s13666_s28 + $0x144] sm:$0xff] %v12285_v12  ;;  %v9599_v52 = vadd.f32 %v9598_v45, %v18475_v39  ;;  %v19091_v12 = vld [vmem:[#allocation47_spill] sm:$0xff] }
 0x57d   : > { %v18670_v24 = vadd.f32 %v12408_v34, %v12407_v8  ;;  %v9600_v13 = vpop.f32.mrf.mxu0 }
 0x57e   : > { %v12410_v32 = vpop.f32.mrf.mxu1  ;;  %v12289_v50 = vpack.c.bf16 %v9599_v52, %v9597_v49  ;;  %v9601_v37 = vadd.f32 %v9600_v13, %v18477_v57 }
 0x57f   : > { %v9602_v9 = vpop.f32.mrf.mxu0 }
 0x580   : > { %v12411_v60 = vpop.f32.mrf.mxu1  ;;  %10835 = vst [vmem:[%s13666_s28 + $0x160] sm:$0xff] %v12289_v50  ;;  %v9603_v54 = vadd.f32 %v9602_v9, %v19088_v22  ;;  %v19092_v9 = vld [vmem:[#allocation3_spill] sm:$0xff] }
 0x581   : > { %v18675_v47 = vadd.f32 %v12411_v60, %v12410_v32  ;;  %v9606_v58 = vpop.f32.mrf.mxu0 }
 0x582   : > { %v12413_v20 = vpop.f32.mrf.mxu1  ;;  %v12293_v44 = vpack.c.bf16 %v9603_v54, %v9601_v37  ;;  %v9607_v59 = vadd.f32 %v9606_v58, %v19089_v17 }
 0x583   : > { %v9608_v39 = vpop.f32.mrf.mxu0 }
 0x584   : > { %v12414_v51 = vpop.f32.mrf.mxu1  ;;  %10839 = vst [vmem:[%s13666_s28 + $0x17c] sm:$0xff] %v12293_v44  ;;  %v9609_v21 = vadd.f32 %v9608_v39, %v18488_v26  ;;  %v19093_v44 = vld [vmem:[#allocation48_spill] sm:$0xff] }
 0x585   : > { %v18680_v7 = vadd.f32 %v12414_v51, %v12413_v20  ;;  %v9610_v28 = vpop.f32.mrf.mxu0 }
 0x586   : > { %v12416_v57 = vpop.f32.mrf.mxu1  ;;  %v12297_v19 = vpack.c.bf16 %v9609_v21, %v9607_v59  ;;  %v9611_v61 = vadd.f32 %v9610_v28, %v18490_v62 }
 0x587   : > { %v9612_v43 = vpop.f32.mrf.mxu0 }
 0x588   : > { %v12417_v4 = vpop.f32.mrf.mxu1  ;;  %10843 = vst [vmem:[%s13666_s28 + $0x198] sm:$0xff] %v12297_v19  ;;  %v9613_v48 = vadd.f32 %v9612_v43, %v19090_v3  ;;  %v19094_v43 = vld [vmem:[#allocation49_spill] sm:$0xff] }
 0x589   : > { %v18685_v56 = vadd.f32 %v12417_v4, %v12416_v57  ;;  %v9616_v46 = vpop.f32.mrf.mxu0 }
 0x58a   : > { %v12419_v35 = vpop.f32.mrf.mxu1  ;;  %v12301_v14 = vpack.c.bf16 %v9613_v48, %v9611_v61  ;;  %v9617_v45 = vadd.f32 %v9616_v46, %v19091_v12 }
 0x58b   : > { %v9618_v26 = vpop.f32.mrf.mxu0 }
 0x58c   : > { %v12420_v8 = vpop.f32.mrf.mxu1  ;;  %10847 = vst [vmem:[%s13666_s28 + $0x1b4] sm:$0xff] %v12301_v14  ;;  %v9619_v34 = vadd.f32 %v9618_v26, %v18501_v16  ;;  %v19095_v14 = vld [vmem:[#allocation4_spill] sm:$0xff] }
 0x58d   : > { %v18690_v36 = vadd.f32 %v12420_v8, %v12419_v35  ;;  %v9620_v49 = vpop.f32.mrf.mxu0 }
 0x58e   : > { %v12422_v62 = vpop.f32.mrf.mxu1  ;;  %v12305_v52 = vpack.c.bf16 %v9619_v34, %v9617_v45  ;;  %v9621_v50 = vadd.f32 %v9620_v49, %v18503_v1 }
 0x58f   : > { %v9622_v13 = vpop.f32.mrf.mxu0 }
 0x590   : > { %v12423_v32 = vpop.f32.mrf.mxu1  ;;  %10851 = vst [vmem:[%s13666_s28 + $0x1d0] sm:$0xff] %v12305_v52  ;;  %v9623_v60 = vadd.f32 %v9622_v13, %v19092_v9  ;;  %v19096_v13 = vld [vmem:[#allocation5_spill] sm:$0xff] }
 0x591   : > { %v18695_v37 = vadd.f32 %v12423_v32, %v12422_v62  ;;  %v9626_v22 = vpop.f32.mrf.mxu0 }
 0x592   : > { %v12425_v54 = vpop.f32.mrf.mxu1  ;;  %v12309_v58 = vpack.c.bf16 %v9623_v60, %v9621_v50  ;;  %v9627_v39 = vadd.f32 %v9626_v22, %v19093_v44 }
 0x593   : > { %v9628_v16 = vpop.f32.mrf.mxu0 }
 0x594   : > { %v12426_v20 = vpop.f32.mrf.mxu1  ;;  %10855 = vst [vmem:[%s13666_s28 + $0x1ec] sm:$0xff] %v12309_v58  ;;  %v9629_v51 = vadd.f32 %v9628_v16, %v18514_v55  ;;  %v19097_v58 = vld [vmem:[#allocation8_spill] sm:$0xff] }
 0x595   : > { %v18700_v17 = vadd.f32 %v12426_v20, %v12425_v54  ;;  %v9630_v59 = vpop.f32.mrf.mxu0 }
 0x596   : > { %v12428_v1 = vpop.f32.mrf.mxu1  ;;  %v12313_v21 = vpack.c.bf16 %v9629_v51, %v9627_v39  ;;  %v9631_v19 = vadd.f32 %v9630_v59, %v18516_v18 }
 0x597   : > { %v9632_v28 = vpop.f32.mrf.mxu0 }
 0x598   : > { %v12429_v57 = vpop.f32.mrf.mxu1  ;;  %10859 = vst [vmem:[%s13666_s28 + $0x208] sm:$0xff] %v12313_v21  ;;  %v9633_v4 = vadd.f32 %v9632_v28, %v19094_v43  ;;  %v19098_v28 = vld [vmem:[#allocation50_spill] sm:$0xff] }
 0x599   : > { %v18705_v61 = vadd.f32 %v12429_v57, %v12428_v1  ;;  %v9636_v3 = vpop.f32.mrf.mxu0 }
 0x59a   : > { %v12431_v48 = vpop.f32.mrf.mxu1  ;;  %v12317_v46 = vpack.c.bf16 %v9633_v4, %v9631_v19  ;;  %v9637_v26 = vadd.f32 %v9636_v3, %v19095_v14 }
 0x59b   : > { %v9638_v55 = vpop.f32.mrf.mxu0 }
 0x59c   : > { %v12432_v35 = vpop.f32.mrf.mxu1  ;;  %10863 = vst [vmem:[%s13666_s28 + $0x224] sm:$0xff] %v12317_v46  ;;  %v9639_v8 = vadd.f32 %v9638_v55, %v18527_v31  ;;  %v19099_v46 = vld [vmem:[#allocation10_spill] sm:$0xff] }
 0x59d   : > { %v18710_v12 = vadd.f32 %v12432_v35, %v12431_v48  ;;  %v9640_v45 = vpop.f32.mrf.mxu0 }
 0x59e   : > { %v12434_v18 = vpop.f32.mrf.mxu1  ;;  %v12321_v34 = vpack.c.bf16 %v9639_v8, %v9637_v26  ;;  %v9641_v52 = vadd.f32 %v9640_v45, %v18529_v11 }
 0x59f   : > { %v9642_v49 = vpop.f32.mrf.mxu0 }
 0x5a0   : > { %v12435_v62 = vpop.f32.mrf.mxu1  ;;  %10867 = vst [vmem:[%s13666_s28 + $0x240] sm:$0xff] %v12321_v34  ;;  %v9643_v32 = vadd.f32 %v9642_v49, %v19096_v13  ;;  %v19100_v49 = vld [vmem:[#allocation9_spill] sm:$0xff] }
 0x5a1   : > { %v18715_v50 = vadd.f32 %v12435_v62, %v12434_v18  ;;  %v9646_v9 = vpop.f32.mrf.mxu0 }
 0x5a2   : > { %v12437_v60 = vpop.f32.mrf.mxu1  ;;  %v12325_v22 = vpack.c.bf16 %v9643_v32, %v9641_v52  ;;  %v9647_v16 = vadd.f32 %v9646_v9, %v19097_v58 }
 0x5a3   : > { %v9648_v31 = vpop.f32.mrf.mxu0 }
 0x5a4   : > { %v12438_v54 = vpop.f32.mrf.mxu1  ;;  %10871 = vst [vmem:[%s13666_s28 + $0x25c] sm:$0xff] %v12325_v22  ;;  %v9649_v20 = vadd.f32 %v9648_v31, %v18540_v30  ;;  %v19101_v22 = vld [vmem:[#allocation51_spill] sm:$0xff] }
 0x5a5   : > { %v18720_v44 = vadd.f32 %v12438_v54, %v12437_v60  ;;  %v9650_v39 = vpop.f32.mrf.mxu0  ;;  %v19102_v54 = vld [vmem:[#allocation12_spill] sm:$0xff] }
 0x5a6   : > { %v12440_v11 = vpop.f32.mrf.mxu1  ;;  %v12329_v51 = vpack.c.bf16 %v9649_v20, %v9647_v16  ;;  %v9651_v21 = vadd.f32 %v9650_v39, %v18542_v15 }
 0x5a7   : > { %v9652_v59 = vpop.f32.mrf.mxu0 }
 0x5a8   : > { %v12441_v1 = vpop.f32.mrf.mxu1  ;;  %10875 = vst [vmem:[%s13666_s28 + $0x278] sm:$0xff] %v12329_v51  ;;  %v9653_v57 = vadd.f32 %v9652_v59, %v19098_v28  ;;  %v19103_v59 = vld [vmem:[#allocation11_spill] sm:$0xff] }
 0x5a9   : > { %v18725_v19 = vadd.f32 %v12441_v1, %v12440_v11  ;;  %v9656_v43 = vpop.f32.mrf.mxu0 }
 0x5aa   : > { %v12443_v4 = vpop.f32.mrf.mxu1  ;;  %v12333_v3 = vpack.c.bf16 %v9653_v57, %v9651_v21  ;;  %v9657_v55 = vadd.f32 %v9656_v43, %v19099_v46  ;;  %v19104_v21 = vld [vmem:[#allocation52_spill] sm:$0xff] }
 0x5ab   : > { %v9658_v30 = vpop.f32.mrf.mxu0 }
 0x5ac   : > { %v12444_v48 = vpop.f32.mrf.mxu1  ;;  %10879 = vst [vmem:[%s13666_s28 + $0x294] sm:$0xff] %v12333_v3  ;;  %v9659_v35 = vadd.f32 %v9658_v30, %v18553_v6 }
 0x5ad   : > { %v18730_v14 = vadd.f32 %v12444_v48, %v12443_v4  ;;  %v9660_v26 = vpop.f32.mrf.mxu0 }
 0x5ae   : > { %v12446_v15 = vpop.f32.mrf.mxu1  ;;  %v12337_v8 = vpack.c.bf16 %v9659_v35, %v9657_v55  ;;  %v9661_v34 = vadd.f32 %v9660_v26, %v18555_v10 }
 0x5af   : > { %v9662_v45 = vpop.f32.mrf.mxu0 }
 0x5b0   : > { %v12447_v18 = vpop.f32.mrf.mxu1  ;;  %10883 = vst [vmem:[%s13666_s28 + $0x2b0] sm:$0xff] %v12337_v8  ;;  %v9663_v62 = vadd.f32 %v9662_v45, %v19100_v49 }
 0x5b1   : > { %v18735_v52 = vadd.f32 %v12447_v18, %v12446_v15  ;;  %v9666_v13 = vpop.f32.mrf.mxu0 }
 0x5b2   : > { %v12449_v32 = vpop.f32.mrf.mxu1  ;;  %v12341_v9 = vpack.c.bf16 %v9663_v62, %v9661_v34  ;;  %v9667_v31 = vadd.f32 %v9666_v13, %v19101_v22 }
 0x5b3   : > { %v9668_v6 = vpop.f32.mrf.mxu0 }
 0x5b4   : > { %v12450_v60 = vpop.f32.mrf.mxu1  ;;  %10887 = vst [vmem:[%s13666_s28 + $0x2cc] sm:$0xff] %v12341_v9  ;;  %v9669_v58 = vadd.f32 %v9668_v6, %v19102_v54 }
 0x5b5   : > { %v18740_v16 = vadd.f32 %v12450_v60, %v12449_v32  ;;  %v9670_v20 = vpop.f32.mrf.mxu0 }
 0x5b6   : > { %v12452_v10 = vpop.f32.mrf.mxu1  ;;  %v12345_v39 = vpack.c.bf16 %v9669_v58, %v9667_v31  ;;  %v9671_v1 = vadd.f32 %v9670_v20, %v19103_v59 }
 0x5b7   : > { %v9672_v11 = vpop.f32.mrf.mxu0 }
 0x5b8   : > { %v12453_v51 = vpop.f32.mrf.mxu1  ;;  %10891 = vst [vmem:[%s13666_s28 + $0x2e8] sm:$0xff] %v12345_v39  ;;  %v9673_v28 = vadd.f32 %v9672_v11, %v19104_v21 }
 0x5b9   : > { %v18745_v57 = vadd.f32 %v12453_v51, %v12452_v10  ;;  %v9676_v43 = vpop.f32.mrf.mxu0 }
 0x5ba   : > { %v12455_v4 = vpop.f32.mrf.mxu1  ;;  %v12349_v3 = vpack.c.bf16 %v9673_v28, %v9671_v1  ;;  %v9677_v46 = vadd.f32 %v9676_v43, %v18574_v29 }
 0x5bb   : > { %v9678_v30 = vpop.f32.mrf.mxu0 }
 0x5bc   : > { %v12456_v48 = vpop.f32.mrf.mxu1  ;;  %10895 = vst [vmem:[%s13666_s28 + $0x304] sm:$0xff] %v12349_v3  ;;  %v9679_v55 = vadd.f32 %v9678_v30, %v18579_v53 }
 0x5bd   : > { %v18750_v35 = vadd.f32 %v12456_v48, %v12455_v4  ;;  %v9680_v26 = vpop.f32.mrf.mxu0 }
 0x5be   : > { %v12458_v15 = vpop.f32.mrf.mxu1  ;;  %v12353_v8 = vpack.c.bf16 %v9679_v55, %v9677_v46 }
 0x5bf   : > { %v9681_v45 = vpop.f32.mrf.mxu0 }
 0x5c0   : > { %v12459_v18 = vpop.f32.mrf.mxu1  ;;  %10899 = vst [vmem:[%s13666_s28 + $0x320] sm:$0xff] %v12353_v8 }
 0x5c1   : > { %v12477_v34 = vpop.f32.mrf.mxu0 }
 0x5c2   : > { %v10021_v49 = vpop.f32.mrf.mxu1 }
 0x5c3   : > { %v12478_v62 = vpop.f32.mrf.mxu0 }
 0x5c4   : > { %v10023_v13 = vpop.f32.mrf.mxu1  ;;  %v12479_v32 = vadd.f32 %v12478_v62, %v12477_v34 }
 0x5c5   : > { %v12480_v9 = vpop.f32.mrf.mxu0 }
 0x5c6   : > { %v10024_v6 = vpop.f32.mrf.mxu1  ;;  %v9870_v29 = vadd.f32 %v12479_v32, %v18588_v5 }
 0x5c7   : > { %v12481_v60 = vpop.f32.mrf.mxu0 }
 0x5c8   : > { %v10026_v53 = vpop.f32.mrf.mxu1  ;;  %v10022_v22 = vadd.f32 %v10021_v49, %v9870_v29  ;;  %v12482_v31 = vadd.f32 %v12481_v60, %v12480_v9 }
 0x5c9   : > { %v12483_v54 = vpop.f32.mrf.mxu0 }
 0x5ca   : > { %v10029_v58 = vpop.f32.mrf.mxu1  ;;  %v12242_v20 = vpack.c.bf16 %v10022_v22, %v10022_v22  ;;  %v9873_v10 = vadd.f32 %v12482_v31, %v18593_v23 }
 0x5cb   : > { %v12484_v39 = vpop.f32.mrf.mxu0 }
 0x5cc   : > { %v10031_v11 = vpop.f32.mrf.mxu1  ;;  %10788 = vst.msk [vmem:[%s13666_s28 + $0x18] sm:$0xf] %vm10787_vm4, %v12242_v20  ;;  %v10025_v51 = vadd.f32 %v10024_v6, %v9873_v10  ;;  %v12485_v59 = vadd.f32 %v12484_v39, %v12483_v54 }
 0x5cd   : > { %v12486_v1 = vpop.f32.mrf.mxu0 }
 0x5ce   : > { %v10032_v5 = vpop.f32.mrf.mxu1  ;;  %v12246_v21 = vpack.c.bf16 %v10025_v51, %v10025_v51  ;;  %v9878_v28 = vadd.f32 %v12485_v59, %v18603_v2 }
 0x5cf   : > { %v12487_v43 = vpop.f32.mrf.mxu0 }
 0x5d0   : > { %v10034_v4 = vpop.f32.mrf.mxu1  ;;  %10792 = vst.msk [vmem:[%s13666_s28 + $0x34] sm:$0xf] %vm10787_vm4, %v12246_v21  ;;  %v10030_v3 = vadd.f32 %v10029_v58, %v9878_v28  ;;  %v12488_v30 = vadd.f32 %v12487_v43, %v12486_v1 }
 0x5d1   : > { %v12489_v23 = vpop.f32.mrf.mxu0 }
 0x5d2   : > { %v10037_v48 = vpop.f32.mrf.mxu1  ;;  %v12250_v46 = vpack.c.bf16 %v10030_v3, %v10030_v3  ;;  %v9881_v55 = vadd.f32 %v12488_v30, %v18608_v42 }
 0x5d3   : > { %v12490_v26 = vpop.f32.mrf.mxu0 }
 0x5d4   : > { %v10039_v15 = vpop.f32.mrf.mxu1  ;;  %10796 = vst.msk [vmem:[%s13666_s28 + $0x50] sm:$0xf] %vm10787_vm4, %v12250_v46  ;;  %v10033_v8 = vadd.f32 %v10032_v5, %v9881_v55  ;;  %v12491_v45 = vadd.f32 %v12490_v26, %v12489_v23 }
 0x5d5   : > { %v12492_v2 = vpop.f32.mrf.mxu0 }
 0x5d6   : > { %v10040_v18 = vpop.f32.mrf.mxu1  ;;  %v12254_v34 = vpack.c.bf16 %v10033_v8, %v10033_v8  ;;  %v9886_v49 = vadd.f32 %v12491_v45, %v18618_v0 }
 0x5d7   : > { %v12493_v62 = vpop.f32.mrf.mxu0 }
 0x5d8   : > { %v10042_v13 = vpop.f32.mrf.mxu1  ;;  %10800 = vst.msk [vmem:[%s13666_s28 + $0x6c] sm:$0xf] %vm10787_vm4, %v12254_v34  ;;  %v10038_v32 = vadd.f32 %v10037_v48, %v9886_v49  ;;  %v12494_v9 = vadd.f32 %v12493_v62, %v12492_v2 }
 0x5d9   : > { %v12495_v42 = vpop.f32.mrf.mxu0 }
 0x5da   : > { %v10045_v6 = vpop.f32.mrf.mxu1  ;;  %v12258_v29 = vpack.c.bf16 %v10038_v32, %v10038_v32  ;;  %v9889_v60 = vadd.f32 %v12494_v9, %v18623_v27 }
 0x5db   : > { %v12496_v53 = vpop.f32.mrf.mxu0 }
 0x5dc   : > { %v10047_v22 = vpop.f32.mrf.mxu1  ;;  %10804 = vst.msk [vmem:[%s13666_s28 + $0x88] sm:$0xf] %vm10787_vm4, %v12258_v29  ;;  %v10041_v31 = vadd.f32 %v10040_v18, %v9889_v60  ;;  %v12497_v54 = vadd.f32 %v12496_v53, %v12495_v42 }
 0x5dd   : > { %v12498_v0 = vpop.f32.mrf.mxu0 }
 0x5de   : > { %v10048_v58 = vpop.f32.mrf.mxu1  ;;  %v12262_v20 = vpack.c.bf16 %v10041_v31, %v10041_v31  ;;  %v9894_v10 = vadd.f32 %v12497_v54, %v18633_v38 }
 0x5df   : > { %v12499_v39 = vpop.f32.mrf.mxu0 }
 0x5e0   : > { %v10050_v11 = vpop.f32.mrf.mxu1  ;;  %10808 = vst.msk [vmem:[%s13666_s28 + $0xa4] sm:$0xf] %vm10787_vm4, %v12262_v20  ;;  %v10046_v51 = vadd.f32 %v10045_v6, %v9894_v10  ;;  %v12500_v59 = vadd.f32 %v12499_v39, %v12498_v0 }
 0x5e1   : > { %v12501_v27 = vpop.f32.mrf.mxu0 }
 0x5e2   : > { %v10053_v1 = vpop.f32.mrf.mxu1  ;;  %v12266_v5 = vpack.c.bf16 %v10046_v51, %v10046_v51  ;;  %v9897_v21 = vadd.f32 %v12500_v59, %v18638_v33 }
 0x5e3   : > { %v12502_v28 = vpop.f32.mrf.mxu0 }
 0x5e4   : > { %v10055_v43 = vpop.f32.mrf.mxu1  ;;  %10812 = vst.msk [vmem:[%s13666_s28 + $0xc0] sm:$0xf] %vm10787_vm4, %v12266_v5  ;;  %v10049_v4 = vadd.f32 %v10048_v58, %v9897_v21  ;;  %v12503_v3 = vadd.f32 %v12502_v28, %v12501_v27 }
 0x5e5   : > { %v12504_v38 = vpop.f32.mrf.mxu0 }
 0x5e6   : > { %v10056_v30 = vpop.f32.mrf.mxu1  ;;  %v12270_v23 = vpack.c.bf16 %v10049_v4, %v10049_v4  ;;  %v9902_v48 = vadd.f32 %v12503_v3, %v18648_v41 }
 0x5e7   : > { %v12505_v46 = vpop.f32.mrf.mxu0 }
 0x5e8   : > { %v10058_v55 = vpop.f32.mrf.mxu1  ;;  %10816 = vst.msk [vmem:[%s13666_s28 + $0xdc] sm:$0xf] %vm10787_vm4, %v12270_v23  ;;  %v10054_v26 = vadd.f32 %v10053_v1, %v9902_v48  ;;  %v12506_v15 = vadd.f32 %v12505_v46, %v12504_v38 }
 0x5e9   : > { %v12507_v33 = vpop.f32.mrf.mxu0 }
 0x5ea   : > { %v10061_v8 = vpop.f32.mrf.mxu1  ;;  %v12274_v45 = vpack.c.bf16 %v10054_v26, %v10054_v26  ;;  %v9905_v2 = vadd.f32 %v12506_v15, %v18653_v63 }
 0x5eb   : > { %v12508_v18 = vpop.f32.mrf.mxu0 }
 0x5ec   : > { %v10063_v34 = vpop.f32.mrf.mxu1  ;;  %10820 = vst.msk [vmem:[%s13666_s28 + $0xf8] sm:$0xf] %vm10787_vm4, %v12274_v45  ;;  %v10057_v49 = vadd.f32 %v10056_v30, %v9905_v2  ;;  %v12509_v62 = vadd.f32 %v12508_v18, %v12507_v33 }
 0x5ed   : > { %v12510_v41 = vpop.f32.mrf.mxu0 }
 0x5ee   : > { %v10064_v13 = vpop.f32.mrf.mxu1  ;;  %v12278_v32 = vpack.c.bf16 %v10057_v49, %v10057_v49  ;;  %v9910_v9 = vadd.f32 %v12509_v62, %v18660_v25 }
 0x5ef   : > { %v12511_v42 = vpop.f32.mrf.mxu0 }
 0x5f0   : > { %v10066_v6 = vpop.f32.mrf.mxu1  ;;  %10824 = vst.msk [vmem:[%s13666_s28 + $0x114] sm:$0xf] %vm10787_vm4, %v12278_v32  ;;  %v10062_v29 = vadd.f32 %v10061_v8, %v9910_v9  ;;  %v12512_v60 = vadd.f32 %v12511_v42, %v12510_v41 }
 0x5f1   : > { %v12513_v63 = vpop.f32.mrf.mxu0 }
 0x5f2   : > { %v10069_v53 = vpop.f32.mrf.mxu1  ;;  %v12282_v22 = vpack.c.bf16 %v10062_v29, %v10062_v29  ;;  %v9913_v31 = vadd.f32 %v12512_v60, %v18665_v40 }
 0x5f3   : > { %v12514_v54 = vpop.f32.mrf.mxu0 }
 0x5f4   : > { %v10071_v0 = vpop.f32.mrf.mxu1  ;;  %10828 = vst.msk [vmem:[%s13666_s28 + $0x130] sm:$0xf] %vm10787_vm4, %v12282_v22  ;;  %v10065_v58 = vadd.f32 %v10064_v13, %v9913_v31  ;;  %v12515_v20 = vadd.f32 %v12514_v54, %v12513_v63 }
 0x5f5   : > { %v12516_v25 = vpop.f32.mrf.mxu0 }
 0x5f6   : > { %v10072_v10 = vpop.f32.mrf.mxu1  ;;  %v12286_v39 = vpack.c.bf16 %v10065_v58, %v10065_v58  ;;  %v9918_v11 = vadd.f32 %v12515_v20, %v18670_v24 }
 0x5f7   : > { %v12517_v51 = vpop.f32.mrf.mxu0 }
 0x5f8   : > { %v10074_v59 = vpop.f32.mrf.mxu1  ;;  %10832 = vst.msk [vmem:[%s13666_s28 + $0x14c] sm:$0xf] %vm10787_vm4, %v12286_v39  ;;  %v10070_v27 = vadd.f32 %v10069_v53, %v9918_v11  ;;  %v12518_v1 = vadd.f32 %v12517_v51, %v12516_v25 }
 0x5f9   : > { %v12519_v40 = vpop.f32.mrf.mxu0 }
 0x5fa   : > { %v10077_v5 = vpop.f32.mrf.mxu1  ;;  %v12290_v21 = vpack.c.bf16 %v10070_v27, %v10070_v27  ;;  %v9921_v28 = vadd.f32 %v12518_v1, %v18675_v47 }
 0x5fb   : > { %v12520_v43 = vpop.f32.mrf.mxu0 }
 0x5fc   : > { %v10079_v4 = vpop.f32.mrf.mxu1  ;;  %10836 = vst.msk [vmem:[%s13666_s28 + $0x168] sm:$0xf] %vm10787_vm4, %v12290_v21  ;;  %v10073_v3 = vadd.f32 %v10072_v10, %v9921_v28  ;;  %v12521_v38 = vadd.f32 %v12520_v43, %v12519_v40 }
 0x5fd   : > { %v12522_v24 = vpop.f32.mrf.mxu0 }
 0x5fe   : > { %v10080_v30 = vpop.f32.mrf.mxu1  ;;  %v12294_v23 = vpack.c.bf16 %v10073_v3, %v10073_v3  ;;  %v9926_v48 = vadd.f32 %v12521_v38, %v18680_v7 }
 0x5ff   : > { %v12523_v46 = vpop.f32.mrf.mxu0 }
 0x600   : > { %v10082_v55 = vpop.f32.mrf.mxu1  ;;  %10840 = vst.msk [vmem:[%s13666_s28 + $0x184] sm:$0xf] %vm10787_vm4, %v12294_v23  ;;  %v10078_v26 = vadd.f32 %v10077_v5, %v9926_v48  ;;  %v12524_v15 = vadd.f32 %v12523_v46, %v12522_v24 }
 0x601   : > { %v12525_v47 = vpop.f32.mrf.mxu0 }
 0x602   : > { %v10085_v33 = vpop.f32.mrf.mxu1  ;;  %v12298_v8 = vpack.c.bf16 %v10078_v26, %v10078_v26  ;;  %v9929_v45 = vadd.f32 %v12524_v15, %v18685_v56 }
 0x603   : > { %v12526_v2 = vpop.f32.mrf.mxu0 }
 0x604   : > { %v10087_v18 = vpop.f32.mrf.mxu1  ;;  %10844 = vst.msk [vmem:[%s13666_s28 + $0x1a0] sm:$0xf] %vm10787_vm4, %v12298_v8  ;;  %v10081_v34 = vadd.f32 %v10080_v30, %v9929_v45  ;;  %v12527_v49 = vadd.f32 %v12526_v2, %v12525_v47 }
 0x605   : > { %v12528_v7 = vpop.f32.mrf.mxu0 }
 0x606   : > { %v10088_v62 = vpop.f32.mrf.mxu1  ;;  %v12302_v41 = vpack.c.bf16 %v10081_v34, %v10081_v34  ;;  %v9934_v13 = vadd.f32 %v12527_v49, %v18690_v36 }
 0x607   : > { %v12529_v32 = vpop.f32.mrf.mxu0 }
 0x608   : > { %v10090_v9 = vpop.f32.mrf.mxu1  ;;  %10848 = vst.msk [vmem:[%s13666_s28 + $0x1bc] sm:$0xf] %vm10787_vm4, %v12302_v41  ;;  %v10086_v42 = vadd.f32 %v10085_v33, %v9934_v13  ;;  %v12530_v6 = vadd.f32 %v12529_v32, %v12528_v7 }
 0x609   : > { %v12531_v56 = vpop.f32.mrf.mxu0 }
 0x60a   : > { %v10093_v29 = vpop.f32.mrf.mxu1  ;;  %v12306_v60 = vpack.c.bf16 %v10086_v42, %v10086_v42  ;;  %v9937_v63 = vadd.f32 %v12530_v6, %v18695_v37 }
 0x60b   : > { %v12532_v53 = vpop.f32.mrf.mxu0 }
 0x60c   : > { %v10095_v22 = vpop.f32.mrf.mxu1  ;;  %10852 = vst.msk [vmem:[%s13666_s28 + $0x1d8] sm:$0xf] %vm10787_vm4, %v12306_v60  ;;  %v10089_v31 = vadd.f32 %v10088_v62, %v9937_v63  ;;  %v12533_v54 = vadd.f32 %v12532_v53, %v12531_v56 }
 0x60d   : > { %v12534_v36 = vpop.f32.mrf.mxu0 }
 0x60e   : > { %v10096_v0 = vpop.f32.mrf.mxu1  ;;  %v12310_v58 = vpack.c.bf16 %v10089_v31, %v10089_v31  ;;  %v9942_v20 = vadd.f32 %v12533_v54, %v18700_v17 }
 0x60f   : > { %v12535_v25 = vpop.f32.mrf.mxu0 }
 0x610   : > { %v10098_v10 = vpop.f32.mrf.mxu1  ;;  %10856 = vst.msk [vmem:[%s13666_s28 + $0x1f4] sm:$0xf] %vm10787_vm4, %v12310_v58  ;;  %v10094_v39 = vadd.f32 %v10093_v29, %v9942_v20  ;;  %v12536_v11 = vadd.f32 %v12535_v25, %v12534_v36 }
 0x611   : > { %v12537_v37 = vpop.f32.mrf.mxu0 }
 0x612   : > { %v10101_v51 = vpop.f32.mrf.mxu1  ;;  %v12314_v59 = vpack.c.bf16 %v10094_v39, %v10094_v39  ;;  %v9945_v27 = vadd.f32 %v12536_v11, %v18705_v61 }
 0x613   : > { %v12538_v1 = vpop.f32.mrf.mxu0 }
 0x614   : > { %v10103_v40 = vpop.f32.mrf.mxu1  ;;  %10860 = vst.msk [vmem:[%s13666_s28 + $0x210] sm:$0xf] %vm10787_vm4, %v12314_v59  ;;  %v10097_v5 = vadd.f32 %v10096_v0, %v9945_v27  ;;  %v12539_v21 = vadd.f32 %v12538_v1, %v12537_v37 }
 0x615   : > { %v12540_v17 = vpop.f32.mrf.mxu0 }
 0x616   : > { %v10104_v28 = vpop.f32.mrf.mxu1  ;;  %v12318_v43 = vpack.c.bf16 %v10097_v5, %v10097_v5  ;;  %v9950_v4 = vadd.f32 %v12539_v21, %v18710_v12 }
 0x617   : > { %v12541_v3 = vpop.f32.mrf.mxu0 }
 0x618   : > { %v10106_v38 = vpop.f32.mrf.mxu1  ;;  %10864 = vst.msk [vmem:[%s13666_s28 + $0x22c] sm:$0xf] %vm10787_vm4, %v12318_v43  ;;  %v10102_v24 = vadd.f32 %v10101_v51, %v9950_v4  ;;  %v12542_v30 = vadd.f32 %v12541_v3, %v12540_v17 }
 0x619   : > { %v12543_v61 = vpop.f32.mrf.mxu0 }
 0x61a   : > { %v10109_v23 = vpop.f32.mrf.mxu1  ;;  %v12322_v48 = vpack.c.bf16 %v10102_v24, %v10102_v24  ;;  %v9953_v46 = vadd.f32 %v12542_v30, %v18715_v50 }
 0x61b   : > { %v12544_v55 = vpop.f32.mrf.mxu0 }
 0x61c   : > { %v10111_v26 = vpop.f32.mrf.mxu1  ;;  %10868 = vst.msk [vmem:[%s13666_s28 + $0x248] sm:$0xf] %vm10787_vm4, %v12322_v48  ;;  %v10105_v15 = vadd.f32 %v10104_v28, %v9953_v46  ;;  %v12545_v47 = vadd.f32 %v12544_v55, %v12543_v61 }
 0x61d   : > { %v12546_v12 = vpop.f32.mrf.mxu0 }
 0x61e   : > { %v10112_v33 = vpop.f32.mrf.mxu1  ;;  %v12326_v8 = vpack.c.bf16 %v10105_v15, %v10105_v15  ;;  %v9958_v45 = vadd.f32 %v12545_v47, %v18720_v44 }
 0x61f   : > { %v12547_v2 = vpop.f32.mrf.mxu0 }
 0x620   : > { %v10114_v18 = vpop.f32.mrf.mxu1  ;;  %10872 = vst.msk [vmem:[%s13666_s28 + $0x264] sm:$0xf] %vm10787_vm4, %v12326_v8  ;;  %v10110_v34 = vadd.f32 %v10109_v23, %v9958_v45  ;;  %v12548_v49 = vadd.f32 %v12547_v2, %v12546_v12 }
 0x621   : > { %v12549_v50 = vpop.f32.mrf.mxu0 }
 0x622   : > { %v10117_v7 = vpop.f32.mrf.mxu1  ;;  %v12330_v62 = vpack.c.bf16 %v10110_v34, %v10110_v34  ;;  %v9961_v41 = vadd.f32 %v12548_v49, %v18725_v19 }
 0x623   : > { %v12550_v13 = vpop.f32.mrf.mxu0 }
 0x624   : > { %v10119_v32 = vpop.f32.mrf.mxu1  ;;  %10876 = vst.msk [vmem:[%s13666_s28 + $0x280] sm:$0xf] %vm10787_vm4, %v12330_v62  ;;  %v10113_v9 = vadd.f32 %v10112_v33, %v9961_v41  ;;  %v12551_v42 = vadd.f32 %v12550_v13, %v12549_v50 }
 0x625   : > { %v12552_v44 = vpop.f32.mrf.mxu0 }
 0x626   : > { %v10120_v6 = vpop.f32.mrf.mxu1  ;;  %v12334_v56 = vpack.c.bf16 %v10113_v9, %v10113_v9  ;;  %v9966_v29 = vadd.f32 %v12551_v42, %v18730_v14 }
 0x627   : > { %v12553_v60 = vpop.f32.mrf.mxu0 }
 0x628   : > { %v10122_v63 = vpop.f32.mrf.mxu1  ;;  %10880 = vst.msk [vmem:[%s13666_s28 + $0x29c] sm:$0xf] %vm10787_vm4, %v12334_v56  ;;  %v10118_v53 = vadd.f32 %v10117_v7, %v9966_v29  ;;  %v12554_v22 = vadd.f32 %v12553_v60, %v12552_v44 }
 0x629   : > { %v12555_v19 = vpop.f32.mrf.mxu0 }
 0x62a   : > { %v10125_v31 = vpop.f32.mrf.mxu1  ;;  %v12338_v54 = vpack.c.bf16 %v10118_v53, %v10118_v53  ;;  %v9969_v36 = vadd.f32 %v12554_v22, %v18735_v52 }
 0x62b   : > { %v12556_v0 = vpop.f32.mrf.mxu0 }
 0x62c   : > { %v10127_v58 = vpop.f32.mrf.mxu1  ;;  %10884 = vst.msk [vmem:[%s13666_s28 + $0x2b8] sm:$0xf] %vm10787_vm4, %v12338_v54  ;;  %v10121_v20 = vadd.f32 %v10120_v6, %v9969_v36  ;;  %v12557_v25 = vadd.f32 %v12556_v0, %v12555_v19 }
 0x62d   : > { %v12558_v14 = vpop.f32.mrf.mxu0 }
 0x62e   : > { %v10128_v10 = vpop.f32.mrf.mxu1  ;;  %v12342_v39 = vpack.c.bf16 %v10121_v20, %v10121_v20  ;;  %v9974_v11 = vadd.f32 %v12557_v25, %v18740_v16 }
 0x62f   : > { %v12559_v37 = vpop.f32.mrf.mxu0 }
 0x630   : > { %v10130_v51 = vpop.f32.mrf.mxu1  ;;  %10888 = vst.msk [vmem:[%s13666_s28 + $0x2d4] sm:$0xf] %vm10787_vm4, %v12342_v39  ;;  %v10126_v59 = vadd.f32 %v10125_v31, %v9974_v11  ;;  %v12560_v27 = vadd.f32 %v12559_v37, %v12558_v14 }
 0x631   : > { %v12561_v52 = vpop.f32.mrf.mxu0 }
 0x632   : > { %v10133_v1 = vpop.f32.mrf.mxu1  ;;  %v12346_v40 = vpack.c.bf16 %v10126_v59, %v10126_v59  ;;  %v9977_v5 = vadd.f32 %v12560_v27, %v18745_v57 }
 0x633   : > { %v12562_v21 = vpop.f32.mrf.mxu0 }
 0x634   : > { %v10135_v17 = vpop.f32.mrf.mxu1  ;;  %10892 = vst.msk [vmem:[%s13666_s28 + $0x2f0] sm:$0xf] %vm10787_vm4, %v12346_v40  ;;  %v10129_v28 = vadd.f32 %v10128_v10, %v9977_v5  ;;  %v12563_v43 = vadd.f32 %v12562_v21, %v12561_v52 }
 0x635   : > { %v12564_v16 = vpop.f32.mrf.mxu0 }
 0x636   : > { %v10136_v4 = vpop.f32.mrf.mxu1  ;;  %v12350_v3 = vpack.c.bf16 %v10129_v28, %v10129_v28  ;;  %v9982_v38 = vadd.f32 %v12563_v43, %v18750_v35 }
 0x637   : > { %v12565_v24 = vpop.f32.mrf.mxu0 }
 0x638   : > { %v10137_v30 = vpop.f32.mrf.mxu1  ;;  %10896 = vst.msk [vmem:[%s13666_s28 + $0x30c] sm:$0xf] %vm10787_vm4, %v12350_v3  ;;  %v10134_v61 = vadd.f32 %v10133_v1, %v9982_v38 }
 0x63a   : > { %v12354_v23 = vpack.c.bf16 %v10134_v61, %v10134_v61 }
 0x63c   : > { %10900 = vst.msk [vmem:[%s13666_s28 + $0x328] sm:$0xf] %vm10787_vm4, %v12354_v23 }
 0x63d PF: > { %s15_s18 = sadd.s32 1, %s13616_s18  }
 0x63e   : > { %p12_p5 = scmp.ge.s32.totalorder %s15_s18, 5  }
 0x640   :  { %14 = sbr.rel (!%p12_p5) target bundleno = 1 (0x1), region = 74 }

</bundles_post_ra>
